<compile_context>
chip_gen: v6e
topology: v6e:2x2x1
jax: 0.10.0
libtpu: 0.0.40
codegen_flags: <defaults>
</compile_context>

<pallas_src>
import functools

import jax
import jax.numpy as jnp
from jax.experimental import pallas as pl
from jax.experimental.pallas import tpu as pltpu


def _round_up(a: int, m: int) -> int:
    return (a + m - 1) // m * m


def _intrvfl_kernel(idx_ref, keys_ref, wt_ref, o_ref, *, kappa, n_d_per_split):
    # idx_ref:  (TB, F)       precomputed thermometer indices (int32, in [0, D])
    # keys_ref: (F, TD)       random bipolar key hypervectors, current D tile
    # wt_ref:   (TD, Cp)      class prototypes, pre-transposed, lane-padded
    # o_ref:    (1, TB, Cp)   logits slab for this D-split, resident across the D reduction axis
    g = pl.program_id(0)          # D-split index (megacore axis for single-batch-tile cases)
    j = pl.program_id(2)          # D tile index within this split ("arbitrary" reduction axis)
    tb, F = idx_ref.shape
    td = keys_ref.shape[1]

    @pl.when(j == 0)
    def _():
        o_ref[...] = jnp.zeros_like(o_ref)

    # Global hypervector positions covered by this D tile (int32: exact compare for any D).
    d_start = (g * n_d_per_split + j) * td
    d_pos = jax.lax.broadcasted_iota(jnp.int32, (1, td), 1) + d_start            # (1, TD)

    # bind + bundle: per-feature 2-D updates; enc + one temp stay inside the vreg file.
    enc = jnp.zeros((tb, td), jnp.float32)
    for f in range(F):
        idx_col = idx_ref[:, f:f + 1]                                            # (TB, 1) int32
        key_row = keys_ref[f:f + 1, :]                                           # (1, TD)
        neg_row = -key_row                                                       # (1, TD) only
        mask = d_pos < idx_col                                                   # (TB, TD)
        enc = enc + jnp.where(mask, key_row, neg_row)                            # (TB, TD)

    # Optional clipping: exact, the full F sum completes inside this grid step.
    if kappa is not None:
        enc = jnp.clip(enc, -float(kappa), float(kappa))

    # dot_similarity against class prototypes, MXU-accumulated into the resident output block.
    o_ref[0] = o_ref[0] + jnp.dot(enc, wt_ref[...], preferred_element_type=jnp.float32)


def prepare_intrvfl_params(keys, weight):
    """One-time layout prep (cacheable): pad keys to lane-aligned D, build (Dp, Cp) weight^T."""
    keys = jnp.asarray(keys, jnp.float32)
    weight = jnp.asarray(weight, jnp.float32)
    F, D = keys.shape
    C, Dw = weight.shape
    assert D == Dw
    Dp = _round_up(D, 128)
    Cp = _round_up(max(C, 128), 128)
    keys_p = jnp.pad(keys, ((0, 0), (0, Dp - D))) if Dp > D else keys
    # Zero-padded rows/cols contribute exactly zero to the logits.
    wt = jnp.zeros((Dp, Cp), jnp.float32).at[:D, :C].set(weight.T)
    return keys_p, wt


def intrvfl_forward(x, keys, weight, *, kappa=None, tb=None, td=None, prepared=None):
    """IntRVFL forward: x (B, F), keys (F, D), weight (C, D) -> logits (B, C)."""
    x = jnp.asarray(x, jnp.float32)
    B, F = x.shape
    Fk, D = keys.shape
    C = weight.shape[0]
    assert F == Fk

    if prepared is None:
        prepared = prepare_intrvfl_params(keys, weight)
    keys_p, wt = prepared
    Dp, Cp = keys_p.shape[1], wt.shape[1]

    # ---- tile selection ---------------------------------------------------------------------
    if tb is None:
        tb = min(64, _round_up(B, 8))             # sublane-aligned batch tile
    tb = _round_up(tb, 8)
    Bp = _round_up(B, tb)

    if td is None:
        # enc accumulator budget: tb*td*4 B <= 64 KiB (<= 16 vregs), multiple of 128 lanes.
        td = max(128, ((64 * 1024) // (tb * 4)) // 128 * 128)
        # Bound double-buffered keys/weight tile VMEM to ~8 MiB (safe on v5e default scoped VMEM
        # and on v7x's smaller 64 MiB physical VMEM).
        while td > 128 and 2 * 4 * td * (F + Cp) > 8 * 1024 * 1024:
            td -= 128
    td = min(td, Dp)
    while Dp % td != 0:                           # Dp, td multiples of 128 -> terminates at 128
        td -= 128
    td = max(td, 128)
    n_d = Dp // td

    # v7x megacore: if only one batch tile, split the D reduction 2-ways on a parallel axis.
    n_splits = 2 if (Bp // tb == 1 and n_d >= 2 and n_d % 2 == 0) else 1
    n_d_per_split = n_d // n_splits

    # ---- hoisted encode prep: thermometer indices computed once (not per D tile) ------------
    idx = jnp.clip(jnp.round(x * D), 0.0, float(D)).astype(jnp.int32)            # (B, F)
    idx_p = jnp.pad(idx, ((0, Bp - B), (0, 0))) if Bp > B else idx               # pad rows sliced off

    kernel = functools.partial(_intrvfl_kernel, kappa=kappa, n_d_per_split=n_d_per_split)

    out = pl.pallas_call(
        kernel,
        out_shape=jax.ShapeDtypeStruct((n_splits, Bp, Cp), jnp.float32),
        grid_spec=pltpu.PrefetchScalarGridSpec(
            num_scalar_prefetch=0,
            grid=(n_splits, Bp // tb, n_d_per_split),
            in_specs=[
                pl.BlockSpec((tb, F), lambda g, i, j: (i, 0)),                          # idx
                pl.BlockSpec((F, td), lambda g, i, j: (0, g * n_d_per_split + j)),      # keys
                pl.BlockSpec((td, Cp), lambda g, i, j: (g * n_d_per_split + j, 0)),     # weight^T
            ],
            out_specs=pl.BlockSpec((1, tb, Cp), lambda g, i, j: (g, i, 0)),
        ),
        compiler_params=pltpu.CompilerParams(
            dimension_semantics=("parallel", "parallel", "arbitrary"),
            vmem_limit_bytes=32 * 1024 * 1024),
    )(idx_p, keys_p, wt)

    logits = jnp.sum(out, axis=0)                 # exact: D-splits cover disjoint hypervector ranges
    return logits[:B, :C]


def intrvfl_reference(x, keys, weight, *, kappa=None):
    """Pure-JAX reference of the IntRVFL forward pass."""
    D = keys.shape[1]
    idx = jnp.clip(jnp.round(x * D), 0.0, float(D))                              # (B, F)
    d = jnp.arange(D, dtype=jnp.float32)
    therm = jnp.where(d[None, None, :] < idx[:, :, None], 1.0, -1.0)             # (B, F, D)
    enc = jnp.sum(therm * keys[None, :, :], axis=1)                              # (B, D)
    if kappa is not None:
        enc = jnp.clip(enc, -float(kappa), float(kappa))
    return enc @ weight.T


if __name__ == "__main__":
    # Shapes consistent with the module: IntRVFL(in_features=64, dimensions=1024,
    # out_features=10, kappa=3) on a batch of 8 samples with features in [0, 1].
    B, F, D, C = 8, 64, 1024, 10
    kappa = 3

    key = jax.random.PRNGKey(0)
    kx, kk, kw = jax.random.split(key, 3)

    x = jax.random.uniform(kx, (B, F), dtype=jnp.float32)                        # inputs in [0, 1]
    # Random bipolar key hypervectors (torchhd.embeddings.Random, MAP VSA).
    keys = jnp.where(jax.random.bernoulli(kk, 0.5, (F, D)), 1.0, -1.0).astype(jnp.float32)
    # Module zero-inits weight; use random values so dot_similarity is exercised non-trivially
    # (as it would be after fit_ridge_regression).
    weight = jax.random.normal(kw, (C, D), dtype=jnp.float32) * 0.05

    prepared = prepare_intrvfl_params(keys, weight)                              # one-time prep

    # Default tiling (single D tile for this small D).
    out = jax.block_until_ready(intrvfl_forward(x, keys, weight, kappa=kappa, prepared=prepared))
    ref = intrvfl_reference(x, keys, weight, kappa=kappa)
    assert out.shape == (B, C)
    assert jnp.allclose(out, ref, atol=1e-4, rtol=1e-4), (out, ref)

    # Exercise the multi-D-tile accumulation path AND the 2-way D split (v7x megacore path).
    out2 = jax.block_until_ready(
        intrvfl_forward(x, keys, weight, kappa=kappa, tb=8, td=256, prepared=prepared))
    assert jnp.allclose(out2, ref, atol=1e-4, rtol=1e-4), (out2, ref)

    # No-kappa path.
    out3 = jax.block_until_ready(intrvfl_forward(x, keys, weight, prepared=prepared))
    ref3 = intrvfl_reference(x, keys, weight)
    assert jnp.allclose(out3, ref3, atol=1e-4, rtol=1e-4), (out3, ref3)

    print("KERNEL_OK")
</pallas_src>

<mosaic_0001>
module attributes {stable_mosaic.version = 11 : i64} {
  func.func @_intrvfl_kernel(%arg0: i32, %arg1: i32, %arg2: i32, %arg3: memref<8x64xi32, #tpu.memory_space<vmem>>, %arg4: memref<64x1024xf32, #tpu.memory_space<vmem>>, %arg5: memref<1024x128xf32, #tpu.memory_space<vmem>>, %arg6: memref<1x8x128xf32, #tpu.memory_space<vmem>>) attributes {dimension_semantics = [#tpu.dimension_semantics<parallel>, #tpu.dimension_semantics<parallel>, #tpu.dimension_semantics<arbitrary>], iteration_bounds = array<i64: 1, 1, 1>, scalar_prefetch = 0 : i64, scratch_operands = 0 : i64, tpu.core_type = #tpu.core_type<tc>, window_params = [{transform_indices = @transform_0, window_bounds = array<i64: 8, 64>}, {transform_indices = @transform_1, window_bounds = array<i64: 64, 1024>}, {transform_indices = @transform_2, window_bounds = array<i64: 1024, 128>}, {transform_indices = @transform_3, window_bounds = array<i64: 1, 8, 128>}]} {
    %c0_i32 = arith.constant 0 : i32
    %0 = arith.cmpi eq, %arg2, %c0_i32 : i32
    %1 = arith.extui %0 : i1 to i32
    %c0_i32_0 = arith.constant 0 : i32
    %2 = arith.cmpi ne, %1, %c0_i32_0 : i32
    scf.if %2 {
      %cst_268 = arith.constant 0.000000e+00 : f32
      %854 = vector.broadcast %cst_268 : f32 to vector<1x8x128xf32>
      %c0_269 = arith.constant 0 : index
      %c0_270 = arith.constant 0 : index
      %c0_271 = arith.constant 0 : index
      %855 = vector.load %arg6[%c0_269, %c0_270, %c0_271] : memref<1x8x128xf32, #tpu.memory_space<vmem>>, vector<1x8x128xf32>
      tpu.vector_store %arg6[%c0_269, %c0_270, %c0_271], %854 {strides = array<i32>} : memref<1x8x128xf32, #tpu.memory_space<vmem>>, vector<1x8x128xf32>,
    } else {
    }
    %c1_i32 = arith.constant 1 : i32
    %3 = arith.muli %arg0, %c1_i32 : i32
    %4 = arith.addi %3, %arg2 : i32
    %c1024_i32 = arith.constant 1024 : i32
    %5 = arith.muli %4, %c1024_i32 : i32
    %6 = tpu.iota {dimensions = array<i32: 1>} : vector<1x1024xi32>
    %7 = vector.broadcast %5 : i32 to vector<1x1024xi32>
    %8 = arith.addi %6, %7 : vector<1x1024xi32>
    %cst = arith.constant 0.000000e+00 : f32
    %9 = vector.broadcast %cst : f32 to vector<8x1024xf32>
    %c0 = arith.constant 0 : index
    %c0_1 = arith.constant 0 : index
    %10 = vector.load %arg3[%c0, %c0_1] : memref<8x64xi32, #tpu.memory_space<vmem>>, vector<8x1xi32>
    %c0_2 = arith.constant 0 : index
    %c0_3 = arith.constant 0 : index
    %11 = vector.load %arg4[%c0_2, %c0_3] : memref<64x1024xf32, #tpu.memory_space<vmem>>, vector<1x1024xf32>
    %cst_4 = arith.constant 0.000000e+00 : f32
    %12 = vector.broadcast %cst_4 : f32 to vector<1x1024xf32>
    %13 = arith.subf %12, %11 : vector<1x1024xf32>
    %14 = vector.broadcast %8 : vector<1x1024xi32> to vector<8x1024xi32>
    %15 = vector.broadcast %10 : vector<8x1xi32> to vector<8x1024xi32>
    %16 = arith.cmpi slt, %14, %15 : vector<8x1024xi32>
    %17 = vector.shape_cast %11 : vector<1x1024xf32> to vector<1x1024xf32>
    %18 = vector.broadcast %17 : vector<1x1024xf32> to vector<8x1024xf32>
    %19 = vector.shape_cast %13 : vector<1x1024xf32> to vector<1x1024xf32>
    %20 = vector.broadcast %19 : vector<1x1024xf32> to vector<8x1024xf32>
    %21 = arith.select %16, %18, %20 : vector<8x1024xi1>, vector<8x1024xf32>
    %22 = arith.addf %9, %21 : vector<8x1024xf32>
    %c0_5 = arith.constant 0 : index
    %c1 = arith.constant 1 : index
    %23 = vector.load %arg3[%c0_5, %c1] : memref<8x64xi32, #tpu.memory_space<vmem>>, vector<8x1xi32>
    %c1_6 = arith.constant 1 : index
    %c0_7 = arith.constant 0 : index
    %24 = vector.load %arg4[%c1_6, %c0_7] : memref<64x1024xf32, #tpu.memory_space<vmem>>, vector<1x1024xf32>
    %cst_8 = arith.constant 0.000000e+00 : f32
    %25 = vector.broadcast %cst_8 : f32 to vector<1x1024xf32>
    %26 = arith.subf %25, %24 : vector<1x1024xf32>
    %27 = vector.broadcast %8 : vector<1x1024xi32> to vector<8x1024xi32>
    %28 = vector.broadcast %23 : vector<8x1xi32> to vector<8x1024xi32>
    %29 = arith.cmpi slt, %27, %28 : vector<8x1024xi32>
    %30 = vector.shape_cast %24 : vector<1x1024xf32> to vector<1x1024xf32>
    %31 = vector.broadcast %30 : vector<1x1024xf32> to vector<8x1024xf32>
    %32 = vector.shape_cast %26 : vector<1x1024xf32> to vector<1x1024xf32>
    %33 = vector.broadcast %32 : vector<1x1024xf32> to vector<8x1024xf32>
    %34 = arith.select %29, %31, %33 : vector<8x1024xi1>, vector<8x1024xf32>
    %35 = arith.addf %22, %34 : vector<8x1024xf32>
    %c0_9 = arith.constant 0 : index
    %c2 = arith.constant 2 : index
    %36 = vector.load %arg3[%c0_9, %c2] : memref<8x64xi32, #tpu.memory_space<vmem>>, vector<8x1xi32>
    %c2_10 = arith.constant 2 : index
    %c0_11 = arith.constant 0 : index
    %37 = vector.load %arg4[%c2_10, %c0_11] : memref<64x1024xf32, #tpu.memory_space<vmem>>, vector<1x1024xf32>
    %cst_12 = arith.constant 0.000000e+00 : f32
    %38 = vector.broadcast %cst_12 : f32 to vector<1x1024xf32>
    %39 = arith.subf %38, %37 : vector<1x1024xf32>
    %40 = vector.broadcast %8 : vector<1x1024xi32> to vector<8x1024xi32>
    %41 = vector.broadcast %36 : vector<8x1xi32> to vector<8x1024xi32>
    %42 = arith.cmpi slt, %40, %41 : vector<8x1024xi32>
    %43 = vector.shape_cast %37 : vector<1x1024xf32> to vector<1x1024xf32>
    %44 = vector.broadcast %43 : vector<1x1024xf32> to vector<8x1024xf32>
    %45 = vector.shape_cast %39 : vector<1x1024xf32> to vector<1x1024xf32>
    %46 = vector.broadcast %45 : vector<1x1024xf32> to vector<8x1024xf32>
    %47 = arith.select %42, %44, %46 : vector<8x1024xi1>, vector<8x1024xf32>
    %48 = arith.addf %35, %47 : vector<8x1024xf32>
    %c0_13 = arith.constant 0 : index
    %c3 = arith.constant 3 : index
    %49 = vector.load %arg3[%c0_13, %c3] : memref<8x64xi32, #tpu.memory_space<vmem>>, vector<8x1xi32>
    %c3_14 = arith.constant 3 : index
    %c0_15 = arith.constant 0 : index
    %50 = vector.load %arg4[%c3_14, %c0_15] : memref<64x1024xf32, #tpu.memory_space<vmem>>, vector<1x1024xf32>
    %cst_16 = arith.constant 0.000000e+00 : f32
    %51 = vector.broadcast %cst_16 : f32 to vector<1x1024xf32>
    %52 = arith.subf %51, %50 : vector<1x1024xf32>
    %53 = vector.broadcast %8 : vector<1x1024xi32> to vector<8x1024xi32>
    %54 = vector.broadcast %49 : vector<8x1xi32> to vector<8x1024xi32>
    %55 = arith.cmpi slt, %53, %54 : vector<8x1024xi32>
    %56 = vector.shape_cast %50 : vector<1x1024xf32> to vector<1x1024xf32>
    %57 = vector.broadcast %56 : vector<1x1024xf32> to vector<8x1024xf32>
    %58 = vector.shape_cast %52 : vector<1x1024xf32> to vector<1x1024xf32>
    %59 = vector.broadcast %58 : vector<1x1024xf32> to vector<8x1024xf32>
    %60 = arith.select %55, %57, %59 : vector<8x1024xi1>, vector<8x1024xf32>
    %61 = arith.addf %48, %60 : vector<8x1024xf32>
    %c0_17 = arith.constant 0 : index
    %c4 = arith.constant 4 : index
    %62 = vector.load %arg3[%c0_17, %c4] : memref<8x64xi32, #tpu.memory_space<vmem>>, vector<8x1xi32>
    %c4_18 = arith.constant 4 : index
    %c0_19 = arith.constant 0 : index
    %63 = vector.load %arg4[%c4_18, %c0_19] : memref<64x1024xf32, #tpu.memory_space<vmem>>, vector<1x1024xf32>
    %cst_20 = arith.constant 0.000000e+00 : f32
    %64 = vector.broadcast %cst_20 : f32 to vector<1x1024xf32>
    %65 = arith.subf %64, %63 : vector<1x1024xf32>
    %66 = vector.broadcast %8 : vector<1x1024xi32> to vector<8x1024xi32>
    %67 = vector.broadcast %62 : vector<8x1xi32> to vector<8x1024xi32>
    %68 = arith.cmpi slt, %66, %67 : vector<8x1024xi32>
    %69 = vector.shape_cast %63 : vector<1x1024xf32> to vector<1x1024xf32>
    %70 = vector.broadcast %69 : vector<1x1024xf32> to vector<8x1024xf32>
    %71 = vector.shape_cast %65 : vector<1x1024xf32> to vector<1x1024xf32>
    %72 = vector.broadcast %71 : vector<1x1024xf32> to vector<8x1024xf32>
    %73 = arith.select %68, %70, %72 : vector<8x1024xi1>, vector<8x1024xf32>
    %74 = arith.addf %61, %73 : vector<8x1024xf32>
    %c0_21 = arith.constant 0 : index
    %c5 = arith.constant 5 : index
    %75 = vector.load %arg3[%c0_21, %c5] : memref<8x64xi32, #tpu.memory_space<vmem>>, vector<8x1xi32>
    %c5_22 = arith.constant 5 : index
    %c0_23 = arith.constant 0 : index
    %76 = vector.load %arg4[%c5_22, %c0_23] : memref<64x1024xf32, #tpu.memory_space<vmem>>, vector<1x1024xf32>
    %cst_24 = arith.constant 0.000000e+00 : f32
    %77 = vector.broadcast %cst_24 : f32 to vector<1x1024xf32>
    %78 = arith.subf %77, %76 : vector<1x1024xf32>
    %79 = vector.broadcast %8 : vector<1x1024xi32> to vector<8x1024xi32>
    %80 = vector.broadcast %75 : vector<8x1xi32> to vector<8x1024xi32>
    %81 = arith.cmpi slt, %79, %80 : vector<8x1024xi32>
    %82 = vector.shape_cast %76 : vector<1x1024xf32> to vector<1x1024xf32>
    %83 = vector.broadcast %82 : vector<1x1024xf32> to vector<8x1024xf32>
    %84 = vector.shape_cast %78 : vector<1x1024xf32> to vector<1x1024xf32>
    %85 = vector.broadcast %84 : vector<1x1024xf32> to vector<8x1024xf32>
    %86 = arith.select %81, %83, %85 : vector<8x1024xi1>, vector<8x1024xf32>
    %87 = arith.addf %74, %86 : vector<8x1024xf32>
    %c0_25 = arith.constant 0 : index
    %c6 = arith.constant 6 : index
    %88 = vector.load %arg3[%c0_25, %c6] : memref<8x64xi32, #tpu.memory_space<vmem>>, vector<8x1xi32>
    %c6_26 = arith.constant 6 : index
    %c0_27 = arith.constant 0 : index
    %89 = vector.load %arg4[%c6_26, %c0_27] : memref<64x1024xf32, #tpu.memory_space<vmem>>, vector<1x1024xf32>
    %cst_28 = arith.constant 0.000000e+00 : f32
    %90 = vector.broadcast %cst_28 : f32 to vector<1x1024xf32>
    %91 = arith.subf %90, %89 : vector<1x1024xf32>
    %92 = vector.broadcast %8 : vector<1x1024xi32> to vector<8x1024xi32>
    %93 = vector.broadcast %88 : vector<8x1xi32> to vector<8x1024xi32>
    %94 = arith.cmpi slt, %92, %93 : vector<8x1024xi32>
    %95 = vector.shape_cast %89 : vector<1x1024xf32> to vector<1x1024xf32>
    %96 = vector.broadcast %95 : vector<1x1024xf32> to vector<8x1024xf32>
    %97 = vector.shape_cast %91 : vector<1x1024xf32> to vector<1x1024xf32>
    %98 = vector.broadcast %97 : vector<1x1024xf32> to vector<8x1024xf32>
    %99 = arith.select %94, %96, %98 : vector<8x1024xi1>, vector<8x1024xf32>
    %100 = arith.addf %87, %99 : vector<8x1024xf32>
    %c0_29 = arith.constant 0 : index
    %c7 = arith.constant 7 : index
    %101 = vector.load %arg3[%c0_29, %c7] : memref<8x64xi32, #tpu.memory_space<vmem>>, vector<8x1xi32>
    %c7_30 = arith.constant 7 : index
    %c0_31 = arith.constant 0 : index
    %102 = vector.load %arg4[%c7_30, %c0_31] : memref<64x1024xf32, #tpu.memory_space<vmem>>, vector<1x1024xf32>
    %cst_32 = arith.constant 0.000000e+00 : f32
    %103 = vector.broadcast %cst_32 : f32 to vector<1x1024xf32>
    %104 = arith.subf %103, %102 : vector<1x1024xf32>
    %105 = vector.broadcast %8 : vector<1x1024xi32> to vector<8x1024xi32>
    %106 = vector.broadcast %101 : vector<8x1xi32> to vector<8x1024xi32>
    %107 = arith.cmpi slt, %105, %106 : vector<8x1024xi32>
    %108 = vector.shape_cast %102 : vector<1x1024xf32> to vector<1x1024xf32>
    %109 = vector.broadcast %108 : vector<1x1024xf32> to vector<8x1024xf32>
    %110 = vector.shape_cast %104 : vector<1x1024xf32> to vector<1x1024xf32>
    %111 = vector.broadcast %110 : vector<1x1024xf32> to vector<8x1024xf32>
    %112 = arith.select %107, %109, %111 : vector<8x1024xi1>, vector<8x1024xf32>
    %113 = arith.addf %100, %112 : vector<8x1024xf32>
    %c0_33 = arith.constant 0 : index
    %c8 = arith.constant 8 : index
    %114 = vector.load %arg3[%c0_33, %c8] : memref<8x64xi32, #tpu.memory_space<vmem>>, vector<8x1xi32>
    %c8_34 = arith.constant 8 : index
    %c0_35 = arith.constant 0 : index
    %115 = vector.load %arg4[%c8_34, %c0_35] : memref<64x1024xf32, #tpu.memory_space<vmem>>, vector<1x1024xf32>
    %cst_36 = arith.constant 0.000000e+00 : f32
    %116 = vector.broadcast %cst_36 : f32 to vector<1x1024xf32>
    %117 = arith.subf %116, %115 : vector<1x1024xf32>
    %118 = vector.broadcast %8 : vector<1x1024xi32> to vector<8x1024xi32>
    %119 = vector.broadcast %114 : vector<8x1xi32> to vector<8x1024xi32>
    %120 = arith.cmpi slt, %118, %119 : vector<8x1024xi32>
    %121 = vector.shape_cast %115 : vector<1x1024xf32> to vector<1x1024xf32>
    %122 = vector.broadcast %121 : vector<1x1024xf32> to vector<8x1024xf32>
    %123 = vector.shape_cast %117 : vector<1x1024xf32> to vector<1x1024xf32>
    %124 = vector.broadcast %123 : vector<1x1024xf32> to vector<8x1024xf32>
    %125 = arith.select %120, %122, %124 : vector<8x1024xi1>, vector<8x1024xf32>
    %126 = arith.addf %113, %125 : vector<8x1024xf32>
    %c0_37 = arith.constant 0 : index
    %c9 = arith.constant 9 : index
    %127 = vector.load %arg3[%c0_37, %c9] : memref<8x64xi32, #tpu.memory_space<vmem>>, vector<8x1xi32>
    %c9_38 = arith.constant 9 : index
    %c0_39 = arith.constant 0 : index
    %128 = vector.load %arg4[%c9_38, %c0_39] : memref<64x1024xf32, #tpu.memory_space<vmem>>, vector<1x1024xf32>
    %cst_40 = arith.constant 0.000000e+00 : f32
    %129 = vector.broadcast %cst_40 : f32 to vector<1x1024xf32>
    %130 = arith.subf %129, %128 : vector<1x1024xf32>
    %131 = vector.broadcast %8 : vector<1x1024xi32> to vector<8x1024xi32>
    %132 = vector.broadcast %127 : vector<8x1xi32> to vector<8x1024xi32>
    %133 = arith.cmpi slt, %131, %132 : vector<8x1024xi32>
    %134 = vector.shape_cast %128 : vector<1x1024xf32> to vector<1x1024xf32>
    %135 = vector.broadcast %134 : vector<1x1024xf32> to vector<8x1024xf32>
    %136 = vector.shape_cast %130 : vector<1x1024xf32> to vector<1x1024xf32>
    %137 = vector.broadcast %136 : vector<1x1024xf32> to vector<8x1024xf32>
    %138 = arith.select %133, %135, %137 : vector<8x1024xi1>, vector<8x1024xf32>
    %139 = arith.addf %126, %138 : vector<8x1024xf32>
    %c0_41 = arith.constant 0 : index
    %c10 = arith.constant 10 : index
    %140 = vector.load %arg3[%c0_41, %c10] : memref<8x64xi32, #tpu.memory_space<vmem>>, vector<8x1xi32>
    %c10_42 = arith.constant 10 : index
    %c0_43 = arith.constant 0 : index
    %141 = vector.load %arg4[%c10_42, %c0_43] : memref<64x1024xf32, #tpu.memory_space<vmem>>, vector<1x1024xf32>
    %cst_44 = arith.constant 0.000000e+00 : f32
    %142 = vector.broadcast %cst_44 : f32 to vector<1x1024xf32>
    %143 = arith.subf %142, %141 : vector<1x1024xf32>
    %144 = vector.broadcast %8 : vector<1x1024xi32> to vector<8x1024xi32>
    %145 = vector.broadcast %140 : vector<8x1xi32> to vector<8x1024xi32>
    %146 = arith.cmpi slt, %144, %145 : vector<8x1024xi32>
    %147 = vector.shape_cast %141 : vector<1x1024xf32> to vector<1x1024xf32>
    %148 = vector.broadcast %147 : vector<1x1024xf32> to vector<8x1024xf32>
    %149 = vector.shape_cast %143 : vector<1x1024xf32> to vector<1x1024xf32>
    %150 = vector.broadcast %149 : vector<1x1024xf32> to vector<8x1024xf32>
    %151 = arith.select %146, %148, %150 : vector<8x1024xi1>, vector<8x1024xf32>
    %152 = arith.addf %139, %151 : vector<8x1024xf32>
    %c0_45 = arith.constant 0 : index
    %c11 = arith.constant 11 : index
    %153 = vector.load %arg3[%c0_45, %c11] : memref<8x64xi32, #tpu.memory_space<vmem>>, vector<8x1xi32>
    %c11_46 = arith.constant 11 : index
    %c0_47 = arith.constant 0 : index
    %154 = vector.load %arg4[%c11_46, %c0_47] : memref<64x1024xf32, #tpu.memory_space<vmem>>, vector<1x1024xf32>
    %cst_48 = arith.constant 0.000000e+00 : f32
    %155 = vector.broadcast %cst_48 : f32 to vector<1x1024xf32>
    %156 = arith.subf %155, %154 : vector<1x1024xf32>
    %157 = vector.broadcast %8 : vector<1x1024xi32> to vector<8x1024xi32>
    %158 = vector.broadcast %153 : vector<8x1xi32> to vector<8x1024xi32>
    %159 = arith.cmpi slt, %157, %158 : vector<8x1024xi32>
    %160 = vector.shape_cast %154 : vector<1x1024xf32> to vector<1x1024xf32>
    %161 = vector.broadcast %160 : vector<1x1024xf32> to vector<8x1024xf32>
    %162 = vector.shape_cast %156 : vector<1x1024xf32> to vector<1x1024xf32>
    %163 = vector.broadcast %162 : vector<1x1024xf32> to vector<8x1024xf32>
    %164 = arith.select %159, %161, %163 : vector<8x1024xi1>, vector<8x1024xf32>
    %165 = arith.addf %152, %164 : vector<8x1024xf32>
    %c0_49 = arith.constant 0 : index
    %c12 = arith.constant 12 : index
    %166 = vector.load %arg3[%c0_49, %c12] : memref<8x64xi32, #tpu.memory_space<vmem>>, vector<8x1xi32>
    %c12_50 = arith.constant 12 : index
    %c0_51 = arith.constant 0 : index
    %167 = vector.load %arg4[%c12_50, %c0_51] : memref<64x1024xf32, #tpu.memory_space<vmem>>, vector<1x1024xf32>
    %cst_52 = arith.constant 0.000000e+00 : f32
    %168 = vector.broadcast %cst_52 : f32 to vector<1x1024xf32>
    %169 = arith.subf %168, %167 : vector<1x1024xf32>
    %170 = vector.broadcast %8 : vector<1x1024xi32> to vector<8x1024xi32>
    %171 = vector.broadcast %166 : vector<8x1xi32> to vector<8x1024xi32>
    %172 = arith.cmpi slt, %170, %171 : vector<8x1024xi32>
    %173 = vector.shape_cast %167 : vector<1x1024xf32> to vector<1x1024xf32>
    %174 = vector.broadcast %173 : vector<1x1024xf32> to vector<8x1024xf32>
    %175 = vector.shape_cast %169 : vector<1x1024xf32> to vector<1x1024xf32>
    %176 = vector.broadcast %175 : vector<1x1024xf32> to vector<8x1024xf32>
    %177 = arith.select %172, %174, %176 : vector<8x1024xi1>, vector<8x1024xf32>
    %178 = arith.addf %165, %177 : vector<8x1024xf32>
    %c0_53 = arith.constant 0 : index
    %c13 = arith.constant 13 : index
    %179 = vector.load %arg3[%c0_53, %c13] : memref<8x64xi32, #tpu.memory_space<vmem>>, vector<8x1xi32>
    %c13_54 = arith.constant 13 : index
    %c0_55 = arith.constant 0 : index
    %180 = vector.load %arg4[%c13_54, %c0_55] : memref<64x1024xf32, #tpu.memory_space<vmem>>, vector<1x1024xf32>
    %cst_56 = arith.constant 0.000000e+00 : f32
    %181 = vector.broadcast %cst_56 : f32 to vector<1x1024xf32>
    %182 = arith.subf %181, %180 : vector<1x1024xf32>
    %183 = vector.broadcast %8 : vector<1x1024xi32> to vector<8x1024xi32>
    %184 = vector.broadcast %179 : vector<8x1xi32> to vector<8x1024xi32>
    %185 = arith.cmpi slt, %183, %184 : vector<8x1024xi32>
    %186 = vector.shape_cast %180 : vector<1x1024xf32> to vector<1x1024xf32>
    %187 = vector.broadcast %186 : vector<1x1024xf32> to vector<8x1024xf32>
    %188 = vector.shape_cast %182 : vector<1x1024xf32> to vector<1x1024xf32>
    %189 = vector.broadcast %188 : vector<1x1024xf32> to vector<8x1024xf32>
    %190 = arith.select %185, %187, %189 : vector<8x1024xi1>, vector<8x1024xf32>
    %191 = arith.addf %178, %190 : vector<8x1024xf32>
    %c0_57 = arith.constant 0 : index
    %c14 = arith.constant 14 : index
    %192 = vector.load %arg3[%c0_57, %c14] : memref<8x64xi32, #tpu.memory_space<vmem>>, vector<8x1xi32>
    %c14_58 = arith.constant 14 : index
    %c0_59 = arith.constant 0 : index
    %193 = vector.load %arg4[%c14_58, %c0_59] : memref<64x1024xf32, #tpu.memory_space<vmem>>, vector<1x1024xf32>
    %cst_60 = arith.constant 0.000000e+00 : f32
    %194 = vector.broadcast %cst_60 : f32 to vector<1x1024xf32>
    %195 = arith.subf %194, %193 : vector<1x1024xf32>
    %196 = vector.broadcast %8 : vector<1x1024xi32> to vector<8x1024xi32>
    %197 = vector.broadcast %192 : vector<8x1xi32> to vector<8x1024xi32>
    %198 = arith.cmpi slt, %196, %197 : vector<8x1024xi32>
    %199 = vector.shape_cast %193 : vector<1x1024xf32> to vector<1x1024xf32>
    %200 = vector.broadcast %199 : vector<1x1024xf32> to vector<8x1024xf32>
    %201 = vector.shape_cast %195 : vector<1x1024xf32> to vector<1x1024xf32>
    %202 = vector.broadcast %201 : vector<1x1024xf32> to vector<8x1024xf32>
    %203 = arith.select %198, %200, %202 : vector<8x1024xi1>, vector<8x1024xf32>
    %204 = arith.addf %191, %203 : vector<8x1024xf32>
    %c0_61 = arith.constant 0 : index
    %c15 = arith.constant 15 : index
    %205 = vector.load %arg3[%c0_61, %c15] : memref<8x64xi32, #tpu.memory_space<vmem>>, vector<8x1xi32>
    %c15_62 = arith.constant 15 : index
    %c0_63 = arith.constant 0 : index
    %206 = vector.load %arg4[%c15_62, %c0_63] : memref<64x1024xf32, #tpu.memory_space<vmem>>, vector<1x1024xf32>
    %cst_64 = arith.constant 0.000000e+00 : f32
    %207 = vector.broadcast %cst_64 : f32 to vector<1x1024xf32>
    %208 = arith.subf %207, %206 : vector<1x1024xf32>
    %209 = vector.broadcast %8 : vector<1x1024xi32> to vector<8x1024xi32>
    %210 = vector.broadcast %205 : vector<8x1xi32> to vector<8x1024xi32>
    %211 = arith.cmpi slt, %209, %210 : vector<8x1024xi32>
    %212 = vector.shape_cast %206 : vector<1x1024xf32> to vector<1x1024xf32>
    %213 = vector.broadcast %212 : vector<1x1024xf32> to vector<8x1024xf32>
    %214 = vector.shape_cast %208 : vector<1x1024xf32> to vector<1x1024xf32>
    %215 = vector.broadcast %214 : vector<1x1024xf32> to vector<8x1024xf32>
    %216 = arith.select %211, %213, %215 : vector<8x1024xi1>, vector<8x1024xf32>
    %217 = arith.addf %204, %216 : vector<8x1024xf32>
    %c0_65 = arith.constant 0 : index
    %c16 = arith.constant 16 : index
    %218 = vector.load %arg3[%c0_65, %c16] : memref<8x64xi32, #tpu.memory_space<vmem>>, vector<8x1xi32>
    %c16_66 = arith.constant 16 : index
    %c0_67 = arith.constant 0 : index
    %219 = vector.load %arg4[%c16_66, %c0_67] : memref<64x1024xf32, #tpu.memory_space<vmem>>, vector<1x1024xf32>
    %cst_68 = arith.constant 0.000000e+00 : f32
    %220 = vector.broadcast %cst_68 : f32 to vector<1x1024xf32>
    %221 = arith.subf %220, %219 : vector<1x1024xf32>
    %222 = vector.broadcast %8 : vector<1x1024xi32> to vector<8x1024xi32>
    %223 = vector.broadcast %218 : vector<8x1xi32> to vector<8x1024xi32>
    %224 = arith.cmpi slt, %222, %223 : vector<8x1024xi32>
    %225 = vector.shape_cast %219 : vector<1x1024xf32> to vector<1x1024xf32>
    %226 = vector.broadcast %225 : vector<1x1024xf32> to vector<8x1024xf32>
    %227 = vector.shape_cast %221 : vector<1x1024xf32> to vector<1x1024xf32>
    %228 = vector.broadcast %227 : vector<1x1024xf32> to vector<8x1024xf32>
    %229 = arith.select %224, %226, %228 : vector<8x1024xi1>, vector<8x1024xf32>
    %230 = arith.addf %217, %229 : vector<8x1024xf32>
    %c0_69 = arith.constant 0 : index
    %c17 = arith.constant 17 : index
    %231 = vector.load %arg3[%c0_69, %c17] : memref<8x64xi32, #tpu.memory_space<vmem>>, vector<8x1xi32>
    %c17_70 = arith.constant 17 : index
    %c0_71 = arith.constant 0 : index
    %232 = vector.load %arg4[%c17_70, %c0_71] : memref<64x1024xf32, #tpu.memory_space<vmem>>, vector<1x1024xf32>
    %cst_72 = arith.constant 0.000000e+00 : f32
    %233 = vector.broadcast %cst_72 : f32 to vector<1x1024xf32>
    %234 = arith.subf %233, %232 : vector<1x1024xf32>
    %235 = vector.broadcast %8 : vector<1x1024xi32> to vector<8x1024xi32>
    %236 = vector.broadcast %231 : vector<8x1xi32> to vector<8x1024xi32>
    %237 = arith.cmpi slt, %235, %236 : vector<8x1024xi32>
    %238 = vector.shape_cast %232 : vector<1x1024xf32> to vector<1x1024xf32>
    %239 = vector.broadcast %238 : vector<1x1024xf32> to vector<8x1024xf32>
    %240 = vector.shape_cast %234 : vector<1x1024xf32> to vector<1x1024xf32>
    %241 = vector.broadcast %240 : vector<1x1024xf32> to vector<8x1024xf32>
    %242 = arith.select %237, %239, %241 : vector<8x1024xi1>, vector<8x1024xf32>
    %243 = arith.addf %230, %242 : vector<8x1024xf32>
    %c0_73 = arith.constant 0 : index
    %c18 = arith.constant 18 : index
    %244 = vector.load %arg3[%c0_73, %c18] : memref<8x64xi32, #tpu.memory_space<vmem>>, vector<8x1xi32>
    %c18_74 = arith.constant 18 : index
    %c0_75 = arith.constant 0 : index
    %245 = vector.load %arg4[%c18_74, %c0_75] : memref<64x1024xf32, #tpu.memory_space<vmem>>, vector<1x1024xf32>
    %cst_76 = arith.constant 0.000000e+00 : f32
    %246 = vector.broadcast %cst_76 : f32 to vector<1x1024xf32>
    %247 = arith.subf %246, %245 : vector<1x1024xf32>
    %248 = vector.broadcast %8 : vector<1x1024xi32> to vector<8x1024xi32>
    %249 = vector.broadcast %244 : vector<8x1xi32> to vector<8x1024xi32>
    %250 = arith.cmpi slt, %248, %249 : vector<8x1024xi32>
    %251 = vector.shape_cast %245 : vector<1x1024xf32> to vector<1x1024xf32>
    %252 = vector.broadcast %251 : vector<1x1024xf32> to vector<8x1024xf32>
    %253 = vector.shape_cast %247 : vector<1x1024xf32> to vector<1x1024xf32>
    %254 = vector.broadcast %253 : vector<1x1024xf32> to vector<8x1024xf32>
    %255 = arith.select %250, %252, %254 : vector<8x1024xi1>, vector<8x1024xf32>
    %256 = arith.addf %243, %255 : vector<8x1024xf32>
    %c0_77 = arith.constant 0 : index
    %c19 = arith.constant 19 : index
    %257 = vector.load %arg3[%c0_77, %c19] : memref<8x64xi32, #tpu.memory_space<vmem>>, vector<8x1xi32>
    %c19_78 = arith.constant 19 : index
    %c0_79 = arith.constant 0 : index
    %258 = vector.load %arg4[%c19_78, %c0_79] : memref<64x1024xf32, #tpu.memory_space<vmem>>, vector<1x1024xf32>
    %cst_80 = arith.constant 0.000000e+00 : f32
    %259 = vector.broadcast %cst_80 : f32 to vector<1x1024xf32>
    %260 = arith.subf %259, %258 : vector<1x1024xf32>
    %261 = vector.broadcast %8 : vector<1x1024xi32> to vector<8x1024xi32>
    %262 = vector.broadcast %257 : vector<8x1xi32> to vector<8x1024xi32>
    %263 = arith.cmpi slt, %261, %262 : vector<8x1024xi32>
    %264 = vector.shape_cast %258 : vector<1x1024xf32> to vector<1x1024xf32>
    %265 = vector.broadcast %264 : vector<1x1024xf32> to vector<8x1024xf32>
    %266 = vector.shape_cast %260 : vector<1x1024xf32> to vector<1x1024xf32>
    %267 = vector.broadcast %266 : vector<1x1024xf32> to vector<8x1024xf32>
    %268 = arith.select %263, %265, %267 : vector<8x1024xi1>, vector<8x1024xf32>
    %269 = arith.addf %256, %268 : vector<8x1024xf32>
    %c0_81 = arith.constant 0 : index
    %c20 = arith.constant 20 : index
    %270 = vector.load %arg3[%c0_81, %c20] : memref<8x64xi32, #tpu.memory_space<vmem>>, vector<8x1xi32>
    %c20_82 = arith.constant 20 : index
    %c0_83 = arith.constant 0 : index
    %271 = vector.load %arg4[%c20_82, %c0_83] : memref<64x1024xf32, #tpu.memory_space<vmem>>, vector<1x1024xf32>
    %cst_84 = arith.constant 0.000000e+00 : f32
    %272 = vector.broadcast %cst_84 : f32 to vector<1x1024xf32>
    %273 = arith.subf %272, %271 : vector<1x1024xf32>
    %274 = vector.broadcast %8 : vector<1x1024xi32> to vector<8x1024xi32>
    %275 = vector.broadcast %270 : vector<8x1xi32> to vector<8x1024xi32>
    %276 = arith.cmpi slt, %274, %275 : vector<8x1024xi32>
    %277 = vector.shape_cast %271 : vector<1x1024xf32> to vector<1x1024xf32>
    %278 = vector.broadcast %277 : vector<1x1024xf32> to vector<8x1024xf32>
    %279 = vector.shape_cast %273 : vector<1x1024xf32> to vector<1x1024xf32>
    %280 = vector.broadcast %279 : vector<1x1024xf32> to vector<8x1024xf32>
    %281 = arith.select %276, %278, %280 : vector<8x1024xi1>, vector<8x1024xf32>
    %282 = arith.addf %269, %281 : vector<8x1024xf32>
    %c0_85 = arith.constant 0 : index
    %c21 = arith.constant 21 : index
    %283 = vector.load %arg3[%c0_85, %c21] : memref<8x64xi32, #tpu.memory_space<vmem>>, vector<8x1xi32>
    %c21_86 = arith.constant 21 : index
    %c0_87 = arith.constant 0 : index
    %284 = vector.load %arg4[%c21_86, %c0_87] : memref<64x1024xf32, #tpu.memory_space<vmem>>, vector<1x1024xf32>
    %cst_88 = arith.constant 0.000000e+00 : f32
    %285 = vector.broadcast %cst_88 : f32 to vector<1x1024xf32>
    %286 = arith.subf %285, %284 : vector<1x1024xf32>
    %287 = vector.broadcast %8 : vector<1x1024xi32> to vector<8x1024xi32>
    %288 = vector.broadcast %283 : vector<8x1xi32> to vector<8x1024xi32>
    %289 = arith.cmpi slt, %287, %288 : vector<8x1024xi32>
    %290 = vector.shape_cast %284 : vector<1x1024xf32> to vector<1x1024xf32>
    %291 = vector.broadcast %290 : vector<1x1024xf32> to vector<8x1024xf32>
    %292 = vector.shape_cast %286 : vector<1x1024xf32> to vector<1x1024xf32>
    %293 = vector.broadcast %292 : vector<1x1024xf32> to vector<8x1024xf32>
    %294 = arith.select %289, %291, %293 : vector<8x1024xi1>, vector<8x1024xf32>
    %295 = arith.addf %282, %294 : vector<8x1024xf32>
    %c0_89 = arith.constant 0 : index
    %c22 = arith.constant 22 : index
    %296 = vector.load %arg3[%c0_89, %c22] : memref<8x64xi32, #tpu.memory_space<vmem>>, vector<8x1xi32>
    %c22_90 = arith.constant 22 : index
    %c0_91 = arith.constant 0 : index
    %297 = vector.load %arg4[%c22_90, %c0_91] : memref<64x1024xf32, #tpu.memory_space<vmem>>, vector<1x1024xf32>
    %cst_92 = arith.constant 0.000000e+00 : f32
    %298 = vector.broadcast %cst_92 : f32 to vector<1x1024xf32>
    %299 = arith.subf %298, %297 : vector<1x1024xf32>
    %300 = vector.broadcast %8 : vector<1x1024xi32> to vector<8x1024xi32>
    %301 = vector.broadcast %296 : vector<8x1xi32> to vector<8x1024xi32>
    %302 = arith.cmpi slt, %300, %301 : vector<8x1024xi32>
    %303 = vector.shape_cast %297 : vector<1x1024xf32> to vector<1x1024xf32>
    %304 = vector.broadcast %303 : vector<1x1024xf32> to vector<8x1024xf32>
    %305 = vector.shape_cast %299 : vector<1x1024xf32> to vector<1x1024xf32>
    %306 = vector.broadcast %305 : vector<1x1024xf32> to vector<8x1024xf32>
    %307 = arith.select %302, %304, %306 : vector<8x1024xi1>, vector<8x1024xf32>
    %308 = arith.addf %295, %307 : vector<8x1024xf32>
    %c0_93 = arith.constant 0 : index
    %c23 = arith.constant 23 : index
    %309 = vector.load %arg3[%c0_93, %c23] : memref<8x64xi32, #tpu.memory_space<vmem>>, vector<8x1xi32>
    %c23_94 = arith.constant 23 : index
    %c0_95 = arith.constant 0 : index
    %310 = vector.load %arg4[%c23_94, %c0_95] : memref<64x1024xf32, #tpu.memory_space<vmem>>, vector<1x1024xf32>
    %cst_96 = arith.constant 0.000000e+00 : f32
    %311 = vector.broadcast %cst_96 : f32 to vector<1x1024xf32>
    %312 = arith.subf %311, %310 : vector<1x1024xf32>
    %313 = vector.broadcast %8 : vector<1x1024xi32> to vector<8x1024xi32>
    %314 = vector.broadcast %309 : vector<8x1xi32> to vector<8x1024xi32>
    %315 = arith.cmpi slt, %313, %314 : vector<8x1024xi32>
    %316 = vector.shape_cast %310 : vector<1x1024xf32> to vector<1x1024xf32>
    %317 = vector.broadcast %316 : vector<1x1024xf32> to vector<8x1024xf32>
    %318 = vector.shape_cast %312 : vector<1x1024xf32> to vector<1x1024xf32>
    %319 = vector.broadcast %318 : vector<1x1024xf32> to vector<8x1024xf32>
    %320 = arith.select %315, %317, %319 : vector<8x1024xi1>, vector<8x1024xf32>
    %321 = arith.addf %308, %320 : vector<8x1024xf32>
    %c0_97 = arith.constant 0 : index
    %c24 = arith.constant 24 : index
    %322 = vector.load %arg3[%c0_97, %c24] : memref<8x64xi32, #tpu.memory_space<vmem>>, vector<8x1xi32>
    %c24_98 = arith.constant 24 : index
    %c0_99 = arith.constant 0 : index
    %323 = vector.load %arg4[%c24_98, %c0_99] : memref<64x1024xf32, #tpu.memory_space<vmem>>, vector<1x1024xf32>
    %cst_100 = arith.constant 0.000000e+00 : f32
    %324 = vector.broadcast %cst_100 : f32 to vector<1x1024xf32>
    %325 = arith.subf %324, %323 : vector<1x1024xf32>
    %326 = vector.broadcast %8 : vector<1x1024xi32> to vector<8x1024xi32>
    %327 = vector.broadcast %322 : vector<8x1xi32> to vector<8x1024xi32>
    %328 = arith.cmpi slt, %326, %327 : vector<8x1024xi32>
    %329 = vector.shape_cast %323 : vector<1x1024xf32> to vector<1x1024xf32>
    %330 = vector.broadcast %329 : vector<1x1024xf32> to vector<8x1024xf32>
    %331 = vector.shape_cast %325 : vector<1x1024xf32> to vector<1x1024xf32>
    %332 = vector.broadcast %331 : vector<1x1024xf32> to vector<8x1024xf32>
    %333 = arith.select %328, %330, %332 : vector<8x1024xi1>, vector<8x1024xf32>
    %334 = arith.addf %321, %333 : vector<8x1024xf32>
    %c0_101 = arith.constant 0 : index
    %c25 = arith.constant 25 : index
    %335 = vector.load %arg3[%c0_101, %c25] : memref<8x64xi32, #tpu.memory_space<vmem>>, vector<8x1xi32>
    %c25_102 = arith.constant 25 : index
    %c0_103 = arith.constant 0 : index
    %336 = vector.load %arg4[%c25_102, %c0_103] : memref<64x1024xf32, #tpu.memory_space<vmem>>, vector<1x1024xf32>
    %cst_104 = arith.constant 0.000000e+00 : f32
    %337 = vector.broadcast %cst_104 : f32 to vector<1x1024xf32>
    %338 = arith.subf %337, %336 : vector<1x1024xf32>
    %339 = vector.broadcast %8 : vector<1x1024xi32> to vector<8x1024xi32>
    %340 = vector.broadcast %335 : vector<8x1xi32> to vector<8x1024xi32>
    %341 = arith.cmpi slt, %339, %340 : vector<8x1024xi32>
    %342 = vector.shape_cast %336 : vector<1x1024xf32> to vector<1x1024xf32>
    %343 = vector.broadcast %342 : vector<1x1024xf32> to vector<8x1024xf32>
    %344 = vector.shape_cast %338 : vector<1x1024xf32> to vector<1x1024xf32>
    %345 = vector.broadcast %344 : vector<1x1024xf32> to vector<8x1024xf32>
    %346 = arith.select %341, %343, %345 : vector<8x1024xi1>, vector<8x1024xf32>
    %347 = arith.addf %334, %346 : vector<8x1024xf32>
    %c0_105 = arith.constant 0 : index
    %c26 = arith.constant 26 : index
    %348 = vector.load %arg3[%c0_105, %c26] : memref<8x64xi32, #tpu.memory_space<vmem>>, vector<8x1xi32>
    %c26_106 = arith.constant 26 : index
    %c0_107 = arith.constant 0 : index
    %349 = vector.load %arg4[%c26_106, %c0_107] : memref<64x1024xf32, #tpu.memory_space<vmem>>, vector<1x1024xf32>
    %cst_108 = arith.constant 0.000000e+00 : f32
    %350 = vector.broadcast %cst_108 : f32 to vector<1x1024xf32>
    %351 = arith.subf %350, %349 : vector<1x1024xf32>
    %352 = vector.broadcast %8 : vector<1x1024xi32> to vector<8x1024xi32>
    %353 = vector.broadcast %348 : vector<8x1xi32> to vector<8x1024xi32>
    %354 = arith.cmpi slt, %352, %353 : vector<8x1024xi32>
    %355 = vector.shape_cast %349 : vector<1x1024xf32> to vector<1x1024xf32>
    %356 = vector.broadcast %355 : vector<1x1024xf32> to vector<8x1024xf32>
    %357 = vector.shape_cast %351 : vector<1x1024xf32> to vector<1x1024xf32>
    %358 = vector.broadcast %357 : vector<1x1024xf32> to vector<8x1024xf32>
    %359 = arith.select %354, %356, %358 : vector<8x1024xi1>, vector<8x1024xf32>
    %360 = arith.addf %347, %359 : vector<8x1024xf32>
    %c0_109 = arith.constant 0 : index
    %c27 = arith.constant 27 : index
    %361 = vector.load %arg3[%c0_109, %c27] : memref<8x64xi32, #tpu.memory_space<vmem>>, vector<8x1xi32>
    %c27_110 = arith.constant 27 : index
    %c0_111 = arith.constant 0 : index
    %362 = vector.load %arg4[%c27_110, %c0_111] : memref<64x1024xf32, #tpu.memory_space<vmem>>, vector<1x1024xf32>
    %cst_112 = arith.constant 0.000000e+00 : f32
    %363 = vector.broadcast %cst_112 : f32 to vector<1x1024xf32>
    %364 = arith.subf %363, %362 : vector<1x1024xf32>
    %365 = vector.broadcast %8 : vector<1x1024xi32> to vector<8x1024xi32>
    %366 = vector.broadcast %361 : vector<8x1xi32> to vector<8x1024xi32>
    %367 = arith.cmpi slt, %365, %366 : vector<8x1024xi32>
    %368 = vector.shape_cast %362 : vector<1x1024xf32> to vector<1x1024xf32>
    %369 = vector.broadcast %368 : vector<1x1024xf32> to vector<8x1024xf32>
    %370 = vector.shape_cast %364 : vector<1x1024xf32> to vector<1x1024xf32>
    %371 = vector.broadcast %370 : vector<1x1024xf32> to vector<8x1024xf32>
    %372 = arith.select %367, %369, %371 : vector<8x1024xi1>, vector<8x1024xf32>
    %373 = arith.addf %360, %372 : vector<8x1024xf32>
    %c0_113 = arith.constant 0 : index
    %c28 = arith.constant 28 : index
    %374 = vector.load %arg3[%c0_113, %c28] : memref<8x64xi32, #tpu.memory_space<vmem>>, vector<8x1xi32>
    %c28_114 = arith.constant 28 : index
    %c0_115 = arith.constant 0 : index
    %375 = vector.load %arg4[%c28_114, %c0_115] : memref<64x1024xf32, #tpu.memory_space<vmem>>, vector<1x1024xf32>
    %cst_116 = arith.constant 0.000000e+00 : f32
    %376 = vector.broadcast %cst_116 : f32 to vector<1x1024xf32>
    %377 = arith.subf %376, %375 : vector<1x1024xf32>
    %378 = vector.broadcast %8 : vector<1x1024xi32> to vector<8x1024xi32>
    %379 = vector.broadcast %374 : vector<8x1xi32> to vector<8x1024xi32>
    %380 = arith.cmpi slt, %378, %379 : vector<8x1024xi32>
    %381 = vector.shape_cast %375 : vector<1x1024xf32> to vector<1x1024xf32>
    %382 = vector.broadcast %381 : vector<1x1024xf32> to vector<8x1024xf32>
    %383 = vector.shape_cast %377 : vector<1x1024xf32> to vector<1x1024xf32>
    %384 = vector.broadcast %383 : vector<1x1024xf32> to vector<8x1024xf32>
    %385 = arith.select %380, %382, %384 : vector<8x1024xi1>, vector<8x1024xf32>
    %386 = arith.addf %373, %385 : vector<8x1024xf32>
    %c0_117 = arith.constant 0 : index
    %c29 = arith.constant 29 : index
    %387 = vector.load %arg3[%c0_117, %c29] : memref<8x64xi32, #tpu.memory_space<vmem>>, vector<8x1xi32>
    %c29_118 = arith.constant 29 : index
    %c0_119 = arith.constant 0 : index
    %388 = vector.load %arg4[%c29_118, %c0_119] : memref<64x1024xf32, #tpu.memory_space<vmem>>, vector<1x1024xf32>
    %cst_120 = arith.constant 0.000000e+00 : f32
    %389 = vector.broadcast %cst_120 : f32 to vector<1x1024xf32>
    %390 = arith.subf %389, %388 : vector<1x1024xf32>
    %391 = vector.broadcast %8 : vector<1x1024xi32> to vector<8x1024xi32>
    %392 = vector.broadcast %387 : vector<8x1xi32> to vector<8x1024xi32>
    %393 = arith.cmpi slt, %391, %392 : vector<8x1024xi32>
    %394 = vector.shape_cast %388 : vector<1x1024xf32> to vector<1x1024xf32>
    %395 = vector.broadcast %394 : vector<1x1024xf32> to vector<8x1024xf32>
    %396 = vector.shape_cast %390 : vector<1x1024xf32> to vector<1x1024xf32>
    %397 = vector.broadcast %396 : vector<1x1024xf32> to vector<8x1024xf32>
    %398 = arith.select %393, %395, %397 : vector<8x1024xi1>, vector<8x1024xf32>
    %399 = arith.addf %386, %398 : vector<8x1024xf32>
    %c0_121 = arith.constant 0 : index
    %c30 = arith.constant 30 : index
    %400 = vector.load %arg3[%c0_121, %c30] : memref<8x64xi32, #tpu.memory_space<vmem>>, vector<8x1xi32>
    %c30_122 = arith.constant 30 : index
    %c0_123 = arith.constant 0 : index
    %401 = vector.load %arg4[%c30_122, %c0_123] : memref<64x1024xf32, #tpu.memory_space<vmem>>, vector<1x1024xf32>
    %cst_124 = arith.constant 0.000000e+00 : f32
    %402 = vector.broadcast %cst_124 : f32 to vector<1x1024xf32>
    %403 = arith.subf %402, %401 : vector<1x1024xf32>
    %404 = vector.broadcast %8 : vector<1x1024xi32> to vector<8x1024xi32>
    %405 = vector.broadcast %400 : vector<8x1xi32> to vector<8x1024xi32>
    %406 = arith.cmpi slt, %404, %405 : vector<8x1024xi32>
    %407 = vector.shape_cast %401 : vector<1x1024xf32> to vector<1x1024xf32>
    %408 = vector.broadcast %407 : vector<1x1024xf32> to vector<8x1024xf32>
    %409 = vector.shape_cast %403 : vector<1x1024xf32> to vector<1x1024xf32>
    %410 = vector.broadcast %409 : vector<1x1024xf32> to vector<8x1024xf32>
    %411 = arith.select %406, %408, %410 : vector<8x1024xi1>, vector<8x1024xf32>
    %412 = arith.addf %399, %411 : vector<8x1024xf32>
    %c0_125 = arith.constant 0 : index
    %c31 = arith.constant 31 : index
    %413 = vector.load %arg3[%c0_125, %c31] : memref<8x64xi32, #tpu.memory_space<vmem>>, vector<8x1xi32>
    %c31_126 = arith.constant 31 : index
    %c0_127 = arith.constant 0 : index
    %414 = vector.load %arg4[%c31_126, %c0_127] : memref<64x1024xf32, #tpu.memory_space<vmem>>, vector<1x1024xf32>
    %cst_128 = arith.constant 0.000000e+00 : f32
    %415 = vector.broadcast %cst_128 : f32 to vector<1x1024xf32>
    %416 = arith.subf %415, %414 : vector<1x1024xf32>
    %417 = vector.broadcast %8 : vector<1x1024xi32> to vector<8x1024xi32>
    %418 = vector.broadcast %413 : vector<8x1xi32> to vector<8x1024xi32>
    %419 = arith.cmpi slt, %417, %418 : vector<8x1024xi32>
    %420 = vector.shape_cast %414 : vector<1x1024xf32> to vector<1x1024xf32>
    %421 = vector.broadcast %420 : vector<1x1024xf32> to vector<8x1024xf32>
    %422 = vector.shape_cast %416 : vector<1x1024xf32> to vector<1x1024xf32>
    %423 = vector.broadcast %422 : vector<1x1024xf32> to vector<8x1024xf32>
    %424 = arith.select %419, %421, %423 : vector<8x1024xi1>, vector<8x1024xf32>
    %425 = arith.addf %412, %424 : vector<8x1024xf32>
    %c0_129 = arith.constant 0 : index
    %c32 = arith.constant 32 : index
    %426 = vector.load %arg3[%c0_129, %c32] : memref<8x64xi32, #tpu.memory_space<vmem>>, vector<8x1xi32>
    %c32_130 = arith.constant 32 : index
    %c0_131 = arith.constant 0 : index
    %427 = vector.load %arg4[%c32_130, %c0_131] : memref<64x1024xf32, #tpu.memory_space<vmem>>, vector<1x1024xf32>
    %cst_132 = arith.constant 0.000000e+00 : f32
    %428 = vector.broadcast %cst_132 : f32 to vector<1x1024xf32>
    %429 = arith.subf %428, %427 : vector<1x1024xf32>
    %430 = vector.broadcast %8 : vector<1x1024xi32> to vector<8x1024xi32>
    %431 = vector.broadcast %426 : vector<8x1xi32> to vector<8x1024xi32>
    %432 = arith.cmpi slt, %430, %431 : vector<8x1024xi32>
    %433 = vector.shape_cast %427 : vector<1x1024xf32> to vector<1x1024xf32>
    %434 = vector.broadcast %433 : vector<1x1024xf32> to vector<8x1024xf32>
    %435 = vector.shape_cast %429 : vector<1x1024xf32> to vector<1x1024xf32>
    %436 = vector.broadcast %435 : vector<1x1024xf32> to vector<8x1024xf32>
    %437 = arith.select %432, %434, %436 : vector<8x1024xi1>, vector<8x1024xf32>
    %438 = arith.addf %425, %437 : vector<8x1024xf32>
    %c0_133 = arith.constant 0 : index
    %c33 = arith.constant 33 : index
    %439 = vector.load %arg3[%c0_133, %c33] : memref<8x64xi32, #tpu.memory_space<vmem>>, vector<8x1xi32>
    %c33_134 = arith.constant 33 : index
    %c0_135 = arith.constant 0 : index
    %440 = vector.load %arg4[%c33_134, %c0_135] : memref<64x1024xf32, #tpu.memory_space<vmem>>, vector<1x1024xf32>
    %cst_136 = arith.constant 0.000000e+00 : f32
    %441 = vector.broadcast %cst_136 : f32 to vector<1x1024xf32>
    %442 = arith.subf %441, %440 : vector<1x1024xf32>
    %443 = vector.broadcast %8 : vector<1x1024xi32> to vector<8x1024xi32>
    %444 = vector.broadcast %439 : vector<8x1xi32> to vector<8x1024xi32>
    %445 = arith.cmpi slt, %443, %444 : vector<8x1024xi32>
    %446 = vector.shape_cast %440 : vector<1x1024xf32> to vector<1x1024xf32>
    %447 = vector.broadcast %446 : vector<1x1024xf32> to vector<8x1024xf32>
    %448 = vector.shape_cast %442 : vector<1x1024xf32> to vector<1x1024xf32>
    %449 = vector.broadcast %448 : vector<1x1024xf32> to vector<8x1024xf32>
    %450 = arith.select %445, %447, %449 : vector<8x1024xi1>, vector<8x1024xf32>
    %451 = arith.addf %438, %450 : vector<8x1024xf32>
    %c0_137 = arith.constant 0 : index
    %c34 = arith.constant 34 : index
    %452 = vector.load %arg3[%c0_137, %c34] : memref<8x64xi32, #tpu.memory_space<vmem>>, vector<8x1xi32>
    %c34_138 = arith.constant 34 : index
    %c0_139 = arith.constant 0 : index
    %453 = vector.load %arg4[%c34_138, %c0_139] : memref<64x1024xf32, #tpu.memory_space<vmem>>, vector<1x1024xf32>
    %cst_140 = arith.constant 0.000000e+00 : f32
    %454 = vector.broadcast %cst_140 : f32 to vector<1x1024xf32>
    %455 = arith.subf %454, %453 : vector<1x1024xf32>
    %456 = vector.broadcast %8 : vector<1x1024xi32> to vector<8x1024xi32>
    %457 = vector.broadcast %452 : vector<8x1xi32> to vector<8x1024xi32>
    %458 = arith.cmpi slt, %456, %457 : vector<8x1024xi32>
    %459 = vector.shape_cast %453 : vector<1x1024xf32> to vector<1x1024xf32>
    %460 = vector.broadcast %459 : vector<1x1024xf32> to vector<8x1024xf32>
    %461 = vector.shape_cast %455 : vector<1x1024xf32> to vector<1x1024xf32>
    %462 = vector.broadcast %461 : vector<1x1024xf32> to vector<8x1024xf32>
    %463 = arith.select %458, %460, %462 : vector<8x1024xi1>, vector<8x1024xf32>
    %464 = arith.addf %451, %463 : vector<8x1024xf32>
    %c0_141 = arith.constant 0 : index
    %c35 = arith.constant 35 : index
    %465 = vector.load %arg3[%c0_141, %c35] : memref<8x64xi32, #tpu.memory_space<vmem>>, vector<8x1xi32>
    %c35_142 = arith.constant 35 : index
    %c0_143 = arith.constant 0 : index
    %466 = vector.load %arg4[%c35_142, %c0_143] : memref<64x1024xf32, #tpu.memory_space<vmem>>, vector<1x1024xf32>
    %cst_144 = arith.constant 0.000000e+00 : f32
    %467 = vector.broadcast %cst_144 : f32 to vector<1x1024xf32>
    %468 = arith.subf %467, %466 : vector<1x1024xf32>
    %469 = vector.broadcast %8 : vector<1x1024xi32> to vector<8x1024xi32>
    %470 = vector.broadcast %465 : vector<8x1xi32> to vector<8x1024xi32>
    %471 = arith.cmpi slt, %469, %470 : vector<8x1024xi32>
    %472 = vector.shape_cast %466 : vector<1x1024xf32> to vector<1x1024xf32>
    %473 = vector.broadcast %472 : vector<1x1024xf32> to vector<8x1024xf32>
    %474 = vector.shape_cast %468 : vector<1x1024xf32> to vector<1x1024xf32>
    %475 = vector.broadcast %474 : vector<1x1024xf32> to vector<8x1024xf32>
    %476 = arith.select %471, %473, %475 : vector<8x1024xi1>, vector<8x1024xf32>
    %477 = arith.addf %464, %476 : vector<8x1024xf32>
    %c0_145 = arith.constant 0 : index
    %c36 = arith.constant 36 : index
    %478 = vector.load %arg3[%c0_145, %c36] : memref<8x64xi32, #tpu.memory_space<vmem>>, vector<8x1xi32>
    %c36_146 = arith.constant 36 : index
    %c0_147 = arith.constant 0 : index
    %479 = vector.load %arg4[%c36_146, %c0_147] : memref<64x1024xf32, #tpu.memory_space<vmem>>, vector<1x1024xf32>
    %cst_148 = arith.constant 0.000000e+00 : f32
    %480 = vector.broadcast %cst_148 : f32 to vector<1x1024xf32>
    %481 = arith.subf %480, %479 : vector<1x1024xf32>
    %482 = vector.broadcast %8 : vector<1x1024xi32> to vector<8x1024xi32>
    %483 = vector.broadcast %478 : vector<8x1xi32> to vector<8x1024xi32>
    %484 = arith.cmpi slt, %482, %483 : vector<8x1024xi32>
    %485 = vector.shape_cast %479 : vector<1x1024xf32> to vector<1x1024xf32>
    %486 = vector.broadcast %485 : vector<1x1024xf32> to vector<8x1024xf32>
    %487 = vector.shape_cast %481 : vector<1x1024xf32> to vector<1x1024xf32>
    %488 = vector.broadcast %487 : vector<1x1024xf32> to vector<8x1024xf32>
    %489 = arith.select %484, %486, %488 : vector<8x1024xi1>, vector<8x1024xf32>
    %490 = arith.addf %477, %489 : vector<8x1024xf32>
    %c0_149 = arith.constant 0 : index
    %c37 = arith.constant 37 : index
    %491 = vector.load %arg3[%c0_149, %c37] : memref<8x64xi32, #tpu.memory_space<vmem>>, vector<8x1xi32>
    %c37_150 = arith.constant 37 : index
    %c0_151 = arith.constant 0 : index
    %492 = vector.load %arg4[%c37_150, %c0_151] : memref<64x1024xf32, #tpu.memory_space<vmem>>, vector<1x1024xf32>
    %cst_152 = arith.constant 0.000000e+00 : f32
    %493 = vector.broadcast %cst_152 : f32 to vector<1x1024xf32>
    %494 = arith.subf %493, %492 : vector<1x1024xf32>
    %495 = vector.broadcast %8 : vector<1x1024xi32> to vector<8x1024xi32>
    %496 = vector.broadcast %491 : vector<8x1xi32> to vector<8x1024xi32>
    %497 = arith.cmpi slt, %495, %496 : vector<8x1024xi32>
    %498 = vector.shape_cast %492 : vector<1x1024xf32> to vector<1x1024xf32>
    %499 = vector.broadcast %498 : vector<1x1024xf32> to vector<8x1024xf32>
    %500 = vector.shape_cast %494 : vector<1x1024xf32> to vector<1x1024xf32>
    %501 = vector.broadcast %500 : vector<1x1024xf32> to vector<8x1024xf32>
    %502 = arith.select %497, %499, %501 : vector<8x1024xi1>, vector<8x1024xf32>
    %503 = arith.addf %490, %502 : vector<8x1024xf32>
    %c0_153 = arith.constant 0 : index
    %c38 = arith.constant 38 : index
    %504 = vector.load %arg3[%c0_153, %c38] : memref<8x64xi32, #tpu.memory_space<vmem>>, vector<8x1xi32>
    %c38_154 = arith.constant 38 : index
    %c0_155 = arith.constant 0 : index
    %505 = vector.load %arg4[%c38_154, %c0_155] : memref<64x1024xf32, #tpu.memory_space<vmem>>, vector<1x1024xf32>
    %cst_156 = arith.constant 0.000000e+00 : f32
    %506 = vector.broadcast %cst_156 : f32 to vector<1x1024xf32>
    %507 = arith.subf %506, %505 : vector<1x1024xf32>
    %508 = vector.broadcast %8 : vector<1x1024xi32> to vector<8x1024xi32>
    %509 = vector.broadcast %504 : vector<8x1xi32> to vector<8x1024xi32>
    %510 = arith.cmpi slt, %508, %509 : vector<8x1024xi32>
    %511 = vector.shape_cast %505 : vector<1x1024xf32> to vector<1x1024xf32>
    %512 = vector.broadcast %511 : vector<1x1024xf32> to vector<8x1024xf32>
    %513 = vector.shape_cast %507 : vector<1x1024xf32> to vector<1x1024xf32>
    %514 = vector.broadcast %513 : vector<1x1024xf32> to vector<8x1024xf32>
    %515 = arith.select %510, %512, %514 : vector<8x1024xi1>, vector<8x1024xf32>
    %516 = arith.addf %503, %515 : vector<8x1024xf32>
    %c0_157 = arith.constant 0 : index
    %c39 = arith.constant 39 : index
    %517 = vector.load %arg3[%c0_157, %c39] : memref<8x64xi32, #tpu.memory_space<vmem>>, vector<8x1xi32>
    %c39_158 = arith.constant 39 : index
    %c0_159 = arith.constant 0 : index
    %518 = vector.load %arg4[%c39_158, %c0_159] : memref<64x1024xf32, #tpu.memory_space<vmem>>, vector<1x1024xf32>
    %cst_160 = arith.constant 0.000000e+00 : f32
    %519 = vector.broadcast %cst_160 : f32 to vector<1x1024xf32>
    %520 = arith.subf %519, %518 : vector<1x1024xf32>
    %521 = vector.broadcast %8 : vector<1x1024xi32> to vector<8x1024xi32>
    %522 = vector.broadcast %517 : vector<8x1xi32> to vector<8x1024xi32>
    %523 = arith.cmpi slt, %521, %522 : vector<8x1024xi32>
    %524 = vector.shape_cast %518 : vector<1x1024xf32> to vector<1x1024xf32>
    %525 = vector.broadcast %524 : vector<1x1024xf32> to vector<8x1024xf32>
    %526 = vector.shape_cast %520 : vector<1x1024xf32> to vector<1x1024xf32>
    %527 = vector.broadcast %526 : vector<1x1024xf32> to vector<8x1024xf32>
    %528 = arith.select %523, %525, %527 : vector<8x1024xi1>, vector<8x1024xf32>
    %529 = arith.addf %516, %528 : vector<8x1024xf32>
    %c0_161 = arith.constant 0 : index
    %c40 = arith.constant 40 : index
    %530 = vector.load %arg3[%c0_161, %c40] : memref<8x64xi32, #tpu.memory_space<vmem>>, vector<8x1xi32>
    %c40_162 = arith.constant 40 : index
    %c0_163 = arith.constant 0 : index
    %531 = vector.load %arg4[%c40_162, %c0_163] : memref<64x1024xf32, #tpu.memory_space<vmem>>, vector<1x1024xf32>
    %cst_164 = arith.constant 0.000000e+00 : f32
    %532 = vector.broadcast %cst_164 : f32 to vector<1x1024xf32>
    %533 = arith.subf %532, %531 : vector<1x1024xf32>
    %534 = vector.broadcast %8 : vector<1x1024xi32> to vector<8x1024xi32>
    %535 = vector.broadcast %530 : vector<8x1xi32> to vector<8x1024xi32>
    %536 = arith.cmpi slt, %534, %535 : vector<8x1024xi32>
    %537 = vector.shape_cast %531 : vector<1x1024xf32> to vector<1x1024xf32>
    %538 = vector.broadcast %537 : vector<1x1024xf32> to vector<8x1024xf32>
    %539 = vector.shape_cast %533 : vector<1x1024xf32> to vector<1x1024xf32>
    %540 = vector.broadcast %539 : vector<1x1024xf32> to vector<8x1024xf32>
    %541 = arith.select %536, %538, %540 : vector<8x1024xi1>, vector<8x1024xf32>
    %542 = arith.addf %529, %541 : vector<8x1024xf32>
    %c0_165 = arith.constant 0 : index
    %c41 = arith.constant 41 : index
    %543 = vector.load %arg3[%c0_165, %c41] : memref<8x64xi32, #tpu.memory_space<vmem>>, vector<8x1xi32>
    %c41_166 = arith.constant 41 : index
    %c0_167 = arith.constant 0 : index
    %544 = vector.load %arg4[%c41_166, %c0_167] : memref<64x1024xf32, #tpu.memory_space<vmem>>, vector<1x1024xf32>
    %cst_168 = arith.constant 0.000000e+00 : f32
    %545 = vector.broadcast %cst_168 : f32 to vector<1x1024xf32>
    %546 = arith.subf %545, %544 : vector<1x1024xf32>
    %547 = vector.broadcast %8 : vector<1x1024xi32> to vector<8x1024xi32>
    %548 = vector.broadcast %543 : vector<8x1xi32> to vector<8x1024xi32>
    %549 = arith.cmpi slt, %547, %548 : vector<8x1024xi32>
    %550 = vector.shape_cast %544 : vector<1x1024xf32> to vector<1x1024xf32>
    %551 = vector.broadcast %550 : vector<1x1024xf32> to vector<8x1024xf32>
    %552 = vector.shape_cast %546 : vector<1x1024xf32> to vector<1x1024xf32>
    %553 = vector.broadcast %552 : vector<1x1024xf32> to vector<8x1024xf32>
    %554 = arith.select %549, %551, %553 : vector<8x1024xi1>, vector<8x1024xf32>
    %555 = arith.addf %542, %554 : vector<8x1024xf32>
    %c0_169 = arith.constant 0 : index
    %c42 = arith.constant 42 : index
    %556 = vector.load %arg3[%c0_169, %c42] : memref<8x64xi32, #tpu.memory_space<vmem>>, vector<8x1xi32>
    %c42_170 = arith.constant 42 : index
    %c0_171 = arith.constant 0 : index
    %557 = vector.load %arg4[%c42_170, %c0_171] : memref<64x1024xf32, #tpu.memory_space<vmem>>, vector<1x1024xf32>
    %cst_172 = arith.constant 0.000000e+00 : f32
    %558 = vector.broadcast %cst_172 : f32 to vector<1x1024xf32>
    %559 = arith.subf %558, %557 : vector<1x1024xf32>
    %560 = vector.broadcast %8 : vector<1x1024xi32> to vector<8x1024xi32>
    %561 = vector.broadcast %556 : vector<8x1xi32> to vector<8x1024xi32>
    %562 = arith.cmpi slt, %560, %561 : vector<8x1024xi32>
    %563 = vector.shape_cast %557 : vector<1x1024xf32> to vector<1x1024xf32>
    %564 = vector.broadcast %563 : vector<1x1024xf32> to vector<8x1024xf32>
    %565 = vector.shape_cast %559 : vector<1x1024xf32> to vector<1x1024xf32>
    %566 = vector.broadcast %565 : vector<1x1024xf32> to vector<8x1024xf32>
    %567 = arith.select %562, %564, %566 : vector<8x1024xi1>, vector<8x1024xf32>
    %568 = arith.addf %555, %567 : vector<8x1024xf32>
    %c0_173 = arith.constant 0 : index
    %c43 = arith.constant 43 : index
    %569 = vector.load %arg3[%c0_173, %c43] : memref<8x64xi32, #tpu.memory_space<vmem>>, vector<8x1xi32>
    %c43_174 = arith.constant 43 : index
    %c0_175 = arith.constant 0 : index
    %570 = vector.load %arg4[%c43_174, %c0_175] : memref<64x1024xf32, #tpu.memory_space<vmem>>, vector<1x1024xf32>
    %cst_176 = arith.constant 0.000000e+00 : f32
    %571 = vector.broadcast %cst_176 : f32 to vector<1x1024xf32>
    %572 = arith.subf %571, %570 : vector<1x1024xf32>
    %573 = vector.broadcast %8 : vector<1x1024xi32> to vector<8x1024xi32>
    %574 = vector.broadcast %569 : vector<8x1xi32> to vector<8x1024xi32>
    %575 = arith.cmpi slt, %573, %574 : vector<8x1024xi32>
    %576 = vector.shape_cast %570 : vector<1x1024xf32> to vector<1x1024xf32>
    %577 = vector.broadcast %576 : vector<1x1024xf32> to vector<8x1024xf32>
    %578 = vector.shape_cast %572 : vector<1x1024xf32> to vector<1x1024xf32>
    %579 = vector.broadcast %578 : vector<1x1024xf32> to vector<8x1024xf32>
    %580 = arith.select %575, %577, %579 : vector<8x1024xi1>, vector<8x1024xf32>
    %581 = arith.addf %568, %580 : vector<8x1024xf32>
    %c0_177 = arith.constant 0 : index
    %c44 = arith.constant 44 : index
    %582 = vector.load %arg3[%c0_177, %c44] : memref<8x64xi32, #tpu.memory_space<vmem>>, vector<8x1xi32>
    %c44_178 = arith.constant 44 : index
    %c0_179 = arith.constant 0 : index
    %583 = vector.load %arg4[%c44_178, %c0_179] : memref<64x1024xf32, #tpu.memory_space<vmem>>, vector<1x1024xf32>
    %cst_180 = arith.constant 0.000000e+00 : f32
    %584 = vector.broadcast %cst_180 : f32 to vector<1x1024xf32>
    %585 = arith.subf %584, %583 : vector<1x1024xf32>
    %586 = vector.broadcast %8 : vector<1x1024xi32> to vector<8x1024xi32>
    %587 = vector.broadcast %582 : vector<8x1xi32> to vector<8x1024xi32>
    %588 = arith.cmpi slt, %586, %587 : vector<8x1024xi32>
    %589 = vector.shape_cast %583 : vector<1x1024xf32> to vector<1x1024xf32>
    %590 = vector.broadcast %589 : vector<1x1024xf32> to vector<8x1024xf32>
    %591 = vector.shape_cast %585 : vector<1x1024xf32> to vector<1x1024xf32>
    %592 = vector.broadcast %591 : vector<1x1024xf32> to vector<8x1024xf32>
    %593 = arith.select %588, %590, %592 : vector<8x1024xi1>, vector<8x1024xf32>
    %594 = arith.addf %581, %593 : vector<8x1024xf32>
    %c0_181 = arith.constant 0 : index
    %c45 = arith.constant 45 : index
    %595 = vector.load %arg3[%c0_181, %c45] : memref<8x64xi32, #tpu.memory_space<vmem>>, vector<8x1xi32>
    %c45_182 = arith.constant 45 : index
    %c0_183 = arith.constant 0 : index
    %596 = vector.load %arg4[%c45_182, %c0_183] : memref<64x1024xf32, #tpu.memory_space<vmem>>, vector<1x1024xf32>
    %cst_184 = arith.constant 0.000000e+00 : f32
    %597 = vector.broadcast %cst_184 : f32 to vector<1x1024xf32>
    %598 = arith.subf %597, %596 : vector<1x1024xf32>
    %599 = vector.broadcast %8 : vector<1x1024xi32> to vector<8x1024xi32>
    %600 = vector.broadcast %595 : vector<8x1xi32> to vector<8x1024xi32>
    %601 = arith.cmpi slt, %599, %600 : vector<8x1024xi32>
    %602 = vector.shape_cast %596 : vector<1x1024xf32> to vector<1x1024xf32>
    %603 = vector.broadcast %602 : vector<1x1024xf32> to vector<8x1024xf32>
    %604 = vector.shape_cast %598 : vector<1x1024xf32> to vector<1x1024xf32>
    %605 = vector.broadcast %604 : vector<1x1024xf32> to vector<8x1024xf32>
    %606 = arith.select %601, %603, %605 : vector<8x1024xi1>, vector<8x1024xf32>
    %607 = arith.addf %594, %606 : vector<8x1024xf32>
    %c0_185 = arith.constant 0 : index
    %c46 = arith.constant 46 : index
    %608 = vector.load %arg3[%c0_185, %c46] : memref<8x64xi32, #tpu.memory_space<vmem>>, vector<8x1xi32>
    %c46_186 = arith.constant 46 : index
    %c0_187 = arith.constant 0 : index
    %609 = vector.load %arg4[%c46_186, %c0_187] : memref<64x1024xf32, #tpu.memory_space<vmem>>, vector<1x1024xf32>
    %cst_188 = arith.constant 0.000000e+00 : f32
    %610 = vector.broadcast %cst_188 : f32 to vector<1x1024xf32>
    %611 = arith.subf %610, %609 : vector<1x1024xf32>
    %612 = vector.broadcast %8 : vector<1x1024xi32> to vector<8x1024xi32>
    %613 = vector.broadcast %608 : vector<8x1xi32> to vector<8x1024xi32>
    %614 = arith.cmpi slt, %612, %613 : vector<8x1024xi32>
    %615 = vector.shape_cast %609 : vector<1x1024xf32> to vector<1x1024xf32>
    %616 = vector.broadcast %615 : vector<1x1024xf32> to vector<8x1024xf32>
    %617 = vector.shape_cast %611 : vector<1x1024xf32> to vector<1x1024xf32>
    %618 = vector.broadcast %617 : vector<1x1024xf32> to vector<8x1024xf32>
    %619 = arith.select %614, %616, %618 : vector<8x1024xi1>, vector<8x1024xf32>
    %620 = arith.addf %607, %619 : vector<8x1024xf32>
    %c0_189 = arith.constant 0 : index
    %c47 = arith.constant 47 : index
    %621 = vector.load %arg3[%c0_189, %c47] : memref<8x64xi32, #tpu.memory_space<vmem>>, vector<8x1xi32>
    %c47_190 = arith.constant 47 : index
    %c0_191 = arith.constant 0 : index
    %622 = vector.load %arg4[%c47_190, %c0_191] : memref<64x1024xf32, #tpu.memory_space<vmem>>, vector<1x1024xf32>
    %cst_192 = arith.constant 0.000000e+00 : f32
    %623 = vector.broadcast %cst_192 : f32 to vector<1x1024xf32>
    %624 = arith.subf %623, %622 : vector<1x1024xf32>
    %625 = vector.broadcast %8 : vector<1x1024xi32> to vector<8x1024xi32>
    %626 = vector.broadcast %621 : vector<8x1xi32> to vector<8x1024xi32>
    %627 = arith.cmpi slt, %625, %626 : vector<8x1024xi32>
    %628 = vector.shape_cast %622 : vector<1x1024xf32> to vector<1x1024xf32>
    %629 = vector.broadcast %628 : vector<1x1024xf32> to vector<8x1024xf32>
    %630 = vector.shape_cast %624 : vector<1x1024xf32> to vector<1x1024xf32>
    %631 = vector.broadcast %630 : vector<1x1024xf32> to vector<8x1024xf32>
    %632 = arith.select %627, %629, %631 : vector<8x1024xi1>, vector<8x1024xf32>
    %633 = arith.addf %620, %632 : vector<8x1024xf32>
    %c0_193 = arith.constant 0 : index
    %c48 = arith.constant 48 : index
    %634 = vector.load %arg3[%c0_193, %c48] : memref<8x64xi32, #tpu.memory_space<vmem>>, vector<8x1xi32>
    %c48_194 = arith.constant 48 : index
    %c0_195 = arith.constant 0 : index
    %635 = vector.load %arg4[%c48_194, %c0_195] : memref<64x1024xf32, #tpu.memory_space<vmem>>, vector<1x1024xf32>
    %cst_196 = arith.constant 0.000000e+00 : f32
    %636 = vector.broadcast %cst_196 : f32 to vector<1x1024xf32>
    %637 = arith.subf %636, %635 : vector<1x1024xf32>
    %638 = vector.broadcast %8 : vector<1x1024xi32> to vector<8x1024xi32>
    %639 = vector.broadcast %634 : vector<8x1xi32> to vector<8x1024xi32>
    %640 = arith.cmpi slt, %638, %639 : vector<8x1024xi32>
    %641 = vector.shape_cast %635 : vector<1x1024xf32> to vector<1x1024xf32>
    %642 = vector.broadcast %641 : vector<1x1024xf32> to vector<8x1024xf32>
    %643 = vector.shape_cast %637 : vector<1x1024xf32> to vector<1x1024xf32>
    %644 = vector.broadcast %643 : vector<1x1024xf32> to vector<8x1024xf32>
    %645 = arith.select %640, %642, %644 : vector<8x1024xi1>, vector<8x1024xf32>
    %646 = arith.addf %633, %645 : vector<8x1024xf32>
    %c0_197 = arith.constant 0 : index
    %c49 = arith.constant 49 : index
    %647 = vector.load %arg3[%c0_197, %c49] : memref<8x64xi32, #tpu.memory_space<vmem>>, vector<8x1xi32>
    %c49_198 = arith.constant 49 : index
    %c0_199 = arith.constant 0 : index
    %648 = vector.load %arg4[%c49_198, %c0_199] : memref<64x1024xf32, #tpu.memory_space<vmem>>, vector<1x1024xf32>
    %cst_200 = arith.constant 0.000000e+00 : f32
    %649 = vector.broadcast %cst_200 : f32 to vector<1x1024xf32>
    %650 = arith.subf %649, %648 : vector<1x1024xf32>
    %651 = vector.broadcast %8 : vector<1x1024xi32> to vector<8x1024xi32>
    %652 = vector.broadcast %647 : vector<8x1xi32> to vector<8x1024xi32>
    %653 = arith.cmpi slt, %651, %652 : vector<8x1024xi32>
    %654 = vector.shape_cast %648 : vector<1x1024xf32> to vector<1x1024xf32>
    %655 = vector.broadcast %654 : vector<1x1024xf32> to vector<8x1024xf32>
    %656 = vector.shape_cast %650 : vector<1x1024xf32> to vector<1x1024xf32>
    %657 = vector.broadcast %656 : vector<1x1024xf32> to vector<8x1024xf32>
    %658 = arith.select %653, %655, %657 : vector<8x1024xi1>, vector<8x1024xf32>
    %659 = arith.addf %646, %658 : vector<8x1024xf32>
    %c0_201 = arith.constant 0 : index
    %c50 = arith.constant 50 : index
    %660 = vector.load %arg3[%c0_201, %c50] : memref<8x64xi32, #tpu.memory_space<vmem>>, vector<8x1xi32>
    %c50_202 = arith.constant 50 : index
    %c0_203 = arith.constant 0 : index
    %661 = vector.load %arg4[%c50_202, %c0_203] : memref<64x1024xf32, #tpu.memory_space<vmem>>, vector<1x1024xf32>
    %cst_204 = arith.constant 0.000000e+00 : f32
    %662 = vector.broadcast %cst_204 : f32 to vector<1x1024xf32>
    %663 = arith.subf %662, %661 : vector<1x1024xf32>
    %664 = vector.broadcast %8 : vector<1x1024xi32> to vector<8x1024xi32>
    %665 = vector.broadcast %660 : vector<8x1xi32> to vector<8x1024xi32>
    %666 = arith.cmpi slt, %664, %665 : vector<8x1024xi32>
    %667 = vector.shape_cast %661 : vector<1x1024xf32> to vector<1x1024xf32>
    %668 = vector.broadcast %667 : vector<1x1024xf32> to vector<8x1024xf32>
    %669 = vector.shape_cast %663 : vector<1x1024xf32> to vector<1x1024xf32>
    %670 = vector.broadcast %669 : vector<1x1024xf32> to vector<8x1024xf32>
    %671 = arith.select %666, %668, %670 : vector<8x1024xi1>, vector<8x1024xf32>
    %672 = arith.addf %659, %671 : vector<8x1024xf32>
    %c0_205 = arith.constant 0 : index
    %c51 = arith.constant 51 : index
    %673 = vector.load %arg3[%c0_205, %c51] : memref<8x64xi32, #tpu.memory_space<vmem>>, vector<8x1xi32>
    %c51_206 = arith.constant 51 : index
    %c0_207 = arith.constant 0 : index
    %674 = vector.load %arg4[%c51_206, %c0_207] : memref<64x1024xf32, #tpu.memory_space<vmem>>, vector<1x1024xf32>
    %cst_208 = arith.constant 0.000000e+00 : f32
    %675 = vector.broadcast %cst_208 : f32 to vector<1x1024xf32>
    %676 = arith.subf %675, %674 : vector<1x1024xf32>
    %677 = vector.broadcast %8 : vector<1x1024xi32> to vector<8x1024xi32>
    %678 = vector.broadcast %673 : vector<8x1xi32> to vector<8x1024xi32>
    %679 = arith.cmpi slt, %677, %678 : vector<8x1024xi32>
    %680 = vector.shape_cast %674 : vector<1x1024xf32> to vector<1x1024xf32>
    %681 = vector.broadcast %680 : vector<1x1024xf32> to vector<8x1024xf32>
    %682 = vector.shape_cast %676 : vector<1x1024xf32> to vector<1x1024xf32>
    %683 = vector.broadcast %682 : vector<1x1024xf32> to vector<8x1024xf32>
    %684 = arith.select %679, %681, %683 : vector<8x1024xi1>, vector<8x1024xf32>
    %685 = arith.addf %672, %684 : vector<8x1024xf32>
    %c0_209 = arith.constant 0 : index
    %c52 = arith.constant 52 : index
    %686 = vector.load %arg3[%c0_209, %c52] : memref<8x64xi32, #tpu.memory_space<vmem>>, vector<8x1xi32>
    %c52_210 = arith.constant 52 : index
    %c0_211 = arith.constant 0 : index
    %687 = vector.load %arg4[%c52_210, %c0_211] : memref<64x1024xf32, #tpu.memory_space<vmem>>, vector<1x1024xf32>
    %cst_212 = arith.constant 0.000000e+00 : f32
    %688 = vector.broadcast %cst_212 : f32 to vector<1x1024xf32>
    %689 = arith.subf %688, %687 : vector<1x1024xf32>
    %690 = vector.broadcast %8 : vector<1x1024xi32> to vector<8x1024xi32>
    %691 = vector.broadcast %686 : vector<8x1xi32> to vector<8x1024xi32>
    %692 = arith.cmpi slt, %690, %691 : vector<8x1024xi32>
    %693 = vector.shape_cast %687 : vector<1x1024xf32> to vector<1x1024xf32>
    %694 = vector.broadcast %693 : vector<1x1024xf32> to vector<8x1024xf32>
    %695 = vector.shape_cast %689 : vector<1x1024xf32> to vector<1x1024xf32>
    %696 = vector.broadcast %695 : vector<1x1024xf32> to vector<8x1024xf32>
    %697 = arith.select %692, %694, %696 : vector<8x1024xi1>, vector<8x1024xf32>
    %698 = arith.addf %685, %697 : vector<8x1024xf32>
    %c0_213 = arith.constant 0 : index
    %c53 = arith.constant 53 : index
    %699 = vector.load %arg3[%c0_213, %c53] : memref<8x64xi32, #tpu.memory_space<vmem>>, vector<8x1xi32>
    %c53_214 = arith.constant 53 : index
    %c0_215 = arith.constant 0 : index
    %700 = vector.load %arg4[%c53_214, %c0_215] : memref<64x1024xf32, #tpu.memory_space<vmem>>, vector<1x1024xf32>
    %cst_216 = arith.constant 0.000000e+00 : f32
    %701 = vector.broadcast %cst_216 : f32 to vector<1x1024xf32>
    %702 = arith.subf %701, %700 : vector<1x1024xf32>
    %703 = vector.broadcast %8 : vector<1x1024xi32> to vector<8x1024xi32>
    %704 = vector.broadcast %699 : vector<8x1xi32> to vector<8x1024xi32>
    %705 = arith.cmpi slt, %703, %704 : vector<8x1024xi32>
    %706 = vector.shape_cast %700 : vector<1x1024xf32> to vector<1x1024xf32>
    %707 = vector.broadcast %706 : vector<1x1024xf32> to vector<8x1024xf32>
    %708 = vector.shape_cast %702 : vector<1x1024xf32> to vector<1x1024xf32>
    %709 = vector.broadcast %708 : vector<1x1024xf32> to vector<8x1024xf32>
    %710 = arith.select %705, %707, %709 : vector<8x1024xi1>, vector<8x1024xf32>
    %711 = arith.addf %698, %710 : vector<8x1024xf32>
    %c0_217 = arith.constant 0 : index
    %c54 = arith.constant 54 : index
    %712 = vector.load %arg3[%c0_217, %c54] : memref<8x64xi32, #tpu.memory_space<vmem>>, vector<8x1xi32>
    %c54_218 = arith.constant 54 : index
    %c0_219 = arith.constant 0 : index
    %713 = vector.load %arg4[%c54_218, %c0_219] : memref<64x1024xf32, #tpu.memory_space<vmem>>, vector<1x1024xf32>
    %cst_220 = arith.constant 0.000000e+00 : f32
    %714 = vector.broadcast %cst_220 : f32 to vector<1x1024xf32>
    %715 = arith.subf %714, %713 : vector<1x1024xf32>
    %716 = vector.broadcast %8 : vector<1x1024xi32> to vector<8x1024xi32>
    %717 = vector.broadcast %712 : vector<8x1xi32> to vector<8x1024xi32>
    %718 = arith.cmpi slt, %716, %717 : vector<8x1024xi32>
    %719 = vector.shape_cast %713 : vector<1x1024xf32> to vector<1x1024xf32>
    %720 = vector.broadcast %719 : vector<1x1024xf32> to vector<8x1024xf32>
    %721 = vector.shape_cast %715 : vector<1x1024xf32> to vector<1x1024xf32>
    %722 = vector.broadcast %721 : vector<1x1024xf32> to vector<8x1024xf32>
    %723 = arith.select %718, %720, %722 : vector<8x1024xi1>, vector<8x1024xf32>
    %724 = arith.addf %711, %723 : vector<8x1024xf32>
    %c0_221 = arith.constant 0 : index
    %c55 = arith.constant 55 : index
    %725 = vector.load %arg3[%c0_221, %c55] : memref<8x64xi32, #tpu.memory_space<vmem>>, vector<8x1xi32>
    %c55_222 = arith.constant 55 : index
    %c0_223 = arith.constant 0 : index
    %726 = vector.load %arg4[%c55_222, %c0_223] : memref<64x1024xf32, #tpu.memory_space<vmem>>, vector<1x1024xf32>
    %cst_224 = arith.constant 0.000000e+00 : f32
    %727 = vector.broadcast %cst_224 : f32 to vector<1x1024xf32>
    %728 = arith.subf %727, %726 : vector<1x1024xf32>
    %729 = vector.broadcast %8 : vector<1x1024xi32> to vector<8x1024xi32>
    %730 = vector.broadcast %725 : vector<8x1xi32> to vector<8x1024xi32>
    %731 = arith.cmpi slt, %729, %730 : vector<8x1024xi32>
    %732 = vector.shape_cast %726 : vector<1x1024xf32> to vector<1x1024xf32>
    %733 = vector.broadcast %732 : vector<1x1024xf32> to vector<8x1024xf32>
    %734 = vector.shape_cast %728 : vector<1x1024xf32> to vector<1x1024xf32>
    %735 = vector.broadcast %734 : vector<1x1024xf32> to vector<8x1024xf32>
    %736 = arith.select %731, %733, %735 : vector<8x1024xi1>, vector<8x1024xf32>
    %737 = arith.addf %724, %736 : vector<8x1024xf32>
    %c0_225 = arith.constant 0 : index
    %c56 = arith.constant 56 : index
    %738 = vector.load %arg3[%c0_225, %c56] : memref<8x64xi32, #tpu.memory_space<vmem>>, vector<8x1xi32>
    %c56_226 = arith.constant 56 : index
    %c0_227 = arith.constant 0 : index
    %739 = vector.load %arg4[%c56_226, %c0_227] : memref<64x1024xf32, #tpu.memory_space<vmem>>, vector<1x1024xf32>
    %cst_228 = arith.constant 0.000000e+00 : f32
    %740 = vector.broadcast %cst_228 : f32 to vector<1x1024xf32>
    %741 = arith.subf %740, %739 : vector<1x1024xf32>
    %742 = vector.broadcast %8 : vector<1x1024xi32> to vector<8x1024xi32>
    %743 = vector.broadcast %738 : vector<8x1xi32> to vector<8x1024xi32>
    %744 = arith.cmpi slt, %742, %743 : vector<8x1024xi32>
    %745 = vector.shape_cast %739 : vector<1x1024xf32> to vector<1x1024xf32>
    %746 = vector.broadcast %745 : vector<1x1024xf32> to vector<8x1024xf32>
    %747 = vector.shape_cast %741 : vector<1x1024xf32> to vector<1x1024xf32>
    %748 = vector.broadcast %747 : vector<1x1024xf32> to vector<8x1024xf32>
    %749 = arith.select %744, %746, %748 : vector<8x1024xi1>, vector<8x1024xf32>
    %750 = arith.addf %737, %749 : vector<8x1024xf32>
    %c0_229 = arith.constant 0 : index
    %c57 = arith.constant 57 : index
    %751 = vector.load %arg3[%c0_229, %c57] : memref<8x64xi32, #tpu.memory_space<vmem>>, vector<8x1xi32>
    %c57_230 = arith.constant 57 : index
    %c0_231 = arith.constant 0 : index
    %752 = vector.load %arg4[%c57_230, %c0_231] : memref<64x1024xf32, #tpu.memory_space<vmem>>, vector<1x1024xf32>
    %cst_232 = arith.constant 0.000000e+00 : f32
    %753 = vector.broadcast %cst_232 : f32 to vector<1x1024xf32>
    %754 = arith.subf %753, %752 : vector<1x1024xf32>
    %755 = vector.broadcast %8 : vector<1x1024xi32> to vector<8x1024xi32>
    %756 = vector.broadcast %751 : vector<8x1xi32> to vector<8x1024xi32>
    %757 = arith.cmpi slt, %755, %756 : vector<8x1024xi32>
    %758 = vector.shape_cast %752 : vector<1x1024xf32> to vector<1x1024xf32>
    %759 = vector.broadcast %758 : vector<1x1024xf32> to vector<8x1024xf32>
    %760 = vector.shape_cast %754 : vector<1x1024xf32> to vector<1x1024xf32>
    %761 = vector.broadcast %760 : vector<1x1024xf32> to vector<8x1024xf32>
    %762 = arith.select %757, %759, %761 : vector<8x1024xi1>, vector<8x1024xf32>
    %763 = arith.addf %750, %762 : vector<8x1024xf32>
    %c0_233 = arith.constant 0 : index
    %c58 = arith.constant 58 : index
    %764 = vector.load %arg3[%c0_233, %c58] : memref<8x64xi32, #tpu.memory_space<vmem>>, vector<8x1xi32>
    %c58_234 = arith.constant 58 : index
    %c0_235 = arith.constant 0 : index
    %765 = vector.load %arg4[%c58_234, %c0_235] : memref<64x1024xf32, #tpu.memory_space<vmem>>, vector<1x1024xf32>
    %cst_236 = arith.constant 0.000000e+00 : f32
    %766 = vector.broadcast %cst_236 : f32 to vector<1x1024xf32>
    %767 = arith.subf %766, %765 : vector<1x1024xf32>
    %768 = vector.broadcast %8 : vector<1x1024xi32> to vector<8x1024xi32>
    %769 = vector.broadcast %764 : vector<8x1xi32> to vector<8x1024xi32>
    %770 = arith.cmpi slt, %768, %769 : vector<8x1024xi32>
    %771 = vector.shape_cast %765 : vector<1x1024xf32> to vector<1x1024xf32>
    %772 = vector.broadcast %771 : vector<1x1024xf32> to vector<8x1024xf32>
    %773 = vector.shape_cast %767 : vector<1x1024xf32> to vector<1x1024xf32>
    %774 = vector.broadcast %773 : vector<1x1024xf32> to vector<8x1024xf32>
    %775 = arith.select %770, %772, %774 : vector<8x1024xi1>, vector<8x1024xf32>
    %776 = arith.addf %763, %775 : vector<8x1024xf32>
    %c0_237 = arith.constant 0 : index
    %c59 = arith.constant 59 : index
    %777 = vector.load %arg3[%c0_237, %c59] : memref<8x64xi32, #tpu.memory_space<vmem>>, vector<8x1xi32>
    %c59_238 = arith.constant 59 : index
    %c0_239 = arith.constant 0 : index
    %778 = vector.load %arg4[%c59_238, %c0_239] : memref<64x1024xf32, #tpu.memory_space<vmem>>, vector<1x1024xf32>
    %cst_240 = arith.constant 0.000000e+00 : f32
    %779 = vector.broadcast %cst_240 : f32 to vector<1x1024xf32>
    %780 = arith.subf %779, %778 : vector<1x1024xf32>
    %781 = vector.broadcast %8 : vector<1x1024xi32> to vector<8x1024xi32>
    %782 = vector.broadcast %777 : vector<8x1xi32> to vector<8x1024xi32>
    %783 = arith.cmpi slt, %781, %782 : vector<8x1024xi32>
    %784 = vector.shape_cast %778 : vector<1x1024xf32> to vector<1x1024xf32>
    %785 = vector.broadcast %784 : vector<1x1024xf32> to vector<8x1024xf32>
    %786 = vector.shape_cast %780 : vector<1x1024xf32> to vector<1x1024xf32>
    %787 = vector.broadcast %786 : vector<1x1024xf32> to vector<8x1024xf32>
    %788 = arith.select %783, %785, %787 : vector<8x1024xi1>, vector<8x1024xf32>
    %789 = arith.addf %776, %788 : vector<8x1024xf32>
    %c0_241 = arith.constant 0 : index
    %c60 = arith.constant 60 : index
    %790 = vector.load %arg3[%c0_241, %c60] : memref<8x64xi32, #tpu.memory_space<vmem>>, vector<8x1xi32>
    %c60_242 = arith.constant 60 : index
    %c0_243 = arith.constant 0 : index
    %791 = vector.load %arg4[%c60_242, %c0_243] : memref<64x1024xf32, #tpu.memory_space<vmem>>, vector<1x1024xf32>
    %cst_244 = arith.constant 0.000000e+00 : f32
    %792 = vector.broadcast %cst_244 : f32 to vector<1x1024xf32>
    %793 = arith.subf %792, %791 : vector<1x1024xf32>
    %794 = vector.broadcast %8 : vector<1x1024xi32> to vector<8x1024xi32>
    %795 = vector.broadcast %790 : vector<8x1xi32> to vector<8x1024xi32>
    %796 = arith.cmpi slt, %794, %795 : vector<8x1024xi32>
    %797 = vector.shape_cast %791 : vector<1x1024xf32> to vector<1x1024xf32>
    %798 = vector.broadcast %797 : vector<1x1024xf32> to vector<8x1024xf32>
    %799 = vector.shape_cast %793 : vector<1x1024xf32> to vector<1x1024xf32>
    %800 = vector.broadcast %799 : vector<1x1024xf32> to vector<8x1024xf32>
    %801 = arith.select %796, %798, %800 : vector<8x1024xi1>, vector<8x1024xf32>
    %802 = arith.addf %789, %801 : vector<8x1024xf32>
    %c0_245 = arith.constant 0 : index
    %c61 = arith.constant 61 : index
    %803 = vector.load %arg3[%c0_245, %c61] : memref<8x64xi32, #tpu.memory_space<vmem>>, vector<8x1xi32>
    %c61_246 = arith.constant 61 : index
    %c0_247 = arith.constant 0 : index
    %804 = vector.load %arg4[%c61_246, %c0_247] : memref<64x1024xf32, #tpu.memory_space<vmem>>, vector<1x1024xf32>
    %cst_248 = arith.constant 0.000000e+00 : f32
    %805 = vector.broadcast %cst_248 : f32 to vector<1x1024xf32>
    %806 = arith.subf %805, %804 : vector<1x1024xf32>
    %807 = vector.broadcast %8 : vector<1x1024xi32> to vector<8x1024xi32>
    %808 = vector.broadcast %803 : vector<8x1xi32> to vector<8x1024xi32>
    %809 = arith.cmpi slt, %807, %808 : vector<8x1024xi32>
    %810 = vector.shape_cast %804 : vector<1x1024xf32> to vector<1x1024xf32>
    %811 = vector.broadcast %810 : vector<1x1024xf32> to vector<8x1024xf32>
    %812 = vector.shape_cast %806 : vector<1x1024xf32> to vector<1x1024xf32>
    %813 = vector.broadcast %812 : vector<1x1024xf32> to vector<8x1024xf32>
    %814 = arith.select %809, %811, %813 : vector<8x1024xi1>, vector<8x1024xf32>
    %815 = arith.addf %802, %814 : vector<8x1024xf32>
    %c0_249 = arith.constant 0 : index
    %c62 = arith.constant 62 : index
    %816 = vector.load %arg3[%c0_249, %c62] : memref<8x64xi32, #tpu.memory_space<vmem>>, vector<8x1xi32>
    %c62_250 = arith.constant 62 : index
    %c0_251 = arith.constant 0 : index
    %817 = vector.load %arg4[%c62_250, %c0_251] : memref<64x1024xf32, #tpu.memory_space<vmem>>, vector<1x1024xf32>
    %cst_252 = arith.constant 0.000000e+00 : f32
    %818 = vector.broadcast %cst_252 : f32 to vector<1x1024xf32>
    %819 = arith.subf %818, %817 : vector<1x1024xf32>
    %820 = vector.broadcast %8 : vector<1x1024xi32> to vector<8x1024xi32>
    %821 = vector.broadcast %816 : vector<8x1xi32> to vector<8x1024xi32>
    %822 = arith.cmpi slt, %820, %821 : vector<8x1024xi32>
    %823 = vector.shape_cast %817 : vector<1x1024xf32> to vector<1x1024xf32>
    %824 = vector.broadcast %823 : vector<1x1024xf32> to vector<8x1024xf32>
    %825 = vector.shape_cast %819 : vector<1x1024xf32> to vector<1x1024xf32>
    %826 = vector.broadcast %825 : vector<1x1024xf32> to vector<8x1024xf32>
    %827 = arith.select %822, %824, %826 : vector<8x1024xi1>, vector<8x1024xf32>
    %828 = arith.addf %815, %827 : vector<8x1024xf32>
    %c0_253 = arith.constant 0 : index
    %c63 = arith.constant 63 : index
    %829 = vector.load %arg3[%c0_253, %c63] : memref<8x64xi32, #tpu.memory_space<vmem>>, vector<8x1xi32>
    %c63_254 = arith.constant 63 : index
    %c0_255 = arith.constant 0 : index
    %830 = vector.load %arg4[%c63_254, %c0_255] : memref<64x1024xf32, #tpu.memory_space<vmem>>, vector<1x1024xf32>
    %cst_256 = arith.constant 0.000000e+00 : f32
    %831 = vector.broadcast %cst_256 : f32 to vector<1x1024xf32>
    %832 = arith.subf %831, %830 : vector<1x1024xf32>
    %833 = vector.broadcast %8 : vector<1x1024xi32> to vector<8x1024xi32>
    %834 = vector.broadcast %829 : vector<8x1xi32> to vector<8x1024xi32>
    %835 = arith.cmpi slt, %833, %834 : vector<8x1024xi32>
    %836 = vector.shape_cast %830 : vector<1x1024xf32> to vector<1x1024xf32>
    %837 = vector.broadcast %836 : vector<1x1024xf32> to vector<8x1024xf32>
    %838 = vector.shape_cast %832 : vector<1x1024xf32> to vector<1x1024xf32>
    %839 = vector.broadcast %838 : vector<1x1024xf32> to vector<8x1024xf32>
    %840 = arith.select %835, %837, %839 : vector<8x1024xi1>, vector<8x1024xf32>
    %841 = arith.addf %828, %840 : vector<8x1024xf32>
    %cst_257 = arith.constant -3.000000e+00 : f32
    %cst_258 = arith.constant 3.000000e+00 : f32
    %842 = vector.broadcast %cst_257 : f32 to vector<8x1024xf32>
    %843 = arith.maximumf %842, %841 : vector<8x1024xf32>
    %844 = vector.broadcast %cst_258 : f32 to vector<8x1024xf32>
    %845 = arith.minimumf %844, %843 : vector<8x1024xf32>
    %c0_259 = arith.constant 0 : index
    %c0_260 = arith.constant 0 : index
    %c0_261 = arith.constant 0 : index
    %846 = vector.load %arg6[%c0_259, %c0_260, %c0_261] : memref<1x8x128xf32, #tpu.memory_space<vmem>>, vector<1x8x128xf32>
    %847 = vector.shape_cast %846 : vector<1x8x128xf32> to vector<8x128xf32>
    %c0_262 = arith.constant 0 : index
    %c0_263 = arith.constant 0 : index
    %848 = vector.load %arg5[%c0_262, %c0_263] : memref<1024x128xf32, #tpu.memory_space<vmem>>, vector<1024x128xf32>
    %cst_264 = arith.constant dense<0.000000e+00> : vector<8x128xf32>
    %849 = tpu.matmul %845, %848, %cst_264 {dimension_numbers = #tpu.dot_dimension_numbers<[1], [0], [0], [1], [0, 0, 1, 1], [], []>} : vector<8x1024xf32>, vector<1024x128xf32>, vector<8x128xf32> -> vector<8x128xf32>
    %850 = arith.addf %847, %849 : vector<8x128xf32>
    %c0_265 = arith.constant 0 : index
    %c0_266 = arith.constant 0 : index
    %c0_267 = arith.constant 0 : index
    %851 = vector.load %arg6[%c0_265, %c0_266, %c0_267] : memref<1x8x128xf32, #tpu.memory_space<vmem>>, vector<1x8x128xf32>
    %852 = vector.shape_cast %851 : vector<1x8x128xf32> to vector<8x128xf32>
    %853 = vector.shape_cast %850 : vector<8x128xf32> to vector<1x8x128xf32>
    tpu.vector_store %arg6[%c0_265, %c0_266, %c0_267], %853 {strides = array<i32>} : memref<1x8x128xf32, #tpu.memory_space<vmem>>, vector<1x8x128xf32>,
    return
  }
  func.func @transform_0(%arg0: i32, %arg1: i32, %arg2: i32) -> (i32, i32) {
    %c0_i32 = arith.constant 0 : i32
    %c0_i32_0 = arith.constant 0 : i32
    return %arg1, %c0_i32 : i32, i32
  }
  func.func @transform_1(%arg0: i32, %arg1: i32, %arg2: i32) -> (i32, i32) {
    %c1_i32 = arith.constant 1 : i32
    %0 = arith.muli %arg0, %c1_i32 : i32
    %1 = arith.addi %0, %arg2 : i32
    %c0_i32 = arith.constant 0 : i32
    %c0_i32_0 = arith.constant 0 : i32
    return %c0_i32, %1 : i32, i32
  }
  func.func @transform_2(%arg0: i32, %arg1: i32, %arg2: i32) -> (i32, i32) {
    %c1_i32 = arith.constant 1 : i32
    %0 = arith.muli %arg0, %c1_i32 : i32
    %1 = arith.addi %0, %arg2 : i32
    %c0_i32 = arith.constant 0 : i32
    %c0_i32_0 = arith.constant 0 : i32
    return %1, %c0_i32 : i32, i32
  }
  func.func @transform_3(%arg0: i32, %arg1: i32, %arg2: i32) -> (i32, i32, i32) {
    %c0_i32 = arith.constant 0 : i32
    %c0_i32_0 = arith.constant 0 : i32
    return %arg0, %arg1, %c0_i32 : i32, i32, i32
  }
}

</mosaic_0001>

<bundles_post_ra>
// kernel: tpu_custom_call.1
= control target key start
LH: loop header
LB: loop body
LE: loop exit
PB: predicated region body
PF: predicated region fallthrough
CT: control target
= control target key end

     0   :  { %8 = vsyncpa [#allocation3], 0  ;;  %s12880_s0 = inlined_call_operand.hbm [shape: s32[8,64], index: 0, kind: input, shape index: {}]   ;;  %s12881_s1 = inlined_call_operand.hbm [shape: f32[64,1024], index: 1, kind: input, shape index: {}]   ;;  %s12882_s2 = inlined_call_operand.hbm [shape: f32[1024,128], index: 2, kind: input, shape index: {}]   ;;  %s12883_s3 = inlined_call_operand.hbm [shape: f32[1,8,128], index: 3, kind: output, shape index: {}]  }
   0x1   :  { %9 = vsyncpa [#allocation6], 0 }
   0x2   :  { %10 = vsyncpa [#allocation4], 0  ;;  %s8204_s12 = smov [#allocation5]  }
   0x3   :  { %s30_s13 = sshll.u32 %s8204_s12, 4  ;;  %s31_s13 = int_to_ptr.vmem [resolvable:$true] %s30_s13 }
   0x4   :  { %s8126_s14 = scalar_lea.vmem %s31_s13, 8192  ;;  %p8131_p1 = scmp.lt.s32.totalorder %s31_s13, %s31_s13 }
   0x5   :  { %p8127_p0 = scmp.ne.s32.totalorder %s31_s13, %s8126_s14  ;;  %p8132_p2 = scmp.lt.s32.totalorder %s8126_s14, %s8126_s14 }
   0x7   :  { %p8133_p3 = por %p8132_p2, %p8131_p1 }
   0x9   :  { %p8134_p4 = pnand %p8133_p3, %p8127_p0 }
   0xb   :  { %8137 = shalt.err (!%p8134_p4)
}
   0xc   :  { %s8205_s15 = smov 1024   ;;  %s8206_s16 = smov 64  }
   0xd   :  { %36 = dma.hbm_to_vmem [thread:$0]  %s12881_s1, 8192, %s31_s13, [#allocation6], %s8205_s15, %s8205_s15, %s8206_s16  }
   0xe   :  { %s8207_s19 = smov [#allocation2]   ;;  %s8208_s21 = smov [#allocation7]  }
   0xf   :  { %s17_s20 = sshll.u32 %s8207_s19, 4  ;;  %s46_s22 = sshll.u32 %s8208_s21, 4  ;;  %s18_s20 = int_to_ptr.vmem [resolvable:$true] %s17_s20  ;;  %s47_s22 = int_to_ptr.vmem [resolvable:$true] %s46_s22 }
  0x10   :  { %s8146_s23 = scalar_lea.vmem %s18_s20, 128  ;;  %p8151_p6 = scmp.lt.s32.totalorder %s18_s20, %s18_s20 }
  0x11   :  { %p8147_p5 = scmp.ne.s32.totalorder %s18_s20, %s8146_s23  ;;  %p8152_p7 = scmp.lt.s32.totalorder %s8146_s23, %s8146_s23 }
  0x13   :  { %p8153_p8 = por %p8152_p7, %p8151_p6 }
  0x15   :  { %p8154_p9 = pnand %p8153_p8, %p8147_p5 }
  0x17   :  { %8157 = shalt.err (!%p8154_p9)
}
  0x18   :  { %20 = dma.hbm_to_vmem [thread:$0]  %s12880_s0, 128, %s18_s20, [#allocation3]  }
  0x19   :  { %s8166_s26 = scalar_lea.vmem %s47_s22, 16384  ;;  %p8171_p11 = scmp.lt.s32.totalorder %s47_s22, %s47_s22 }
  0x1a   :  { %p8167_p10 = scmp.ne.s32.totalorder %s47_s22, %s8166_s26  ;;  %p8172_p12 = scmp.lt.s32.totalorder %s8166_s26, %s8166_s26 }
  0x1c   :  { %p8173_p13 = por %p8172_p12, %p8171_p11 }
  0x1e   :  { %p8174_p0 = pnand %p8173_p13, %p8167_p10 }
  0x20   :  { %8177 = shalt.err (!%p8174_p0)
}
  0x21   :  { %s8209_s1 = smov 128   ;;  %s8210_s27 = smov 8  }
  0x22   :  { %52 = dma.hbm_to_vmem [thread:$0]  %s12882_s2, 16384, %s47_s22, [#allocation6], %s8209_s1, %s8209_s1, %s8210_s27  }
  0x23   :  { %8198 = dma.done.wait [#allocation3], 128  }
  0x24   :  { %8199 = vsyncadd [#allocation3], 4294967168 }
  0x25   :  { %8200 = dma.done.wait [#allocation6], 24576  }
  0x26   :  { %8201 = vsyncadd [#allocation6], 4294942720  ;;  %v8211_v0 = vmov 2   ;;  %v8212_v1 = vmov 0   ;;  %v8305_v2 = vld [vmem:[#allocation2] sm:$0xff]  ;;  %v8213_v3 = vmov 3   ;;  %v73_v5 = vlaneseq }
  0x27   :  { %8053 = vset.pattern.permute.xlu1 %v8211_v0  ;;  %8051 = vset.pattern.permute.xlu0 %v8212_v1  ;;  %v8214_v4 = vmov 1   ;;  %v8215_v6 = vmov 4   ;;  %v8216_v7 = vmov 5   ;;  %v320_v8 = vld [vmem:[#allocation5 + $0x2] ss:$8 sm:$0xf] }
  0x28   :  { %325 = vperm.xlu1 %8053, %v8305_v2   ;;  %97 = vperm.xlu0 %8051, %v8305_v2   ;;  %v321_v9 = vld [vmem:[#allocation5 + $0x2] ss:$8 sm:$0xf0]  ;;  %v109_v10 = vshrl.u32 %v73_v5, 7  ;;  %v8217_v12 = vmov 6   ;;  %v8218_v13 = vmov 8  }
  0x29   :  { %v8313_v11 = vor.u32 %v321_v9, %v320_v8  ;;  %v8317_v14 = vand.u32 127, %v73_v5  ;;  %v92_v17 = vld [vmem:[#allocation5] ss:$8 sm:$0xf]  ;;  %v8219_v26 = vmov 7   ;;  %v8220_v27 = vmov 11  }
  0x2a   :  { %v8319_v15 = vsub.s32 0, %v109_v10  ;;  %v8321_v16 = vsub.s32 1, %v109_v10  ;;  %v8323_v18 = vsub.s32 2, %v109_v10  ;;  %v8325_v19 = vsub.s32 3, %v109_v10  ;;  %s8275_s0 = smov [#allocation8]  }
  0x2b   :  { %v8327_v20 = vsub.s32 4, %v109_v10  ;;  %v93_v21 = vld [vmem:[#allocation5] ss:$8 sm:$0xf0]  ;;  %v8329_v22 = vsub.s32 5, %v109_v10  ;;  %v8331_v23 = vsub.s32 6, %v109_v10 }
  0x2c   :  { %8054 = vset.pattern.permute.xlu1 %v8213_v3  ;;  %8052 = vset.pattern.permute.xlu0 %v8214_v4  ;;  %12970 = vst [vmem:[#allocation12_spill] sm:$0xff] %v8319_v15  ;;  %12971 = vst [vmem:[#allocation13_spill] sm:$0xff] %v8321_v16  ;;  %v8333_v24 = vsub.s32 7, %v109_v10  ;;  %v8336_v25 = vsub.f32 0.0, %v8313_v11  ;;  %v8339_v28 = vadd.s32 128, %v8317_v14  ;;  %v8345_v31 = vor.u32 %v93_v21, %v92_v17  ;;  %s7820_s2 = sshll.u32 %s8275_s0, 4  ;;  %s7821_s2 = int_to_ptr.vmem [resolvable:$true] %s7820_s2 }
  0x2d   :  { %439 = vperm.xlu1 %8054, %v8305_v2   ;;  %211 = vperm.xlu0 %8052, %v8305_v2   ;;  %12972 = vst [vmem:[#allocation14_spill] sm:$0xff] %v8327_v20  ;;  %12973 = vst [vmem:[#allocation15_spill] sm:$0xff] %v8329_v22  ;;  %v434_v32 = vld [vmem:[#allocation5 + $0x3] ss:$8 sm:$0xf]  ;;  %v8221_v53 = vmov 9   ;;  %p8183_p2 = scmp.lt.s32.totalorder %s7821_s2, %s7821_s2 }
  0x2e   :  { %12974 = vst [vmem:[#allocation16_spill] sm:$0xff] %v8331_v23  ;;  %12975 = vst [vmem:[#allocation17_spill] sm:$0xff] %v8333_v24  ;;  %v435_v33 = vld [vmem:[#allocation5 + $0x3] ss:$8 sm:$0xf0]  ;;  %v8378_v52 = vsub.f32 0.0, %v8345_v31  ;;  %v13013_v48 = vrot.slane %v8336_v25, %v8327_v20 }
  0x2f   :  { %v206_v37 = vld [vmem:[#allocation5 + $0x1] ss:$8 sm:$0xf]  ;;  %v548_v43 = vld [vmem:[#allocation5 + $0x4] ss:$8 sm:$0xf]  ;;  %v8383_v56 = vor.u32 %v435_v33, %v434_v32 }
  0x30   :  { %v207_v38 = vld [vmem:[#allocation5 + $0x1] ss:$8 sm:$0xf0]  ;;  %v549_v44 = vld [vmem:[#allocation5 + $0x4] ss:$8 sm:$0xf0] }
  0x31   :  { %8055 = vset.pattern.permute.xlu1 %v8215_v6  ;;  %8056 = vset.pattern.permute.xlu0 %v8216_v7  ;;  %v8222_v54 = vmov 14   ;;  %v8381_v55 = vadd.s32 256, %v8317_v14  ;;  %v8385_v57 = vor.u32 %v207_v38, %v206_v37  ;;  %v8387_v58 = vor.u32 %v549_v44, %v548_v43  ;;  %v662_v4 = vld [vmem:[#allocation5 + $0x5] ss:$8 sm:$0xf]  ;;  %s8178_s30 = scalar_lea.vmem %s7821_s2, 128 }
  0x32   :  { %553 = vperm.xlu1 %8055, %v8305_v2   ;;  %667 = vperm.xlu0 %8056, %v8305_v2   ;;  %v8392_v59 = vadd.s32 384, %v8317_v14  ;;  %v8224_v17 = vmov 17   ;;  %v8426_v21 = vadd.s32 512, %v8317_v14  ;;  %v8437_v33 = vadd.s32 640, %v8317_v14  ;;  %p8179_p1 = scmp.ne.s32.totalorder %s7821_s2, %s8178_s30  ;;  %p8184_p3 = scmp.lt.s32.totalorder %s8178_s30, %s8178_s30 }
  0x33   :  { %v8225_v32 = vmov 12   ;;  %v8226_v38 = vmov 20   ;;  %v8471_v43 = vadd.s32 768, %v8317_v14  ;;  %v8488_v37 = vsub.f32 0.0, %v8387_v58 }
  0x34   :  { %12976 = vst [vmem:[#allocation18_spill] sm:$0xff] %v8426_v21  ;;  %v8227_v10 = vmov 13   ;;  %v776_v63 = vld [vmem:[#allocation5 + $0x6] ss:$8 sm:$0xf]  ;;  %v8523_v44 = vadd.s32 896, %v8317_v14  ;;  %p8185_p4 = por %p8184_p3, %p8183_p2 }
  0x35   :  { %12977 = vst [vmem:[#allocation19_spill] sm:$0xff] %v8471_v43  ;;  %v890_v8 = vld [vmem:[#allocation5 + $0x7] ss:$8 sm:$0xf]  ;;  %v8233_v1 = vmov 18   ;;  %v8250_v40 = vmov 31  }
  0x36   :  { %8057 = vset.pattern.permute.xlu1 %v8217_v12  ;;  %8059 = vset.pattern.permute.xlu0 %v8218_v13  ;;  %v8423_v12 = vsub.f32 0.0, %v8383_v56  ;;  %v8223_v13 = vmov 10   ;;  %12979 = vst [vmem:[#allocation21_spill] sm:$0xff] %v8523_v44  ;;  %v1118_v5 = vld [vmem:[#allocation5 + $0x41] ss:$8 sm:$0xf]  ;;  %p8186_p5 = pnand %p8185_p4, %p8179_p1 }
  0x37   :  { %781 = vperm.xlu1 %8057, %v8305_v2   ;;  %1009 = vperm.xlu0 %8059, %v8305_v2   ;;  %v1346_v9 = vld [vmem:[#allocation5 + $0x43] ss:$8 sm:$0xf]  ;;  %v1917_v45 = vld [vmem:[#allocation5 + $0x80] ss:$8 sm:$0xf0] }
  0x38   :  { %v2030_v35 = vld [vmem:[#allocation5 + $0x81] ss:$8 sm:$0xf]  ;;  %v8251_v36 = vmov 33  }
  0x39   :  { %v2031_v29 = vld [vmem:[#allocation5 + $0x81] ss:$8 sm:$0xf0] }
  0x3a   :  { %v8978_v42 = vor.u32 %v2031_v29, %v2030_v35  ;;  %v2258_v29 = vld [vmem:[#allocation5 + $0x83] ss:$8 sm:$0xf]  ;;  %v2373_v35 = vld [vmem:[#allocation5 + $0x84] ss:$8 sm:$0xf0] }
  0x3b   :  { %8058 = vset.pattern.permute.xlu1 %v8219_v26  ;;  %8062 = vset.pattern.permute.xlu0 %v8220_v27  ;;  %v8228_v27 = vmov 23   ;;  %v1689_v26 = vld [vmem:[#allocation5 + $0x46] ss:$8 sm:$0xf0] }
  0x3c   :  { %895 = vperm.xlu1 %8058, %v8305_v2   ;;  %1351 = vperm.xlu0 %8062, %v8305_v2   ;;  %13003 = vst [vmem:[#allocation45_spill] sm:$0xff] %v8978_v42 }
  0x40   :  { %8060 = vset.pattern.permute.xlu1 %v8221_v53  ;;  %8065 = vset.pattern.permute.xlu0 %v8222_v54  ;;  %v8230_v53 = vmov 26   ;;  %v1005_v54 = vld [vmem:[#allocation5 + $0x40] ss:$8 sm:$0xf0] }
  0x41   :  { %1123 = vperm.xlu1 %8060, %v8305_v2   ;;  %1693 = vperm.xlu0 %8065, %v8305_v2  }
  0x45   :  { %8061 = vset.pattern.permute.xlu1 %v8223_v13  ;;  %8068 = vset.pattern.permute.xlu0 %v8224_v17  ;;  %v8452_v13 = vsub.f32 0.0, %v8385_v57 }
  0x46   :  { %1237 = vperm.xlu1 %8061, %v8305_v2   ;;  %2035 = vperm.xlu0 %8068, %v8305_v2  }
  0x4a   :  { %8063 = vset.pattern.permute.xlu1 %v8225_v32  ;;  %8071 = vset.pattern.permute.xlu0 %v8226_v38  ;;  %v663_v38 = vld [vmem:[#allocation5 + $0x5] ss:$8 sm:$0xf0]  ;;  %v777_v32 = vld [vmem:[#allocation5 + $0x6] ss:$8 sm:$0xf0] }
  0x4b   :  { %1465 = vperm.xlu1 %8063, %v8305_v2   ;;  %2377 = vperm.xlu0 %8071, %v8305_v2   ;;  %v8518_v17 = vor.u32 %v663_v38, %v662_v4  ;;  %v8545_v62 = vor.u32 %v777_v32, %v776_v63  ;;  %v8231_v4 = vmov 16   ;;  %v1575_v63 = vld [vmem:[#allocation5 + $0x45] ss:$8 sm:$0xf0] }
  0x4d   :  { %12978 = vst [vmem:[#allocation20_spill] sm:$0xff] %v8518_v17  ;;  %12980 = vst [vmem:[#allocation22_spill] sm:$0xff] %v8545_v62  ;;  %v8554_v7 = vsub.f32 0.0, %v8518_v17  ;;  %v8577_v32 = vsub.f32 0.0, %v8545_v62 }
  0x4f   :  { %8064 = vset.pattern.permute.xlu1 %v8227_v10  ;;  %8074 = vset.pattern.permute.xlu0 %v8228_v27  ;;  %v891_v10 = vld [vmem:[#allocation5 + $0x7] ss:$8 sm:$0xf0]  ;;  %12981 = vst [vmem:[#allocation23_spill] sm:$0xff] %v8554_v7  ;;  %v8229_v27 = vmov 15   ;;  %12983 = vst [vmem:[#allocation25_spill] sm:$0xff] %v8577_v32 }
  0x50   :  { %1579 = vperm.xlu1 %8064, %v8305_v2   ;;  %2719 = vperm.xlu0 %8074, %v8305_v2   ;;  %v8560_v38 = vor.u32 %v891_v10, %v890_v8  ;;  %v1119_v10 = vld [vmem:[#allocation5 + $0x41] ss:$8 sm:$0xf0]  ;;  %v1233_v8 = vld [vmem:[#allocation5 + $0x42] ss:$8 sm:$0xf0] }
  0x51   :  { %v8663_v6 = vor.u32 %v1119_v10, %v1118_v5  ;;  %v1232_v5 = vld [vmem:[#allocation5 + $0x42] ss:$8 sm:$0xf] }
  0x52   :  { %12982 = vst [vmem:[#allocation24_spill] sm:$0xff] %v8560_v38  ;;  %v8616_v61 = vsub.f32 0.0, %v8560_v38  ;;  %v8710_v0 = vor.u32 %v1233_v8, %v1232_v5  ;;  %v8239_v8 = vmov 22   ;;  %v1461_v5 = vld [vmem:[#allocation5 + $0x44] ss:$8 sm:$0xf0] }
  0x53   :  { %12987 = vst [vmem:[#allocation29_spill] sm:$0xff] %v8663_v6  ;;  %v8694_v3 = vsub.f32 0.0, %v8663_v6  ;;  %v13059_v6 = vrot.slane %v8452_v13, %v8327_v20  ;;  %v8259_v38 = vmov 43  }
  0x54   :  { %8066 = vset.pattern.permute.xlu1 %v8229_v27  ;;  %8077 = vset.pattern.permute.xlu0 %v8230_v53  ;;  %v8232_v27 = vmov 29   ;;  %v1004_v53 = vld [vmem:[#allocation5 + $0x40] ss:$8 sm:$0xf]  ;;  %12984 = vst [vmem:[#allocation26_spill] sm:$0xff] %v8616_v61  ;;  %12989 = vst [vmem:[#allocation31_spill] sm:$0xff] %v8710_v0  ;;  %v13067_v61 = vrot.slane %v8423_v12, %v8321_v16 }
  0x55   :  { %1807 = vperm.xlu1 %8066, %v8305_v2   ;;  %3061 = vperm.xlu0 %8077, %v8305_v2   ;;  %v8632_v60 = vor.u32 %v1005_v54, %v1004_v53  ;;  %v8236_v54 = vmov 35   ;;  %12988 = vst [vmem:[#allocation30_spill] sm:$0xff] %v8694_v3  ;;  %v8741_v10 = vsub.f32 0.0, %v8710_v0  ;;  %v13061_v3 = vrot.slane %v8452_v13, %v8329_v22 }
  0x57   :  { %12985 = vst [vmem:[#allocation27_spill] sm:$0xff] %v8632_v60  ;;  %v8661_v53 = vsub.f32 0.0, %v8632_v60  ;;  %12990 = vst [vmem:[#allocation32_spill] sm:$0xff] %v8741_v10  ;;  %v13057_v10 = vrot.slane %v8452_v13, %v8325_v19  ;;  %v13063_v60 = vrot.slane %v8452_v13, %v8331_v23 }
  0x59   :  { %8067 = vset.pattern.permute.xlu1 %v8231_v4  ;;  %8080 = vset.pattern.permute.xlu0 %v8232_v27  ;;  %v8234_v27 = vmov 32   ;;  %12986 = vst [vmem:[#allocation28_spill] sm:$0xff] %v8661_v53  ;;  %v13065_v53 = vrot.slane %v8452_v13, %v8333_v24 }
  0x5a   :  { %1921 = vperm.xlu1 %8067, %v8305_v2   ;;  %3403 = vperm.xlu0 %8080, %v8305_v2  }
  0x5e   :  { %8069 = vset.pattern.permute.xlu1 %v8233_v1  ;;  %8083 = vset.pattern.permute.xlu0 %v8234_v27  ;;  %v8235_v1 = vmov 19   ;;  %v8237_v27 = vmov 21  }
  0x5f   :  { %2149 = vperm.xlu1 %8069, %v8305_v2   ;;  %3745 = vperm.xlu0 %8083, %v8305_v2  }
  0x63   :  { %8070 = vset.pattern.permute.xlu1 %v8235_v1  ;;  %8086 = vset.pattern.permute.xlu0 %v8236_v54  ;;  %v8238_v54 = vmov 38  }
  0x64   :  { %2263 = vperm.xlu1 %8070, %v8305_v2   ;;  %4087 = vperm.xlu0 %8086, %v8305_v2  }
  0x68   :  { %8072 = vset.pattern.permute.xlu1 %v8237_v27  ;;  %8089 = vset.pattern.permute.xlu0 %v8238_v54  ;;  %v1347_v54 = vld [vmem:[#allocation5 + $0x43] ss:$8 sm:$0xf0]  ;;  %v8240_v27 = vmov 41  }
  0x69   :  { %2491 = vperm.xlu1 %8072, %v8305_v2   ;;  %4429 = vperm.xlu0 %8089, %v8305_v2   ;;  %v8749_v4 = vor.u32 %v1347_v54, %v1346_v9  ;;  %v1460_v54 = vld [vmem:[#allocation5 + $0x44] ss:$8 sm:$0xf] }
  0x6a   :  { %v8788_v51 = vor.u32 %v1461_v5, %v1460_v54  ;;  %v1574_v54 = vld [vmem:[#allocation5 + $0x45] ss:$8 sm:$0xf]  ;;  %v1916_v5 = vld [vmem:[#allocation5 + $0x80] ss:$8 sm:$0xf] }
  0x6b   :  { %12991 = vst [vmem:[#allocation33_spill] sm:$0xff] %v8749_v4  ;;  %v8780_v41 = vsub.f32 0.0, %v8749_v4  ;;  %v8827_v49 = vor.u32 %v1575_v63, %v1574_v54  ;;  %v1688_v54 = vld [vmem:[#allocation5 + $0x46] ss:$8 sm:$0xf]  ;;  %v8245_v63 = vmov 27   ;;  %v8936_v30 = vor.u32 %v1917_v45, %v1916_v5 }
  0x6c   :  { %12993 = vst [vmem:[#allocation35_spill] sm:$0xff] %v8788_v51  ;;  %v8819_v39 = vsub.f32 0.0, %v8788_v51  ;;  %v8864_v47 = vor.u32 %v1689_v26, %v1688_v54  ;;  %v8248_v26 = vmov 53   ;;  %v2144_v54 = vld [vmem:[#allocation5 + $0x82] ss:$8 sm:$0xf] }
  0x6d   :  { %8073 = vset.pattern.permute.xlu1 %v8239_v8  ;;  %8092 = vset.pattern.permute.xlu0 %v8240_v27  ;;  %12992 = vst [vmem:[#allocation34_spill] sm:$0xff] %v8780_v41  ;;  %v8241_v8 = vmov 24   ;;  %v8242_v27 = vmov 44   ;;  %12995 = vst [vmem:[#allocation37_spill] sm:$0xff] %v8827_v49  ;;  %v8856_v9 = vsub.f32 0.0, %v8827_v49  ;;  %v8970_v1 = vsub.f32 0.0, %v8936_v30 }
  0x6e   :  { %2605 = vperm.xlu1 %8073, %v8305_v2   ;;  %4771 = vperm.xlu0 %8092, %v8305_v2   ;;  %12994 = vst [vmem:[#allocation36_spill] sm:$0xff] %v8819_v39  ;;  %12997 = vst [vmem:[#allocation39_spill] sm:$0xff] %v8864_v47  ;;  %v8895_v34 = vsub.f32 0.0, %v8864_v47  ;;  %v2145_v45 = vld [vmem:[#allocation5 + $0x82] ss:$8 sm:$0xf0]  ;;  %v13031_v47 = vrot.slane %v8378_v52, %v8331_v23  ;;  %v13050_v39 = vrot.slane %v8383_v56, %v8331_v23 }
  0x6f   :  { %12996 = vst [vmem:[#allocation38_spill] sm:$0xff] %v8856_v9  ;;  %13001 = vst [vmem:[#allocation43_spill] sm:$0xff] %v8936_v30  ;;  %v9018_v50 = vor.u32 %v2145_v45, %v2144_v54  ;;  %v8253_v5 = vmov 34   ;;  %v2372_v45 = vld [vmem:[#allocation5 + $0x84] ss:$8 sm:$0xf]  ;;  %v13055_v41 = vrot.slane %v8452_v13, %v8323_v18 }
  0x70   :  { %12998 = vst [vmem:[#allocation40_spill] sm:$0xff] %v8895_v34  ;;  %13002 = vst [vmem:[#allocation44_spill] sm:$0xff] %v8970_v1  ;;  %v13026_v1 = vrot.slane %v8313_v11, %v8329_v22 }
  0x71   :  { %13005 = vst [vmem:[#allocation47_spill] sm:$0xff] %v9018_v50 }
  0x72   :  { %8075 = vset.pattern.permute.xlu1 %v8241_v8  ;;  %8095 = vset.pattern.permute.xlu0 %v8242_v27  ;;  %v8243_v8 = vmov 25   ;;  %v8244_v27 = vmov 47  }
  0x73   :  { %2833 = vperm.xlu1 %8075, %v8305_v2   ;;  %5113 = vperm.xlu0 %8095, %v8305_v2  }
  0x77   :  { %8076 = vset.pattern.permute.xlu1 %v8243_v8  ;;  %8098 = vset.pattern.permute.xlu0 %v8244_v27  ;;  %v8246_v27 = vmov 50   ;;  %v1803_v8 = vld [vmem:[#allocation5 + $0x47] ss:$8 sm:$0xf0] }
  0x78   :  { %2947 = vperm.xlu1 %8076, %v8305_v2   ;;  %5455 = vperm.xlu0 %8098, %v8305_v2  }
  0x7c   :  { %8078 = vset.pattern.permute.xlu1 %v8245_v63  ;;  %8101 = vset.pattern.permute.xlu0 %v8246_v27  ;;  %v1802_v27 = vld [vmem:[#allocation5 + $0x47] ss:$8 sm:$0xf]  ;;  %v8247_v63 = vmov 28  }
  0x7d   :  { %3175 = vperm.xlu1 %8078, %v8305_v2   ;;  %5797 = vperm.xlu0 %8101, %v8305_v2   ;;  %v8903_v46 = vor.u32 %v1803_v8, %v1802_v27  ;;  %v8249_v27 = vmov 30   ;;  %v2259_v8 = vld [vmem:[#allocation5 + $0x83] ss:$8 sm:$0xf0] }
  0x7f   :  { %12999 = vst [vmem:[#allocation41_spill] sm:$0xff] %v8903_v46 }
  0x81   :  { %8079 = vset.pattern.permute.xlu1 %v8247_v63  ;;  %8104 = vset.pattern.permute.xlu0 %v8248_v26  ;;  %v8933_v63 = vsub.f32 0.0, %v8903_v46  ;;  %v9010_v26 = vsub.f32 0.0, %v8978_v42  ;;  %v2487_v42 = vld [vmem:[#allocation5 + $0x85] ss:$8 sm:$0xf0] }
  0x82   :  { %3289 = vperm.xlu1 %8079, %v8305_v2   ;;  %6139 = vperm.xlu0 %8104, %v8305_v2  }
  0x83   :  { %13000 = vst [vmem:[#allocation42_spill] sm:$0xff] %v8933_v63  ;;  %13004 = vst [vmem:[#allocation46_spill] sm:$0xff] %v9010_v26  ;;  %v8254_v26 = vmov 36  }
  0x86   :  { %8081 = vset.pattern.permute.xlu1 %v8249_v27  ;;  %v9056_v27 = vor.u32 %v2259_v8, %v2258_v29 }
  0x87   :  { %3517 = vperm.xlu1 %8081, %v8305_v2  }
  0x88   :  { %13007 = vst [vmem:[#allocation49_spill] sm:$0xff] %v9056_v27  ;;  %v9093_v54 = vsub.f32 0.0, %v9056_v27 }
  0x8a   :  { %13008 = vst [vmem:[#allocation50_spill] sm:$0xff] %v9093_v54 }
  0x8b   :  { %8082 = vset.pattern.permute.xlu1 %v8250_v40  ;;  %v8252_v40 = vmov 56  }
  0x8c   :  { %3631 = vperm.xlu1 %8082, %v8305_v2   ;;  %8107 = vset.pattern.permute.xlu0 %v8252_v40 }
  0x90   :  { %8084 = vset.pattern.permute.xlu1 %v8251_v36  ;;  %v9066_v36 = vld [vmem:[#allocation2] sm:$0xff] }
  0x91   :  { %3859 = vperm.xlu1 %8084, %v8305_v2   ;;  %v9048_v2 = vsub.f32 0.0, %v9018_v50  ;;  %6481 = vperm.xlu0 %8107, %v9066_v36   ;;  %v9099_v50 = vor.u32 %v2373_v35, %v2372_v45 }
  0x93   :  { %13006 = vst [vmem:[#allocation48_spill] sm:$0xff] %v9048_v2  ;;  %13009 = vst [vmem:[#allocation51_spill] sm:$0xff] %v9099_v50  ;;  %v9116_v40 = vsub.f32 0.0, %v9099_v50  ;;  %v13018_v50 = vrot.slane %v8313_v11, %v8319_v15 }
  0x95   :  { %8085 = vset.pattern.permute.xlu1 %v8253_v5  ;;  %13010 = vst [vmem:[#allocation52_spill] sm:$0xff] %v9116_v40  ;;  %v2486_v5 = vld [vmem:[#allocation5 + $0x85] ss:$8 sm:$0xf] }
  0x96   :  { %3973 = vperm.xlu1 %8085, %v9066_v36   ;;  %v9147_v2 = vor.u32 %v2487_v42, %v2486_v5  ;;  %v13014_v42 = vrot.slane %v8313_v11, %v8327_v20  ;;  %v13016_v5 = vrot.slane %v8313_v11, %v8331_v23 }
  0x98   :  { %13011 = vst [vmem:[#allocation53_spill] sm:$0xff] %v9147_v2  ;;  %v9165_v8 = vsub.f32 0.0, %v9147_v2  ;;  %v13017_v2 = vrot.slane %v8336_v25, %v8319_v15 }
  0x9a   :  { %8087 = vset.pattern.permute.xlu1 %v8254_v26  ;;  %v8255_v26 = vmov 37   ;;  %13012 = vst [vmem:[#allocation54_spill] sm:$0xff] %v9165_v8 }
  0x9b   :  { %4201 = vperm.xlu1 %8087, %v9066_v36  }
  0x9f   :  { %8088 = vset.pattern.permute.xlu1 %v8255_v26  ;;  %v8256_v26 = vmov 39  }
  0xa0   :  { %4315 = vperm.xlu1 %8088, %v9066_v36  }
  0xa3   :  { %v326_v45 = vpop.permute.xlu1 %325  ;;  %v98_v27 = vpop.permute.xlu0 %97 }
  0xa4   :  { %vm327_vm0 = vcmp.lt.s32.totalorder %v8317_v14, %v326_v45  ;;  %8090 = vset.pattern.permute.xlu1 %v8256_v26  ;;  %vm328_vm1 = vcmp.lt.s32.totalorder %v8339_v28, %v326_v45  ;;  %vm329_vm2 = vcmp.lt.s32.totalorder %v8381_v55, %v326_v45  ;;  %vm331_vm3 = vcmp.lt.s32.totalorder %v8426_v21, %v326_v45 }
  0xa5   :  { %vm333_vm4 = vcmp.lt.s32.totalorder %v8471_v43, %v326_v45  ;;  %4543 = vperm.xlu1 %8090, %v9066_v36   ;;  %vm330_vm5 = vcmp.lt.s32.totalorder %v8392_v59, %v326_v45  ;;  %vm332_vm6 = vcmp.lt.s32.totalorder %v8437_v33, %v326_v45  ;;  %vm334_vm7 = vcmp.lt.s32.totalorder %v8523_v44, %v326_v45 }
  0xa6   :  { %v9218_v35 = vsel %vm331_vm3, %v13014_v42, %v13013_v48  ;;  %v13015_v26 = vrot.slane %v8336_v25, %v8331_v23  ;;  %v9236_v40 = vsel %vm327_vm0, %v13018_v50, %v13017_v2  ;;  %v13019_v48 = vrot.slane %v8336_v25, %v8321_v16 }
  0xa7   :  { %v13020_v42 = vrot.slane %v8313_v11, %v8321_v16  ;;  %vm99_vm8 = vcmp.lt.s32.totalorder %v8317_v14, %v98_v27  ;;  %vm100_vm9 = vcmp.lt.s32.totalorder %v8339_v28, %v98_v27  ;;  %vm101_vm10 = vcmp.lt.s32.totalorder %v8381_v55, %v98_v27 }
  0xa8   :  { %v9226_v29 = vsel %vm333_vm4, %v13016_v5, %v13015_v26  ;;  %v13021_v5 = vrot.slane %v8336_v25, %v8323_v18  ;;  %v13022_v26 = vrot.slane %v8313_v11, %v8323_v18  ;;  %vm103_vm11 = vcmp.lt.s32.totalorder %v8426_v21, %v98_v27  ;;  %v9259_v50 = vpop.permute.xlu1 %439 }
  0xa9   :  { %v9244_v54 = vsel %vm328_vm1, %v13020_v42, %v13019_v48  ;;  %vm105_vm12 = vcmp.lt.s32.totalorder %v8471_v43, %v98_v27  ;;  %v8257_v2 = vmov 40   ;;  %v13023_v48 = vrot.slane %v8336_v25, %v8325_v19 }
  0xaa   :  { %v9252_v30 = vsel %vm329_vm2, %v13022_v26, %v13021_v5  ;;  %8091 = vset.pattern.permute.xlu1 %v8257_v2  ;;  %v13024_v42 = vrot.slane %v8313_v11, %v8325_v19  ;;  %v13025_v26 = vrot.slane %v8336_v25, %v8329_v22  ;;  %vm102_vm13 = vcmp.lt.s32.totalorder %v8392_v59, %v98_v27 }
  0xab   :  { %vm104_vm14 = vcmp.lt.s32.totalorder %v8437_v33, %v98_v27  ;;  %4657 = vperm.xlu1 %8091, %v9066_v36   ;;  %v13027_v2 = vrot.slane %v8336_v25, %v8333_v24  ;;  %vm106_vm15 = vcmp.lt.s32.totalorder %v8523_v44, %v98_v27  ;;  %v13032_v25 = vrot.slane %v8345_v31, %v8331_v23  ;;  %v212_v27 = vpop.permute.xlu0 %211 }
  0xac   :  { %v9269_v5 = vsel %vm330_vm5, %v13024_v42, %v13023_v48  ;;  %v422_v46 = vsel %vm332_vm6, %v13026_v1, %v13025_v26  ;;  %v13028_v48 = vrot.slane %v8313_v11, %v8333_v24  ;;  %v13029_v1 = vrot.slane %v8378_v52, %v8327_v20 }
  0xad   :  { %v13030_v26 = vrot.slane %v8345_v31, %v8327_v20  ;;  %v195_v34 = vsel %vm105_vm12, %v13032_v25, %v13031_v47  ;;  %v13033_v11 = vrot.slane %v8378_v52, %v8319_v15  ;;  %v13034_v45 = vrot.slane %v8345_v31, %v8319_v15 }
  0xae   :  { %v424_v42 = vsel %vm334_vm7, %v13028_v48, %v13027_v2  ;;  %v13035_v48 = vrot.slane %v8378_v52, %v8321_v16  ;;  %v13037_v47 = vrot.slane %v8378_v52, %v8323_v18  ;;  %v13038_v25 = vrot.slane %v8345_v31, %v8323_v18 }
  0xaf   :  { %v193_v63 = vsel %vm103_vm11, %v13030_v26, %v13029_v1  ;;  %v189_v2 = vsel %vm99_vm8, %v13034_v45, %v13033_v11  ;;  %v13036_v1 = vrot.slane %v8345_v31, %v8321_v16  ;;  %vm441_vm0 = vcmp.lt.s32.totalorder %v8317_v14, %v9259_v50 }
  0xb0   :  { %v191_v49 = vsel %vm101_vm10, %v13038_v25, %v13037_v47  ;;  %v13039_v11 = vrot.slane %v8378_v52, %v8325_v19  ;;  %v13040_v45 = vrot.slane %v8345_v31, %v8325_v19  ;;  %vm445_vm1 = vcmp.lt.s32.totalorder %v8426_v21, %v9259_v50 }
  0xb1   :  { %v190_v26 = vsel %vm100_vm9, %v13036_v1, %v13035_v48  ;;  %v13041_v48 = vrot.slane %v8378_v52, %v8329_v22  ;;  %v13042_v1 = vrot.slane %v8345_v31, %v8329_v22  ;;  %vm447_vm2 = vcmp.lt.s32.totalorder %v8471_v43, %v9259_v50 }
  0xb2   :  { %v192_v9 = vsel %vm102_vm13, %v13040_v45, %v13039_v11  ;;  %v13043_v47 = vrot.slane %v8378_v52, %v8333_v24  ;;  %v13044_v25 = vrot.slane %v8345_v31, %v8333_v24  ;;  %vm442_vm3 = vcmp.lt.s32.totalorder %v8339_v28, %v9259_v50 }
  0xb3   :  { %v194_v51 = vsel %vm104_vm14, %v13042_v1, %v13041_v48  ;;  %vm443_vm4 = vcmp.lt.s32.totalorder %v8381_v55, %v9259_v50  ;;  %vm446_vm5 = vcmp.lt.s32.totalorder %v8437_v33, %v9259_v50  ;;  %v8258_v45 = vmov 42  }
  0xb4   :  { %v196_v11 = vsel %vm106_vm15, %v13044_v25, %v13043_v47  ;;  %8093 = vset.pattern.permute.xlu1 %v8258_v45  ;;  %vm448_vm6 = vcmp.lt.s32.totalorder %v8523_v44, %v9259_v50  ;;  %v13045_v52 = vrot.slane %v8423_v12, %v8319_v15  ;;  %v13046_v31 = vrot.slane %v8383_v56, %v8319_v15 }
  0xb5   :  { %v13047_v1 = vrot.slane %v8423_v12, %v8327_v20  ;;  %v13048_v47 = vrot.slane %v8383_v56, %v8327_v20  ;;  %v13049_v45 = vrot.slane %v8423_v12, %v8331_v23  ;;  %4885 = vperm.xlu1 %8093, %v9066_v36   ;;  %vm213_vm7 = vcmp.lt.s32.totalorder %v8317_v14, %v212_v27 }
  0xb6   :  { %v531_v48 = vsel %vm441_vm0, %v13046_v31, %v13045_v52  ;;  %vm214_vm8 = vcmp.lt.s32.totalorder %v8339_v28, %v212_v27  ;;  %vm215_vm9 = vcmp.lt.s32.totalorder %v8381_v55, %v212_v27  ;;  %vm216_vm10 = vcmp.lt.s32.totalorder %v8392_v59, %v212_v27 }
  0xb7   :  { %v535_v25 = vsel %vm445_vm1, %v13048_v47, %v13047_v1  ;;  %v537_v4 = vsel %vm447_vm2, %v13050_v39, %v13049_v45  ;;  %vm444_vm11 = vcmp.lt.s32.totalorder %v8392_v59, %v9259_v50  ;;  %vm217_vm12 = vcmp.lt.s32.totalorder %v8426_v21, %v212_v27 }
  0xb8   :  { %vm218_vm13 = vcmp.lt.s32.totalorder %v8437_v33, %v212_v27  ;;  %vm219_vm14 = vcmp.lt.s32.totalorder %v8471_v43, %v212_v27  ;;  %vm220_vm15 = vcmp.lt.s32.totalorder %v8523_v44, %v212_v27  ;;  %v13051_v39 = vrot.slane %v8452_v13, %v8319_v15 }
  0xb9   :  { %v13052_v52 = vrot.slane %v8385_v57, %v8319_v15  ;;  %v13053_v1 = vrot.slane %v8452_v13, %v8321_v16  ;;  %v13054_v47 = vrot.slane %v8385_v57, %v8321_v16  ;;  %v13056_v27 = vrot.slane %v8385_v57, %v8323_v18  ;;  %8094 = vset.pattern.permute.xlu1 %v8259_v38 }
  0xba   :  { %v13070_v13 = vrot.slane %v8383_v56, %v8323_v18  ;;  %4999 = vperm.xlu1 %8094, %v9066_v36   ;;  %v13081_v50 = vrot.slane %v8488_v37, %v8329_v22 }
  0xbb   :  { %v303_v31 = vsel %vm213_vm7, %v13052_v52, %v13051_v39  ;;  %v304_v45 = vsel %vm214_vm8, %v13054_v47, %v13053_v1  ;;  %v305_v0 = vsel %vm215_vm9, %v13056_v27, %v13055_v41  ;;  %v13058_v39 = vrot.slane %v8385_v57, %v8325_v19 }
  0xbc   :  { %v13060_v1 = vrot.slane %v8385_v57, %v8327_v20  ;;  %v13062_v41 = vrot.slane %v8385_v57, %v8329_v22  ;;  %v311_v38 = vadd.f32 %v303_v31, %v189_v2  ;;  %v312_v8 = vadd.f32 %v304_v45, %v190_v26  ;;  %v554_v2 = vpop.permute.xlu1 %553 }
  0xbd   :  { %v306_v52 = vsel %vm216_vm10, %v13058_v39, %v13057_v10  ;;  %v13064_v10 = vrot.slane %v8385_v57, %v8331_v23  ;;  %vm555_vm0 = vcmp.lt.s32.totalorder %v8317_v14, %v554_v2  ;;  %vm557_vm1 = vcmp.lt.s32.totalorder %v8381_v55, %v554_v2 }
  0xbe   :  { %v307_v47 = vsel %vm217_vm12, %v13060_v1, %v13059_v6  ;;  %v308_v27 = vsel %vm218_vm13, %v13062_v41, %v13061_v3  ;;  %v13066_v6 = vrot.slane %v8385_v57, %v8333_v24  ;;  %v13068_v3 = vrot.slane %v8383_v56, %v8321_v16 }
  0xbf   :  { %v309_v39 = vsel %vm219_vm14, %v13064_v10, %v13063_v60  ;;  %v13069_v60 = vrot.slane %v8423_v12, %v8323_v18  ;;  %v315_v10 = vadd.f32 %v307_v47, %v193_v63  ;;  %vm559_vm2 = vcmp.lt.s32.totalorder %v8426_v21, %v554_v2 }
  0xc0   :  { %v310_v1 = vsel %vm220_vm15, %v13066_v6, %v13065_v53  ;;  %v532_v41 = vsel %vm442_vm3, %v13068_v3, %v13067_v61  ;;  %v313_v53 = vadd.f32 %v305_v0, %v191_v49  ;;  %v316_v6 = vadd.f32 %v308_v27, %v194_v51  ;;  %v668_v27 = vpop.permute.xlu0 %667 }
  0xc1   :  { %v533_v57 = vsel %vm443_vm4, %v13070_v13, %v13069_v60  ;;  %v317_v62 = vadd.f32 %v309_v39, %v195_v34  ;;  %v318_v32 = vadd.f32 %v310_v1, %v196_v11  ;;  %v314_v61 = vadd.f32 %v306_v52, %v192_v9 }
  0xc2   :  { %v425_v3 = vadd.f32 %v9236_v40, %v311_v38  ;;  %v427_v17 = vadd.f32 %v9252_v30, %v313_v53  ;;  %v429_v7 = vadd.f32 %v9218_v35, %v315_v10  ;;  %v430_v16 = vadd.f32 %v422_v46, %v316_v6 }
  0xc3   :  { %v431_v15 = vadd.f32 %v9226_v29, %v317_v62  ;;  %v432_v60 = vadd.f32 %v424_v42, %v318_v32  ;;  %v13071_v49 = vrot.slane %v8423_v12, %v8329_v22  ;;  %v13072_v34 = vrot.slane %v8383_v56, %v8329_v22 }
  0xc4   :  { %v13073_v30 = vrot.slane %v8423_v12, %v8333_v24  ;;  %v13074_v46 = vrot.slane %v8383_v56, %v8333_v24  ;;  %v539_v0 = vadd.f32 %v531_v48, %v425_v3  ;;  %v541_v32 = vadd.f32 %v533_v57, %v427_v17  ;;  %v13087_v57 = vld [vmem:[#allocation12_spill] sm:$0xff] }
  0xc5   :  { %v536_v51 = vsel %vm446_vm5, %v13072_v34, %v13071_v49  ;;  %v8260_v9 = vmov 45   ;;  %v543_v63 = vadd.f32 %v535_v25, %v429_v7  ;;  %v545_v40 = vadd.f32 %v537_v4, %v431_v15  ;;  %v13090_v34 = vld [vmem:[#allocation13_spill] sm:$0xff] }
  0xc6   :  { %v538_v62 = vsel %vm448_vm6, %v13074_v46, %v13073_v30  ;;  %8096 = vset.pattern.permute.xlu1 %v8260_v9  ;;  %v544_v29 = vadd.f32 %v536_v51, %v430_v16  ;;  %v426_v42 = vadd.f32 %v9244_v54, %v312_v8  ;;  %v428_v26 = vadd.f32 %v9269_v5, %v314_v61 }
  0xc7   :  { %v546_v35 = vadd.f32 %v538_v62, %v432_v60  ;;  %5227 = vperm.xlu1 %8096, %v9066_v36   ;;  %vm560_vm3 = vcmp.lt.s32.totalorder %v8437_v33, %v554_v2  ;;  %vm561_vm4 = vcmp.lt.s32.totalorder %v8471_v43, %v554_v2  ;;  %vm562_vm5 = vcmp.lt.s32.totalorder %v8523_v44, %v554_v2 }
  0xc8   :  { %v13075_v15 = vrot.slane %v8423_v12, %v8325_v19  ;;  %v13076_v16 = vrot.slane %v8383_v56, %v8325_v19  ;;  %vm556_vm6 = vcmp.lt.s32.totalorder %v8339_v28, %v554_v2  ;;  %vm558_vm7 = vcmp.lt.s32.totalorder %v8392_v59, %v554_v2  ;;  %v13097_v2 = vld [vmem:[#allocation20_spill] sm:$0xff] }
  0xc9   :  { %v13077_v17 = vrot.slane %v8488_v37, %v8323_v18  ;;  %v13078_v4 = vrot.slane %v8387_v58, %v8323_v18  ;;  %v13079_v12 = vrot.slane %v8488_v37, %v8327_v20  ;;  %v13080_v56 = vrot.slane %v8387_v58, %v8327_v20 }
  0xca   :  { %v534_v7 = vsel %vm444_vm11, %v13076_v16, %v13075_v15  ;;  %v13082_v5 = vrot.slane %v8387_v58, %v8329_v22  ;;  %v13083_v48 = vrot.slane %v8488_v37, %v8331_v23  ;;  %v13084_v25 = vrot.slane %v8387_v58, %v8331_v23 }
  0xcb   :  { %v647_v54 = vsel %vm557_vm1, %v13078_v4, %v13077_v17  ;;  %v649_v8 = vsel %vm559_vm2, %v13080_v56, %v13079_v12  ;;  %v13085_v45 = vrot.slane %v8488_v37, %v8333_v24  ;;  %v13086_v52 = vrot.slane %v8387_v58, %v8333_v24 }
  0xcc   :  { %v650_v11 = vsel %vm560_vm3, %v13082_v5, %v13081_v50  ;;  %v651_v31 = vsel %vm561_vm4, %v13084_v25, %v13083_v48  ;;  %v8261_v39 = vmov 46   ;;  %v540_v1 = vadd.f32 %v532_v41, %v426_v42  ;;  %v782_v5 = vpop.permute.xlu1 %781 }
  0xcd   :  { %v652_v47 = vsel %vm562_vm5, %v13086_v52, %v13085_v45  ;;  %8097 = vset.pattern.permute.xlu1 %v8261_v39  ;;  %v542_v13 = vadd.f32 %v534_v7, %v428_v26  ;;  %v13088_v38 = vrot.slane %v8488_v37, %v13087_v57  ;;  %v13089_v53 = vrot.slane %v8387_v58, %v13087_v57 }
  0xce   :  { %v655_v6 = vadd.f32 %v647_v54, %v541_v32  ;;  %5341 = vperm.xlu1 %8097, %v9066_v36   ;;  %v657_v61 = vadd.f32 %v649_v8, %v543_v63  ;;  %v658_v3 = vadd.f32 %v650_v11, %v544_v29  ;;  %v659_v60 = vadd.f32 %v651_v31, %v545_v40  ;;  %v13099_v40 = vld [vmem:[#allocation54_spill] sm:$0xff] }
  0xcf   :  { %v645_v10 = vsel %vm555_vm0, %v13089_v53, %v13088_v38  ;;  %v660_v49 = vadd.f32 %v652_v47, %v546_v35  ;;  %v13091_v41 = vrot.slane %v8488_v37, %v13090_v34  ;;  %v13092_v51 = vrot.slane %v8387_v58, %v13090_v34 }
  0xd0   :  { %v13093_v46 = vrot.slane %v8488_v37, %v8325_v19  ;;  %v13094_v62 = vrot.slane %v8387_v58, %v8325_v19  ;;  %vm669_vm8 = vcmp.lt.s32.totalorder %v8317_v14, %v668_v27  ;;  %vm671_vm9 = vcmp.lt.s32.totalorder %v8381_v55, %v668_v27  ;;  %v13095_v58 = vld [vmem:[#allocation23_spill] sm:$0xff] }
  0xd1   :  { %v646_v30 = vsel %vm556_vm6, %v13092_v51, %v13091_v41  ;;  %vm673_vm10 = vcmp.lt.s32.totalorder %v8426_v21, %v668_v27  ;;  %vm674_vm11 = vcmp.lt.s32.totalorder %v8437_v33, %v668_v27  ;;  %vm675_vm12 = vcmp.lt.s32.totalorder %v8471_v43, %v668_v27 }
  0xd2   :  { %v648_v32 = vsel %vm558_vm7, %v13094_v62, %v13093_v46  ;;  %vm676_vm13 = vcmp.lt.s32.totalorder %v8523_v44, %v668_v27  ;;  %vm670_vm14 = vcmp.lt.s32.totalorder %v8339_v28, %v668_v27  ;;  %vm672_vm15 = vcmp.lt.s32.totalorder %v8392_v59, %v668_v27  ;;  %v13114_v27 = vld [vmem:[#allocation25_spill] sm:$0xff] }
  0xd3   :  { %v13096_v37 = vrot.slane %v13095_v58, %v8323_v18  ;;  %v13098_v9 = vrot.slane %v13097_v2, %v8323_v18  ;;  %v8262_v29 = vmov 48   ;;  %v2570_v35 = vrot.slane %v13099_v40, %v8331_v23 }
  0xd4   :  { %8099 = vset.pattern.permute.xlu1 %v8262_v29  ;;  %v13100_v42 = vrot.slane %v13095_v58, %v8327_v20  ;;  %v13101_v26 = vrot.slane %v13097_v2, %v8327_v20  ;;  %v13102_v16 = vrot.slane %v13095_v58, %v8329_v22  ;;  %v13103_v7 = vrot.slane %v13097_v2, %v8329_v22 }
  0xd5   :  { %v761_v63 = vsel %vm671_vm9, %v13098_v9, %v13096_v37  ;;  %v13104_v4 = vrot.slane %v13095_v58, %v8331_v23  ;;  %v13105_v54 = vrot.slane %v13097_v2, %v8331_v23  ;;  %v13106_v56 = vrot.slane %v13095_v58, %v8333_v24  ;;  %5569 = vperm.xlu1 %8099, %v9066_v36  }
  0xd6   :  { %v763_v15 = vsel %vm673_vm10, %v13101_v26, %v13100_v42  ;;  %v764_v17 = vsel %vm674_vm11, %v13103_v7, %v13102_v16  ;;  %v13107_v8 = vrot.slane %v13097_v2, %v8333_v24  ;;  %v653_v11 = vadd.f32 %v645_v10, %v539_v0  ;;  %v896_v7 = vpop.permute.xlu1 %895 }
  0xd7   :  { %v765_v12 = vsel %vm675_vm12, %v13105_v54, %v13104_v4  ;;  %v654_v48 = vadd.f32 %v646_v30, %v540_v1  ;;  %v656_v25 = vadd.f32 %v648_v32, %v542_v13  ;;  %v13108_v31 = vrot.slane %v13095_v58, %v13087_v57 }
  0xd8   :  { %v766_v50 = vsel %vm676_vm13, %v13107_v8, %v13106_v56  ;;  %v13109_v45 = vrot.slane %v13097_v2, %v13087_v57  ;;  %v13110_v47 = vrot.slane %v13095_v58, %v13090_v34  ;;  %v13111_v39 = vrot.slane %v13097_v2, %v13090_v34 }
  0xd9   :  { %v13112_v1 = vrot.slane %v13095_v58, %v8325_v19  ;;  %v13113_v13 = vrot.slane %v13097_v2, %v8325_v19  ;;  %v771_v53 = vadd.f32 %v763_v15, %v657_v61  ;;  %v773_v10 = vadd.f32 %v765_v12, %v659_v60  ;;  %v13116_v61 = vld [vmem:[#allocation22_spill] sm:$0xff] }
  0xda   :  { %v759_v52 = vsel %vm669_vm8, %v13109_v45, %v13108_v31  ;;  %v760_v0 = vsel %vm670_vm14, %v13111_v39, %v13110_v47  ;;  %v769_v41 = vadd.f32 %v761_v63, %v655_v6  ;;  %v772_v51 = vadd.f32 %v764_v17, %v658_v3 }
  0xdb   :  { %v762_v38 = vsel %vm672_vm15, %v13113_v13, %v13112_v1  ;;  %v774_v30 = vadd.f32 %v766_v50, %v660_v49  ;;  %vm785_vm0 = vcmp.lt.s32.totalorder %v8381_v55, %v782_v5  ;;  %vm787_vm1 = vcmp.lt.s32.totalorder %v8426_v21, %v782_v5  ;;  %v13132_v13 = vld [vmem:[#allocation26_spill] sm:$0xff] }
  0xdc   :  { %vm788_vm2 = vcmp.lt.s32.totalorder %v8437_v33, %v782_v5  ;;  %vm789_vm3 = vcmp.lt.s32.totalorder %v8471_v43, %v782_v5  ;;  %vm790_vm4 = vcmp.lt.s32.totalorder %v8523_v44, %v782_v5  ;;  %v8263_v46 = vmov 49  }
  0xdd   :  { %8100 = vset.pattern.permute.xlu1 %v8263_v46  ;;  %v767_v62 = vadd.f32 %v759_v52, %v653_v11  ;;  %vm783_vm5 = vcmp.lt.s32.totalorder %v8317_v14, %v782_v5  ;;  %vm784_vm6 = vcmp.lt.s32.totalorder %v8339_v28, %v782_v5  ;;  %v13115_v6 = vrot.slane %v13114_v27, %v8323_v18 }
  0xde   :  { %v13117_v3 = vrot.slane %v13116_v61, %v8323_v18  ;;  %5683 = vperm.xlu1 %8100, %v9066_v36   ;;  %v13118_v49 = vrot.slane %v13114_v27, %v8327_v20  ;;  %v13119_v32 = vrot.slane %v13116_v61, %v8327_v20  ;;  %v13120_v37 = vrot.slane %v13114_v27, %v8329_v22 }
  0xdf   :  { %v13121_v2 = vrot.slane %v13116_v61, %v8329_v22  ;;  %v13122_v63 = vrot.slane %v13114_v27, %v8331_v23  ;;  %v13123_v29 = vrot.slane %v13116_v61, %v8331_v23  ;;  %v13124_v26 = vrot.slane %v13114_v27, %v8333_v24 }
  0xe0   :  { %v875_v60 = vsel %vm785_vm0, %v13117_v3, %v13115_v6  ;;  %v877_v58 = vsel %vm787_vm1, %v13119_v32, %v13118_v49  ;;  %v13125_v15 = vrot.slane %v13116_v61, %v8333_v24  ;;  %v768_v17 = vadd.f32 %v760_v0, %v654_v48 }
  0xe1   :  { %v878_v9 = vsel %vm788_vm2, %v13121_v2, %v13120_v37  ;;  %v879_v42 = vsel %vm789_vm3, %v13123_v29, %v13122_v63  ;;  %v770_v4 = vadd.f32 %v762_v38, %v656_v25  ;;  %vm786_vm7 = vcmp.lt.s32.totalorder %v8392_v59, %v782_v5  ;;  %v1010_v37 = vpop.permute.xlu0 %1009 }
  0xe2   :  { %v880_v16 = vsel %vm790_vm4, %v13125_v15, %v13124_v26  ;;  %v883_v54 = vadd.f32 %v875_v60, %v769_v41  ;;  %v885_v12 = vadd.f32 %v877_v58, %v771_v53  ;;  %v886_v56 = vadd.f32 %v878_v9, %v772_v51  ;;  %v13134_v53 = vld [vmem:[#allocation24_spill] sm:$0xff] }
  0xe3   :  { %v887_v8 = vadd.f32 %v879_v42, %v773_v10  ;;  %v888_v50 = vadd.f32 %v880_v16, %v774_v30  ;;  %v13126_v11 = vrot.slane %v13114_v27, %v13087_v57  ;;  %v13127_v31 = vrot.slane %v13116_v61, %v13087_v57 }
  0xe4   :  { %v13128_v48 = vrot.slane %v13114_v27, %v13090_v34  ;;  %v13129_v25 = vrot.slane %v13116_v61, %v13090_v34  ;;  %vm897_vm8 = vcmp.lt.s32.totalorder %v8317_v14, %v896_v7  ;;  %vm899_vm9 = vcmp.lt.s32.totalorder %v8381_v55, %v896_v7 }
  0xe5   :  { %v873_v45 = vsel %vm783_vm5, %v13127_v31, %v13126_v11  ;;  %v8264_v47 = vmov 51   ;;  %vm901_vm10 = vcmp.lt.s32.totalorder %v8426_v21, %v896_v7  ;;  %vm902_vm11 = vcmp.lt.s32.totalorder %v8437_v33, %v896_v7 }
  0xe6   :  { %v874_v52 = vsel %vm784_vm6, %v13129_v25, %v13128_v48  ;;  %8102 = vset.pattern.permute.xlu1 %v8264_v47  ;;  %vm903_vm12 = vcmp.lt.s32.totalorder %v8471_v43, %v896_v7  ;;  %vm904_vm13 = vcmp.lt.s32.totalorder %v8523_v44, %v896_v7  ;;  %v13130_v39 = vrot.slane %v13114_v27, %v8325_v19 }
  0xe7   :  { %5911 = vperm.xlu1 %8102, %v9066_v36   ;;  %v13131_v0 = vrot.slane %v13116_v61, %v8325_v19  ;;  %vm898_vm14 = vcmp.lt.s32.totalorder %v8339_v28, %v896_v7  ;;  %vm900_vm15 = vcmp.lt.s32.totalorder %v8392_v59, %v896_v7  ;;  %v13133_v38 = vrot.slane %v13132_v13, %v8323_v18  ;;  %v13150_v7 = vld [vmem:[#allocation28_spill] sm:$0xff] }
  0xe8   :  { %v13135_v10 = vrot.slane %v13134_v53, %v8323_v18  ;;  %v13136_v51 = vrot.slane %v13132_v13, %v8327_v20  ;;  %v13137_v30 = vrot.slane %v13134_v53, %v8327_v20  ;;  %v13138_v5 = vrot.slane %v13132_v13, %v8329_v22 }
  0xe9   :  { %v876_v1 = vsel %vm786_vm7, %v13131_v0, %v13130_v39  ;;  %v13139_v27 = vrot.slane %v13134_v53, %v8329_v22  ;;  %v13140_v61 = vrot.slane %v13132_v13, %v8331_v23  ;;  %v13141_v3 = vrot.slane %v13134_v53, %v8331_v23 }
  0xea   :  { %v989_v41 = vsel %vm899_vm9, %v13135_v10, %v13133_v38  ;;  %v991_v46 = vsel %vm901_vm10, %v13137_v30, %v13136_v51  ;;  %v13142_v49 = vrot.slane %v13132_v13, %v8333_v24  ;;  %v13143_v32 = vrot.slane %v13134_v53, %v8333_v24 }
  0xeb   :  { %v992_v6 = vsel %vm902_vm11, %v13139_v27, %v13138_v5  ;;  %v993_v60 = vsel %vm903_vm12, %v13141_v3, %v13140_v61  ;;  %v881_v2 = vadd.f32 %v873_v45, %v767_v62  ;;  %v882_v9 = vadd.f32 %v874_v52, %v768_v17  ;;  %v1124_v5 = vpop.permute.xlu1 %1123 }
  0xec   :  { %v994_v58 = vsel %vm904_vm13, %v13143_v32, %v13142_v49  ;;  %v13144_v63 = vrot.slane %v13132_v13, %v13087_v57  ;;  %v13145_v29 = vrot.slane %v13134_v53, %v13087_v57  ;;  %v997_v26 = vadd.f32 %v989_v41, %v883_v54 }
  0xed   :  { %v999_v15 = vadd.f32 %v991_v46, %v885_v12  ;;  %v1000_v16 = vadd.f32 %v992_v6, %v886_v56  ;;  %v1001_v11 = vadd.f32 %v993_v60, %v887_v8  ;;  %v1002_v31 = vadd.f32 %v994_v58, %v888_v50  ;;  %v13152_v50 = vld [vmem:[#allocation27_spill] sm:$0xff] }
  0xee   :  { %v987_v42 = vsel %vm897_vm8, %v13145_v29, %v13144_v63  ;;  %v8265_v48 = vmov 52   ;;  %v13146_v62 = vrot.slane %v13132_v13, %v13090_v34  ;;  %v13147_v17 = vrot.slane %v13134_v53, %v13090_v34 }
  0xef   :  { %8103 = vset.pattern.permute.xlu1 %v8265_v48  ;;  %v13148_v25 = vrot.slane %v13132_v13, %v8325_v19  ;;  %v13149_v54 = vrot.slane %v13134_v53, %v8325_v19  ;;  %vm1011_vm0 = vcmp.lt.s32.totalorder %v8317_v14, %v1010_v37  ;;  %vm1013_vm1 = vcmp.lt.s32.totalorder %v8381_v55, %v1010_v37 }
  0xf0   :  { %v988_v45 = vsel %vm898_vm14, %v13147_v17, %v13146_v62  ;;  %6025 = vperm.xlu1 %8103, %v9066_v36   ;;  %vm1015_vm2 = vcmp.lt.s32.totalorder %v8426_v21, %v1010_v37  ;;  %vm1016_vm3 = vcmp.lt.s32.totalorder %v8437_v33, %v1010_v37  ;;  %vm1017_vm4 = vcmp.lt.s32.totalorder %v8471_v43, %v1010_v37 }
  0xf1   :  { %v990_v12 = vsel %vm900_vm15, %v13149_v54, %v13148_v25  ;;  %vm1018_vm5 = vcmp.lt.s32.totalorder %v8523_v44, %v1010_v37  ;;  %v884_v56 = vadd.f32 %v876_v1, %v770_v4  ;;  %vm1012_vm6 = vcmp.lt.s32.totalorder %v8339_v28, %v1010_v37 }
  0xf2   :  { %vm1014_vm7 = vcmp.lt.s32.totalorder %v8392_v59, %v1010_v37  ;;  %v13151_v8 = vrot.slane %v13150_v7, %v8323_v18  ;;  %v13153_v52 = vrot.slane %v13152_v50, %v8323_v18  ;;  %v13154_v39 = vrot.slane %v13150_v7, %v8327_v20 }
  0xf3   :  { %v13155_v0 = vrot.slane %v13152_v50, %v8327_v20  ;;  %v13156_v4 = vrot.slane %v13150_v7, %v8329_v22  ;;  %v13157_v1 = vrot.slane %v13152_v50, %v8329_v22  ;;  %v13158_v53 = vrot.slane %v13150_v7, %v8331_v23 }
  0xf4   :  { %v1103_v47 = vsel %vm1013_vm1, %v13153_v52, %v13151_v8  ;;  %v13159_v10 = vrot.slane %v13152_v50, %v8331_v23  ;;  %v13160_v51 = vrot.slane %v13150_v7, %v8333_v24  ;;  %v13161_v30 = vrot.slane %v13152_v50, %v8333_v24 }
  0xf5   :  { %v1105_v13 = vsel %vm1015_vm2, %v13155_v0, %v13154_v39  ;;  %v1106_v38 = vsel %vm1016_vm3, %v13157_v1, %v13156_v4  ;;  %v995_v27 = vadd.f32 %v987_v42, %v881_v2  ;;  %v996_v6 = vadd.f32 %v988_v45, %v882_v9  ;;  %v1238_v1 = vpop.permute.xlu1 %1237 }
  0xf6   :  { %v1107_v41 = vsel %vm1017_vm4, %v13159_v10, %v13158_v53  ;;  %v1108_v46 = vsel %vm1018_vm5, %v13161_v30, %v13160_v51  ;;  %v998_v61 = vadd.f32 %v990_v12, %v884_v56  ;;  %v13162_v3 = vrot.slane %v13150_v7, %v13087_v57 }
  0xf7   :  { %v13163_v60 = vrot.slane %v13152_v50, %v13087_v57  ;;  %v8266_v32 = vmov 54   ;;  %v13164_v58 = vrot.slane %v13150_v7, %v13090_v34  ;;  %v13165_v63 = vrot.slane %v13152_v50, %v13090_v34 }
  0xf8   :  { %8105 = vset.pattern.permute.xlu1 %v8266_v32  ;;  %v13166_v9 = vrot.slane %v13150_v7, %v8325_v19  ;;  %v13167_v29 = vrot.slane %v13152_v50, %v8325_v19  ;;  %v1113_v48 = vadd.f32 %v1105_v13, %v999_v15  ;;  %v1115_v62 = vadd.f32 %v1107_v41, %v1001_v11  ;;  %v13168_v15 = vld [vmem:[#allocation30_spill] sm:$0xff] }
  0xf9   :  { %v1101_v49 = vsel %vm1011_vm0, %v13163_v60, %v13162_v3  ;;  %v1102_v2 = vsel %vm1012_vm6, %v13165_v63, %v13164_v58  ;;  %6253 = vperm.xlu1 %8105, %v9066_v36   ;;  %v1111_v37 = vadd.f32 %v1103_v47, %v997_v26  ;;  %v1114_v17 = vadd.f32 %v1106_v38, %v1000_v16  ;;  %v13170_v16 = vld [vmem:[#allocation29_spill] sm:$0xff] }
  0xfa   :  { %v1104_v42 = vsel %vm1014_vm7, %v13167_v29, %v13166_v9  ;;  %v1116_v45 = vadd.f32 %v1108_v46, %v1002_v31  ;;  %vm1127_vm8 = vcmp.lt.s32.totalorder %v8381_v55, %v1124_v5  ;;  %vm1129_vm9 = vcmp.lt.s32.totalorder %v8426_v21, %v1124_v5  ;;  %v13188_v29 = vld [vmem:[#allocation31_spill] sm:$0xff] }
  0xfb   :  { %vm1130_vm10 = vcmp.lt.s32.totalorder %v8437_v33, %v1124_v5  ;;  %vm1131_vm11 = vcmp.lt.s32.totalorder %v8471_v43, %v1124_v5  ;;  %vm1132_vm12 = vcmp.lt.s32.totalorder %v8523_v44, %v1124_v5  ;;  %v1109_v25 = vadd.f32 %v1101_v49, %v995_v27 }
  0xfc   :  { %vm1125_vm13 = vcmp.lt.s32.totalorder %v8317_v14, %v1124_v5  ;;  %vm1126_vm14 = vcmp.lt.s32.totalorder %v8339_v28, %v1124_v5  ;;  %v13169_v26 = vrot.slane %v13168_v15, %v8323_v18  ;;  %v13171_v11 = vrot.slane %v13170_v16, %v8323_v18 }
  0xfd   :  { %v13172_v54 = vrot.slane %v13168_v15, %v8327_v20  ;;  %v13173_v12 = vrot.slane %v13170_v16, %v8327_v20  ;;  %v13174_v7 = vrot.slane %v13168_v15, %v8329_v22  ;;  %v13175_v8 = vrot.slane %v13170_v16, %v8329_v22 }
  0xfe   :  { %v1217_v31 = vsel %vm1127_vm8, %v13171_v11, %v13169_v26  ;;  %v13176_v52 = vrot.slane %v13168_v15, %v8331_v23  ;;  %v13177_v47 = vrot.slane %v13170_v16, %v8331_v23  ;;  %v13178_v0 = vrot.slane %v13168_v15, %v8333_v24 }
  0xff   :  { %v1219_v56 = vsel %vm1129_vm9, %v13173_v12, %v13172_v54  ;;  %v1220_v50 = vsel %vm1130_vm10, %v13175_v8, %v13174_v7  ;;  %v13179_v13 = vrot.slane %v13170_v16, %v8333_v24  ;;  %v8267_v38 = vmov 55   ;;  %v1352_v8 = vpop.permute.xlu0 %1351 }
 0x100   :  { %v1221_v39 = vsel %vm1131_vm11, %v13177_v47, %v13176_v52  ;;  %8106 = vset.pattern.permute.xlu1 %v8267_v38  ;;  %v1110_v53 = vadd.f32 %v1102_v2, %v996_v6  ;;  %v1112_v10 = vadd.f32 %v1104_v42, %v998_v61  ;;  %vm1128_vm15 = vcmp.lt.s32.totalorder %v8392_v59, %v1124_v5  ;;  %v13186_v2 = vld [vmem:[#allocation32_spill] sm:$0xff] }
 0x101   :  { %v1222_v4 = vsel %vm1132_vm12, %v13179_v13, %v13178_v0  ;;  %v1225_v41 = vadd.f32 %v1217_v31, %v1111_v37  ;;  %6367 = vperm.xlu1 %8106, %v9066_v36   ;;  %v1227_v51 = vadd.f32 %v1219_v56, %v1113_v48  ;;  %v1228_v30 = vadd.f32 %v1220_v50, %v1114_v17 }
 0x102   :  { %v1229_v46 = vadd.f32 %v1221_v39, %v1115_v62  ;;  %v1230_v27 = vadd.f32 %v1222_v4, %v1116_v45  ;;  %v13180_v3 = vrot.slane %v13168_v15, %v13087_v57  ;;  %v13181_v60 = vrot.slane %v13170_v16, %v13087_v57 }
 0x103   :  { %v13182_v6 = vrot.slane %v13168_v15, %v13090_v34  ;;  %v13183_v61 = vrot.slane %v13170_v16, %v13090_v34  ;;  %vm1239_vm0 = vcmp.lt.s32.totalorder %v8317_v14, %v1238_v1  ;;  %vm1241_vm1 = vcmp.lt.s32.totalorder %v8381_v55, %v1238_v1 }
 0x104   :  { %v1215_v49 = vsel %vm1125_vm13, %v13181_v60, %v13180_v3  ;;  %vm1243_vm2 = vcmp.lt.s32.totalorder %v8426_v21, %v1238_v1  ;;  %vm1244_vm3 = vcmp.lt.s32.totalorder %v8437_v33, %v1238_v1  ;;  %vm1245_vm4 = vcmp.lt.s32.totalorder %v8471_v43, %v1238_v1 }
 0x105   :  { %v1216_v32 = vsel %vm1126_vm14, %v13183_v61, %v13182_v6  ;;  %vm1246_vm5 = vcmp.lt.s32.totalorder %v8523_v44, %v1238_v1  ;;  %v13184_v58 = vrot.slane %v13168_v15, %v8325_v19  ;;  %v13185_v63 = vrot.slane %v13170_v16, %v8325_v19 }
 0x106   :  { %vm1240_vm6 = vcmp.lt.s32.totalorder %v8339_v28, %v1238_v1  ;;  %vm1242_vm7 = vcmp.lt.s32.totalorder %v8392_v59, %v1238_v1  ;;  %v13187_v9 = vrot.slane %v13186_v2, %v8323_v18  ;;  %v13189_v42 = vrot.slane %v13188_v29, %v8323_v18 }
 0x107   :  { %v1218_v5 = vsel %vm1128_vm15, %v13185_v63, %v13184_v58  ;;  %v8268_v62 = vmov 57   ;;  %v13190_v37 = vrot.slane %v13186_v2, %v8327_v20  ;;  %v13191_v17 = vrot.slane %v13188_v29, %v8327_v20 }
 0x108   :  { %v1331_v48 = vsel %vm1241_vm1, %v13189_v42, %v13187_v9  ;;  %8108 = vset.pattern.permute.xlu1 %v8268_v62  ;;  %v13192_v15 = vrot.slane %v13186_v2, %v8329_v22  ;;  %v13193_v26 = vrot.slane %v13188_v29, %v8329_v22  ;;  %v13194_v11 = vrot.slane %v13186_v2, %v8331_v23 }
 0x109   :  { %v1333_v45 = vsel %vm1243_vm2, %v13191_v17, %v13190_v37  ;;  %v13195_v31 = vrot.slane %v13188_v29, %v8331_v23  ;;  %v13196_v12 = vrot.slane %v13186_v2, %v8333_v24  ;;  %v13197_v56 = vrot.slane %v13188_v29, %v8333_v24  ;;  %6595 = vperm.xlu1 %8108, %v9066_v36   ;;  %v1466_v17 = vpop.permute.xlu1 %1465 }
 0x10a   :  { %v1334_v16 = vsel %vm1244_vm3, %v13193_v26, %v13192_v15  ;;  %v1223_v50 = vadd.f32 %v1215_v49, %v1109_v25  ;;  %v1224_v52 = vadd.f32 %v1216_v32, %v1110_v53  ;;  %v13198_v47 = vrot.slane %v13186_v2, %v13087_v57 }
 0x10b   :  { %v1335_v54 = vsel %vm1245_vm4, %v13195_v31, %v13194_v11  ;;  %v1336_v7 = vsel %vm1246_vm5, %v13197_v56, %v13196_v12  ;;  %v13199_v39 = vrot.slane %v13188_v29, %v13087_v57  ;;  %v1339_v13 = vadd.f32 %v1331_v48, %v1225_v41 }
 0x10c   :  { %v1341_v4 = vadd.f32 %v1333_v45, %v1227_v51  ;;  %v1342_v38 = vadd.f32 %v1334_v16, %v1228_v30  ;;  %v1343_v3 = vadd.f32 %v1335_v54, %v1229_v46  ;;  %v1344_v60 = vadd.f32 %v1336_v7, %v1230_v27  ;;  %v13204_v30 = vld [vmem:[#allocation34_spill] sm:$0xff]  ;;  %v13206_v46 = vld [vmem:[#allocation33_spill] sm:$0xff] }
 0x10d   :  { %v1329_v0 = vsel %vm1239_vm0, %v13199_v39, %v13198_v47  ;;  %v13200_v6 = vrot.slane %v13186_v2, %v13090_v34  ;;  %v13201_v36 = vrot.slane %v13188_v29, %v13090_v34  ;;  %v13202_v53 = vrot.slane %v13186_v2, %v8325_v19 }
 0x10e   :  { %v13203_v49 = vrot.slane %v13188_v29, %v8325_v19  ;;  %vm1353_vm8 = vcmp.lt.s32.totalorder %v8317_v14, %v1352_v8  ;;  %vm1355_vm9 = vcmp.lt.s32.totalorder %v8381_v55, %v1352_v8  ;;  %vm1357_vm10 = vcmp.lt.s32.totalorder %v8426_v21, %v1352_v8 }
 0x10f   :  { %v1330_v25 = vsel %vm1240_vm6, %v13201_v36, %v13200_v6  ;;  %vm1358_vm11 = vcmp.lt.s32.totalorder %v8437_v33, %v1352_v8  ;;  %vm1359_vm12 = vcmp.lt.s32.totalorder %v8471_v43, %v1352_v8  ;;  %vm1360_vm13 = vcmp.lt.s32.totalorder %v8523_v44, %v1352_v8 }
 0x110   :  { %v1332_v41 = vsel %vm1242_vm7, %v13203_v49, %v13202_v53  ;;  %v1226_v51 = vadd.f32 %v1218_v5, %v1112_v10  ;;  %vm1354_vm14 = vcmp.lt.s32.totalorder %v8339_v28, %v1352_v8  ;;  %vm1356_vm15 = vcmp.lt.s32.totalorder %v8392_v59, %v1352_v8 }
 0x111   :  { %v13205_v1 = vrot.slane %v13204_v30, %v8323_v18  ;;  %v13207_v27 = vrot.slane %v13206_v46, %v8323_v18  ;;  %v13208_v32 = vrot.slane %v13204_v30, %v8327_v20  ;;  %v13209_v58 = vrot.slane %v13206_v46, %v8327_v20 }
 0x112   :  { %v13210_v10 = vrot.slane %v13204_v30, %v8329_v22  ;;  %v13211_v5 = vrot.slane %v13206_v46, %v8329_v22  ;;  %v13212_v9 = vrot.slane %v13204_v30, %v8331_v23  ;;  %v13213_v29 = vrot.slane %v13206_v46, %v8331_v23 }
 0x113   :  { %v1445_v61 = vsel %vm1355_vm9, %v13207_v27, %v13205_v1  ;;  %v1447_v63 = vsel %vm1357_vm10, %v13209_v58, %v13208_v32  ;;  %v13214_v48 = vrot.slane %v13204_v30, %v8333_v24  ;;  %v13215_v62 = vrot.slane %v13206_v46, %v8333_v24 }
 0x114   :  { %v1448_v2 = vsel %vm1358_vm11, %v13211_v5, %v13210_v10  ;;  %v1449_v42 = vsel %vm1359_vm12, %v13213_v29, %v13212_v9  ;;  %v1337_v45 = vadd.f32 %v1329_v0, %v1223_v50  ;;  %v1338_v15 = vadd.f32 %v1330_v25, %v1224_v52 }
 0x115   :  { %v1450_v37 = vsel %vm1360_vm13, %v13215_v62, %v13214_v48  ;;  %v1340_v26 = vadd.f32 %v1332_v41, %v1226_v51  ;;  %v13216_v16 = vrot.slane %v13204_v30, %v13087_v57  ;;  %v13217_v11 = vrot.slane %v13206_v46, %v13087_v57 }
 0x116   :  { %v13218_v54 = vrot.slane %v13204_v30, %v13090_v34  ;;  %v13219_v12 = vrot.slane %v13206_v46, %v13090_v34  ;;  %v13220_v7 = vrot.slane %v13204_v30, %v8325_v19  ;;  %v13221_v50 = vrot.slane %v13206_v46, %v8325_v19 }
 0x117   :  { %v1443_v31 = vsel %vm1353_vm8, %v13217_v11, %v13216_v16  ;;  %v1455_v47 = vadd.f32 %v1447_v63, %v1341_v4  ;;  %v1457_v39 = vadd.f32 %v1449_v42, %v1343_v3  ;;  %v1453_v0 = vadd.f32 %v1445_v61, %v1339_v13  ;;  %v13222_v4 = vld [vmem:[#allocation36_spill] sm:$0xff]  ;;  %v1580_v63 = vpop.permute.xlu1 %1579 }
 0x118   :  { %v1444_v56 = vsel %vm1354_vm14, %v13219_v12, %v13218_v54  ;;  %v1446_v52 = vsel %vm1356_vm15, %v13221_v50, %v13220_v7  ;;  %v1456_v6 = vadd.f32 %v1448_v2, %v1342_v38  ;;  %v1458_v8 = vadd.f32 %v1450_v37, %v1344_v60  ;;  %v13224_v38 = vld [vmem:[#allocation35_spill] sm:$0xff]  ;;  %v13240_v54 = vld [vmem:[#allocation38_spill] sm:$0xff] }
 0x119   :  { %vm1469_vm0 = vcmp.lt.s32.totalorder %v8381_v55, %v1466_v17  ;;  %vm1471_vm1 = vcmp.lt.s32.totalorder %v8426_v21, %v1466_v17  ;;  %vm1472_vm2 = vcmp.lt.s32.totalorder %v8437_v33, %v1466_v17  ;;  %vm1473_vm3 = vcmp.lt.s32.totalorder %v8471_v43, %v1466_v17 }
 0x11a   :  { %vm1474_vm4 = vcmp.lt.s32.totalorder %v8523_v44, %v1466_v17  ;;  %v1451_v36 = vadd.f32 %v1443_v31, %v1337_v45  ;;  %vm1467_vm5 = vcmp.lt.s32.totalorder %v8317_v14, %v1466_v17  ;;  %vm1468_vm6 = vcmp.lt.s32.totalorder %v8339_v28, %v1466_v17 }
 0x11b   :  { %v13223_v13 = vrot.slane %v13222_v4, %v8323_v18  ;;  %v13225_v3 = vrot.slane %v13224_v38, %v8323_v18  ;;  %v13226_v25 = vrot.slane %v13222_v4, %v8327_v20  ;;  %v13227_v53 = vrot.slane %v13224_v38, %v8327_v20 }
 0x11c   :  { %v13228_v41 = vrot.slane %v13222_v4, %v8329_v22  ;;  %v13229_v51 = vrot.slane %v13224_v38, %v8329_v22  ;;  %v13230_v1 = vrot.slane %v13222_v4, %v8331_v23  ;;  %v13231_v46 = vrot.slane %v13224_v38, %v8331_v23 }
 0x11d   :  { %v1559_v60 = vsel %vm1469_vm0, %v13225_v3, %v13223_v13  ;;  %v1561_v49 = vsel %vm1471_vm1, %v13227_v53, %v13226_v25  ;;  %v13232_v61 = vrot.slane %v13222_v4, %v8333_v24  ;;  %v13233_v32 = vrot.slane %v13224_v38, %v8333_v24  ;;  %v1694_v53 = vpop.permute.xlu0 %1693 }
 0x11e   :  { %v1562_v30 = vsel %vm1472_vm2, %v13229_v51, %v13228_v41  ;;  %v1563_v27 = vsel %vm1473_vm3, %v13231_v46, %v13230_v1  ;;  %v1452_v10 = vadd.f32 %v1444_v56, %v1338_v15  ;;  %v1454_v5 = vadd.f32 %v1446_v52, %v1340_v26  ;;  %v13242_v56 = vld [vmem:[#allocation37_spill] sm:$0xff] }
 0x11f   :  { %v1564_v58 = vsel %vm1474_vm4, %v13233_v32, %v13232_v61  ;;  %vm1470_vm7 = vcmp.lt.s32.totalorder %v8392_v59, %v1466_v17  ;;  %v1567_v2 = vadd.f32 %v1559_v60, %v1453_v0  ;;  %v1569_v9 = vadd.f32 %v1561_v49, %v1455_v47 }
 0x120   :  { %v1570_v29 = vadd.f32 %v1562_v30, %v1456_v6  ;;  %v1571_v42 = vadd.f32 %v1563_v27, %v1457_v39  ;;  %v1572_v48 = vadd.f32 %v1564_v58, %v1458_v8  ;;  %v13234_v62 = vrot.slane %v13222_v4, %v13087_v57 }
 0x121   :  { %v13235_v37 = vrot.slane %v13224_v38, %v13087_v57  ;;  %v13236_v15 = vrot.slane %v13222_v4, %v13090_v34  ;;  %v13237_v26 = vrot.slane %v13224_v38, %v13090_v34  ;;  %vm1581_vm8 = vcmp.lt.s32.totalorder %v8317_v14, %v1580_v63 }
 0x122   :  { %vm1583_vm9 = vcmp.lt.s32.totalorder %v8381_v55, %v1580_v63  ;;  %vm1585_vm10 = vcmp.lt.s32.totalorder %v8426_v21, %v1580_v63  ;;  %vm1586_vm11 = vcmp.lt.s32.totalorder %v8437_v33, %v1580_v63  ;;  %vm1587_vm12 = vcmp.lt.s32.totalorder %v8471_v43, %v1580_v63 }
 0x123   :  { %v1557_v45 = vsel %vm1467_vm5, %v13235_v37, %v13234_v62  ;;  %v1558_v16 = vsel %vm1468_vm6, %v13237_v26, %v13236_v15  ;;  %vm1588_vm13 = vcmp.lt.s32.totalorder %v8523_v44, %v1580_v63  ;;  %v13238_v11 = vrot.slane %v13222_v4, %v8325_v19 }
 0x124   :  { %v13239_v31 = vrot.slane %v13224_v38, %v8325_v19  ;;  %vm1582_vm14 = vcmp.lt.s32.totalorder %v8339_v28, %v1580_v63  ;;  %vm1584_vm15 = vcmp.lt.s32.totalorder %v8392_v59, %v1580_v63  ;;  %v13241_v12 = vrot.slane %v13240_v54, %v8323_v18 }
 0x125   :  { %v13243_v7 = vrot.slane %v13242_v56, %v8323_v18  ;;  %v13244_v52 = vrot.slane %v13240_v54, %v8327_v20  ;;  %v13245_v47 = vrot.slane %v13242_v56, %v8327_v20  ;;  %v13246_v0 = vrot.slane %v13240_v54, %v8329_v22 }
 0x126   :  { %v1560_v17 = vsel %vm1470_vm7, %v13239_v31, %v13238_v11  ;;  %v13247_v6 = vrot.slane %v13242_v56, %v8329_v22  ;;  %v13248_v4 = vrot.slane %v13240_v54, %v8331_v23  ;;  %v13249_v13 = vrot.slane %v13242_v56, %v8331_v23 }
 0x127   :  { %v1673_v50 = vsel %vm1583_vm9, %v13243_v7, %v13241_v12  ;;  %v1675_v39 = vsel %vm1585_vm10, %v13245_v47, %v13244_v52  ;;  %v13250_v3 = vrot.slane %v13240_v54, %v8333_v24  ;;  %v13251_v60 = vrot.slane %v13242_v56, %v8333_v24  ;;  %v1808_v47 = vpop.permute.xlu1 %1807 }
 0x128   :  { %v1676_v8 = vsel %vm1586_vm11, %v13247_v6, %v13246_v0  ;;  %v1677_v38 = vsel %vm1587_vm12, %v13249_v13, %v13248_v4  ;;  %v1565_v49 = vadd.f32 %v1557_v45, %v1451_v36  ;;  %v1566_v41 = vadd.f32 %v1558_v16, %v1452_v10 }
 0x129   :  { %v1678_v25 = vsel %vm1588_vm13, %v13251_v60, %v13250_v3  ;;  %v13252_v51 = vrot.slane %v13240_v54, %v13087_v57  ;;  %v13253_v30 = vrot.slane %v13242_v56, %v13087_v57  ;;  %v1681_v46 = vadd.f32 %v1673_v50, %v1567_v2 }
 0x12a   :  { %v1683_v27 = vadd.f32 %v1675_v39, %v1569_v9  ;;  %v1684_v61 = vadd.f32 %v1676_v8, %v1570_v29  ;;  %v1685_v32 = vadd.f32 %v1677_v38, %v1571_v42  ;;  %v1686_v58 = vadd.f32 %v1678_v25, %v1572_v48  ;;  %v13258_v29 = vld [vmem:[#allocation40_spill] sm:$0xff]  ;;  %v13260_v42 = vld [vmem:[#allocation39_spill] sm:$0xff] }
 0x12b   :  { %v1671_v1 = vsel %vm1581_vm8, %v13253_v30, %v13252_v51  ;;  %v13254_v62 = vrot.slane %v13240_v54, %v13090_v34  ;;  %v13255_v36 = vrot.slane %v13242_v56, %v13090_v34  ;;  %v13256_v37 = vrot.slane %v13240_v54, %v8325_v19 }
 0x12c   :  { %v13257_v45 = vrot.slane %v13242_v56, %v8325_v19  ;;  %vm1695_vm0 = vcmp.lt.s32.totalorder %v8317_v14, %v1694_v53  ;;  %vm1697_vm1 = vcmp.lt.s32.totalorder %v8381_v55, %v1694_v53  ;;  %vm1699_vm2 = vcmp.lt.s32.totalorder %v8426_v21, %v1694_v53 }
 0x12d   :  { %v1672_v10 = vsel %vm1582_vm14, %v13255_v36, %v13254_v62  ;;  %vm1700_vm3 = vcmp.lt.s32.totalorder %v8437_v33, %v1694_v53  ;;  %vm1701_vm4 = vcmp.lt.s32.totalorder %v8471_v43, %v1694_v53  ;;  %vm1702_vm5 = vcmp.lt.s32.totalorder %v8523_v44, %v1694_v53 }
 0x12e   :  { %v1674_v2 = vsel %vm1584_vm15, %v13257_v45, %v13256_v37  ;;  %v1568_v9 = vadd.f32 %v1560_v17, %v1454_v5  ;;  %vm1696_vm6 = vcmp.lt.s32.totalorder %v8339_v28, %v1694_v53  ;;  %vm1698_vm7 = vcmp.lt.s32.totalorder %v8392_v59, %v1694_v53 }
 0x12f   :  { %v13259_v63 = vrot.slane %v13258_v29, %v8323_v18  ;;  %v13261_v48 = vrot.slane %v13260_v42, %v8323_v18  ;;  %v13262_v26 = vrot.slane %v13258_v29, %v8327_v20  ;;  %v13263_v16 = vrot.slane %v13260_v42, %v8327_v20 }
 0x130   :  { %v13264_v5 = vrot.slane %v13258_v29, %v8329_v22  ;;  %v13265_v31 = vrot.slane %v13260_v42, %v8329_v22  ;;  %v13266_v54 = vrot.slane %v13258_v29, %v8331_v23  ;;  %v13267_v12 = vrot.slane %v13260_v42, %v8331_v23 }
 0x131   :  { %v1787_v15 = vsel %vm1697_vm1, %v13261_v48, %v13259_v63  ;;  %v1789_v11 = vsel %vm1699_vm2, %v13263_v16, %v13262_v26  ;;  %v13268_v7 = vrot.slane %v13258_v29, %v8333_v24  ;;  %v13269_v50 = vrot.slane %v13260_v42, %v8333_v24 }
 0x132   :  { %v1790_v17 = vsel %vm1700_vm3, %v13265_v31, %v13264_v5  ;;  %v1791_v56 = vsel %vm1701_vm4, %v13267_v12, %v13266_v54  ;;  %v1679_v39 = vadd.f32 %v1671_v1, %v1565_v49  ;;  %v1680_v0 = vadd.f32 %v1672_v10, %v1566_v41 }
 0x133   :  { %v1792_v52 = vsel %vm1702_vm5, %v13269_v50, %v13268_v7  ;;  %v1682_v6 = vadd.f32 %v1674_v2, %v1568_v9  ;;  %v13270_v8 = vrot.slane %v13258_v29, %v13087_v57  ;;  %v13271_v4 = vrot.slane %v13260_v42, %v13087_v57 }
 0x134   :  { %v13272_v38 = vrot.slane %v13258_v29, %v13090_v34  ;;  %v13273_v3 = vrot.slane %v13260_v42, %v13090_v34  ;;  %v13274_v25 = vrot.slane %v13258_v29, %v8325_v19  ;;  %v13275_v49 = vrot.slane %v13260_v42, %v8325_v19 }
 0x135   :  { %v1785_v13 = vsel %vm1695_vm0, %v13271_v4, %v13270_v8  ;;  %v1797_v51 = vadd.f32 %v1789_v11, %v1683_v27  ;;  %v1799_v30 = vadd.f32 %v1791_v56, %v1685_v32  ;;  %v1795_v1 = vadd.f32 %v1787_v15, %v1681_v46  ;;  %v13276_v27 = vld [vmem:[#allocation42_spill] sm:$0xff]  ;;  %v1922_v11 = vpop.permute.xlu1 %1921 }
 0x136   :  { %v1786_v60 = vsel %vm1696_vm6, %v13273_v3, %v13272_v38  ;;  %v1788_v41 = vsel %vm1698_vm7, %v13275_v49, %v13274_v25  ;;  %v1798_v62 = vadd.f32 %v1790_v17, %v1684_v61  ;;  %v1800_v53 = vadd.f32 %v1792_v52, %v1686_v58  ;;  %v13278_v61 = vld [vmem:[#allocation41_spill] sm:$0xff]  ;;  %v13294_v38 = vld [vmem:[#allocation44_spill] sm:$0xff] }
 0x137   :  { %vm1811_vm8 = vcmp.lt.s32.totalorder %v8381_v55, %v1808_v47  ;;  %vm1813_vm9 = vcmp.lt.s32.totalorder %v8426_v21, %v1808_v47  ;;  %vm1814_vm10 = vcmp.lt.s32.totalorder %v8437_v33, %v1808_v47  ;;  %vm1815_vm11 = vcmp.lt.s32.totalorder %v8471_v43, %v1808_v47 }
 0x138   :  { %vm1816_vm12 = vcmp.lt.s32.totalorder %v8523_v44, %v1808_v47  ;;  %v1793_v36 = vadd.f32 %v1785_v13, %v1679_v39  ;;  %vm1809_vm13 = vcmp.lt.s32.totalorder %v8317_v14, %v1808_v47  ;;  %vm1810_vm14 = vcmp.lt.s32.totalorder %v8339_v28, %v1808_v47 }
 0x139   :  { %v13277_v46 = vrot.slane %v13276_v27, %v8323_v18  ;;  %v13279_v32 = vrot.slane %v13278_v61, %v8323_v18  ;;  %v13280_v10 = vrot.slane %v13276_v27, %v8327_v20  ;;  %v13281_v37 = vrot.slane %v13278_v61, %v8327_v20 }
 0x13a   :  { %v13282_v2 = vrot.slane %v13276_v27, %v8329_v22  ;;  %v13283_v9 = vrot.slane %v13278_v61, %v8329_v22  ;;  %v13284_v63 = vrot.slane %v13276_v27, %v8331_v23  ;;  %v13285_v42 = vrot.slane %v13278_v61, %v8331_v23 }
 0x13b   :  { %v1901_v58 = vsel %vm1811_vm8, %v13279_v32, %v13277_v46  ;;  %v1903_v45 = vsel %vm1813_vm9, %v13281_v37, %v13280_v10  ;;  %v13286_v15 = vrot.slane %v13276_v27, %v8333_v24  ;;  %v13287_v26 = vrot.slane %v13278_v61, %v8333_v24  ;;  %v2036_v37 = vpop.permute.xlu0 %2035 }
 0x13c   :  { %v1904_v29 = vsel %vm1814_vm10, %v13283_v9, %v13282_v2  ;;  %v1905_v48 = vsel %vm1815_vm11, %v13285_v42, %v13284_v63  ;;  %v1794_v5 = vadd.f32 %v1786_v60, %v1680_v0  ;;  %v1796_v31 = vadd.f32 %v1788_v41, %v1682_v6  ;;  %v13296_v60 = vld [vmem:[#allocation43_spill] sm:$0xff] }
 0x13d   :  { %v1906_v16 = vsel %vm1816_vm12, %v13287_v26, %v13286_v15  ;;  %vm1812_vm15 = vcmp.lt.s32.totalorder %v8392_v59, %v1808_v47  ;;  %v1909_v17 = vadd.f32 %v1901_v58, %v1795_v1  ;;  %v1911_v54 = vadd.f32 %v1903_v45, %v1797_v51 }
 0x13e   :  { %v1912_v12 = vadd.f32 %v1904_v29, %v1798_v62  ;;  %v1913_v56 = vadd.f32 %v1905_v48, %v1799_v30  ;;  %v1914_v7 = vadd.f32 %v1906_v16, %v1800_v53  ;;  %v13288_v50 = vrot.slane %v13276_v27, %v13087_v57 }
 0x13f   :  { %v13289_v52 = vrot.slane %v13278_v61, %v13087_v57  ;;  %v13290_v0 = vrot.slane %v13276_v27, %v13090_v34  ;;  %v13291_v6 = vrot.slane %v13278_v61, %v13090_v34  ;;  %vm1923_vm0 = vcmp.lt.s32.totalorder %v8317_v14, %v1922_v11 }
 0x140   :  { %vm1925_vm1 = vcmp.lt.s32.totalorder %v8381_v55, %v1922_v11  ;;  %vm1927_vm2 = vcmp.lt.s32.totalorder %v8426_v21, %v1922_v11  ;;  %vm1928_vm3 = vcmp.lt.s32.totalorder %v8437_v33, %v1922_v11  ;;  %vm1929_vm4 = vcmp.lt.s32.totalorder %v8471_v43, %v1922_v11 }
 0x141   :  { %v1899_v39 = vsel %vm1809_vm13, %v13289_v52, %v13288_v50  ;;  %v1900_v8 = vsel %vm1810_vm14, %v13291_v6, %v13290_v0  ;;  %vm1930_vm5 = vcmp.lt.s32.totalorder %v8523_v44, %v1922_v11  ;;  %v13292_v4 = vrot.slane %v13276_v27, %v8325_v19 }
 0x142   :  { %v13293_v13 = vrot.slane %v13278_v61, %v8325_v19  ;;  %vm1924_vm6 = vcmp.lt.s32.totalorder %v8339_v28, %v1922_v11  ;;  %vm1926_vm7 = vcmp.lt.s32.totalorder %v8392_v59, %v1922_v11  ;;  %v13295_v3 = vrot.slane %v13294_v38, %v8323_v18 }
 0x143   :  { %v13297_v25 = vrot.slane %v13296_v60, %v8323_v18  ;;  %v13298_v41 = vrot.slane %v13294_v38, %v8327_v20  ;;  %v13299_v51 = vrot.slane %v13296_v60, %v8327_v20  ;;  %v13300_v1 = vrot.slane %v13294_v38, %v8329_v22 }
 0x144   :  { %v1902_v47 = vsel %vm1812_vm15, %v13293_v13, %v13292_v4  ;;  %v13301_v62 = vrot.slane %v13296_v60, %v8329_v22  ;;  %v13302_v27 = vrot.slane %v13294_v38, %v8331_v23  ;;  %v13303_v46 = vrot.slane %v13296_v60, %v8331_v23 }
 0x145   :  { %v2015_v49 = vsel %vm1925_vm1, %v13297_v25, %v13295_v3  ;;  %v2017_v30 = vsel %vm1927_vm2, %v13299_v51, %v13298_v41  ;;  %v13304_v32 = vrot.slane %v13294_v38, %v8333_v24  ;;  %v13305_v58 = vrot.slane %v13296_v60, %v8333_v24  ;;  %v2150_v51 = vpop.permute.xlu1 %2149 }
 0x146   :  { %v2018_v53 = vsel %vm1928_vm3, %v13301_v62, %v13300_v1  ;;  %v2019_v61 = vsel %vm1929_vm4, %v13303_v46, %v13302_v27  ;;  %v1907_v45 = vadd.f32 %v1899_v39, %v1793_v36  ;;  %v1908_v2 = vadd.f32 %v1900_v8, %v1794_v5 }
 0x147   :  { %v2020_v10 = vsel %vm1930_vm5, %v13305_v58, %v13304_v32  ;;  %v13306_v9 = vrot.slane %v13294_v38, %v13087_v57  ;;  %v13307_v29 = vrot.slane %v13296_v60, %v13087_v57  ;;  %v2023_v42 = vadd.f32 %v2015_v49, %v1909_v17 }
 0x148   :  { %v2025_v48 = vadd.f32 %v2017_v30, %v1911_v54  ;;  %v2026_v15 = vadd.f32 %v2018_v53, %v1912_v12  ;;  %v2027_v26 = vadd.f32 %v2019_v61, %v1913_v56  ;;  %v2028_v16 = vadd.f32 %v2020_v10, %v1914_v7  ;;  %v13312_v12 = vld [vmem:[#allocation46_spill] sm:$0xff]  ;;  %v13314_v56 = vld [vmem:[#allocation45_spill] sm:$0xff] }
 0x149   :  { %v2013_v63 = vsel %vm1923_vm0, %v13307_v29, %v13306_v9  ;;  %v13308_v50 = vrot.slane %v13294_v38, %v13090_v34  ;;  %v13309_v36 = vrot.slane %v13296_v60, %v13090_v34  ;;  %v13310_v52 = vrot.slane %v13294_v38, %v8325_v19 }
 0x14a   :  { %v13311_v39 = vrot.slane %v13296_v60, %v8325_v19  ;;  %vm2037_vm8 = vcmp.lt.s32.totalorder %v8317_v14, %v2036_v37  ;;  %vm2039_vm9 = vcmp.lt.s32.totalorder %v8381_v55, %v2036_v37  ;;  %vm2041_vm10 = vcmp.lt.s32.totalorder %v8426_v21, %v2036_v37 }
 0x14b   :  { %v2014_v5 = vsel %vm1924_vm6, %v13309_v36, %v13308_v50  ;;  %vm2042_vm11 = vcmp.lt.s32.totalorder %v8437_v33, %v2036_v37  ;;  %vm2043_vm12 = vcmp.lt.s32.totalorder %v8471_v43, %v2036_v37  ;;  %vm2044_vm13 = vcmp.lt.s32.totalorder %v8523_v44, %v2036_v37 }
 0x14c   :  { %v2016_v17 = vsel %vm1926_vm7, %v13311_v39, %v13310_v52  ;;  %v1910_v54 = vadd.f32 %v1902_v47, %v1796_v31  ;;  %vm2038_vm14 = vcmp.lt.s32.totalorder %v8339_v28, %v2036_v37  ;;  %vm2040_vm15 = vcmp.lt.s32.totalorder %v8392_v59, %v2036_v37 }
 0x14d   :  { %v13313_v11 = vrot.slane %v13312_v12, %v8323_v18  ;;  %v13315_v7 = vrot.slane %v13314_v56, %v8323_v18  ;;  %v13316_v6 = vrot.slane %v13312_v12, %v8327_v20  ;;  %v13317_v8 = vrot.slane %v13314_v56, %v8327_v20 }
 0x14e   :  { %v13318_v31 = vrot.slane %v13312_v12, %v8329_v22  ;;  %v13319_v13 = vrot.slane %v13314_v56, %v8329_v22  ;;  %v13320_v38 = vrot.slane %v13312_v12, %v8331_v23  ;;  %v13321_v3 = vrot.slane %v13314_v56, %v8331_v23 }
 0x14f   :  { %v2129_v0 = vsel %vm2039_vm9, %v13315_v7, %v13313_v11  ;;  %v2131_v4 = vsel %vm2041_vm10, %v13317_v8, %v13316_v6  ;;  %v13322_v25 = vrot.slane %v13312_v12, %v8333_v24  ;;  %v13323_v49 = vrot.slane %v13314_v56, %v8333_v24 }
 0x150   :  { %v2132_v47 = vsel %vm2042_vm11, %v13319_v13, %v13318_v31  ;;  %v2133_v60 = vsel %vm2043_vm12, %v13321_v3, %v13320_v38  ;;  %v2021_v30 = vadd.f32 %v2013_v63, %v1907_v45  ;;  %v2022_v1 = vadd.f32 %v2014_v5, %v1908_v2 }
 0x151   :  { %v2134_v41 = vsel %vm2044_vm13, %v13323_v49, %v13322_v25  ;;  %v2024_v62 = vadd.f32 %v2016_v17, %v1910_v54  ;;  %v13324_v53 = vrot.slane %v13312_v12, %v13087_v57  ;;  %v13325_v27 = vrot.slane %v13314_v56, %v13087_v57 }
 0x152   :  { %v13326_v61 = vrot.slane %v13312_v12, %v13090_v34  ;;  %v13327_v32 = vrot.slane %v13314_v56, %v13090_v34  ;;  %v13328_v10 = vrot.slane %v13312_v12, %v8325_v19  ;;  %v13329_v45 = vrot.slane %v13314_v56, %v8325_v19 }
 0x153   :  { %v2127_v46 = vsel %vm2037_vm8, %v13325_v27, %v13324_v53  ;;  %v2139_v9 = vadd.f32 %v2131_v4, %v2025_v48  ;;  %v2141_v29 = vadd.f32 %v2133_v60, %v2027_v26  ;;  %v2137_v63 = vadd.f32 %v2129_v0, %v2023_v42  ;;  %v13330_v48 = vld [vmem:[#allocation48_spill] sm:$0xff]  ;;  %v2264_v4 = vpop.permute.xlu1 %2263 }
 0x154   :  { %v2128_v58 = vsel %vm2038_vm14, %v13327_v32, %v13326_v61  ;;  %v2130_v2 = vsel %vm2040_vm15, %v13329_v45, %v13328_v10  ;;  %v2140_v50 = vadd.f32 %v2132_v47, %v2026_v15  ;;  %v2142_v37 = vadd.f32 %v2134_v41, %v2028_v16  ;;  %v13332_v15 = vld [vmem:[#allocation47_spill] sm:$0xff]  ;;  %v13348_v61 = vld [vmem:[#allocation50_spill] sm:$0xff] }
 0x155   :  { %vm2153_vm0 = vcmp.lt.s32.totalorder %v8381_v55, %v2150_v51  ;;  %vm2155_vm1 = vcmp.lt.s32.totalorder %v8426_v21, %v2150_v51  ;;  %vm2156_vm2 = vcmp.lt.s32.totalorder %v8437_v33, %v2150_v51  ;;  %vm2157_vm3 = vcmp.lt.s32.totalorder %v8471_v43, %v2150_v51 }
 0x156   :  { %vm2158_vm4 = vcmp.lt.s32.totalorder %v8523_v44, %v2150_v51  ;;  %v2135_v36 = vadd.f32 %v2127_v46, %v2021_v30  ;;  %vm2151_vm5 = vcmp.lt.s32.totalorder %v8317_v14, %v2150_v51  ;;  %vm2152_vm6 = vcmp.lt.s32.totalorder %v8339_v28, %v2150_v51 }
 0x157   :  { %v13331_v42 = vrot.slane %v13330_v48, %v8323_v18  ;;  %v13333_v26 = vrot.slane %v13332_v15, %v8323_v18  ;;  %v13334_v5 = vrot.slane %v13330_v48, %v8327_v20  ;;  %v13335_v52 = vrot.slane %v13332_v15, %v8327_v20 }
 0x158   :  { %v13336_v17 = vrot.slane %v13330_v48, %v8329_v22  ;;  %v13337_v54 = vrot.slane %v13332_v15, %v8329_v22  ;;  %v13338_v11 = vrot.slane %v13330_v48, %v8331_v23  ;;  %v13339_v56 = vrot.slane %v13332_v15, %v8331_v23 }
 0x159   :  { %v2243_v16 = vsel %vm2153_vm0, %v13333_v26, %v13331_v42  ;;  %v2245_v39 = vsel %vm2155_vm1, %v13335_v52, %v13334_v5  ;;  %v13340_v0 = vrot.slane %v13330_v48, %v8333_v24  ;;  %v13341_v6 = vrot.slane %v13332_v15, %v8333_v24  ;;  %v2378_v52 = vpop.permute.xlu0 %2377 }
 0x15a   :  { %v2246_v12 = vsel %vm2156_vm2, %v13337_v54, %v13336_v17  ;;  %v2247_v7 = vsel %vm2157_vm3, %v13339_v56, %v13338_v11  ;;  %v2136_v31 = vadd.f32 %v2128_v58, %v2022_v1  ;;  %v2138_v13 = vadd.f32 %v2130_v2, %v2024_v62  ;;  %v13350_v58 = vld [vmem:[#allocation49_spill] sm:$0xff] }
 0x15b   :  { %v2248_v8 = vsel %vm2158_vm4, %v13341_v6, %v13340_v0  ;;  %vm2154_vm7 = vcmp.lt.s32.totalorder %v8392_v59, %v2150_v51  ;;  %v2251_v47 = vadd.f32 %v2243_v16, %v2137_v63  ;;  %v2253_v38 = vadd.f32 %v2245_v39, %v2139_v9 }
 0x15c   :  { %v2254_v3 = vadd.f32 %v2246_v12, %v2140_v50  ;;  %v2255_v60 = vadd.f32 %v2247_v7, %v2141_v29  ;;  %v2256_v25 = vadd.f32 %v2248_v8, %v2142_v37  ;;  %v13342_v49 = vrot.slane %v13330_v48, %v13087_v57 }
 0x15d   :  { %v13343_v41 = vrot.slane %v13332_v15, %v13087_v57  ;;  %v13344_v1 = vrot.slane %v13330_v48, %v13090_v34  ;;  %v13345_v62 = vrot.slane %v13332_v15, %v13090_v34  ;;  %vm2265_vm8 = vcmp.lt.s32.totalorder %v8317_v14, %v2264_v4 }
 0x15e   :  { %vm2267_vm9 = vcmp.lt.s32.totalorder %v8381_v55, %v2264_v4  ;;  %vm2269_vm10 = vcmp.lt.s32.totalorder %v8426_v21, %v2264_v4  ;;  %vm2270_vm11 = vcmp.lt.s32.totalorder %v8437_v33, %v2264_v4  ;;  %vm2271_vm12 = vcmp.lt.s32.totalorder %v8471_v43, %v2264_v4 }
 0x15f   :  { %v2241_v30 = vsel %vm2151_vm5, %v13343_v41, %v13342_v49  ;;  %v2242_v53 = vsel %vm2152_vm6, %v13345_v62, %v13344_v1  ;;  %vm2272_vm13 = vcmp.lt.s32.totalorder %v8523_v44, %v2264_v4  ;;  %v13346_v27 = vrot.slane %v13330_v48, %v8325_v19 }
 0x160   :  { %v13347_v46 = vrot.slane %v13332_v15, %v8325_v19  ;;  %vm2266_vm14 = vcmp.lt.s32.totalorder %v8339_v28, %v2264_v4  ;;  %vm2268_vm15 = vcmp.lt.s32.totalorder %v8392_v59, %v2264_v4  ;;  %v13349_v32 = vrot.slane %v13348_v61, %v8323_v18  ;;  %v13366_v4 = vld [vmem:[#allocation52_spill] sm:$0xff] }
 0x161   :  { %v13351_v10 = vrot.slane %v13350_v58, %v8323_v18  ;;  %v13352_v2 = vrot.slane %v13348_v61, %v8327_v20  ;;  %v13353_v9 = vrot.slane %v13350_v58, %v8327_v20  ;;  %v13354_v63 = vrot.slane %v13348_v61, %v8329_v22 }
 0x162   :  { %v2244_v51 = vsel %vm2154_vm7, %v13347_v46, %v13346_v27  ;;  %v13355_v50 = vrot.slane %v13350_v58, %v8329_v22  ;;  %v13356_v48 = vrot.slane %v13348_v61, %v8331_v23  ;;  %v13357_v42 = vrot.slane %v13350_v58, %v8331_v23 }
 0x163   :  { %v2357_v45 = vsel %vm2267_vm9, %v13351_v10, %v13349_v32  ;;  %v2359_v29 = vsel %vm2269_vm10, %v13353_v9, %v13352_v2  ;;  %v13358_v26 = vrot.slane %v13348_v61, %v8333_v24  ;;  %v13359_v16 = vrot.slane %v13350_v58, %v8333_v24 }
 0x164   :  { %v2360_v37 = vsel %vm2270_vm11, %v13355_v50, %v13354_v63  ;;  %v2361_v15 = vsel %vm2271_vm12, %v13357_v42, %v13356_v48  ;;  %v2249_v39 = vadd.f32 %v2241_v30, %v2135_v36  ;;  %v2250_v17 = vadd.f32 %v2242_v53, %v2136_v31 }
 0x165   :  { %v2362_v5 = vsel %vm2272_vm13, %v13359_v16, %v13358_v26  ;;  %v13360_v54 = vrot.slane %v13348_v61, %v13087_v57  ;;  %v13361_v12 = vrot.slane %v13350_v58, %v13087_v57  ;;  %v2365_v56 = vadd.f32 %v2357_v45, %v2251_v47  ;;  %v2492_v45 = vpop.permute.xlu1 %2491 }
 0x166   :  { %v2367_v7 = vadd.f32 %v2359_v29, %v2253_v38  ;;  %v2368_v0 = vadd.f32 %v2360_v37, %v2254_v3  ;;  %v2369_v6 = vadd.f32 %v2361_v15, %v2255_v60  ;;  %v2370_v8 = vadd.f32 %v2362_v5, %v2256_v25  ;;  %v13368_v25 = vld [vmem:[#allocation51_spill] sm:$0xff] }
 0x167   :  { %v2355_v11 = vsel %vm2265_vm8, %v13361_v12, %v13360_v54  ;;  %v13362_v49 = vrot.slane %v13348_v61, %v13090_v34  ;;  %v13363_v36 = vrot.slane %v13350_v58, %v13090_v34  ;;  %v13364_v41 = vrot.slane %v13348_v61, %v8325_v19 }
 0x168   :  { %v13365_v30 = vrot.slane %v13350_v58, %v8325_v19  ;;  %vm2379_vm0 = vcmp.lt.s32.totalorder %v8317_v14, %v2378_v52  ;;  %vm2381_vm1 = vcmp.lt.s32.totalorder %v8381_v55, %v2378_v52  ;;  %vm2380_vm2 = vcmp.lt.s32.totalorder %v8339_v28, %v2378_v52 }
 0x169   :  { %v2356_v31 = vsel %vm2266_vm14, %v13363_v36, %v13362_v49  ;;  %vm2383_vm3 = vcmp.lt.s32.totalorder %v8426_v21, %v2378_v52  ;;  %vm2384_vm4 = vcmp.lt.s32.totalorder %v8437_v33, %v2378_v52  ;;  %vm2385_vm5 = vcmp.lt.s32.totalorder %v8471_v43, %v2378_v52 }
 0x16a   :  { %v2358_v47 = vsel %vm2268_vm15, %v13365_v30, %v13364_v41  ;;  %v2252_v38 = vadd.f32 %v2244_v51, %v2138_v13  ;;  %v2363_v3 = vadd.f32 %v2355_v11, %v2249_v39  ;;  %vm2382_vm6 = vcmp.lt.s32.totalorder %v8392_v59, %v2378_v52 }
 0x16b   :  { %vm2386_vm7 = vcmp.lt.s32.totalorder %v8523_v44, %v2378_v52  ;;  %v13367_v60 = vrot.slane %v13366_v4, %v13087_v57  ;;  %v13369_v1 = vrot.slane %v13368_v25, %v13087_v57  ;;  %v13370_v53 = vrot.slane %v13366_v4, %v8323_v18 }
 0x16c   :  { %v13371_v27 = vrot.slane %v13368_v25, %v8323_v18  ;;  %v13372_v13 = vrot.slane %v13366_v4, %v8327_v20  ;;  %v13373_v51 = vrot.slane %v13368_v25, %v8327_v20  ;;  %v13374_v32 = vrot.slane %v13366_v4, %v8331_v23 }
 0x16d   :  { %v2469_v62 = vsel %vm2379_vm0, %v13369_v1, %v13367_v60  ;;  %v13375_v58 = vrot.slane %v13368_v25, %v8331_v23  ;;  %v2364_v2 = vadd.f32 %v2356_v31, %v2250_v17  ;;  %v2366_v9 = vadd.f32 %v2358_v47, %v2252_v38  ;;  %v2600_v1 = vld [vmem:[#allocation5 + $0x86] ss:$8 sm:$0xf] }
 0x16e   :  { %v2471_v46 = vsel %vm2381_vm1, %v13371_v27, %v13370_v53  ;;  %v2473_v61 = vsel %vm2383_vm3, %v13373_v51, %v13372_v13  ;;  %v13376_v29 = vrot.slane %v13366_v4, %v13090_v34  ;;  %v13377_v63 = vrot.slane %v13368_v25, %v13090_v34 }
 0x16f   :  { %v2475_v10 = vsel %vm2385_vm5, %v13375_v58, %v13374_v32  ;;  %v13378_v37 = vrot.slane %v13366_v4, %v8329_v22  ;;  %v13379_v48 = vrot.slane %v13368_v25, %v8329_v22  ;;  %v13380_v15 = vrot.slane %v13366_v4, %v8325_v19  ;;  %v2606_v58 = vpop.permute.xlu1 %2605 }
 0x170   :  { %v2470_v50 = vsel %vm2380_vm2, %v13377_v63, %v13376_v29  ;;  %v13381_v26 = vrot.slane %v13368_v25, %v8325_v19  ;;  %v13382_v5 = vrot.slane %v13366_v4, %v8333_v24  ;;  %v13383_v52 = vrot.slane %v13368_v25, %v8333_v24 }
 0x171   :  { %v2474_v42 = vsel %vm2384_vm4, %v13379_v48, %v13378_v37  ;;  %v2481_v17 = vadd.f32 %v2473_v61, %v2367_v7  ;;  %v2483_v54 = vadd.f32 %v2475_v10, %v2369_v6  ;;  %v10523_v12 = vadd.f32 %v2469_v62, %v2363_v3  ;;  %v13385_v7 = vld [vmem:[#allocation53_spill] sm:$0xff] }
 0x172   :  { %v2472_v16 = vsel %vm2382_vm6, %v13381_v26, %v13380_v15  ;;  %v2476_v39 = vsel %vm2386_vm7, %v13383_v52, %v13382_v5  ;;  %v2479_v11 = vadd.f32 %v2471_v46, %v2365_v56  ;;  %v2574_v49 = vrot.slane %v13099_v40, %v8333_v24  ;;  %v2601_v62 = vld [vmem:[#allocation5 + $0x86] ss:$8 sm:$0xf0] }
 0x173   :  { %vm2495_vm8 = vcmp.lt.s32.totalorder %v8381_v55, %v2492_v45  ;;  %v2482_v36 = vadd.f32 %v2474_v42, %v2368_v0  ;;  %vm2497_vm9 = vcmp.lt.s32.totalorder %v8426_v21, %v2492_v45  ;;  %vm2498_vm10 = vcmp.lt.s32.totalorder %v8437_v33, %v2492_v45 }
 0x174   :  { %vm2499_vm11 = vcmp.lt.s32.totalorder %v8471_v43, %v2492_v45  ;;  %v10531_v31 = vadd.f32 %v2470_v50, %v2364_v2  ;;  %v2484_v41 = vadd.f32 %v2476_v39, %v2370_v8  ;;  %vm2500_vm12 = vcmp.lt.s32.totalorder %v8523_v44, %v2492_v45 }
 0x175   :  { %v13384_v56 = vrot.slane %v13099_v40, %v8323_v18  ;;  %v13386_v6 = vrot.slane %v13385_v7, %v8323_v18  ;;  %vm2493_vm13 = vcmp.lt.s32.totalorder %v8317_v14, %v2492_v45  ;;  %v13387_v0 = vrot.slane %v13099_v40, %v8327_v20 }
 0x176   :  { %v13388_v47 = vrot.slane %v13385_v7, %v8327_v20  ;;  %v13389_v8 = vrot.slane %v13099_v40, %v8329_v22  ;;  %v13390_v3 = vrot.slane %v13385_v7, %v8329_v22  ;;  %v13391_v60 = vrot.slane %v13385_v7, %v8331_v23 }
 0x177   :  { %v2585_v30 = vsel %vm2495_vm8, %v13386_v6, %v13384_v56  ;;  %vm2494_vm14 = vcmp.lt.s32.totalorder %v8339_v28, %v2492_v45  ;;  %vm2496_vm15 = vcmp.lt.s32.totalorder %v8392_v59, %v2492_v45  ;;  %v13392_v53 = vrot.slane %v13385_v7, %v8333_v24  ;;  %v10586_v45 = vld [vmem:[#allocation2] sm:$0xff] }
 0x178   :  { %v2587_v38 = vsel %vm2497_vm9, %v13388_v47, %v13387_v0  ;;  %v2588_v4 = vsel %vm2498_vm10, %v13390_v3, %v13389_v8  ;;  %v2589_v25 = vsel %vm2499_vm11, %v13391_v60, %v2570_v35  ;;  %v10564_v46 = vadd.f32 %v2585_v30, %v2479_v11  ;;  %v2714_v60 = vld [vmem:[#allocation5 + $0x87] ss:$8 sm:$0xf] }
 0x179   :  { %v2590_v27 = vsel %vm2500_vm12, %v13392_v53, %v2574_v49  ;;  %v2480_v13 = vadd.f32 %v2472_v16, %v2366_v9  ;;  %v2595_v51 = vadd.f32 %v2587_v38, %v2481_v17  ;;  %v2596_v61 = vadd.f32 %v2588_v4, %v2482_v36 }
 0x17a   :  { %v2597_v32 = vadd.f32 %v2589_v25, %v2483_v54  ;;  %v2598_v10 = vadd.f32 %v2590_v27, %v2484_v41  ;;  %v2602_v2 = vor.u32 %v2601_v62, %v2600_v1  ;;  %v13393_v35 = vrot.slane %v13099_v40, %v13087_v57  ;;  %v2715_v25 = vld [vmem:[#allocation5 + $0x87] ss:$8 sm:$0xf0] }
 0x17b   :  { %v13394_v29 = vrot.slane %v13385_v7, %v13087_v57  ;;  %v13395_v50 = vrot.slane %v13099_v40, %v13090_v34  ;;  %v13396_v9 = vrot.slane %v13385_v7, %v13090_v34  ;;  %v13397_v48 = vrot.slane %v13099_v40, %v8325_v19 }
 0x17c   :  { %v13398_v42 = vrot.slane %v13385_v7, %v8325_v19  ;;  %v8269_v26 = vmov 58   ;;  %v8270_v16 = vmov 59   ;;  %v2603_v5 = vsub.f32 0.0, %v2602_v2 }
 0x17d   :  { %v2583_v63 = vsel %vm2493_vm13, %v13394_v29, %v13393_v35  ;;  %v2584_v37 = vsel %vm2494_vm14, %v13396_v9, %v13395_v50  ;;  %8109 = vset.pattern.permute.xlu1 %v8269_v26  ;;  %8110 = vset.pattern.permute.xlu0 %v8270_v16  ;;  %vm2607_vm0 = vcmp.lt.s32.totalorder %v8317_v14, %v2606_v58  ;;  %v8271_v0 = vmov 60   ;;  %v2720_v9 = vpop.permute.xlu0 %2719 }
 0x17e   :  { %v2586_v15 = vsel %vm2496_vm15, %v13398_v42, %v13397_v48  ;;  %6709 = vperm.xlu1 %8109, %v10586_v45   ;;  %6823 = vperm.xlu0 %8110, %v10586_v45   ;;  %vm2608_vm1 = vcmp.lt.s32.totalorder %v8339_v28, %v2606_v58  ;;  %vm2609_vm2 = vcmp.lt.s32.totalorder %v8381_v55, %v2606_v58 }
 0x17f   :  { %v2619_v40 = vrot.slane %v2602_v2, %v13087_v57  ;;  %v2623_v52 = vrot.slane %v2602_v2, %v13090_v34  ;;  %v2635_v39 = vrot.slane %v2602_v2, %v8327_v20  ;;  %v2639_v17 = vrot.slane %v2602_v2, %v8329_v22 }
 0x180   :  { %v2643_v54 = vrot.slane %v2602_v2, %v8331_v23  ;;  %v2647_v11 = vrot.slane %v2602_v2, %v8333_v24  ;;  %v2660_v49 = vrot.slane %v2603_v5, %v13087_v57  ;;  %v2664_v36 = vrot.slane %v2603_v5, %v13090_v34 }
 0x181   :  { %v2676_v41 = vrot.slane %v2603_v5, %v8327_v20  ;;  %v2680_v56 = vrot.slane %v2603_v5, %v8329_v22  ;;  %v2684_v7 = vrot.slane %v2603_v5, %v8331_v23  ;;  %v2627_v6 = vrot.slane %v2602_v2, %v8323_v18 }
 0x182   :  { %v2688_v30 = vrot.slane %v2603_v5, %v8333_v24  ;;  %vm2611_vm3 = vcmp.lt.s32.totalorder %v8426_v21, %v2606_v58  ;;  %vm2612_vm4 = vcmp.lt.s32.totalorder %v8437_v33, %v2606_v58  ;;  %8111 = vset.pattern.permute.xlu1 %v8271_v0  ;;  %v2631_v47 = vrot.slane %v2602_v2, %v8325_v19  ;;  %v2828_v0 = vld [vmem:[#allocation5 + $0xc0] ss:$8 sm:$0xf] }
 0x183   :  { %v2668_v38 = vrot.slane %v2603_v5, %v8323_v18  ;;  %vm2613_vm5 = vcmp.lt.s32.totalorder %v8471_v43, %v2606_v58  ;;  %vm2614_vm6 = vcmp.lt.s32.totalorder %v8523_v44, %v2606_v58  ;;  %6937 = vperm.xlu1 %8111, %v10586_v45   ;;  %v2672_v8 = vrot.slane %v2603_v5, %v8325_v19 }
 0x184   :  { %vm2610_vm7 = vcmp.lt.s32.totalorder %v8392_v59, %v2606_v58  ;;  %v2701_v3 = vsel %vm2611_vm3, %v2635_v39, %v2676_v41  ;;  %v2702_v4 = vsel %vm2612_vm4, %v2639_v17, %v2680_v56  ;;  %v2697_v1 = vsel %vm2607_vm0, %v2619_v40, %v2660_v49 }
 0x185   :  { %v2698_v62 = vsel %vm2608_vm1, %v2623_v52, %v2664_v36  ;;  %v2703_v53 = vsel %vm2613_vm5, %v2643_v54, %v2684_v7  ;;  %v2704_v27 = vsel %vm2614_vm6, %v2647_v11, %v2688_v30  ;;  %v2591_v2 = vadd.f32 %v2583_v63, %v10523_v12 }
 0x186   :  { %v2592_v35 = vadd.f32 %v2584_v37, %v10531_v31  ;;  %v2709_v29 = vadd.f32 %v2701_v3, %v2595_v51  ;;  %v2710_v50 = vadd.f32 %v2702_v4, %v2596_v61  ;;  %v2594_v48 = vadd.f32 %v2586_v15, %v2480_v13 }
 0x187   :  { %v2711_v42 = vadd.f32 %v2703_v53, %v2597_v32  ;;  %v10621_v26 = vadd.f32 %v2704_v27, %v2598_v10  ;;  %v2716_v16 = vor.u32 %v2715_v25, %v2714_v60  ;;  %v2699_v5 = vsel %vm2609_vm2, %v2627_v6, %v2668_v38 }
 0x188   :  { %v2700_v40 = vsel %vm2610_vm7, %v2631_v47, %v2672_v8  ;;  %v2705_v52 = vadd.f32 %v2697_v1, %v2591_v2  ;;  %v2706_v39 = vadd.f32 %v2698_v62, %v2592_v35  ;;  %vm2721_vm8 = vcmp.lt.s32.totalorder %v8317_v14, %v2720_v9  ;;  %v2829_v47 = vld [vmem:[#allocation5 + $0xc0] ss:$8 sm:$0xf0]  ;;  %v2834_v62 = vpop.permute.xlu1 %2833 }
 0x189   :  { %v2717_v17 = vsub.f32 0.0, %v2716_v16  ;;  %vm2722_vm9 = vcmp.lt.s32.totalorder %v8339_v28, %v2720_v9  ;;  %vm2723_vm10 = vcmp.lt.s32.totalorder %v8381_v55, %v2720_v9  ;;  %v2733_v12 = vrot.slane %v2716_v16, %v13087_v57 }
 0x18a   :  { %v2737_v31 = vrot.slane %v2716_v16, %v13090_v34  ;;  %v2741_v13 = vrot.slane %v2716_v16, %v8323_v18  ;;  %vm2725_vm11 = vcmp.lt.s32.totalorder %v8426_v21, %v2720_v9  ;;  %v2745_v51 = vrot.slane %v2716_v16, %v8325_v19 }
 0x18b   :  { %v2749_v61 = vrot.slane %v2716_v16, %v8327_v20  ;;  %v2757_v32 = vrot.slane %v2716_v16, %v8331_v23  ;;  %v2774_v58 = vrot.slane %v2717_v17, %v13087_v57  ;;  %v2778_v10 = vrot.slane %v2717_v17, %v13090_v34 }
 0x18c   :  { %v2782_v63 = vrot.slane %v2717_v17, %v8323_v18  ;;  %v2790_v37 = vrot.slane %v2717_v17, %v8327_v20  ;;  %v2798_v15 = vrot.slane %v2717_v17, %v8331_v23  ;;  %v2753_v54 = vrot.slane %v2716_v16, %v8329_v22 }
 0x18d   :  { %v2786_v11 = vrot.slane %v2717_v17, %v8325_v19  ;;  %v2794_v49 = vrot.slane %v2717_v17, %v8329_v22  ;;  %vm2727_vm12 = vcmp.lt.s32.totalorder %v8471_v43, %v2720_v9  ;;  %v2707_v36 = vadd.f32 %v2699_v5, %v10564_v46 }
 0x18e   :  { %v2708_v41 = vadd.f32 %v2700_v40, %v2594_v48  ;;  %vm2724_vm13 = vcmp.lt.s32.totalorder %v8392_v59, %v2720_v9  ;;  %vm2726_vm14 = vcmp.lt.s32.totalorder %v8437_v33, %v2720_v9  ;;  %v2761_v56 = vrot.slane %v2716_v16, %v8333_v24 }
 0x18f   :  { %v2802_v7 = vrot.slane %v2717_v17, %v8333_v24  ;;  %v2815_v6 = vsel %vm2725_vm11, %v2749_v61, %v2790_v37  ;;  %v2817_v30 = vsel %vm2727_vm12, %v2757_v32, %v2798_v15  ;;  %vm2728_vm15 = vcmp.lt.s32.totalorder %v8523_v44, %v2720_v9  ;;  %v2942_v15 = vld [vmem:[#allocation5 + $0xc1] ss:$8 sm:$0xf] }
 0x190   :  { %v2811_v46 = vsel %vm2721_vm8, %v2733_v12, %v2774_v58  ;;  %v2812_v38 = vsel %vm2722_vm9, %v2737_v31, %v2778_v10  ;;  %v2813_v8 = vsel %vm2723_vm10, %v2741_v13, %v2782_v63  ;;  %v2814_v3 = vsel %vm2724_vm13, %v2745_v51, %v2786_v11 }
 0x191   :  { %v2816_v4 = vsel %vm2726_vm14, %v2753_v54, %v2794_v49  ;;  %v2823_v60 = vadd.f32 %v2815_v6, %v2709_v29  ;;  %v2825_v25 = vadd.f32 %v2817_v30, %v2711_v42  ;;  %v2830_v1 = vor.u32 %v2829_v47, %v2828_v0  ;;  %v2943_v54 = vld [vmem:[#allocation5 + $0xc1] ss:$8 sm:$0xf0]  ;;  %v2948_v47 = vpop.permute.xlu1 %2947 }
 0x192   :  { %v2818_v53 = vsel %vm2728_vm15, %v2761_v56, %v2802_v7  ;;  %v2819_v27 = vadd.f32 %v2811_v46, %v2705_v52  ;;  %v2820_v2 = vadd.f32 %v2812_v38, %v2706_v39  ;;  %v2821_v35 = vadd.f32 %v2813_v8, %v2707_v36 }
 0x193   :  { %v10660_v48 = vadd.f32 %v2814_v3, %v2708_v41  ;;  %v10662_v16 = vadd.f32 %v2816_v4, %v2710_v50  ;;  %v2831_v5 = vsub.f32 0.0, %v2830_v1  ;;  %v2863_v40 = vrot.slane %v2830_v1, %v8327_v20 }
 0x194   :  { %vm2835_vm0 = vcmp.lt.s32.totalorder %v8317_v14, %v2834_v62  ;;  %vm2836_vm1 = vcmp.lt.s32.totalorder %v8339_v28, %v2834_v62  ;;  %vm2837_vm2 = vcmp.lt.s32.totalorder %v8381_v55, %v2834_v62  ;;  %v2871_v29 = vrot.slane %v2830_v1, %v8331_v23 }
 0x195   :  { %vm2838_vm3 = vcmp.lt.s32.totalorder %v8392_v59, %v2834_v62  ;;  %vm2839_vm4 = vcmp.lt.s32.totalorder %v8426_v21, %v2834_v62  ;;  %vm2841_vm5 = vcmp.lt.s32.totalorder %v8471_v43, %v2834_v62  ;;  %v2847_v50 = vrot.slane %v2830_v1, %v13087_v57 }
 0x196   :  { %v2888_v9 = vrot.slane %v2831_v5, %v13087_v57  ;;  %v2904_v42 = vrot.slane %v2831_v5, %v8327_v20  ;;  %v2912_v52 = vrot.slane %v2831_v5, %v8331_v23  ;;  %v2851_v39 = vrot.slane %v2830_v1, %v13090_v34 }
 0x197   :  { %v2855_v17 = vrot.slane %v2830_v1, %v8323_v18  ;;  %v2859_v12 = vrot.slane %v2830_v1, %v8325_v19  ;;  %v2892_v31 = vrot.slane %v2831_v5, %v13090_v34  ;;  %v2867_v13 = vrot.slane %v2830_v1, %v8329_v22 }
 0x198   :  { %v2875_v51 = vrot.slane %v2830_v1, %v8333_v24  ;;  %v2896_v61 = vrot.slane %v2831_v5, %v8323_v18  ;;  %v2929_v32 = vsel %vm2839_vm4, %v2863_v40, %v2904_v42  ;;  %v2900_v58 = vrot.slane %v2831_v5, %v8325_v19 }
 0x199   :  { %v2908_v10 = vrot.slane %v2831_v5, %v8329_v22  ;;  %v2916_v63 = vrot.slane %v2831_v5, %v8333_v24  ;;  %v2931_v37 = vsel %vm2841_vm5, %v2871_v29, %v2912_v52  ;;  %vm2840_vm6 = vcmp.lt.s32.totalorder %v8437_v33, %v2834_v62 }
 0x19a   :  { %vm2842_vm7 = vcmp.lt.s32.totalorder %v8523_v44, %v2834_v62  ;;  %v2925_v11 = vsel %vm2835_vm0, %v2847_v50, %v2888_v9  ;;  %v2937_v49 = vadd.f32 %v2929_v32, %v2823_v60  ;;  %v2926_v36 = vsel %vm2836_vm1, %v2851_v39, %v2892_v31 }
 0x19b   :  { %v2939_v41 = vadd.f32 %v2931_v37, %v2825_v25  ;;  %v2826_v56 = vadd.f32 %v2818_v53, %v10621_v26  ;;  %v2927_v7 = vsel %vm2837_vm2, %v2855_v17, %v2896_v61  ;;  %v8272_v6 = vmov 61   ;;  %v3057_v61 = vld [vmem:[#allocation5 + $0xc2] ss:$8 sm:$0xf0]  ;;  %v3062_v37 = vpop.permute.xlu0 %3061 }
 0x19c   :  { %8112 = vset.pattern.permute.xlu1 %v8272_v6  ;;  %v8273_v30 = vmov 62   ;;  %v2944_v0 = vor.u32 %v2943_v54, %v2942_v15  ;;  %v2928_v46 = vsel %vm2838_vm3, %v2859_v12, %v2900_v58  ;;  %v2930_v38 = vsel %vm2840_vm6, %v2867_v13, %v2908_v10 }
 0x19d   :  { %8113 = vset.pattern.permute.xlu0 %v8273_v30  ;;  %v2932_v8 = vsel %vm2842_vm7, %v2875_v51, %v2916_v63  ;;  %7051 = vperm.xlu1 %8112, %v10586_v45   ;;  %v2933_v3 = vadd.f32 %v2925_v11, %v2819_v27  ;;  %v2934_v26 = vadd.f32 %v2926_v36, %v2820_v2  ;;  %v8274_v5 = vmov 63   ;;  %v3056_v51 = vld [vmem:[#allocation5 + $0xc2] ss:$8 sm:$0xf] }
 0x19e   :  { %7165 = vperm.xlu0 %8113, %v10586_v45   ;;  %v2945_v4 = vsub.f32 0.0, %v2944_v0  ;;  %v2935_v60 = vadd.f32 %v2927_v7, %v2821_v35  ;;  %vm2949_vm8 = vcmp.lt.s32.totalorder %v8317_v14, %v2948_v47  ;;  %vm2950_vm9 = vcmp.lt.s32.totalorder %v8339_v28, %v2948_v47 }
 0x19f   :  { %vm2951_vm10 = vcmp.lt.s32.totalorder %v8381_v55, %v2948_v47  ;;  %v2961_v25 = vrot.slane %v2944_v0, %v13087_v57  ;;  %v2977_v1 = vrot.slane %v2944_v0, %v8327_v20  ;;  %v2985_v62 = vrot.slane %v2944_v0, %v8331_v23 }
 0x1a0   :  { %vm2953_vm11 = vcmp.lt.s32.totalorder %v8426_v21, %v2948_v47  ;;  %v2965_v53 = vrot.slane %v2944_v0, %v13090_v34  ;;  %v3002_v27 = vrot.slane %v2945_v4, %v13087_v57  ;;  %v3018_v2 = vrot.slane %v2945_v4, %v8327_v20 }
 0x1a1   :  { %v3026_v35 = vrot.slane %v2945_v4, %v8331_v23  ;;  %8114 = vset.pattern.permute.xlu1 %v8274_v5  ;;  %v2969_v40 = vrot.slane %v2944_v0, %v8323_v18  ;;  %v3006_v29 = vrot.slane %v2945_v4, %v13090_v34  ;;  %v3010_v50 = vrot.slane %v2945_v4, %v8323_v18 }
 0x1a2   :  { %vm2955_vm12 = vcmp.lt.s32.totalorder %v8471_v43, %v2948_v47  ;;  %7279 = vperm.xlu1 %8114, %v10586_v45   ;;  %v2973_v9 = vrot.slane %v2944_v0, %v8325_v19  ;;  %v2981_v42 = vrot.slane %v2944_v0, %v8329_v22  ;;  %v2989_v52 = vrot.slane %v2944_v0, %v8333_v24 }
 0x1a3   :  { %v3014_v39 = vrot.slane %v2945_v4, %v8325_v19  ;;  %8115 = vset.pattern.permute.xlu0 %v8274_v5  ;;  %v3022_v17 = vrot.slane %v2945_v4, %v8329_v22  ;;  %v3030_v12 = vrot.slane %v2945_v4, %v8333_v24  ;;  %v3043_v31 = vsel %vm2953_vm11, %v2977_v1, %v3018_v2  ;;  %v3170_v2 = vld [vmem:[#allocation5 + $0xc3] ss:$8 sm:$0xf] }
 0x1a4   :  { %v3045_v13 = vsel %vm2955_vm12, %v2985_v62, %v3026_v35  ;;  %vm2952_vm13 = vcmp.lt.s32.totalorder %v8392_v59, %v2948_v47  ;;  %vm2954_vm14 = vcmp.lt.s32.totalorder %v8437_v33, %v2948_v47  ;;  %vm2956_vm15 = vcmp.lt.s32.totalorder %v8523_v44, %v2948_v47  ;;  %v3171_v35 = vld [vmem:[#allocation5 + $0xc3] ss:$8 sm:$0xf0] }
 0x1a5   :  { %v3039_v45 = vsel %vm2949_vm8, %v2961_v25, %v3002_v27  ;;  %v3040_v32 = vsel %vm2950_vm9, %v2965_v53, %v3006_v29  ;;  %v3041_v58 = vsel %vm2951_vm10, %v2969_v40, %v3010_v50  ;;  %v3051_v10 = vadd.f32 %v3043_v31, %v2937_v49  ;;  %v3176_v31 = vpop.permute.xlu1 %3175 }
 0x1a6   :  { %v3053_v63 = vadd.f32 %v3045_v13, %v2939_v41  ;;  %v2936_v15 = vadd.f32 %v2928_v46, %v10660_v48  ;;  %v2938_v54 = vadd.f32 %v2930_v38, %v10662_v16  ;;  %v2940_v11 = vadd.f32 %v2932_v8, %v2826_v56 }
 0x1a7   :  { %v3058_v36 = vor.u32 %v3057_v61, %v3056_v51  ;;  %v3042_v7 = vsel %vm2952_vm13, %v2973_v9, %v3014_v39  ;;  %v3044_v6 = vsel %vm2954_vm14, %v2981_v42, %v3022_v17  ;;  %v3046_v30 = vsel %vm2956_vm15, %v2989_v52, %v3030_v12 }
 0x1a8   :  { %v3047_v0 = vadd.f32 %v3039_v45, %v2933_v3  ;;  %v3048_v4 = vadd.f32 %v3040_v32, %v2934_v26  ;;  %v3049_v25 = vadd.f32 %v3041_v58, %v2935_v60  ;;  %vm3063_vm0 = vcmp.lt.s32.totalorder %v8317_v14, %v3062_v37 }
 0x1a9   :  { %v3059_v1 = vsub.f32 0.0, %v3058_v36  ;;  %v3091_v47 = vrot.slane %v3058_v36, %v8327_v20  ;;  %vm3064_vm1 = vcmp.lt.s32.totalorder %v8339_v28, %v3062_v37  ;;  %vm3065_vm2 = vcmp.lt.s32.totalorder %v8381_v55, %v3062_v37 }
 0x1aa   :  { %vm3067_vm3 = vcmp.lt.s32.totalorder %v8426_v21, %v3062_v37  ;;  %v3075_v48 = vrot.slane %v3058_v36, %v13087_v57  ;;  %v3079_v16 = vrot.slane %v3058_v36, %v13090_v34  ;;  %v3099_v49 = vrot.slane %v3058_v36, %v8331_v23 }
 0x1ab   :  { %vm3069_vm4 = vcmp.lt.s32.totalorder %v8471_v43, %v3062_v37  ;;  %v3116_v41 = vrot.slane %v3059_v1, %v13087_v57  ;;  %v3120_v56 = vrot.slane %v3059_v1, %v13090_v34  ;;  %v3132_v46 = vrot.slane %v3059_v1, %v8327_v20 }
 0x1ac   :  { %v3140_v38 = vrot.slane %v3059_v1, %v8331_v23  ;;  %v3083_v8 = vrot.slane %v3058_v36, %v8323_v18  ;;  %v3087_v3 = vrot.slane %v3058_v36, %v8325_v19  ;;  %v3124_v26 = vrot.slane %v3059_v1, %v8323_v18 }
 0x1ad   :  { %vm3066_vm5 = vcmp.lt.s32.totalorder %v8392_v59, %v3062_v37  ;;  %v3095_v60 = vrot.slane %v3058_v36, %v8329_v22  ;;  %v3128_v62 = vrot.slane %v3059_v1, %v8325_v19  ;;  %v3136_v53 = vrot.slane %v3059_v1, %v8329_v22 }
 0x1ae   :  { %v3157_v27 = vsel %vm3067_vm3, %v3091_v47, %v3132_v46  ;;  %v3103_v5 = vrot.slane %v3058_v36, %v8333_v24  ;;  %v3144_v40 = vrot.slane %v3059_v1, %v8333_v24  ;;  %vm3068_vm6 = vcmp.lt.s32.totalorder %v8437_v33, %v3062_v37 }
 0x1af   :  { %v3159_v29 = vsel %vm3069_vm4, %v3099_v49, %v3140_v38  ;;  %vm3070_vm7 = vcmp.lt.s32.totalorder %v8523_v44, %v3062_v37  ;;  %v3153_v50 = vsel %vm3063_vm0, %v3075_v48, %v3116_v41  ;;  %v3154_v9 = vsel %vm3064_vm1, %v3079_v16, %v3120_v56  ;;  %v3284_v38 = vld [vmem:[#allocation5 + $0xc4] ss:$8 sm:$0xf] }
 0x1b0   :  { %v3165_v42 = vadd.f32 %v3157_v27, %v3051_v10  ;;  %v3050_v52 = vadd.f32 %v3042_v7, %v2936_v15  ;;  %v3155_v39 = vsel %vm3065_vm2, %v3083_v8, %v3124_v26  ;;  %v3167_v17 = vadd.f32 %v3159_v29, %v3053_v63  ;;  %v3285_v8 = vld [vmem:[#allocation5 + $0xc4] ss:$8 sm:$0xf0]  ;;  %v3290_v27 = vpop.permute.xlu1 %3289 }
 0x1b1   :  { %v3172_v12 = vor.u32 %v3171_v35, %v3170_v2  ;;  %v3052_v13 = vadd.f32 %v3044_v6, %v2938_v54  ;;  %v3054_v51 = vadd.f32 %v3046_v30, %v2940_v11  ;;  %v3156_v61 = vsel %vm3066_vm5, %v3087_v3, %v3128_v62 }
 0x1b2   :  { %v3158_v45 = vsel %vm3068_vm6, %v3095_v60, %v3136_v53  ;;  %v3160_v32 = vsel %vm3070_vm7, %v3103_v5, %v3144_v40  ;;  %v3161_v58 = vadd.f32 %v3153_v50, %v3047_v0  ;;  %v3162_v36 = vadd.f32 %v3154_v9, %v3048_v4 }
 0x1b3   :  { %v3173_v1 = vsub.f32 0.0, %v3172_v12  ;;  %v3163_v47 = vadd.f32 %v3155_v39, %v3049_v25  ;;  %vm3177_vm8 = vcmp.lt.s32.totalorder %v8317_v14, %v3176_v31  ;;  %vm3178_vm9 = vcmp.lt.s32.totalorder %v8339_v28, %v3176_v31 }
 0x1b4   :  { %vm3179_vm10 = vcmp.lt.s32.totalorder %v8381_v55, %v3176_v31  ;;  %v3189_v10 = vrot.slane %v3172_v12, %v13087_v57  ;;  %v3205_v63 = vrot.slane %v3172_v12, %v8327_v20  ;;  %v3213_v15 = vrot.slane %v3172_v12, %v8331_v23 }
 0x1b5   :  { %vm3181_vm11 = vcmp.lt.s32.totalorder %v8426_v21, %v3176_v31  ;;  %v3193_v37 = vrot.slane %v3172_v12, %v13090_v34  ;;  %v3230_v54 = vrot.slane %v3173_v1, %v13087_v57  ;;  %v3246_v11 = vrot.slane %v3173_v1, %v8327_v20 }
 0x1b6   :  { %v3254_v7 = vrot.slane %v3173_v1, %v8331_v23  ;;  %v3197_v6 = vrot.slane %v3172_v12, %v8323_v18  ;;  %v3234_v30 = vrot.slane %v3173_v1, %v13090_v34  ;;  %v3238_v0 = vrot.slane %v3173_v1, %v8323_v18 }
 0x1b7   :  { %vm3183_vm12 = vcmp.lt.s32.totalorder %v8471_v43, %v3176_v31  ;;  %v3201_v4 = vrot.slane %v3172_v12, %v8325_v19  ;;  %v3209_v25 = vrot.slane %v3172_v12, %v8329_v22  ;;  %v3217_v48 = vrot.slane %v3172_v12, %v8333_v24 }
 0x1b8   :  { %v3242_v16 = vrot.slane %v3173_v1, %v8325_v19  ;;  %v3250_v49 = vrot.slane %v3173_v1, %v8329_v22  ;;  %v3258_v41 = vrot.slane %v3173_v1, %v8333_v24  ;;  %v3271_v56 = vsel %vm3181_vm11, %v3205_v63, %v3246_v11  ;;  %v3399_v11 = vld [vmem:[#allocation5 + $0xc5] ss:$8 sm:$0xf0] }
 0x1b9   :  { %v3273_v46 = vsel %vm3183_vm12, %v3213_v15, %v3254_v7  ;;  %vm3180_vm13 = vcmp.lt.s32.totalorder %v8392_v59, %v3176_v31  ;;  %vm3182_vm14 = vcmp.lt.s32.totalorder %v8437_v33, %v3176_v31  ;;  %vm3184_vm15 = vcmp.lt.s32.totalorder %v8523_v44, %v3176_v31 }
 0x1ba   :  { %v3267_v3 = vsel %vm3177_vm8, %v3189_v10, %v3230_v54  ;;  %v3268_v26 = vsel %vm3178_vm9, %v3193_v37, %v3234_v30  ;;  %v3269_v60 = vsel %vm3179_vm10, %v3197_v6, %v3238_v0  ;;  %v3279_v62 = vadd.f32 %v3271_v56, %v3165_v42  ;;  %v3398_v54 = vld [vmem:[#allocation5 + $0xc5] ss:$8 sm:$0xf]  ;;  %v3404_v56 = vpop.permute.xlu0 %3403 }
 0x1bb   :  { %v3281_v53 = vadd.f32 %v3273_v46, %v3167_v17  ;;  %v3164_v2 = vadd.f32 %v3156_v61, %v3050_v52  ;;  %v3166_v35 = vadd.f32 %v3158_v45, %v3052_v13  ;;  %v3168_v5 = vadd.f32 %v3160_v32, %v3054_v51 }
 0x1bc   :  { %v3286_v40 = vor.u32 %v3285_v8, %v3284_v38  ;;  %v3270_v29 = vsel %vm3180_vm13, %v3201_v4, %v3242_v16  ;;  %v3272_v50 = vsel %vm3182_vm14, %v3209_v25, %v3250_v49  ;;  %v3274_v9 = vsel %vm3184_vm15, %v3217_v48, %v3258_v41 }
 0x1bd   :  { %v3275_v39 = vadd.f32 %v3267_v3, %v3161_v58  ;;  %v3276_v12 = vadd.f32 %v3268_v26, %v3162_v36  ;;  %v3277_v1 = vadd.f32 %v3269_v60, %v3163_v47  ;;  %vm3291_vm0 = vcmp.lt.s32.totalorder %v8317_v14, %v3290_v27 }
 0x1be   :  { %v3287_v10 = vsub.f32 0.0, %v3286_v40  ;;  %v3319_v63 = vrot.slane %v3286_v40, %v8327_v20  ;;  %vm3292_vm1 = vcmp.lt.s32.totalorder %v8339_v28, %v3290_v27  ;;  %vm3293_vm2 = vcmp.lt.s32.totalorder %v8381_v55, %v3290_v27 }
 0x1bf   :  { %vm3295_vm3 = vcmp.lt.s32.totalorder %v8426_v21, %v3290_v27  ;;  %v3303_v42 = vrot.slane %v3286_v40, %v13087_v57  ;;  %v3307_v52 = vrot.slane %v3286_v40, %v13090_v34  ;;  %v3327_v17 = vrot.slane %v3286_v40, %v8331_v23 }
 0x1c0   :  { %vm3297_vm4 = vcmp.lt.s32.totalorder %v8471_v43, %v3290_v27  ;;  %v3344_v31 = vrot.slane %v3287_v10, %v13087_v57  ;;  %v3348_v13 = vrot.slane %v3287_v10, %v13090_v34  ;;  %v3360_v51 = vrot.slane %v3287_v10, %v8327_v20 }
 0x1c1   :  { %v3368_v61 = vrot.slane %v3287_v10, %v8331_v23  ;;  %v3311_v45 = vrot.slane %v3286_v40, %v8323_v18  ;;  %v3315_v32 = vrot.slane %v3286_v40, %v8325_v19  ;;  %v3352_v58 = vrot.slane %v3287_v10, %v8323_v18 }
 0x1c2   :  { %vm3294_vm5 = vcmp.lt.s32.totalorder %v8392_v59, %v3290_v27  ;;  %v3323_v36 = vrot.slane %v3286_v40, %v8329_v22  ;;  %v3356_v47 = vrot.slane %v3287_v10, %v8325_v19  ;;  %v3364_v15 = vrot.slane %v3287_v10, %v8329_v22 }
 0x1c3   :  { %v3385_v37 = vsel %vm3295_vm3, %v3319_v63, %v3360_v51  ;;  %v3331_v7 = vrot.slane %v3286_v40, %v8333_v24  ;;  %v3372_v6 = vrot.slane %v3287_v10, %v8333_v24  ;;  %vm3296_vm6 = vcmp.lt.s32.totalorder %v8437_v33, %v3290_v27 }
 0x1c4   :  { %v3387_v30 = vsel %vm3297_vm4, %v3327_v17, %v3368_v61  ;;  %vm3298_vm7 = vcmp.lt.s32.totalorder %v8523_v44, %v3290_v27  ;;  %v3381_v0 = vsel %vm3291_vm0, %v3303_v42, %v3344_v31  ;;  %v3382_v4 = vsel %vm3292_vm1, %v3307_v52, %v3348_v13  ;;  %v3512_v61 = vld [vmem:[#allocation5 + $0xc6] ss:$8 sm:$0xf] }
 0x1c5   :  { %v3393_v25 = vadd.f32 %v3385_v37, %v3279_v62  ;;  %v3278_v48 = vadd.f32 %v3270_v29, %v3164_v2  ;;  %v3383_v16 = vsel %vm3293_vm2, %v3311_v45, %v3352_v58  ;;  %v3395_v49 = vadd.f32 %v3387_v30, %v3281_v53  ;;  %v3513_v45 = vld [vmem:[#allocation5 + $0xc6] ss:$8 sm:$0xf0]  ;;  %v3518_v37 = vpop.permute.xlu1 %3517 }
 0x1c6   :  { %v3400_v41 = vor.u32 %v3399_v11, %v3398_v54  ;;  %v3280_v46 = vadd.f32 %v3272_v50, %v3166_v35  ;;  %v3282_v38 = vadd.f32 %v3274_v9, %v3168_v5  ;;  %v3384_v8 = vsel %vm3294_vm5, %v3315_v32, %v3356_v47 }
 0x1c7   :  { %v3386_v3 = vsel %vm3296_vm6, %v3323_v36, %v3364_v15  ;;  %v3388_v26 = vsel %vm3298_vm7, %v3331_v7, %v3372_v6  ;;  %v3389_v60 = vadd.f32 %v3381_v0, %v3275_v39  ;;  %v3390_v40 = vadd.f32 %v3382_v4, %v3276_v12 }
 0x1c8   :  { %v3401_v10 = vsub.f32 0.0, %v3400_v41  ;;  %v3391_v63 = vadd.f32 %v3383_v16, %v3277_v1  ;;  %vm3405_vm8 = vcmp.lt.s32.totalorder %v8317_v14, %v3404_v56  ;;  %vm3406_vm9 = vcmp.lt.s32.totalorder %v8339_v28, %v3404_v56 }
 0x1c9   :  { %vm3407_vm10 = vcmp.lt.s32.totalorder %v8381_v55, %v3404_v56  ;;  %v3417_v62 = vrot.slane %v3400_v41, %v13087_v57  ;;  %v3433_v53 = vrot.slane %v3400_v41, %v8327_v20  ;;  %v3441_v2 = vrot.slane %v3400_v41, %v8331_v23 }
 0x1ca   :  { %vm3409_vm11 = vcmp.lt.s32.totalorder %v8426_v21, %v3404_v56  ;;  %v3421_v27 = vrot.slane %v3400_v41, %v13090_v34  ;;  %v3458_v35 = vrot.slane %v3401_v10, %v13087_v57  ;;  %v3474_v5 = vrot.slane %v3401_v10, %v8327_v20 }
 0x1cb   :  { %v3482_v29 = vrot.slane %v3401_v10, %v8331_v23  ;;  %v3425_v50 = vrot.slane %v3400_v41, %v8323_v18  ;;  %v3462_v9 = vrot.slane %v3401_v10, %v13090_v34  ;;  %v3466_v39 = vrot.slane %v3401_v10, %v8323_v18 }
 0x1cc   :  { %vm3411_vm12 = vcmp.lt.s32.totalorder %v8471_v43, %v3404_v56  ;;  %v3429_v12 = vrot.slane %v3400_v41, %v8325_v19  ;;  %v3437_v1 = vrot.slane %v3400_v41, %v8329_v22  ;;  %v3445_v42 = vrot.slane %v3400_v41, %v8333_v24 }
 0x1cd   :  { %v3470_v52 = vrot.slane %v3401_v10, %v8325_v19  ;;  %v3478_v17 = vrot.slane %v3401_v10, %v8329_v22  ;;  %v3486_v31 = vrot.slane %v3401_v10, %v8333_v24  ;;  %v3499_v13 = vsel %vm3409_vm11, %v3433_v53, %v3474_v5  ;;  %v3627_v5 = vld [vmem:[#allocation5 + $0xc7] ss:$8 sm:$0xf0] }
 0x1ce   :  { %v3501_v51 = vsel %vm3411_vm12, %v3441_v2, %v3482_v29  ;;  %vm3408_vm13 = vcmp.lt.s32.totalorder %v8392_v59, %v3404_v56  ;;  %vm3410_vm14 = vcmp.lt.s32.totalorder %v8437_v33, %v3404_v56  ;;  %vm3412_vm15 = vcmp.lt.s32.totalorder %v8523_v44, %v3404_v56 }
 0x1cf   :  { %v3495_v32 = vsel %vm3405_vm8, %v3417_v62, %v3458_v35  ;;  %v3496_v58 = vsel %vm3406_vm9, %v3421_v27, %v3462_v9  ;;  %v3497_v36 = vsel %vm3407_vm10, %v3425_v50, %v3466_v39  ;;  %v3507_v47 = vadd.f32 %v3499_v13, %v3393_v25  ;;  %v3626_v35 = vld [vmem:[#allocation5 + $0xc7] ss:$8 sm:$0xf]  ;;  %v3632_v13 = vpop.permute.xlu1 %3631 }
 0x1d0   :  { %v3509_v15 = vadd.f32 %v3501_v51, %v3395_v49  ;;  %v3392_v54 = vadd.f32 %v3384_v8, %v3278_v48  ;;  %v3394_v11 = vadd.f32 %v3386_v3, %v3280_v46  ;;  %v3396_v7 = vadd.f32 %v3388_v26, %v3282_v38 }
 0x1d1   :  { %v3514_v6 = vor.u32 %v3513_v45, %v3512_v61  ;;  %v3498_v30 = vsel %vm3408_vm13, %v3429_v12, %v3470_v52  ;;  %v3500_v0 = vsel %vm3410_vm14, %v3437_v1, %v3478_v17  ;;  %v3502_v4 = vsel %vm3412_vm15, %v3445_v42, %v3486_v31 }
 0x1d2   :  { %v3503_v16 = vadd.f32 %v3495_v32, %v3389_v60  ;;  %v3504_v41 = vadd.f32 %v3496_v58, %v3390_v40  ;;  %v3505_v10 = vadd.f32 %v3497_v36, %v3391_v63  ;;  %vm3519_vm0 = vcmp.lt.s32.totalorder %v8317_v14, %v3518_v37 }
 0x1d3   :  { %v3515_v62 = vsub.f32 0.0, %v3514_v6  ;;  %v3547_v53 = vrot.slane %v3514_v6, %v8327_v20  ;;  %vm3520_vm1 = vcmp.lt.s32.totalorder %v8339_v28, %v3518_v37  ;;  %vm3521_vm2 = vcmp.lt.s32.totalorder %v8381_v55, %v3518_v37 }
 0x1d4   :  { %vm3523_vm3 = vcmp.lt.s32.totalorder %v8426_v21, %v3518_v37  ;;  %v3531_v25 = vrot.slane %v3514_v6, %v13087_v57  ;;  %v3535_v48 = vrot.slane %v3514_v6, %v13090_v34  ;;  %v3555_v49 = vrot.slane %v3514_v6, %v8331_v23 }
 0x1d5   :  { %vm3525_vm4 = vcmp.lt.s32.totalorder %v8471_v43, %v3518_v37  ;;  %v3572_v56 = vrot.slane %v3515_v62, %v13087_v57  ;;  %v3576_v46 = vrot.slane %v3515_v62, %v13090_v34  ;;  %v3588_v38 = vrot.slane %v3515_v62, %v8327_v20 }
 0x1d6   :  { %v3596_v8 = vrot.slane %v3515_v62, %v8331_v23  ;;  %v3539_v3 = vrot.slane %v3514_v6, %v8323_v18  ;;  %v3543_v26 = vrot.slane %v3514_v6, %v8325_v19  ;;  %v3580_v60 = vrot.slane %v3515_v62, %v8323_v18 }
 0x1d7   :  { %vm3522_vm5 = vcmp.lt.s32.totalorder %v8392_v59, %v3518_v37  ;;  %v3551_v40 = vrot.slane %v3514_v6, %v8329_v22  ;;  %v3584_v63 = vrot.slane %v3515_v62, %v8325_v19  ;;  %v3592_v2 = vrot.slane %v3515_v62, %v8329_v22 }
 0x1d8   :  { %v3613_v27 = vsel %vm3523_vm3, %v3547_v53, %v3588_v38  ;;  %v3559_v29 = vrot.slane %v3514_v6, %v8333_v24  ;;  %v3600_v50 = vrot.slane %v3515_v62, %v8333_v24  ;;  %vm3524_vm6 = vcmp.lt.s32.totalorder %v8437_v33, %v3518_v37 }
 0x1d9   :  { %v3615_v9 = vsel %vm3525_vm4, %v3555_v49, %v3596_v8  ;;  %vm3526_vm7 = vcmp.lt.s32.totalorder %v8523_v44, %v3518_v37  ;;  %v3609_v39 = vsel %vm3519_vm0, %v3531_v25, %v3572_v56  ;;  %v3610_v12 = vsel %vm3520_vm1, %v3535_v48, %v3576_v46  ;;  %v3740_v8 = vld [vmem:[#allocation5 + $0x100] ss:$8 sm:$0xf] }
 0x1da   :  { %v3621_v1 = vadd.f32 %v3613_v27, %v3507_v47  ;;  %v3506_v42 = vadd.f32 %v3498_v30, %v3392_v54  ;;  %v3611_v52 = vsel %vm3521_vm2, %v3539_v3, %v3580_v60  ;;  %v3623_v17 = vadd.f32 %v3615_v9, %v3509_v15  ;;  %v3741_v3 = vld [vmem:[#allocation5 + $0x100] ss:$8 sm:$0xf0]  ;;  %v3746_v27 = vpop.permute.xlu0 %3745 }
 0x1db   :  { %v3628_v31 = vor.u32 %v3627_v5, %v3626_v35  ;;  %v3508_v51 = vadd.f32 %v3500_v0, %v3394_v11  ;;  %v3510_v61 = vadd.f32 %v3502_v4, %v3396_v7  ;;  %v3612_v45 = vsel %vm3522_vm5, %v3543_v26, %v3584_v63 }
 0x1dc   :  { %v3614_v32 = vsel %vm3524_vm6, %v3551_v40, %v3592_v2  ;;  %v3616_v58 = vsel %vm3526_vm7, %v3559_v29, %v3600_v50  ;;  %v3617_v36 = vadd.f32 %v3609_v39, %v3503_v16  ;;  %v3618_v6 = vadd.f32 %v3610_v12, %v3504_v41 }
 0x1dd   :  { %v3629_v62 = vsub.f32 0.0, %v3628_v31  ;;  %v3619_v53 = vadd.f32 %v3611_v52, %v3505_v10  ;;  %vm3633_vm8 = vcmp.lt.s32.totalorder %v8317_v14, %v3632_v13  ;;  %vm3634_vm9 = vcmp.lt.s32.totalorder %v8339_v28, %v3632_v13 }
 0x1de   :  { %vm3635_vm10 = vcmp.lt.s32.totalorder %v8381_v55, %v3632_v13  ;;  %v3645_v47 = vrot.slane %v3628_v31, %v13087_v57  ;;  %v3661_v15 = vrot.slane %v3628_v31, %v8327_v20  ;;  %v3669_v54 = vrot.slane %v3628_v31, %v8331_v23 }
 0x1df   :  { %vm3637_vm11 = vcmp.lt.s32.totalorder %v8426_v21, %v3632_v13  ;;  %v3649_v37 = vrot.slane %v3628_v31, %v13090_v34  ;;  %v3686_v11 = vrot.slane %v3629_v62, %v13087_v57  ;;  %v3702_v7 = vrot.slane %v3629_v62, %v8327_v20 }
 0x1e0   :  { %v3710_v30 = vrot.slane %v3629_v62, %v8331_v23  ;;  %v3653_v0 = vrot.slane %v3628_v31, %v8323_v18  ;;  %v3690_v4 = vrot.slane %v3629_v62, %v13090_v34  ;;  %v3694_v16 = vrot.slane %v3629_v62, %v8323_v18 }
 0x1e1   :  { %vm3639_vm12 = vcmp.lt.s32.totalorder %v8471_v43, %v3632_v13  ;;  %v3657_v41 = vrot.slane %v3628_v31, %v8325_v19  ;;  %v3665_v10 = vrot.slane %v3628_v31, %v8329_v22  ;;  %v3673_v25 = vrot.slane %v3628_v31, %v8333_v24 }
 0x1e2   :  { %v3698_v48 = vrot.slane %v3629_v62, %v8325_v19  ;;  %v3706_v49 = vrot.slane %v3629_v62, %v8329_v22  ;;  %v3714_v56 = vrot.slane %v3629_v62, %v8333_v24  ;;  %v3727_v46 = vsel %vm3637_vm11, %v3661_v15, %v3702_v7  ;;  %v3855_v7 = vld [vmem:[#allocation5 + $0x101] ss:$8 sm:$0xf0] }
 0x1e3   :  { %v3729_v38 = vsel %vm3639_vm12, %v3669_v54, %v3710_v30  ;;  %vm3636_vm13 = vcmp.lt.s32.totalorder %v8392_v59, %v3632_v13  ;;  %vm3638_vm14 = vcmp.lt.s32.totalorder %v8437_v33, %v3632_v13  ;;  %vm3640_vm15 = vcmp.lt.s32.totalorder %v8523_v44, %v3632_v13 }
 0x1e4   :  { %v3723_v26 = vsel %vm3633_vm8, %v3645_v47, %v3686_v11  ;;  %v3724_v60 = vsel %vm3634_vm9, %v3649_v37, %v3690_v4  ;;  %v3725_v40 = vsel %vm3635_vm10, %v3653_v0, %v3694_v16  ;;  %v3735_v63 = vadd.f32 %v3727_v46, %v3621_v1  ;;  %v3854_v11 = vld [vmem:[#allocation5 + $0x101] ss:$8 sm:$0xf]  ;;  %v3860_v46 = vpop.permute.xlu1 %3859 }
 0x1e5   :  { %v3737_v2 = vadd.f32 %v3729_v38, %v3623_v17  ;;  %v3620_v35 = vadd.f32 %v3612_v45, %v3506_v42  ;;  %v3622_v5 = vadd.f32 %v3614_v32, %v3508_v51  ;;  %v3624_v29 = vadd.f32 %v3616_v58, %v3510_v61 }
 0x1e6   :  { %v3742_v50 = vor.u32 %v3741_v3, %v3740_v8  ;;  %v3726_v9 = vsel %vm3636_vm13, %v3657_v41, %v3698_v48  ;;  %v3728_v39 = vsel %vm3638_vm14, %v3665_v10, %v3706_v49  ;;  %v3730_v12 = vsel %vm3640_vm15, %v3673_v25, %v3714_v56 }
 0x1e7   :  { %v3731_v52 = vadd.f32 %v3723_v26, %v3617_v36  ;;  %v3732_v31 = vadd.f32 %v3724_v60, %v3618_v6  ;;  %v3733_v62 = vadd.f32 %v3725_v40, %v3619_v53  ;;  %vm3747_vm0 = vcmp.lt.s32.totalorder %v8317_v14, %v3746_v27 }
 0x1e8   :  { %v3743_v47 = vsub.f32 0.0, %v3742_v50  ;;  %v3775_v15 = vrot.slane %v3742_v50, %v8327_v20  ;;  %vm3748_vm1 = vcmp.lt.s32.totalorder %v8339_v28, %v3746_v27  ;;  %vm3749_vm2 = vcmp.lt.s32.totalorder %v8381_v55, %v3746_v27 }
 0x1e9   :  { %vm3751_vm3 = vcmp.lt.s32.totalorder %v8426_v21, %v3746_v27  ;;  %v3759_v1 = vrot.slane %v3742_v50, %v13087_v57  ;;  %v3763_v42 = vrot.slane %v3742_v50, %v13090_v34  ;;  %v3783_v17 = vrot.slane %v3742_v50, %v8331_v23 }
 0x1ea   :  { %vm3753_vm4 = vcmp.lt.s32.totalorder %v8471_v43, %v3746_v27  ;;  %v3800_v13 = vrot.slane %v3743_v47, %v13087_v57  ;;  %v3804_v51 = vrot.slane %v3743_v47, %v13090_v34  ;;  %v3816_v61 = vrot.slane %v3743_v47, %v8327_v20 }
 0x1eb   :  { %v3824_v45 = vrot.slane %v3743_v47, %v8331_v23  ;;  %v3767_v32 = vrot.slane %v3742_v50, %v8323_v18  ;;  %v3771_v58 = vrot.slane %v3742_v50, %v8325_v19  ;;  %v3808_v36 = vrot.slane %v3743_v47, %v8323_v18 }
 0x1ec   :  { %vm3750_vm5 = vcmp.lt.s32.totalorder %v8392_v59, %v3746_v27  ;;  %v3779_v6 = vrot.slane %v3742_v50, %v8329_v22  ;;  %v3812_v53 = vrot.slane %v3743_v47, %v8325_v19  ;;  %v3820_v54 = vrot.slane %v3743_v47, %v8329_v22 }
 0x1ed   :  { %v3841_v37 = vsel %vm3751_vm3, %v3775_v15, %v3816_v61  ;;  %v3787_v30 = vrot.slane %v3742_v50, %v8333_v24  ;;  %v3828_v0 = vrot.slane %v3743_v47, %v8333_v24  ;;  %vm3752_vm6 = vcmp.lt.s32.totalorder %v8437_v33, %v3746_v27 }
 0x1ee   :  { %v3843_v4 = vsel %vm3753_vm4, %v3783_v17, %v3824_v45  ;;  %vm3754_vm7 = vcmp.lt.s32.totalorder %v8523_v44, %v3746_v27  ;;  %v3837_v16 = vsel %vm3747_vm0, %v3759_v1, %v3800_v13  ;;  %v3838_v41 = vsel %vm3748_vm1, %v3763_v42, %v3804_v51  ;;  %v3968_v45 = vld [vmem:[#allocation5 + $0x102] ss:$8 sm:$0xf] }
 0x1ef   :  { %v3849_v10 = vadd.f32 %v3841_v37, %v3735_v63  ;;  %v3734_v25 = vadd.f32 %v3726_v9, %v3620_v35  ;;  %v3839_v48 = vsel %vm3749_vm2, %v3767_v32, %v3808_v36  ;;  %v3851_v49 = vadd.f32 %v3843_v4, %v3737_v2  ;;  %v3969_v32 = vld [vmem:[#allocation5 + $0x102] ss:$8 sm:$0xf0]  ;;  %v3974_v37 = vpop.permute.xlu1 %3973 }
 0x1f0   :  { %v3856_v56 = vor.u32 %v3855_v7, %v3854_v11  ;;  %v3736_v38 = vadd.f32 %v3728_v39, %v3622_v5  ;;  %v3738_v8 = vadd.f32 %v3730_v12, %v3624_v29  ;;  %v3840_v3 = vsel %vm3750_vm5, %v3771_v58, %v3812_v53 }
 0x1f1   :  { %v3842_v26 = vsel %vm3752_vm6, %v3779_v6, %v3820_v54  ;;  %v3844_v60 = vsel %vm3754_vm7, %v3787_v30, %v3828_v0  ;;  %v3845_v40 = vadd.f32 %v3837_v16, %v3731_v52  ;;  %v3846_v50 = vadd.f32 %v3838_v41, %v3732_v31 }
 0x1f2   :  { %v3857_v47 = vsub.f32 0.0, %v3856_v56  ;;  %v3847_v15 = vadd.f32 %v3839_v48, %v3733_v62  ;;  %vm3861_vm8 = vcmp.lt.s32.totalorder %v8317_v14, %v3860_v46  ;;  %vm3862_vm9 = vcmp.lt.s32.totalorder %v8339_v28, %v3860_v46 }
 0x1f3   :  { %vm3863_vm10 = vcmp.lt.s32.totalorder %v8381_v55, %v3860_v46  ;;  %v3873_v63 = vrot.slane %v3856_v56, %v13087_v57  ;;  %v3889_v2 = vrot.slane %v3856_v56, %v8327_v20  ;;  %v3897_v35 = vrot.slane %v3856_v56, %v8331_v23 }
 0x1f4   :  { %vm3865_vm11 = vcmp.lt.s32.totalorder %v8426_v21, %v3860_v46  ;;  %v3877_v27 = vrot.slane %v3856_v56, %v13090_v34  ;;  %v3914_v5 = vrot.slane %v3857_v47, %v13087_v57  ;;  %v3930_v29 = vrot.slane %v3857_v47, %v8327_v20 }
 0x1f5   :  { %v3938_v9 = vrot.slane %v3857_v47, %v8331_v23  ;;  %v3881_v39 = vrot.slane %v3856_v56, %v8323_v18  ;;  %v3918_v12 = vrot.slane %v3857_v47, %v13090_v34  ;;  %v3922_v52 = vrot.slane %v3857_v47, %v8323_v18 }
 0x1f6   :  { %vm3867_vm12 = vcmp.lt.s32.totalorder %v8471_v43, %v3860_v46  ;;  %v3885_v31 = vrot.slane %v3856_v56, %v8325_v19  ;;  %v3893_v62 = vrot.slane %v3856_v56, %v8329_v22  ;;  %v3901_v1 = vrot.slane %v3856_v56, %v8333_v24 }
 0x1f7   :  { %v3926_v42 = vrot.slane %v3857_v47, %v8325_v19  ;;  %v3934_v17 = vrot.slane %v3857_v47, %v8329_v22  ;;  %v3942_v13 = vrot.slane %v3857_v47, %v8333_v24  ;;  %v3955_v51 = vsel %vm3865_vm11, %v3889_v2, %v3930_v29  ;;  %v4083_v29 = vld [vmem:[#allocation5 + $0x103] ss:$8 sm:$0xf0] }
 0x1f8   :  { %v3957_v61 = vsel %vm3867_vm12, %v3897_v35, %v3938_v9  ;;  %vm3864_vm13 = vcmp.lt.s32.totalorder %v8392_v59, %v3860_v46  ;;  %vm3866_vm14 = vcmp.lt.s32.totalorder %v8437_v33, %v3860_v46  ;;  %vm3868_vm15 = vcmp.lt.s32.totalorder %v8523_v44, %v3860_v46 }
 0x1f9   :  { %v3951_v58 = vsel %vm3861_vm8, %v3873_v63, %v3914_v5  ;;  %v3952_v36 = vsel %vm3862_vm9, %v3877_v27, %v3918_v12  ;;  %v3953_v6 = vsel %vm3863_vm10, %v3881_v39, %v3922_v52  ;;  %v3963_v53 = vadd.f32 %v3955_v51, %v3849_v10  ;;  %v4082_v5 = vld [vmem:[#allocation5 + $0x103] ss:$8 sm:$0xf]  ;;  %v4088_v51 = vpop.permute.xlu0 %4087 }
 0x1fa   :  { %v3965_v54 = vadd.f32 %v3957_v61, %v3851_v49  ;;  %v3848_v11 = vadd.f32 %v3840_v3, %v3734_v25  ;;  %v3850_v7 = vadd.f32 %v3842_v26, %v3736_v38  ;;  %v3852_v30 = vadd.f32 %v3844_v60, %v3738_v8 }
 0x1fb   :  { %v3970_v0 = vor.u32 %v3969_v32, %v3968_v45  ;;  %v3954_v4 = vsel %vm3864_vm13, %v3885_v31, %v3926_v42  ;;  %v3956_v16 = vsel %vm3866_vm14, %v3893_v62, %v3934_v17  ;;  %v3958_v41 = vsel %vm3868_vm15, %v3901_v1, %v3942_v13 }
 0x1fc   :  { %v3959_v48 = vadd.f32 %v3951_v58, %v3845_v40  ;;  %v3960_v56 = vadd.f32 %v3952_v36, %v3846_v50  ;;  %v3961_v47 = vadd.f32 %v3953_v6, %v3847_v15  ;;  %vm3975_vm0 = vcmp.lt.s32.totalorder %v8317_v14, %v3974_v37 }
 0x1fd   :  { %v3971_v63 = vsub.f32 0.0, %v3970_v0  ;;  %v4003_v2 = vrot.slane %v3970_v0, %v8327_v20  ;;  %vm3976_vm1 = vcmp.lt.s32.totalorder %v8339_v28, %v3974_v37  ;;  %vm3977_vm2 = vcmp.lt.s32.totalorder %v8381_v55, %v3974_v37 }
 0x1fe   :  { %vm3979_vm3 = vcmp.lt.s32.totalorder %v8426_v21, %v3974_v37  ;;  %v3987_v10 = vrot.slane %v3970_v0, %v13087_v57  ;;  %v3991_v25 = vrot.slane %v3970_v0, %v13090_v34  ;;  %v4011_v49 = vrot.slane %v3970_v0, %v8331_v23 }
 0x1ff   :  { %vm3981_vm4 = vcmp.lt.s32.totalorder %v8471_v43, %v3974_v37  ;;  %v4028_v46 = vrot.slane %v3971_v63, %v13087_v57  ;;  %v4032_v38 = vrot.slane %v3971_v63, %v13090_v34  ;;  %v4044_v8 = vrot.slane %v3971_v63, %v8327_v20 }
 0x200   :  { %v4052_v3 = vrot.slane %v3971_v63, %v8331_v23  ;;  %v3995_v26 = vrot.slane %v3970_v0, %v8323_v18  ;;  %v3999_v60 = vrot.slane %v3970_v0, %v8325_v19  ;;  %v4036_v40 = vrot.slane %v3971_v63, %v8323_v18 }
 0x201   :  { %vm3978_vm5 = vcmp.lt.s32.totalorder %v8392_v59, %v3974_v37  ;;  %v4007_v50 = vrot.slane %v3970_v0, %v8329_v22  ;;  %v4040_v15 = vrot.slane %v3971_v63, %v8325_v19  ;;  %v4048_v35 = vrot.slane %v3971_v63, %v8329_v22 }
 0x202   :  { %v4069_v27 = vsel %vm3979_vm3, %v4003_v2, %v4044_v8  ;;  %v4015_v9 = vrot.slane %v3970_v0, %v8333_v24  ;;  %v4056_v39 = vrot.slane %v3971_v63, %v8333_v24  ;;  %vm3980_vm6 = vcmp.lt.s32.totalorder %v8437_v33, %v3974_v37 }
 0x203   :  { %v4071_v12 = vsel %vm3981_vm4, %v4011_v49, %v4052_v3  ;;  %vm3982_vm7 = vcmp.lt.s32.totalorder %v8523_v44, %v3974_v37  ;;  %v4065_v52 = vsel %vm3975_vm0, %v3987_v10, %v4028_v46  ;;  %v4066_v31 = vsel %vm3976_vm1, %v3991_v25, %v4032_v38  ;;  %v4196_v3 = vld [vmem:[#allocation5 + $0x104] ss:$8 sm:$0xf] }
 0x204   :  { %v4077_v62 = vadd.f32 %v4069_v27, %v3963_v53  ;;  %v3962_v1 = vadd.f32 %v3954_v4, %v3848_v11  ;;  %v4067_v42 = vsel %vm3977_vm2, %v3995_v26, %v4036_v40  ;;  %v4079_v17 = vadd.f32 %v4071_v12, %v3965_v54  ;;  %v4197_v26 = vld [vmem:[#allocation5 + $0x104] ss:$8 sm:$0xf0]  ;;  %v4202_v27 = vpop.permute.xlu1 %4201 }
 0x205   :  { %v4084_v13 = vor.u32 %v4083_v29, %v4082_v5  ;;  %v3964_v61 = vadd.f32 %v3956_v16, %v3850_v7  ;;  %v3966_v45 = vadd.f32 %v3958_v41, %v3852_v30  ;;  %v4068_v32 = vsel %vm3978_vm5, %v3999_v60, %v4040_v15 }
 0x206   :  { %v4070_v58 = vsel %vm3980_vm6, %v4007_v50, %v4048_v35  ;;  %v4072_v36 = vsel %vm3982_vm7, %v4015_v9, %v4056_v39  ;;  %v4073_v6 = vadd.f32 %v4065_v52, %v3959_v48  ;;  %v4074_v0 = vadd.f32 %v4066_v31, %v3960_v56 }
 0x207   :  { %v4085_v63 = vsub.f32 0.0, %v4084_v13  ;;  %v4075_v2 = vadd.f32 %v4067_v42, %v3961_v47  ;;  %vm4089_vm8 = vcmp.lt.s32.totalorder %v8317_v14, %v4088_v51  ;;  %vm4090_vm9 = vcmp.lt.s32.totalorder %v8339_v28, %v4088_v51 }
 0x208   :  { %vm4091_vm10 = vcmp.lt.s32.totalorder %v8381_v55, %v4088_v51  ;;  %v4101_v53 = vrot.slane %v4084_v13, %v13087_v57  ;;  %v4117_v54 = vrot.slane %v4084_v13, %v8327_v20  ;;  %v4125_v11 = vrot.slane %v4084_v13, %v8331_v23 }
 0x209   :  { %vm4093_vm11 = vcmp.lt.s32.totalorder %v8426_v21, %v4088_v51  ;;  %v4105_v37 = vrot.slane %v4084_v13, %v13090_v34  ;;  %v4142_v7 = vrot.slane %v4085_v63, %v13087_v57  ;;  %v4158_v30 = vrot.slane %v4085_v63, %v8327_v20 }
 0x20a   :  { %v4166_v4 = vrot.slane %v4085_v63, %v8331_v23  ;;  %v4109_v16 = vrot.slane %v4084_v13, %v8323_v18  ;;  %v4146_v41 = vrot.slane %v4085_v63, %v13090_v34  ;;  %v4150_v48 = vrot.slane %v4085_v63, %v8323_v18 }
 0x20b   :  { %vm4095_vm12 = vcmp.lt.s32.totalorder %v8471_v43, %v4088_v51  ;;  %v4113_v56 = vrot.slane %v4084_v13, %v8325_v19  ;;  %v4121_v47 = vrot.slane %v4084_v13, %v8329_v22  ;;  %v4129_v10 = vrot.slane %v4084_v13, %v8333_v24 }
 0x20c   :  { %v4154_v25 = vrot.slane %v4085_v63, %v8325_v19  ;;  %v4162_v49 = vrot.slane %v4085_v63, %v8329_v22  ;;  %v4170_v46 = vrot.slane %v4085_v63, %v8333_v24  ;;  %v4183_v38 = vsel %vm4093_vm11, %v4117_v54, %v4158_v30  ;;  %v4311_v30 = vld [vmem:[#allocation5 + $0x105] ss:$8 sm:$0xf0] }
 0x20d   :  { %v4185_v8 = vsel %vm4095_vm12, %v4125_v11, %v4166_v4  ;;  %vm4092_vm13 = vcmp.lt.s32.totalorder %v8392_v59, %v4088_v51  ;;  %vm4094_vm14 = vcmp.lt.s32.totalorder %v8437_v33, %v4088_v51  ;;  %vm4096_vm15 = vcmp.lt.s32.totalorder %v8523_v44, %v4088_v51 }
 0x20e   :  { %v4179_v60 = vsel %vm4089_vm8, %v4101_v53, %v4142_v7  ;;  %v4180_v40 = vsel %vm4090_vm9, %v4105_v37, %v4146_v41  ;;  %v4181_v50 = vsel %vm4091_vm10, %v4109_v16, %v4150_v48  ;;  %v4191_v15 = vadd.f32 %v4183_v38, %v4077_v62  ;;  %v4310_v7 = vld [vmem:[#allocation5 + $0x105] ss:$8 sm:$0xf]  ;;  %v4316_v38 = vpop.permute.xlu1 %4315 }
 0x20f   :  { %v4193_v35 = vadd.f32 %v4185_v8, %v4079_v17  ;;  %v4076_v5 = vadd.f32 %v4068_v32, %v3962_v1  ;;  %v4078_v29 = vadd.f32 %v4070_v58, %v3964_v61  ;;  %v4080_v9 = vadd.f32 %v4072_v36, %v3966_v45 }
 0x210   :  { %v4198_v39 = vor.u32 %v4197_v26, %v4196_v3  ;;  %v4182_v12 = vsel %vm4092_vm13, %v4113_v56, %v4154_v25  ;;  %v4184_v52 = vsel %vm4094_vm14, %v4121_v47, %v4162_v49  ;;  %v4186_v31 = vsel %vm4096_vm15, %v4129_v10, %v4170_v46 }
 0x211   :  { %v4187_v42 = vadd.f32 %v4179_v60, %v4073_v6  ;;  %v4188_v13 = vadd.f32 %v4180_v40, %v4074_v0  ;;  %v4189_v63 = vadd.f32 %v4181_v50, %v4075_v2  ;;  %vm4203_vm0 = vcmp.lt.s32.totalorder %v8317_v14, %v4202_v27 }
 0x212   :  { %v4199_v53 = vsub.f32 0.0, %v4198_v39  ;;  %v4231_v54 = vrot.slane %v4198_v39, %v8327_v20  ;;  %vm4204_vm1 = vcmp.lt.s32.totalorder %v8339_v28, %v4202_v27  ;;  %vm4205_vm2 = vcmp.lt.s32.totalorder %v8381_v55, %v4202_v27 }
 0x213   :  { %vm4207_vm3 = vcmp.lt.s32.totalorder %v8426_v21, %v4202_v27  ;;  %v4215_v62 = vrot.slane %v4198_v39, %v13087_v57  ;;  %v4219_v1 = vrot.slane %v4198_v39, %v13090_v34  ;;  %v4239_v17 = vrot.slane %v4198_v39, %v8331_v23 }
 0x214   :  { %vm4209_vm4 = vcmp.lt.s32.totalorder %v8471_v43, %v4202_v27  ;;  %v4256_v51 = vrot.slane %v4199_v53, %v13087_v57  ;;  %v4260_v61 = vrot.slane %v4199_v53, %v13090_v34  ;;  %v4272_v45 = vrot.slane %v4199_v53, %v8327_v20 }
 0x215   :  { %v4280_v32 = vrot.slane %v4199_v53, %v8331_v23  ;;  %v4223_v58 = vrot.slane %v4198_v39, %v8323_v18  ;;  %v4227_v36 = vrot.slane %v4198_v39, %v8325_v19  ;;  %v4264_v6 = vrot.slane %v4199_v53, %v8323_v18 }
 0x216   :  { %vm4206_vm5 = vcmp.lt.s32.totalorder %v8392_v59, %v4202_v27  ;;  %v4235_v0 = vrot.slane %v4198_v39, %v8329_v22  ;;  %v4268_v2 = vrot.slane %v4199_v53, %v8325_v19  ;;  %v4276_v11 = vrot.slane %v4199_v53, %v8329_v22 }
 0x217   :  { %v4297_v37 = vsel %vm4207_vm3, %v4231_v54, %v4272_v45  ;;  %v4243_v4 = vrot.slane %v4198_v39, %v8333_v24  ;;  %v4284_v16 = vrot.slane %v4199_v53, %v8333_v24  ;;  %vm4208_vm6 = vcmp.lt.s32.totalorder %v8437_v33, %v4202_v27 }
 0x218   :  { %v4299_v41 = vsel %vm4209_vm4, %v4239_v17, %v4280_v32  ;;  %vm4210_vm7 = vcmp.lt.s32.totalorder %v8523_v44, %v4202_v27  ;;  %v4293_v48 = vsel %vm4203_vm0, %v4215_v62, %v4256_v51  ;;  %v4294_v56 = vsel %vm4204_vm1, %v4219_v1, %v4260_v61  ;;  %v4424_v32 = vld [vmem:[#allocation5 + $0x106] ss:$8 sm:$0xf] }
 0x219   :  { %v4305_v47 = vadd.f32 %v4297_v37, %v4191_v15  ;;  %v4190_v10 = vadd.f32 %v4182_v12, %v4076_v5  ;;  %v4295_v25 = vsel %vm4205_vm2, %v4223_v58, %v4264_v6  ;;  %v4307_v49 = vadd.f32 %v4299_v41, %v4193_v35  ;;  %v4425_v58 = vld [vmem:[#allocation5 + $0x106] ss:$8 sm:$0xf0]  ;;  %v4430_v37 = vpop.permute.xlu0 %4429 }
 0x21a   :  { %v4312_v46 = vor.u32 %v4311_v30, %v4310_v7  ;;  %v4192_v8 = vadd.f32 %v4184_v52, %v4078_v29  ;;  %v4194_v3 = vadd.f32 %v4186_v31, %v4080_v9  ;;  %v4296_v26 = vsel %vm4206_vm5, %v4227_v36, %v4268_v2 }
 0x21b   :  { %v4298_v60 = vsel %vm4208_vm6, %v4235_v0, %v4276_v11  ;;  %v4300_v40 = vsel %vm4210_vm7, %v4243_v4, %v4284_v16  ;;  %v4301_v50 = vadd.f32 %v4293_v48, %v4187_v42  ;;  %v4302_v39 = vadd.f32 %v4294_v56, %v4188_v13 }
 0x21c   :  { %v4313_v53 = vsub.f32 0.0, %v4312_v46  ;;  %v4303_v54 = vadd.f32 %v4295_v25, %v4189_v63  ;;  %vm4317_vm8 = vcmp.lt.s32.totalorder %v8317_v14, %v4316_v38  ;;  %vm4318_vm9 = vcmp.lt.s32.totalorder %v8339_v28, %v4316_v38 }
 0x21d   :  { %vm4319_vm10 = vcmp.lt.s32.totalorder %v8381_v55, %v4316_v38  ;;  %v4329_v15 = vrot.slane %v4312_v46, %v13087_v57  ;;  %v4345_v35 = vrot.slane %v4312_v46, %v8327_v20  ;;  %v4353_v5 = vrot.slane %v4312_v46, %v8331_v23 }
 0x21e   :  { %vm4321_vm11 = vcmp.lt.s32.totalorder %v8426_v21, %v4316_v38  ;;  %v4333_v27 = vrot.slane %v4312_v46, %v13090_v34  ;;  %v4370_v29 = vrot.slane %v4313_v53, %v13087_v57  ;;  %v4386_v9 = vrot.slane %v4313_v53, %v8327_v20 }
 0x21f   :  { %v4394_v12 = vrot.slane %v4313_v53, %v8331_v23  ;;  %v4337_v52 = vrot.slane %v4312_v46, %v8323_v18  ;;  %v4374_v31 = vrot.slane %v4313_v53, %v13090_v34  ;;  %v4378_v42 = vrot.slane %v4313_v53, %v8323_v18 }
 0x220   :  { %vm4323_vm12 = vcmp.lt.s32.totalorder %v8471_v43, %v4316_v38  ;;  %v4341_v13 = vrot.slane %v4312_v46, %v8325_v19  ;;  %v4349_v63 = vrot.slane %v4312_v46, %v8329_v22  ;;  %v4357_v62 = vrot.slane %v4312_v46, %v8333_v24 }
 0x221   :  { %v4382_v1 = vrot.slane %v4313_v53, %v8325_v19  ;;  %v4390_v17 = vrot.slane %v4313_v53, %v8329_v22  ;;  %v4398_v51 = vrot.slane %v4313_v53, %v8333_v24  ;;  %v4411_v61 = vsel %vm4321_vm11, %v4345_v35, %v4386_v9  ;;  %v4539_v9 = vld [vmem:[#allocation5 + $0x107] ss:$8 sm:$0xf0] }
 0x222   :  { %v4413_v45 = vsel %vm4323_vm12, %v4353_v5, %v4394_v12  ;;  %vm4320_vm13 = vcmp.lt.s32.totalorder %v8392_v59, %v4316_v38  ;;  %vm4322_vm14 = vcmp.lt.s32.totalorder %v8437_v33, %v4316_v38  ;;  %vm4324_vm15 = vcmp.lt.s32.totalorder %v8523_v44, %v4316_v38 }
 0x223   :  { %v4407_v36 = vsel %vm4317_vm8, %v4329_v15, %v4370_v29  ;;  %v4408_v6 = vsel %vm4318_vm9, %v4333_v27, %v4374_v31  ;;  %v4409_v0 = vsel %vm4319_vm10, %v4337_v52, %v4378_v42  ;;  %v4419_v2 = vadd.f32 %v4411_v61, %v4305_v47  ;;  %v4538_v29 = vld [vmem:[#allocation5 + $0x107] ss:$8 sm:$0xf]  ;;  %v4544_v61 = vpop.permute.xlu1 %4543 }
 0x224   :  { %v4421_v11 = vadd.f32 %v4413_v45, %v4307_v49  ;;  %v4304_v7 = vadd.f32 %v4296_v26, %v4190_v10  ;;  %v4306_v30 = vadd.f32 %v4298_v60, %v4192_v8  ;;  %v4308_v4 = vadd.f32 %v4300_v40, %v4194_v3 }
 0x225   :  { %v4426_v16 = vor.u32 %v4425_v58, %v4424_v32  ;;  %v4410_v41 = vsel %vm4320_vm13, %v4341_v13, %v4382_v1  ;;  %v4412_v48 = vsel %vm4322_vm14, %v4349_v63, %v4390_v17  ;;  %v4414_v56 = vsel %vm4324_vm15, %v4357_v62, %v4398_v51 }
 0x226   :  { %v4415_v25 = vadd.f32 %v4407_v36, %v4301_v50  ;;  %v4416_v46 = vadd.f32 %v4408_v6, %v4302_v39  ;;  %v4417_v53 = vadd.f32 %v4409_v0, %v4303_v54  ;;  %vm4431_vm0 = vcmp.lt.s32.totalorder %v8317_v14, %v4430_v37 }
 0x227   :  { %v4427_v15 = vsub.f32 0.0, %v4426_v16  ;;  %v4459_v35 = vrot.slane %v4426_v16, %v8327_v20  ;;  %vm4432_vm1 = vcmp.lt.s32.totalorder %v8339_v28, %v4430_v37  ;;  %vm4433_vm2 = vcmp.lt.s32.totalorder %v8381_v55, %v4430_v37 }
 0x228   :  { %vm4435_vm3 = vcmp.lt.s32.totalorder %v8426_v21, %v4430_v37  ;;  %v4443_v47 = vrot.slane %v4426_v16, %v13087_v57  ;;  %v4447_v10 = vrot.slane %v4426_v16, %v13090_v34  ;;  %v4467_v49 = vrot.slane %v4426_v16, %v8331_v23 }
 0x229   :  { %vm4437_vm4 = vcmp.lt.s32.totalorder %v8471_v43, %v4430_v37  ;;  %v4484_v38 = vrot.slane %v4427_v15, %v13087_v57  ;;  %v4488_v8 = vrot.slane %v4427_v15, %v13090_v34  ;;  %v4500_v3 = vrot.slane %v4427_v15, %v8327_v20 }
 0x22a   :  { %v4508_v26 = vrot.slane %v4427_v15, %v8331_v23  ;;  %v4451_v60 = vrot.slane %v4426_v16, %v8323_v18  ;;  %v4455_v40 = vrot.slane %v4426_v16, %v8325_v19  ;;  %v4492_v50 = vrot.slane %v4427_v15, %v8323_v18 }
 0x22b   :  { %vm4434_vm5 = vcmp.lt.s32.totalorder %v8392_v59, %v4430_v37  ;;  %v4463_v39 = vrot.slane %v4426_v16, %v8329_v22  ;;  %v4496_v54 = vrot.slane %v4427_v15, %v8325_v19  ;;  %v4504_v5 = vrot.slane %v4427_v15, %v8329_v22 }
 0x22c   :  { %v4525_v27 = vsel %vm4435_vm3, %v4459_v35, %v4500_v3  ;;  %v4471_v12 = vrot.slane %v4426_v16, %v8333_v24  ;;  %v4512_v52 = vrot.slane %v4427_v15, %v8333_v24  ;;  %vm4436_vm6 = vcmp.lt.s32.totalorder %v8437_v33, %v4430_v37 }
 0x22d   :  { %v4527_v31 = vsel %vm4437_vm4, %v4467_v49, %v4508_v26  ;;  %vm4438_vm7 = vcmp.lt.s32.totalorder %v8523_v44, %v4430_v37  ;;  %v4521_v42 = vsel %vm4431_vm0, %v4443_v47, %v4484_v38  ;;  %v4522_v13 = vsel %vm4432_vm1, %v4447_v10, %v4488_v8  ;;  %v4652_v26 = vld [vmem:[#allocation5 + $0x140] ss:$8 sm:$0xf] }
 0x22e   :  { %v4533_v63 = vadd.f32 %v4525_v27, %v4419_v2  ;;  %v4418_v62 = vadd.f32 %v4410_v41, %v4304_v7  ;;  %v4523_v1 = vsel %vm4433_vm2, %v4451_v60, %v4492_v50  ;;  %v4535_v17 = vadd.f32 %v4527_v31, %v4421_v11  ;;  %v4653_v60 = vld [vmem:[#allocation5 + $0x140] ss:$8 sm:$0xf0]  ;;  %v4658_v27 = vpop.permute.xlu1 %4657 }
 0x22f   :  { %v4540_v51 = vor.u32 %v4539_v9, %v4538_v29  ;;  %v4420_v45 = vadd.f32 %v4412_v48, %v4306_v30  ;;  %v4422_v32 = vadd.f32 %v4414_v56, %v4308_v4  ;;  %v4524_v58 = vsel %vm4434_vm5, %v4455_v40, %v4496_v54 }
 0x230   :  { %v4526_v36 = vsel %vm4436_vm6, %v4463_v39, %v4504_v5  ;;  %v4528_v6 = vsel %vm4438_vm7, %v4471_v12, %v4512_v52  ;;  %v4529_v0 = vadd.f32 %v4521_v42, %v4415_v25  ;;  %v4530_v16 = vadd.f32 %v4522_v13, %v4416_v46 }
 0x231   :  { %v4541_v15 = vsub.f32 0.0, %v4540_v51  ;;  %v4531_v35 = vadd.f32 %v4523_v1, %v4417_v53  ;;  %vm4545_vm8 = vcmp.lt.s32.totalorder %v8317_v14, %v4544_v61  ;;  %vm4546_vm9 = vcmp.lt.s32.totalorder %v8339_v28, %v4544_v61 }
 0x232   :  { %vm4547_vm10 = vcmp.lt.s32.totalorder %v8381_v55, %v4544_v61  ;;  %v4557_v2 = vrot.slane %v4540_v51, %v13087_v57  ;;  %v4573_v11 = vrot.slane %v4540_v51, %v8327_v20  ;;  %v4581_v7 = vrot.slane %v4540_v51, %v8331_v23 }
 0x233   :  { %vm4549_vm11 = vcmp.lt.s32.totalorder %v8426_v21, %v4544_v61  ;;  %v4561_v37 = vrot.slane %v4540_v51, %v13090_v34  ;;  %v4598_v30 = vrot.slane %v4541_v15, %v13087_v57  ;;  %v4614_v4 = vrot.slane %v4541_v15, %v8327_v20 }
 0x234   :  { %v4622_v41 = vrot.slane %v4541_v15, %v8331_v23  ;;  %v4565_v48 = vrot.slane %v4540_v51, %v8323_v18  ;;  %v4602_v56 = vrot.slane %v4541_v15, %v13090_v34  ;;  %v4606_v25 = vrot.slane %v4541_v15, %v8323_v18 }
 0x235   :  { %vm4551_vm12 = vcmp.lt.s32.totalorder %v8471_v43, %v4544_v61  ;;  %v4569_v46 = vrot.slane %v4540_v51, %v8325_v19  ;;  %v4577_v53 = vrot.slane %v4540_v51, %v8329_v22  ;;  %v4585_v47 = vrot.slane %v4540_v51, %v8333_v24 }
 0x236   :  { %v4610_v10 = vrot.slane %v4541_v15, %v8325_v19  ;;  %v4618_v49 = vrot.slane %v4541_v15, %v8329_v22  ;;  %v4626_v38 = vrot.slane %v4541_v15, %v8333_v24  ;;  %v4639_v8 = vsel %vm4549_vm11, %v4573_v11, %v4614_v4  ;;  %v4767_v4 = vld [vmem:[#allocation5 + $0x141] ss:$8 sm:$0xf0] }
 0x237   :  { %v4641_v3 = vsel %vm4551_vm12, %v4581_v7, %v4622_v41  ;;  %vm4548_vm13 = vcmp.lt.s32.totalorder %v8392_v59, %v4544_v61  ;;  %vm4550_vm14 = vcmp.lt.s32.totalorder %v8437_v33, %v4544_v61  ;;  %vm4552_vm15 = vcmp.lt.s32.totalorder %v8523_v44, %v4544_v61 }
 0x238   :  { %v4635_v40 = vsel %vm4545_vm8, %v4557_v2, %v4598_v30  ;;  %v4636_v50 = vsel %vm4546_vm9, %v4561_v37, %v4602_v56  ;;  %v4637_v39 = vsel %vm4547_vm10, %v4565_v48, %v4606_v25  ;;  %v4647_v54 = vadd.f32 %v4639_v8, %v4533_v63  ;;  %v4766_v30 = vld [vmem:[#allocation5 + $0x141] ss:$8 sm:$0xf]  ;;  %v4772_v8 = vpop.permute.xlu0 %4771 }
 0x239   :  { %v4649_v5 = vadd.f32 %v4641_v3, %v4535_v17  ;;  %v4532_v29 = vadd.f32 %v4524_v58, %v4418_v62  ;;  %v4534_v9 = vadd.f32 %v4526_v36, %v4420_v45  ;;  %v4536_v12 = vadd.f32 %v4528_v6, %v4422_v32 }
 0x23a   :  { %v4654_v52 = vor.u32 %v4653_v60, %v4652_v26  ;;  %v4638_v31 = vsel %vm4548_vm13, %v4569_v46, %v4610_v10  ;;  %v4640_v42 = vsel %vm4550_vm14, %v4577_v53, %v4618_v49  ;;  %v4642_v13 = vsel %vm4552_vm15, %v4585_v47, %v4626_v38 }
 0x23b   :  { %v4643_v1 = vadd.f32 %v4635_v40, %v4529_v0  ;;  %v4644_v51 = vadd.f32 %v4636_v50, %v4530_v16  ;;  %v4645_v15 = vadd.f32 %v4637_v39, %v4531_v35  ;;  %vm4659_vm0 = vcmp.lt.s32.totalorder %v8317_v14, %v4658_v27 }
 0x23c   :  { %v4655_v2 = vsub.f32 0.0, %v4654_v52  ;;  %v4687_v11 = vrot.slane %v4654_v52, %v8327_v20  ;;  %vm4660_vm1 = vcmp.lt.s32.totalorder %v8339_v28, %v4658_v27  ;;  %vm4661_vm2 = vcmp.lt.s32.totalorder %v8381_v55, %v4658_v27 }
 0x23d   :  { %vm4663_vm3 = vcmp.lt.s32.totalorder %v8426_v21, %v4658_v27  ;;  %v4671_v63 = vrot.slane %v4654_v52, %v13087_v57  ;;  %v4675_v62 = vrot.slane %v4654_v52, %v13090_v34  ;;  %v4695_v17 = vrot.slane %v4654_v52, %v8331_v23 }
 0x23e   :  { %vm4665_vm4 = vcmp.lt.s32.totalorder %v8471_v43, %v4658_v27  ;;  %v4712_v61 = vrot.slane %v4655_v2, %v13087_v57  ;;  %v4716_v45 = vrot.slane %v4655_v2, %v13090_v34  ;;  %v4728_v32 = vrot.slane %v4655_v2, %v8327_v20 }
 0x23f   :  { %v4736_v58 = vrot.slane %v4655_v2, %v8331_v23  ;;  %v4679_v36 = vrot.slane %v4654_v52, %v8323_v18  ;;  %v4683_v6 = vrot.slane %v4654_v52, %v8325_v19  ;;  %v4720_v0 = vrot.slane %v4655_v2, %v8323_v18 }
 0x240   :  { %vm4662_vm5 = vcmp.lt.s32.totalorder %v8392_v59, %v4658_v27  ;;  %v4691_v16 = vrot.slane %v4654_v52, %v8329_v22  ;;  %v4724_v35 = vrot.slane %v4655_v2, %v8325_v19  ;;  %v4732_v7 = vrot.slane %v4655_v2, %v8329_v22 }
 0x241   :  { %v4753_v37 = vsel %vm4663_vm3, %v4687_v11, %v4728_v32  ;;  %v4699_v41 = vrot.slane %v4654_v52, %v8333_v24  ;;  %v4740_v48 = vrot.slane %v4655_v2, %v8333_v24  ;;  %vm4664_vm6 = vcmp.lt.s32.totalorder %v8437_v33, %v4658_v27 }
 0x242   :  { %v4755_v56 = vsel %vm4665_vm4, %v4695_v17, %v4736_v58  ;;  %vm4666_vm7 = vcmp.lt.s32.totalorder %v8523_v44, %v4658_v27  ;;  %v4749_v25 = vsel %vm4659_vm0, %v4671_v63, %v4712_v61  ;;  %v4750_v46 = vsel %vm4660_vm1, %v4675_v62, %v4716_v45  ;;  %v4880_v58 = vld [vmem:[#allocation5 + $0x142] ss:$8 sm:$0xf] }
 0x243   :  { %v4761_v53 = vadd.f32 %v4753_v37, %v4647_v54  ;;  %v4646_v47 = vadd.f32 %v4638_v31, %v4532_v29  ;;  %v4751_v10 = vsel %vm4661_vm2, %v4679_v36, %v4720_v0  ;;  %v4763_v49 = vadd.f32 %v4755_v56, %v4649_v5  ;;  %v4881_v36 = vld [vmem:[#allocation5 + $0x142] ss:$8 sm:$0xf0]  ;;  %v11264_v37 = vpop.permute.xlu1 %4885 }
 0x244   :  { %v4768_v38 = vor.u32 %v4767_v4, %v4766_v30  ;;  %v4648_v3 = vadd.f32 %v4640_v42, %v4534_v9  ;;  %v4650_v26 = vadd.f32 %v4642_v13, %v4536_v12  ;;  %v4752_v60 = vsel %vm4662_vm5, %v4683_v6, %v4724_v35 }
 0x245   :  { %v4754_v40 = vsel %vm4664_vm6, %v4691_v16, %v4732_v7  ;;  %v4756_v50 = vsel %vm4666_vm7, %v4699_v41, %v4740_v48  ;;  %v4757_v39 = vadd.f32 %v4749_v25, %v4643_v1  ;;  %v4758_v52 = vadd.f32 %v4750_v46, %v4644_v51 }
 0x246   :  { %v4769_v2 = vsub.f32 0.0, %v4768_v38  ;;  %v4759_v11 = vadd.f32 %v4751_v10, %v4645_v15  ;;  %vm4773_vm8 = vcmp.lt.s32.totalorder %v8317_v14, %v4772_v8  ;;  %vm4774_vm9 = vcmp.lt.s32.totalorder %v8339_v28, %v4772_v8 }
 0x247   :  { %vm4775_vm10 = vcmp.lt.s32.totalorder %v8381_v55, %v4772_v8  ;;  %v4785_v54 = vrot.slane %v4768_v38, %v13087_v57  ;;  %v4801_v5 = vrot.slane %v4768_v38, %v8327_v20  ;;  %v4809_v29 = vrot.slane %v4768_v38, %v8331_v23 }
 0x248   :  { %vm4777_vm11 = vcmp.lt.s32.totalorder %v8426_v21, %v4772_v8  ;;  %v4789_v27 = vrot.slane %v4768_v38, %v13090_v34  ;;  %v4826_v9 = vrot.slane %v4769_v2, %v13087_v57  ;;  %v4842_v12 = vrot.slane %v4769_v2, %v8327_v20 }
 0x249   :  { %v4850_v31 = vrot.slane %v4769_v2, %v8331_v23  ;;  %v4793_v42 = vrot.slane %v4768_v38, %v8323_v18  ;;  %v4830_v13 = vrot.slane %v4769_v2, %v13090_v34  ;;  %v4834_v1 = vrot.slane %v4769_v2, %v8323_v18 }
 0x24a   :  { %vm4779_vm12 = vcmp.lt.s32.totalorder %v8471_v43, %v4772_v8  ;;  %v4797_v51 = vrot.slane %v4768_v38, %v8325_v19  ;;  %v4805_v15 = vrot.slane %v4768_v38, %v8329_v22  ;;  %v4813_v63 = vrot.slane %v4768_v38, %v8333_v24 }
 0x24b   :  { %v4838_v62 = vrot.slane %v4769_v2, %v8325_v19  ;;  %v4846_v17 = vrot.slane %v4769_v2, %v8329_v22  ;;  %v4854_v61 = vrot.slane %v4769_v2, %v8333_v24  ;;  %v4867_v45 = vsel %vm4777_vm11, %v4801_v5, %v4842_v12 }
 0x24c   :  { %v4869_v32 = vsel %vm4779_vm12, %v4809_v29, %v4850_v31  ;;  %vm4776_vm13 = vcmp.lt.s32.totalorder %v8392_v59, %v4772_v8  ;;  %vm4778_vm14 = vcmp.lt.s32.totalorder %v8437_v33, %v4772_v8  ;;  %vm4780_vm15 = vcmp.lt.s32.totalorder %v8523_v44, %v4772_v8  ;;  %v4994_v29 = vld [vmem:[#allocation5 + $0x143] ss:$8 sm:$0xf] }
 0x24d   :  { %v4863_v6 = vsel %vm4773_vm8, %v4785_v54, %v4826_v9  ;;  %v4864_v0 = vsel %vm4774_vm9, %v4789_v27, %v4830_v13  ;;  %v4865_v16 = vsel %vm4775_vm10, %v4793_v42, %v4834_v1  ;;  %v4875_v35 = vadd.f32 %v4867_v45, %v4761_v53  ;;  %v7419_v27 = vld [vmem:[#allocation7 + $0x78] sm:$0xff] }
 0x24e   :  { %v4877_v7 = vadd.f32 %v4869_v32, %v4763_v49  ;;  %v4760_v30 = vadd.f32 %v4752_v60, %v4646_v47  ;;  %v4762_v4 = vadd.f32 %v4754_v40, %v4648_v3  ;;  %v4764_v41 = vadd.f32 %v4756_v50, %v4650_v26  ;;  %v7435_v47 = vld [vmem:[#allocation7 + $0xf8] sm:$0xff] }
 0x24f   :  { %v11266_v48 = vor.u32 %v4881_v36, %v4880_v58  ;;  %v4866_v56 = vsel %vm4776_vm13, %v4797_v51, %v4838_v62  ;;  %v4868_v25 = vsel %vm4778_vm14, %v4805_v15, %v4846_v17  ;;  %v4870_v46 = vsel %vm4780_vm15, %v4813_v63, %v4854_v61  ;;  %v7467_v49 = vld [vmem:[#allocation7 + $0x1f8] sm:$0xff]  ;;  %7838 = vmatprep.subr.mxu0 %v7435_v47  ;;  %v7434_v51 = vld [vmem:[#allocation7 + $0xf0] sm:$0xff]  ;;  %v7465_v47 = vld [vmem:[#allocation7 + $0x1e8] sm:$0xff] }
 0x250   :  { %v11268_v10 = vadd.f32 %v4863_v6, %v4757_v39  ;;  %v11270_v38 = vadd.f32 %v4864_v0, %v4758_v52  ;;  %v11272_v2 = vadd.f32 %v4865_v16, %v4759_v11  ;;  %vm4887_vm0 = vcmp.lt.s32.totalorder %v8317_v14, %v11264_v37  ;;  %7873 = vmatprep.subr.mxu1 %v7467_v49  ;;  %v7451_v9 = vld [vmem:[#allocation7 + $0x178] sm:$0xff]  ;;  %v7466_v15 = vld [vmem:[#allocation7 + $0x1f0] sm:$0xff] }
 0x251   :  { %v4883_v8 = vsub.f32 0.0, %v11266_v48  ;;  %v4915_v53 = vrot.slane %v11266_v48, %v8327_v20  ;;  %vm4888_vm1 = vcmp.lt.s32.totalorder %v8339_v28, %v11264_v37  ;;  %vm4889_vm2 = vcmp.lt.s32.totalorder %v8381_v55, %v11264_v37  ;;  %v4995_v1 = vld [vmem:[#allocation5 + $0x143] ss:$8 sm:$0xf0]  ;;  %7839 = vmatpush3.msra.mxu0 %v7419_v27  ;;  %7874 = vmatpush3.msra.mxu1 %v7451_v9 }
 0x252   :  { %vm4891_vm3 = vcmp.lt.s32.totalorder %v8426_v21, %v11264_v37  ;;  %v4899_v3 = vrot.slane %v11266_v48, %v13087_v57  ;;  %v4903_v26 = vrot.slane %v11266_v48, %v13090_v34  ;;  %v4923_v60 = vrot.slane %v11266_v48, %v8331_v23  ;;  %7840 = vmatprep.subr.mxu0 %v7434_v51  ;;  %v7418_v58 = vld [vmem:[#allocation7 + $0x70] sm:$0xff]  ;;  %v7448_v27 = vld [vmem:[#allocation7 + $0x160] sm:$0xff] }
 0x253   :  { %vm4893_vm4 = vcmp.lt.s32.totalorder %v8471_v43, %v11264_v37  ;;  %v4940_v40 = vrot.slane %v4883_v8, %v13087_v57  ;;  %v4944_v50 = vrot.slane %v4883_v8, %v13090_v34  ;;  %v4956_v39 = vrot.slane %v4883_v8, %v8327_v20  ;;  %v7450_v36 = vld [vmem:[#allocation7 + $0x170] sm:$0xff]  ;;  %7875 = vmatprep.subr.mxu1 %v7466_v15 }
 0x254   :  { %v4964_v52 = vrot.slane %v4883_v8, %v8331_v23  ;;  %v4907_v11 = vrot.slane %v11266_v48, %v8323_v18  ;;  %v4911_v54 = vrot.slane %v11266_v48, %v8325_v19  ;;  %v4948_v5 = vrot.slane %v4883_v8, %v8323_v18  ;;  %7841 = vmatpush3.msra.mxu0 %v7418_v58  ;;  %v7415_v58 = vld [vmem:[#allocation7 + $0x58] sm:$0xff] }
 0x255   :  { %vm4890_vm5 = vcmp.lt.s32.totalorder %v8392_v59, %v11264_v37  ;;  %v4919_v12 = vrot.slane %v11266_v48, %v8329_v22  ;;  %v4952_v31 = vrot.slane %v4883_v8, %v8325_v19  ;;  %v4960_v42 = vrot.slane %v4883_v8, %v8329_v22  ;;  %7876 = vmatpush3.msra.mxu1 %v7450_v36 }
 0x256   :  { %v4981_v13 = vsel %vm4891_vm3, %v4915_v53, %v4956_v39  ;;  %v4927_v63 = vrot.slane %v11266_v48, %v8333_v24  ;;  %v4968_v62 = vrot.slane %v4883_v8, %v8333_v24  ;;  %vm4892_vm6 = vcmp.lt.s32.totalorder %v8437_v33, %v11264_v37  ;;  %v11338_v8 = vpop.permute.xlu1 %4999  ;;  %v7433_v53 = vld [vmem:[#allocation7 + $0xe8] sm:$0xff]  ;;  %7877 = vmatprep.subr.mxu1 %v7465_v47  ;;  %v11435_v47 = vpop.permute.xlu0 %5113 }
 0x257   :  { %v4983_v17 = vsel %vm4893_vm4, %v4923_v60, %v4964_v52  ;;  %vm4894_vm7 = vcmp.lt.s32.totalorder %v8523_v44, %v11264_v37  ;;  %v4977_v61 = vsel %vm4887_vm0, %v4899_v3, %v4940_v40  ;;  %v4978_v45 = vsel %vm4888_vm1, %v4903_v26, %v4944_v50  ;;  %7842 = vmatprep.subr.mxu0 %v7433_v53  ;;  %v7432_v37 = vld [vmem:[#allocation7 + $0xe0] sm:$0xff] }
 0x258   :  { %v11327_v32 = vadd.f32 %v4981_v13, %v4875_v35  ;;  %v11329_v6 = vadd.f32 %v4866_v56, %v4760_v30  ;;  %v4979_v0 = vsel %vm4889_vm2, %v4907_v11, %v4948_v5  ;;  %v11334_v16 = vadd.f32 %v4983_v17, %v4877_v7  ;;  %v7417_v56 = vld [vmem:[#allocation7 + $0x68] sm:$0xff]  ;;  %v7464_v60 = vld [vmem:[#allocation7 + $0x1e0] sm:$0xff] }
 0x259   :  { %v11336_v48 = vor.u32 %v4995_v1, %v4994_v29  ;;  %v11340_v35 = vadd.f32 %v4868_v25, %v4762_v4  ;;  %v11342_v49 = vadd.f32 %v4870_v46, %v4764_v41  ;;  %v11347_v30 = vsel %vm4890_vm5, %v4911_v54, %v4952_v31  ;;  %v7449_v46 = vld [vmem:[#allocation7 + $0x168] sm:$0xff]  ;;  %7843 = vmatpush3.msra.mxu0 %v7417_v56  ;;  %v7416_v11 = vld [vmem:[#allocation7 + $0x60] sm:$0xff]  ;;  %v7431_v1 = vld [vmem:[#allocation7 + $0xd8] sm:$0xff] }
 0x25a   :  { %v11352_v7 = vsel %vm4892_vm6, %v4919_v12, %v4960_v42  ;;  %v4984_v3 = vsel %vm4894_vm7, %v4927_v63, %v4968_v62  ;;  %v11358_v4 = vadd.f32 %v4977_v61, %v11268_v10  ;;  %v11361_v41 = vadd.f32 %v4978_v45, %v11270_v38  ;;  %7878 = vmatpush3.msra.mxu1 %v7449_v46  ;;  %v5108_v13 = vld [vmem:[#allocation5 + $0x144] ss:$8 sm:$0xf] }
 0x25b   :  { %v11364_v25 = vsub.f32 0.0, %v11336_v48  ;;  %v11367_v26 = vadd.f32 %v4979_v0, %v11272_v2  ;;  %vm5001_vm8 = vcmp.lt.s32.totalorder %v8317_v14, %v11338_v8  ;;  %vm5002_vm9 = vcmp.lt.s32.totalorder %v8339_v28, %v11338_v8  ;;  %7844 = vmatprep.subr.mxu0 %v7432_v37  ;;  %7879 = vmatprep.subr.mxu1 %v7464_v60  ;;  %v5109_v17 = vld [vmem:[#allocation5 + $0x144] ss:$8 sm:$0xf0] }
 0x25c   :  { %vm5003_vm10 = vcmp.lt.s32.totalorder %v8381_v55, %v11338_v8  ;;  %v5013_v10 = vrot.slane %v11336_v48, %v13087_v57  ;;  %v5029_v38 = vrot.slane %v11336_v48, %v8327_v20  ;;  %v5037_v2 = vrot.slane %v11336_v48, %v8331_v23  ;;  %7845 = vmatpush3.msra.mxu0 %v7416_v11  ;;  %v7463_v61 = vld [vmem:[#allocation7 + $0x1d8] sm:$0xff] }
 0x25d   :  { %vm5005_vm11 = vcmp.lt.s32.totalorder %v8426_v21, %v11338_v8  ;;  %v5017_v40 = vrot.slane %v11336_v48, %v13090_v34  ;;  %v5054_v50 = vrot.slane %v11364_v25, %v13087_v57  ;;  %v5070_v39 = vrot.slane %v11364_v25, %v8327_v20  ;;  %7880 = vmatpush3.msra.mxu1 %v7448_v27  ;;  %v7447_v56 = vld [vmem:[#allocation7 + $0x158] sm:$0xff] }
 0x25e   :  { %v5078_v52 = vrot.slane %v11364_v25, %v8331_v23  ;;  %v5021_v54 = vrot.slane %v11336_v48, %v8323_v18  ;;  %v5058_v5 = vrot.slane %v11364_v25, %v13090_v34  ;;  %v5062_v29 = vrot.slane %v11364_v25, %v8323_v18  ;;  %7846 = vmatprep.subr.mxu0 %v7431_v1 }
 0x25f   :  { %vm5007_vm12 = vcmp.lt.s32.totalorder %v8471_v43, %v11338_v8  ;;  %v5025_v9 = vrot.slane %v11336_v48, %v8325_v19  ;;  %v5033_v12 = vrot.slane %v11336_v48, %v8329_v22  ;;  %v5041_v31 = vrot.slane %v11336_v48, %v8333_v24  ;;  %7881 = vmatprep.subr.mxu1 %v7463_v61 }
 0x260   :  { %v5066_v42 = vrot.slane %v11364_v25, %v8325_v19  ;;  %v5074_v51 = vrot.slane %v11364_v25, %v8329_v22  ;;  %v5082_v15 = vrot.slane %v11364_v25, %v8333_v24  ;;  %v5095_v63 = vsel %vm5005_vm11, %v5029_v38, %v5070_v39  ;;  %v7430_v25 = vld [vmem:[#allocation7 + $0xd0] sm:$0xff]  ;;  %7847 = vmatpush3.msra.mxu0 %v7415_v58 }
 0x261   :  { %v5097_v62 = vsel %vm5007_vm12, %v5037_v2, %v5078_v52  ;;  %vm5004_vm13 = vcmp.lt.s32.totalorder %v8392_v59, %v11338_v8  ;;  %vm5006_vm14 = vcmp.lt.s32.totalorder %v8437_v33, %v11338_v8  ;;  %vm5008_vm15 = vcmp.lt.s32.totalorder %v8523_v44, %v11338_v8  ;;  %7882 = vmatpush3.msra.mxu1 %v7447_v56  ;;  %v7446_v8 = vld [vmem:[#allocation7 + $0x150] sm:$0xff]  ;;  %v7412_v56 = vld [vmem:[#allocation7 + $0x40] sm:$0xff] }
 0x262   :  { %v5091_v45 = vsel %vm5001_vm8, %v5013_v10, %v5054_v50  ;;  %v5092_v36 = vsel %vm5002_vm9, %v5017_v40, %v5058_v5  ;;  %v5093_v0 = vsel %vm5003_vm10, %v5021_v54, %v5062_v29  ;;  %v11430_v48 = vadd.f32 %v5095_v63, %v11327_v32  ;;  %7848 = vmatprep.subr.mxu0 %v7430_v25  ;;  %v7461_v50 = vld [vmem:[#allocation7 + $0x1c8] sm:$0xff]  ;;  %v7428_v63 = vld [vmem:[#allocation7 + $0xc0] sm:$0xff] }
 0x263   :  { %v11433_v53 = vadd.f32 %v5097_v62, %v11334_v16  ;;  %v11439_v46 = vadd.f32 %v11347_v30, %v11329_v6  ;;  %v11443_v37 = vadd.f32 %v11352_v7, %v11340_v35  ;;  %v11446_v10 = vadd.f32 %v4984_v3, %v11342_v49  ;;  %v7462_v16 = vld [vmem:[#allocation7 + $0x1d0] sm:$0xff]  ;;  %v7413_v5 = vld [vmem:[#allocation7 + $0x48] sm:$0xff]  ;;  %v7444_v25 = vld [vmem:[#allocation7 + $0x140] sm:$0xff] }
 0x264   :  { %v11448_v32 = vor.u32 %v5109_v17, %v5108_v13  ;;  %v5094_v38 = vsel %vm5004_vm13, %v5025_v9, %v5066_v42  ;;  %v11456_v6 = vsel %vm5006_vm14, %v5033_v12, %v5074_v51  ;;  %v11461_v35 = vsel %vm5008_vm15, %v5041_v31, %v5082_v15  ;;  %v7414_v30 = vld [vmem:[#allocation7 + $0x50] sm:$0xff]  ;;  %7883 = vmatprep.subr.mxu1 %v7462_v16  ;;  %v7445_v31 = vld [vmem:[#allocation7 + $0x148] sm:$0xff] }
 0x265   :  { %v11464_v49 = vadd.f32 %v5091_v45, %v11358_v4  ;;  %v11467_v7 = vadd.f32 %v5092_v36, %v11361_v41  ;;  %v11470_v3 = vadd.f32 %v5093_v0, %v11367_v26  ;;  %vm5115_vm0 = vcmp.lt.s32.totalorder %v8317_v14, %v11435_v47  ;;  %v7429_v41 = vld [vmem:[#allocation7 + $0xc8] sm:$0xff]  ;;  %7849 = vmatpush3.msra.mxu0 %v7414_v30  ;;  %v7460_v45 = vld [vmem:[#allocation7 + $0x1c0] sm:$0xff] }
 0x266   :  { %v11473_v2 = vsub.f32 0.0, %v11448_v32  ;;  %v5143_v4 = vrot.slane %v11448_v32, %v8327_v20  ;;  %vm5116_vm1 = vcmp.lt.s32.totalorder %v8339_v28, %v11435_v47  ;;  %vm5117_vm2 = vcmp.lt.s32.totalorder %v8381_v55, %v11435_v47  ;;  %7884 = vmatpush3.msra.mxu1 %v7446_v8  ;;  %v5222_v12 = vld [vmem:[#allocation5 + $0x145] ss:$8 sm:$0xf]  ;;  %7850 = vmatprep.subr.mxu0 %v7429_v41  ;;  %v11549_v8 = vpop.permute.xlu1 %5227 }
 0x267   :  { %vm5119_vm3 = vcmp.lt.s32.totalorder %v8426_v21, %v11435_v47  ;;  %v5127_v26 = vrot.slane %v11448_v32, %v13087_v57  ;;  %v5131_v60 = vrot.slane %v11448_v32, %v13090_v34  ;;  %v5151_v40 = vrot.slane %v11448_v32, %v8331_v23  ;;  %v5223_v15 = vld [vmem:[#allocation5 + $0x145] ss:$8 sm:$0xf0]  ;;  %7885 = vmatprep.subr.mxu1 %v7461_v50 }
 0x268   :  { %vm5121_vm4 = vcmp.lt.s32.totalorder %v8471_v43, %v11435_v47  ;;  %v5168_v39 = vrot.slane %v11473_v2, %v13087_v57  ;;  %v5172_v52 = vrot.slane %v11473_v2, %v13090_v34  ;;  %v5184_v11 = vrot.slane %v11473_v2, %v8327_v20  ;;  %7851 = vmatpush3.msra.mxu0 %v7413_v5  ;;  %v7459_v41 = vld [vmem:[#allocation7 + $0x1b8] sm:$0xff] }
 0x269   :  { %v5192_v54 = vrot.slane %v11473_v2, %v8331_v23  ;;  %v5135_v29 = vrot.slane %v11448_v32, %v8323_v18  ;;  %v5139_v27 = vrot.slane %v11448_v32, %v8325_v19  ;;  %v5176_v9 = vrot.slane %v11473_v2, %v8323_v18  ;;  %7886 = vmatpush3.msra.mxu1 %v7445_v31 }
 0x26a   :  { %vm5118_vm5 = vcmp.lt.s32.totalorder %v8392_v59, %v11435_v47  ;;  %v5147_v42 = vrot.slane %v11448_v32, %v8329_v22  ;;  %v5180_v13 = vrot.slane %v11473_v2, %v8325_v19  ;;  %v5188_v1 = vrot.slane %v11473_v2, %v8329_v22  ;;  %7852 = vmatprep.subr.mxu0 %v7428_v63 }
 0x26b   :  { %v5209_v51 = vsel %vm5119_vm3, %v5143_v4, %v5184_v11  ;;  %v5155_v62 = vrot.slane %v11448_v32, %v8333_v24  ;;  %v5196_v17 = vrot.slane %v11473_v2, %v8333_v24  ;;  %vm5120_vm6 = vcmp.lt.s32.totalorder %v8437_v33, %v11435_v47  ;;  %7887 = vmatprep.subr.mxu1 %v7460_v45  ;;  %v7425_v45 = vld [vmem:[#allocation7 + $0xa8] sm:$0xff] }
 0x26c   :  { %v5211_v61 = vsel %vm5121_vm4, %v5151_v40, %v5192_v54  ;;  %vm5122_vm7 = vcmp.lt.s32.totalorder %v8523_v44, %v11435_v47  ;;  %v5205_v58 = vsel %vm5115_vm0, %v5127_v26, %v5168_v39  ;;  %v5206_v36 = vsel %vm5116_vm1, %v5131_v60, %v5172_v52  ;;  %7853 = vmatpush3.msra.mxu0 %v7412_v56  ;;  %v7411_v26 = vld [vmem:[#allocation7 + $0x38] sm:$0xff]  ;;  %v7426_v40 = vld [vmem:[#allocation7 + $0xb0] sm:$0xff] }
 0x26d   :  { %v11536_v0 = vadd.f32 %v5209_v51, %v11430_v48  ;;  %v11539_v32 = vadd.f32 %v5094_v38, %v11439_v46  ;;  %v5207_v16 = vsel %vm5117_vm2, %v5135_v29, %v5176_v9  ;;  %v11545_v30 = vadd.f32 %v5211_v61, %v11433_v53  ;;  %v7427_v48 = vld [vmem:[#allocation7 + $0xb8] sm:$0xff]  ;;  %7888 = vmatpush3.msra.mxu1 %v7444_v25  ;;  %v7458_v54 = vld [vmem:[#allocation7 + $0x1b0] sm:$0xff] }
 0x26e   :  { %v11547_v2 = vor.u32 %v5223_v15, %v5222_v12  ;;  %v11553_v4 = vadd.f32 %v11456_v6, %v11443_v37  ;;  %v11557_v46 = vadd.f32 %v11461_v35, %v11446_v10  ;;  %v11562_v38 = vsel %vm5118_vm5, %v5139_v27, %v5180_v13  ;;  %7854 = vmatprep.subr.mxu0 %v7427_v48  ;;  %v7443_v47 = vld [vmem:[#allocation7 + $0x138] sm:$0xff]  ;;  %v7410_v9 = vld [vmem:[#allocation7 + $0x30] sm:$0xff]  ;;  %v11650_v48 = vpop.permute.xlu1 %5341 }
 0x26f   :  { %v11567_v53 = vsel %vm5120_vm6, %v5147_v42, %v5188_v1  ;;  %v5212_v37 = vsel %vm5122_vm7, %v5155_v62, %v5196_v17  ;;  %v11573_v6 = vadd.f32 %v5205_v58, %v11464_v49  ;;  %v11576_v10 = vadd.f32 %v5206_v36, %v11467_v7  ;;  %7889 = vmatprep.subr.mxu1 %v7459_v41  ;;  %v5336_v1 = vld [vmem:[#allocation5 + $0x146] ss:$8 sm:$0xf] }
 0x270   :  { %v11579_v35 = vsub.f32 0.0, %v11547_v2  ;;  %v11582_v60 = vadd.f32 %v5207_v16, %v11470_v3  ;;  %vm5229_vm8 = vcmp.lt.s32.totalorder %v8317_v14, %v11549_v8  ;;  %vm5230_vm9 = vcmp.lt.s32.totalorder %v8339_v28, %v11549_v8  ;;  %7855 = vmatpush3.msra.mxu0 %v7411_v26  ;;  %7890 = vmatpush3.msra.mxu1 %v7443_v47  ;;  %v7442_v51 = vld [vmem:[#allocation7 + $0x130] sm:$0xff]  ;;  %v7457_v36 = vld [vmem:[#allocation7 + $0x1a8] sm:$0xff] }
 0x271   :  { %vm5231_vm10 = vcmp.lt.s32.totalorder %v8381_v55, %v11549_v8  ;;  %v5241_v49 = vrot.slane %v11547_v2, %v13087_v57  ;;  %v5257_v7 = vrot.slane %v11547_v2, %v8327_v20  ;;  %v5265_v3 = vrot.slane %v11547_v2, %v8331_v23  ;;  %7856 = vmatprep.subr.mxu0 %v7426_v40  ;;  %v5337_v61 = vld [vmem:[#allocation5 + $0x146] ss:$8 sm:$0xf0] }
 0x272   :  { %vm5233_vm11 = vcmp.lt.s32.totalorder %v8426_v21, %v11549_v8  ;;  %v5245_v50 = vrot.slane %v11547_v2, %v13090_v34  ;;  %v5282_v39 = vrot.slane %v11579_v35, %v13087_v57  ;;  %v5298_v52 = vrot.slane %v11579_v35, %v8327_v20  ;;  %7891 = vmatprep.subr.mxu1 %v7458_v54  ;;  %v7409_v41 = vld [vmem:[#allocation7 + $0x28] sm:$0xff] }
 0x273   :  { %v5306_v11 = vrot.slane %v11579_v35, %v8331_v23  ;;  %v5249_v5 = vrot.slane %v11547_v2, %v8323_v18  ;;  %v5286_v29 = vrot.slane %v11579_v35, %v13090_v34  ;;  %v5290_v27 = vrot.slane %v11579_v35, %v8323_v18  ;;  %7857 = vmatpush3.msra.mxu0 %v7410_v9 }
 0x274   :  { %vm5235_vm12 = vcmp.lt.s32.totalorder %v8471_v43, %v11549_v8  ;;  %v5253_v12 = vrot.slane %v11547_v2, %v8325_v19  ;;  %v5261_v31 = vrot.slane %v11547_v2, %v8329_v22  ;;  %v5269_v42 = vrot.slane %v11547_v2, %v8333_v24  ;;  %7892 = vmatpush3.msra.mxu1 %v7442_v51 }
 0x275   :  { %v5294_v13 = vrot.slane %v11579_v35, %v8325_v19  ;;  %v5302_v15 = vrot.slane %v11579_v35, %v8329_v22  ;;  %v5310_v63 = vrot.slane %v11579_v35, %v8333_v24  ;;  %v5323_v62 = vsel %vm5233_vm11, %v5257_v7, %v5298_v52  ;;  %v7441_v35 = vld [vmem:[#allocation7 + $0x128] sm:$0xff]  ;;  %7858 = vmatprep.subr.mxu0 %v7425_v45 }
 0x276   :  { %v5325_v17 = vsel %vm5235_vm12, %v5265_v3, %v5306_v11  ;;  %vm5232_vm13 = vcmp.lt.s32.totalorder %v8392_v59, %v11549_v8  ;;  %vm5234_vm14 = vcmp.lt.s32.totalorder %v8437_v33, %v11549_v8  ;;  %vm5236_vm15 = vcmp.lt.s32.totalorder %v8523_v44, %v11549_v8  ;;  %7893 = vmatprep.subr.mxu1 %v7457_v36  ;;  %v7408_v8 = vld [vmem:[#allocation7 + $0x20] sm:$0xff] }
 0x277   :  { %v5319_v58 = vsel %vm5229_vm8, %v5241_v49, %v5282_v39  ;;  %v5320_v56 = vsel %vm5230_vm9, %v5245_v50, %v5286_v29  ;;  %v5321_v25 = vsel %vm5231_vm10, %v5249_v5, %v5290_v27  ;;  %v11645_v16 = vadd.f32 %v5323_v62, %v11536_v0  ;;  %7859 = vmatpush3.msra.mxu0 %v7409_v41  ;;  %v7423_v39 = vld [vmem:[#allocation7 + $0x98] sm:$0xff]  ;;  %v7454_v41 = vld [vmem:[#allocation7 + $0x190] sm:$0xff] }
 0x278   :  { %v11648_v2 = vadd.f32 %v5325_v17, %v11545_v30  ;;  %v11654_v26 = vadd.f32 %v11562_v38, %v11539_v32  ;;  %v11658_v47 = vadd.f32 %v11567_v53, %v11553_v4  ;;  %v11661_v49 = vadd.f32 %v5212_v37, %v11557_v46  ;;  %v7424_v30 = vld [vmem:[#allocation7 + $0xa0] sm:$0xff]  ;;  %7894 = vmatpush3.msra.mxu1 %v7441_v35  ;;  %v7455_v29 = vld [vmem:[#allocation7 + $0x198] sm:$0xff]  ;;  %v7406_v35 = vld [vmem:[#allocation7 + $0x10] sm:$0xff] }
 0x279   :  { %v11663_v0 = vor.u32 %v5337_v61, %v5336_v1  ;;  %v5322_v7 = vsel %vm5232_vm13, %v5253_v12, %v5294_v13  ;;  %v11671_v32 = vsel %vm5234_vm14, %v5261_v31, %v5302_v15  ;;  %v11676_v4 = vsel %vm5236_vm15, %v5269_v42, %v5310_v63  ;;  %v7456_v38 = vld [vmem:[#allocation7 + $0x1a0] sm:$0xff]  ;;  %7860 = vmatprep.subr.mxu0 %v7424_v30  ;;  %v7407_v42 = vld [vmem:[#allocation7 + $0x18] sm:$0xff] }
 0x27a   :  { %v11679_v46 = vadd.f32 %v5319_v58, %v11573_v6  ;;  %v11682_v53 = vadd.f32 %v5320_v56, %v11576_v10  ;;  %v11685_v37 = vadd.f32 %v5321_v25, %v11582_v60  ;;  %vm5343_vm0 = vcmp.lt.s32.totalorder %v8317_v14, %v11650_v48  ;;  %v7440_v10 = vld [vmem:[#allocation7 + $0x120] sm:$0xff]  ;;  %7895 = vmatprep.subr.mxu1 %v7456_v38  ;;  %v7439_v62 = vld [vmem:[#allocation7 + $0x118] sm:$0xff]  ;;  %v7422_v58 = vld [vmem:[#allocation7 + $0x90] sm:$0xff] }
 0x27b   :  { %v11688_v3 = vsub.f32 0.0, %v11663_v0  ;;  %v5371_v6 = vrot.slane %v11663_v0, %v8327_v20  ;;  %vm5344_vm1 = vcmp.lt.s32.totalorder %v8339_v28, %v11650_v48  ;;  %vm5345_vm2 = vcmp.lt.s32.totalorder %v8381_v55, %v11650_v48  ;;  %7861 = vmatpush3.msra.mxu0 %v7408_v8  ;;  %v5450_v31 = vld [vmem:[#allocation5 + $0x147] ss:$8 sm:$0xf]  ;;  %7896 = vmatpush3.msra.mxu1 %v7440_v10  ;;  %v11764_v8 = vpop.permute.xlu0 %5455 }
 0x27c   :  { %vm5347_vm3 = vcmp.lt.s32.totalorder %v8426_v21, %v11650_v48  ;;  %v5355_v60 = vrot.slane %v11663_v0, %v13087_v57  ;;  %v5359_v40 = vrot.slane %v11663_v0, %v13090_v34  ;;  %v5379_v50 = vrot.slane %v11663_v0, %v8331_v23  ;;  %v5451_v63 = vld [vmem:[#allocation5 + $0x147] ss:$8 sm:$0xf0]  ;;  %7862 = vmatprep.subr.mxu0 %v7423_v39 }
 0x27d   :  { %vm5349_vm4 = vcmp.lt.s32.totalorder %v8471_v43, %v11650_v48  ;;  %v5396_v52 = vrot.slane %v11688_v3, %v13087_v57  ;;  %v5400_v11 = vrot.slane %v11688_v3, %v13090_v34  ;;  %v5412_v54 = vrot.slane %v11688_v3, %v8327_v20  ;;  %7897 = vmatprep.subr.mxu1 %v7455_v29  ;;  %v7421_v10 = vld [vmem:[#allocation7 + $0x88] sm:$0xff] }
 0x27e   :  { %v5420_v5 = vrot.slane %v11688_v3, %v8331_v23  ;;  %v5363_v27 = vrot.slane %v11663_v0, %v8323_v18  ;;  %v5367_v9 = vrot.slane %v11663_v0, %v8325_v19  ;;  %v5404_v12 = vrot.slane %v11688_v3, %v8323_v18  ;;  %7863 = vmatpush3.msra.mxu0 %v7407_v42 }
 0x27f   :  { %vm5346_vm5 = vcmp.lt.s32.totalorder %v8392_v59, %v11650_v48  ;;  %v5375_v13 = vrot.slane %v11663_v0, %v8329_v22  ;;  %v5408_v1 = vrot.slane %v11688_v3, %v8325_v19  ;;  %v5416_v51 = vrot.slane %v11688_v3, %v8329_v22  ;;  %7898 = vmatpush3.msra.mxu1 %v7439_v62 }
 0x280   :  { %v5437_v15 = vsel %vm5347_vm3, %v5371_v6, %v5412_v54  ;;  %v5383_v17 = vrot.slane %v11663_v0, %v8333_v24  ;;  %v5424_v61 = vrot.slane %v11688_v3, %v8333_v24  ;;  %vm5348_vm6 = vcmp.lt.s32.totalorder %v8437_v33, %v11650_v48  ;;  %7864 = vmatprep.subr.mxu0 %v7422_v58  ;;  %v7436_v58 = vld [vmem:[#allocation7 + $0x100] sm:$0xff] }
 0x281   :  { %v5439_v45 = vsel %vm5349_vm4, %v5379_v50, %v5420_v5  ;;  %vm5350_vm7 = vcmp.lt.s32.totalorder %v8523_v44, %v11650_v48  ;;  %v5433_v36 = vsel %vm5343_vm0, %v5355_v60, %v5396_v52  ;;  %v5434_v56 = vsel %vm5344_vm1, %v5359_v40, %v5400_v11  ;;  %7899 = vmatprep.subr.mxu1 %v7454_v41  ;;  %v7405_v48 = vld [vmem:[#allocation7 + $0x8] sm:$0xff]  ;;  %v7420_v5 = vld [vmem:[#allocation7 + $0x80] sm:$0xff] }
 0x282   :  { %v11751_v25 = vadd.f32 %v5437_v15, %v11645_v16  ;;  %v11754_v0 = vadd.f32 %v5322_v7, %v11654_v26  ;;  %v5435_v30 = vsel %vm5345_vm2, %v5363_v27, %v5404_v12  ;;  %v11760_v38 = vadd.f32 %v5439_v45, %v11648_v2  ;;  %v7438_v16 = vld [vmem:[#allocation7 + $0x110] sm:$0xff]  ;;  %7865 = vmatpush3.msra.mxu0 %v7406_v35  ;;  %v7437_v50 = vld [vmem:[#allocation7 + $0x108] sm:$0xff]  ;;  %v7452_v12 = vld [vmem:[#allocation7 + $0x180] sm:$0xff] }
 0x283   :  { %v11762_v3 = vor.u32 %v5451_v63, %v5450_v31  ;;  %v11768_v6 = vadd.f32 %v11671_v32, %v11658_v47  ;;  %v11772_v26 = vadd.f32 %v11676_v4, %v11661_v49  ;;  %v5436_v7 = vsel %vm5346_vm5, %v5367_v9, %v5408_v1  ;;  %v7453_v4 = vld [vmem:[#allocation7 + $0x188] sm:$0xff]  ;;  %7900 = vmatpush3.msra.mxu1 %v7438_v16  ;;  %v7404_v15 = vld [vmem:[#allocation7] sm:$0xff]  ;;  %v5570_v16 = vpop.permute.xlu1 %5569 }
 0x284   :  { %v5438_v2 = vsel %vm5348_vm6, %v5375_v13, %v5416_v51  ;;  %v5440_v60 = vsel %vm5350_vm7, %v5383_v17, %v5424_v61  ;;  %v11784_v47 = vadd.f32 %v5433_v36, %v11679_v46  ;;  %v11787_v49 = vadd.f32 %v5434_v56, %v11682_v53  ;;  %7866 = vmatprep.subr.mxu0 %v7421_v10  ;;  %v5564_v51 = vld [vmem:[#allocation5 + $0x180] ss:$8 sm:$0xf] }
 0x285   :  { %v11790_v32 = vsub.f32 0.0, %v11762_v3  ;;  %v5443_v40 = vadd.f32 %v5435_v30, %v11685_v37  ;;  %vm5457_vm8 = vcmp.lt.s32.totalorder %v8317_v14, %v11764_v8  ;;  %vm5458_vm9 = vcmp.lt.s32.totalorder %v8339_v28, %v11764_v8  ;;  %7901 = vmatprep.subr.mxu1 %v7453_v4  ;;  %7867 = vmatpush3.msra.mxu0 %v7405_v48  ;;  %v5565_v45 = vld [vmem:[#allocation5 + $0x180] ss:$8 sm:$0xf0] }
 0x286   :  { %vm5459_vm10 = vcmp.lt.s32.totalorder %v8381_v55, %v11764_v8  ;;  %v5469_v46 = vrot.slane %v11762_v3, %v13087_v57  ;;  %v5485_v53 = vrot.slane %v11762_v3, %v8327_v20  ;;  %v5493_v37 = vrot.slane %v11762_v3, %v8331_v23  ;;  %7902 = vmatpush3.msra.mxu1 %v7437_v50  ;;  %v7499_v56 = vld [vmem:[#allocation7 + $0x2f8] sm:$0xff] }
 0x287   :  { %vm5461_vm11 = vcmp.lt.s32.totalorder %v8426_v21, %v11764_v8  ;;  %v5473_v39 = vrot.slane %v11762_v3, %v13090_v34  ;;  %v5510_v52 = vrot.slane %v11790_v32, %v13087_v57  ;;  %v5526_v11 = vrot.slane %v11790_v32, %v8327_v20  ;;  %7868 = vmatprep.subr.mxu0 %v7420_v5  ;;  %v7531_v10 = vld [vmem:[#allocation7 + $0x3f8] sm:$0xff] }
 0x288   :  { %v5534_v54 = vrot.slane %v11790_v32, %v8331_v23  ;;  %v5477_v29 = vrot.slane %v11762_v3, %v8323_v18  ;;  %v5514_v27 = vrot.slane %v11790_v32, %v13090_v34  ;;  %v5518_v9 = vrot.slane %v11790_v32, %v8323_v18  ;;  %7903 = vmatprep.subr.mxu1 %v7452_v12  ;;  %v5679_v12 = vld [vmem:[#allocation5 + $0x181] ss:$8 sm:$0xf0] }
 0x289   :  { %vm5463_vm12 = vcmp.lt.s32.totalorder %v8471_v43, %v11764_v8  ;;  %v5481_v31 = vrot.slane %v11762_v3, %v8325_v19  ;;  %v5489_v42 = vrot.slane %v11762_v3, %v8329_v22  ;;  %v5497_v13 = vrot.slane %v11762_v3, %v8333_v24  ;;  %7869 = vmatpush3.msra.mxu0 %v7404_v15 }
 0x28a   :  { %v5522_v1 = vrot.slane %v11790_v32, %v8325_v19  ;;  %v5530_v63 = vrot.slane %v11790_v32, %v8329_v22  ;;  %v5538_v62 = vrot.slane %v11790_v32, %v8333_v24  ;;  %v5551_v17 = vsel %vm5461_vm11, %v5485_v53, %v5526_v11  ;;  %7904 = vmatpush3.msra.mxu1 %v7436_v58 }
 0x28b   :  { %v5553_v61 = vsel %vm5463_vm12, %v5493_v37, %v5534_v54  ;;  %vm5460_vm13 = vcmp.lt.s32.totalorder %v8392_v59, %v11764_v8  ;;  %vm5462_vm14 = vcmp.lt.s32.totalorder %v8437_v33, %v11764_v8  ;;  %vm5464_vm15 = vcmp.lt.s32.totalorder %v8523_v44, %v11764_v8  ;;  %7908 = vmatprep.subr.mxu0 %v7499_v56 }
 0x28c   :  { %v5547_v36 = vsel %vm5457_vm8, %v5469_v46, %v5510_v52  ;;  %v5548_v41 = vsel %vm5458_vm9, %v5473_v39, %v5514_v27  ;;  %v5549_v35 = vsel %vm5459_vm10, %v5477_v29, %v5518_v9  ;;  %v5559_v30 = vadd.f32 %v5551_v17, %v11751_v25  ;;  %7943 = vmatprep.subr.mxu1 %v7531_v10  ;;  %v5678_v9 = vld [vmem:[#allocation5 + $0x181] ss:$8 sm:$0xf] }
 0x28d   :  { %v5561_v3 = vadd.f32 %v5553_v61, %v11760_v38  ;;  %v5444_v32 = vadd.f32 %v5436_v7, %v11754_v0  ;;  %v5446_v4 = vadd.f32 %v5438_v2, %v11768_v6  ;;  %v5448_v48 = vadd.f32 %v5440_v60, %v11772_v26 }
 0x28e   :  { %v5566_v46 = vor.u32 %v5565_v45, %v5564_v51  ;;  %v5550_v53 = vsel %vm5460_vm13, %v5481_v31, %v5522_v1  ;;  %v5552_v25 = vsel %vm5462_vm14, %v5489_v42, %v5530_v63  ;;  %v5554_v38 = vsel %vm5464_vm15, %v5497_v13, %v5538_v62  ;;  %v5684_v45 = vpop.permute.xlu1 %5683 }
 0x28f   :  { %v5555_v0 = vadd.f32 %v5547_v36, %v11784_v47  ;;  %v5556_v6 = vadd.f32 %v5548_v41, %v11787_v49  ;;  %v11869_v26 = vadd.f32 %v5549_v35, %v5443_v40  ;;  %vm5571_vm0 = vcmp.lt.s32.totalorder %v8317_v14, %v5570_v16 }
 0x290   :  { %v5567_v7 = vsub.f32 0.0, %v5566_v46  ;;  %v5599_v2 = vrot.slane %v5566_v46, %v8327_v20  ;;  %vm5572_vm1 = vcmp.lt.s32.totalorder %v8339_v28, %v5570_v16  ;;  %vm5573_vm2 = vcmp.lt.s32.totalorder %v8381_v55, %v5570_v16 }
 0x291   :  { %vm5575_vm3 = vcmp.lt.s32.totalorder %v8426_v21, %v5570_v16  ;;  %v5583_v8 = vrot.slane %v5566_v46, %v13087_v57  ;;  %v5587_v60 = vrot.slane %v5566_v46, %v13090_v34  ;;  %v5607_v47 = vrot.slane %v5566_v46, %v8331_v23 }
 0x292   :  { %vm5577_vm4 = vcmp.lt.s32.totalorder %v8471_v43, %v5570_v16  ;;  %v5624_v49 = vrot.slane %v5567_v7, %v13087_v57  ;;  %v5628_v40 = vrot.slane %v5567_v7, %v13090_v34  ;;  %v5640_v37 = vrot.slane %v5567_v7, %v8327_v20 }
 0x293   :  { %v5648_v50 = vrot.slane %v5567_v7, %v8331_v23  ;;  %v5591_v39 = vrot.slane %v5566_v46, %v8323_v18  ;;  %v5595_v52 = vrot.slane %v5566_v46, %v8325_v19  ;;  %v5603_v11 = vrot.slane %v5566_v46, %v8329_v22 }
 0x294   :  { %vm5574_vm5 = vcmp.lt.s32.totalorder %v8392_v59, %v5570_v16  ;;  %v5632_v54 = vrot.slane %v5567_v7, %v8323_v18  ;;  %v5636_v5 = vrot.slane %v5567_v7, %v8325_v19  ;;  %v5644_v29 = vrot.slane %v5567_v7, %v8329_v22 }
 0x295   :  { %v5665_v27 = vsel %vm5575_vm3, %v5599_v2, %v5640_v37  ;;  %v5611_v31 = vrot.slane %v5566_v46, %v8333_v24  ;;  %v5652_v42 = vrot.slane %v5567_v7, %v8333_v24  ;;  %vm5576_vm6 = vcmp.lt.s32.totalorder %v8437_v33, %v5570_v16 }
 0x296   :  { %v5667_v13 = vsel %vm5577_vm4, %v5607_v47, %v5648_v50  ;;  %vm5578_vm7 = vcmp.lt.s32.totalorder %v8523_v44, %v5570_v16  ;;  %v5661_v1 = vsel %vm5571_vm0, %v5583_v8, %v5624_v49  ;;  %v5662_v51 = vsel %vm5572_vm1, %v5587_v60, %v5628_v40  ;;  %v5792_v50 = vld [vmem:[#allocation5 + $0x182] ss:$8 sm:$0xf] }
 0x297   :  { %v5673_v15 = vadd.f32 %v5665_v27, %v5559_v30  ;;  %v5558_v63 = vadd.f32 %v5550_v53, %v5444_v32  ;;  %v5560_v62 = vadd.f32 %v5552_v25, %v5446_v4  ;;  %v5675_v17 = vadd.f32 %v5667_v13, %v5561_v3  ;;  %v5798_v13 = vpop.permute.xlu0 %5797 }
 0x298   :  { %v5680_v61 = vor.u32 %v5679_v12, %v5678_v9  ;;  %v5562_v58 = vadd.f32 %v5554_v38, %v5448_v48  ;;  %v5663_v36 = vsel %vm5573_vm2, %v5591_v39, %v5632_v54  ;;  %v5664_v56 = vsel %vm5574_vm5, %v5595_v52, %v5636_v5  ;;  %v5793_v39 = vld [vmem:[#allocation5 + $0x182] ss:$8 sm:$0xf0] }
 0x299   :  { %v5666_v41 = vsel %vm5576_vm6, %v5603_v11, %v5644_v29  ;;  %v5668_v35 = vsel %vm5578_vm7, %v5611_v31, %v5652_v42  ;;  %v5669_v10 = vadd.f32 %v5661_v1, %v5555_v0  ;;  %v5670_v46 = vadd.f32 %v5662_v51, %v5556_v6 }
 0x29a   :  { %v5681_v7 = vsub.f32 0.0, %v5680_v61  ;;  %v5697_v2 = vrot.slane %v5680_v61, %v13087_v57  ;;  %vm5685_vm8 = vcmp.lt.s32.totalorder %v8317_v14, %v5684_v45  ;;  %vm5686_vm9 = vcmp.lt.s32.totalorder %v8339_v28, %v5684_v45 }
 0x29b   :  { %vm5689_vm10 = vcmp.lt.s32.totalorder %v8426_v21, %v5684_v45  ;;  %v5701_v30 = vrot.slane %v5680_v61, %v13090_v34  ;;  %v5705_v3 = vrot.slane %v5680_v61, %v8323_v18  ;;  %v5713_v16 = vrot.slane %v5680_v61, %v8327_v20 }
 0x29c   :  { %v5721_v32 = vrot.slane %v5680_v61, %v8331_v23  ;;  %v5738_v4 = vrot.slane %v5681_v7, %v13087_v57  ;;  %v5742_v48 = vrot.slane %v5681_v7, %v13090_v34  ;;  %v5754_v53 = vrot.slane %v5681_v7, %v8327_v20 }
 0x29d   :  { %v5762_v25 = vrot.slane %v5681_v7, %v8331_v23  ;;  %v5717_v38 = vrot.slane %v5680_v61, %v8329_v22  ;;  %v5746_v0 = vrot.slane %v5681_v7, %v8323_v18  ;;  %v5758_v6 = vrot.slane %v5681_v7, %v8329_v22 }
 0x29e   :  { %vm5691_vm11 = vcmp.lt.s32.totalorder %v8471_v43, %v5684_v45  ;;  %v5709_v8 = vrot.slane %v5680_v61, %v8325_v19  ;;  %v5725_v60 = vrot.slane %v5680_v61, %v8333_v24  ;;  %vm5687_vm12 = vcmp.lt.s32.totalorder %v8381_v55, %v5684_v45 }
 0x29f   :  { %vm5690_vm13 = vcmp.lt.s32.totalorder %v8437_v33, %v5684_v45  ;;  %v5750_v47 = vrot.slane %v5681_v7, %v8325_v19  ;;  %v5766_v49 = vrot.slane %v5681_v7, %v8333_v24  ;;  %v5779_v40 = vsel %vm5689_vm10, %v5713_v16, %v5754_v53 }
 0x2a0   :  { %v5781_v37 = vsel %vm5691_vm11, %v5721_v32, %v5762_v25  ;;  %vm5688_vm14 = vcmp.lt.s32.totalorder %v8392_v59, %v5684_v45  ;;  %vm5692_vm15 = vcmp.lt.s32.totalorder %v8523_v44, %v5684_v45  ;;  %v5775_v52 = vsel %vm5685_vm8, %v5697_v2, %v5738_v4 }
 0x2a1   :  { %v5776_v11 = vsel %vm5686_vm9, %v5701_v30, %v5742_v48  ;;  %v5777_v54 = vsel %vm5687_vm12, %v5705_v3, %v5746_v0  ;;  %v5780_v5 = vsel %vm5690_vm13, %v5717_v38, %v5758_v6  ;;  %v5787_v29 = vadd.f32 %v5779_v40, %v5673_v15  ;;  %v5906_v30 = vld [vmem:[#allocation5 + $0x183] ss:$8 sm:$0xf] }
 0x2a2   :  { %v5789_v27 = vadd.f32 %v5781_v37, %v5675_v17  ;;  %v5671_v9 = vadd.f32 %v5663_v36, %v11869_v26  ;;  %v5672_v12 = vadd.f32 %v5664_v56, %v5558_v63  ;;  %v5674_v31 = vadd.f32 %v5666_v41, %v5560_v62  ;;  %v5907_v3 = vld [vmem:[#allocation5 + $0x183] ss:$8 sm:$0xf0] }
 0x2a3   :  { %v5794_v42 = vor.u32 %v5793_v39, %v5792_v50  ;;  %v5676_v1 = vadd.f32 %v5668_v35, %v5562_v58  ;;  %v5778_v51 = vsel %vm5688_vm14, %v5709_v8, %v5750_v47  ;;  %v5782_v61 = vsel %vm5692_vm15, %v5725_v60, %v5766_v49  ;;  %v5912_v50 = vpop.permute.xlu1 %5911 }
 0x2a4   :  { %v5783_v7 = vadd.f32 %v5775_v52, %v5669_v10  ;;  %v5784_v16 = vadd.f32 %v5776_v11, %v5670_v46  ;;  %v5785_v32 = vadd.f32 %v5777_v54, %v5671_v9  ;;  %v5788_v2 = vadd.f32 %v5780_v5, %v5674_v31 }
 0x2a5   :  { %v5795_v4 = vsub.f32 0.0, %v5794_v42  ;;  %v5827_v45 = vrot.slane %v5794_v42, %v8327_v20  ;;  %vm5799_vm0 = vcmp.lt.s32.totalorder %v8317_v14, %v5798_v13  ;;  %vm5800_vm1 = vcmp.lt.s32.totalorder %v8339_v28, %v5798_v13 }
 0x2a6   :  { %vm5801_vm2 = vcmp.lt.s32.totalorder %v8381_v55, %v5798_v13  ;;  %v5835_v26 = vrot.slane %v5794_v42, %v8331_v23  ;;  %vm5802_vm3 = vcmp.lt.s32.totalorder %v8392_v59, %v5798_v13  ;;  %vm5803_vm4 = vcmp.lt.s32.totalorder %v8426_v21, %v5798_v13 }
 0x2a7   :  { %vm5805_vm5 = vcmp.lt.s32.totalorder %v8471_v43, %v5798_v13  ;;  %v5811_v15 = vrot.slane %v5794_v42, %v13087_v57  ;;  %v5852_v63 = vrot.slane %v5795_v4, %v13087_v57  ;;  %v5868_v62 = vrot.slane %v5795_v4, %v8327_v20 }
 0x2a8   :  { %v5876_v17 = vrot.slane %v5795_v4, %v8331_v23  ;;  %v5815_v58 = vrot.slane %v5794_v42, %v13090_v34  ;;  %v5819_v36 = vrot.slane %v5794_v42, %v8323_v18  ;;  %v5856_v56 = vrot.slane %v5795_v4, %v13090_v34 }
 0x2a9   :  { %v5860_v41 = vrot.slane %v5795_v4, %v8323_v18  ;;  %v5831_v35 = vrot.slane %v5794_v42, %v8329_v22  ;;  %v5872_v10 = vrot.slane %v5795_v4, %v8329_v22  ;;  %vm5804_vm6 = vcmp.lt.s32.totalorder %v8437_v33, %v5798_v13 }
 0x2aa   :  { %v5893_v46 = vsel %vm5803_vm4, %v5827_v45, %v5868_v62  ;;  %v5823_v48 = vrot.slane %v5794_v42, %v8325_v19  ;;  %v5839_v53 = vrot.slane %v5794_v42, %v8333_v24  ;;  %v5864_v25 = vrot.slane %v5795_v4, %v8325_v19  ;;  %v6021_v62 = vld [vmem:[#allocation5 + $0x184] ss:$8 sm:$0xf0] }
 0x2ab   :  { %v5895_v38 = vsel %vm5805_vm5, %v5835_v26, %v5876_v17  ;;  %v5880_v0 = vrot.slane %v5795_v4, %v8333_v24  ;;  %vm5806_vm7 = vcmp.lt.s32.totalorder %v8523_v44, %v5798_v13  ;;  %v5889_v6 = vsel %vm5799_vm0, %v5811_v15, %v5852_v63  ;;  %v6020_v63 = vld [vmem:[#allocation5 + $0x184] ss:$8 sm:$0xf] }
 0x2ac   :  { %v5901_v8 = vadd.f32 %v5893_v46, %v5787_v29  ;;  %v5890_v60 = vsel %vm5800_vm1, %v5815_v58, %v5856_v56  ;;  %v5891_v47 = vsel %vm5801_vm2, %v5819_v36, %v5860_v41  ;;  %v5903_v49 = vadd.f32 %v5895_v38, %v5789_v27 }
 0x2ad   :  { %v5908_v40 = vor.u32 %v5907_v3, %v5906_v30  ;;  %v5894_v37 = vsel %vm5804_vm6, %v5831_v35, %v5872_v10  ;;  %v5786_v39 = vadd.f32 %v5778_v51, %v5672_v12  ;;  %v5790_v52 = vadd.f32 %v5782_v61, %v5676_v1 }
 0x2ae   :  { %v5892_v11 = vsel %vm5802_vm3, %v5823_v48, %v5864_v25  ;;  %v5896_v5 = vsel %vm5806_vm7, %v5839_v53, %v5880_v0  ;;  %v5897_v29 = vadd.f32 %v5889_v6, %v5783_v7  ;;  %v5898_v9 = vadd.f32 %v5890_v60, %v5784_v16  ;;  %v12006_v53 = vpop.permute.xlu1 %6025 }
 0x2af   :  { %v5909_v54 = vsub.f32 0.0, %v5908_v40  ;;  %v5899_v31 = vadd.f32 %v5891_v47, %v5785_v32  ;;  %v5902_v42 = vadd.f32 %v5894_v37, %v5788_v2  ;;  %v5941_v4 = vrot.slane %v5908_v40, %v8327_v20 }
 0x2b0   :  { %v5949_v27 = vrot.slane %v5908_v40, %v8331_v23  ;;  %vm5913_vm8 = vcmp.lt.s32.totalorder %v8317_v14, %v5912_v50  ;;  %vm5914_vm9 = vcmp.lt.s32.totalorder %v8339_v28, %v5912_v50  ;;  %vm5917_vm10 = vcmp.lt.s32.totalorder %v8426_v21, %v5912_v50 }
 0x2b1   :  { %v5982_v45 = vrot.slane %v5909_v54, %v8327_v20  ;;  %v5990_v12 = vrot.slane %v5909_v54, %v8331_v23  ;;  %v5925_v13 = vrot.slane %v5908_v40, %v13087_v57  ;;  %v5929_v1 = vrot.slane %v5908_v40, %v13090_v34 }
 0x2b2   :  { %vm5915_vm11 = vcmp.lt.s32.totalorder %v8381_v55, %v5912_v50  ;;  %vm5919_vm12 = vcmp.lt.s32.totalorder %v8471_v43, %v5912_v50  ;;  %v5933_v51 = vrot.slane %v5908_v40, %v8323_v18  ;;  %v5945_v61 = vrot.slane %v5908_v40, %v8329_v22 }
 0x2b3   :  { %v5966_v7 = vrot.slane %v5909_v54, %v13087_v57  ;;  %v5970_v16 = vrot.slane %v5909_v54, %v13090_v34  ;;  %v5974_v32 = vrot.slane %v5909_v54, %v8323_v18  ;;  %v5986_v2 = vrot.slane %v5909_v54, %v8329_v22 }
 0x2b4   :  { %v6007_v26 = vsel %vm5917_vm10, %v5941_v4, %v5982_v45  ;;  %v6009_v15 = vsel %vm5919_vm12, %v5949_v27, %v5990_v12  ;;  %v5937_v17 = vrot.slane %v5908_v40, %v8325_v19  ;;  %v5978_v58 = vrot.slane %v5909_v54, %v8325_v19  ;;  %v6134_v4 = vld [vmem:[#allocation5 + $0x185] ss:$8 sm:$0xf] }
 0x2b5   :  { %vm5916_vm13 = vcmp.lt.s32.totalorder %v8392_v59, %v5912_v50  ;;  %vm5918_vm14 = vcmp.lt.s32.totalorder %v8437_v33, %v5912_v50  ;;  %v5953_v36 = vrot.slane %v5908_v40, %v8333_v24  ;;  %v5994_v56 = vrot.slane %v5909_v54, %v8333_v24  ;;  %v6135_v27 = vld [vmem:[#allocation5 + $0x185] ss:$8 sm:$0xf0] }
 0x2b6   :  { %v6015_v41 = vadd.f32 %v6007_v26, %v5901_v8  ;;  %v6017_v35 = vadd.f32 %v6009_v15, %v5903_v49  ;;  %vm5920_vm15 = vcmp.lt.s32.totalorder %v8523_v44, %v5912_v50  ;;  %v6003_v10 = vsel %vm5913_vm8, %v5925_v13, %v5966_v7  ;;  %v12059_v7 = vpop.permute.xlu0 %6139 }
 0x2b7   :  { %v6004_v46 = vsel %vm5914_vm9, %v5929_v1, %v5970_v16  ;;  %v12002_v30 = vor.u32 %v6021_v62, %v6020_v63  ;;  %v6005_v3 = vsel %vm5915_vm11, %v5933_v51, %v5974_v32  ;;  %v6008_v48 = vsel %vm5918_vm14, %v5945_v61, %v5986_v2  ;;  %v12061_v16 = vpop.permute.xlu1 %6253 }
 0x2b8   :  { %v12008_v25 = vadd.f32 %v5892_v11, %v5786_v39  ;;  %v5904_v38 = vadd.f32 %v5896_v5, %v5790_v52  ;;  %v12010_v0 = vsel %vm5916_vm13, %v5937_v17, %v5978_v58  ;;  %v6010_v8 = vsel %vm5920_vm15, %v5953_v36, %v5994_v56  ;;  %v6248_v36 = vld [vmem:[#allocation5 + $0x186] ss:$8 sm:$0xf] }
 0x2b9   :  { %v12013_v6 = vsub.f32 0.0, %v12002_v30  ;;  %v12015_v60 = vadd.f32 %v6003_v10, %v5897_v29  ;;  %v12017_v47 = vadd.f32 %v6004_v46, %v5898_v9  ;;  %v6055_v49 = vrot.slane %v12002_v30, %v8327_v20  ;;  %v6249_v10 = vld [vmem:[#allocation5 + $0x186] ss:$8 sm:$0xf0] }
 0x2ba   :  { %v12021_v40 = vadd.f32 %v6005_v3, %v5899_v31  ;;  %v12023_v37 = vadd.f32 %v6008_v48, %v5902_v42  ;;  %v6063_v50 = vrot.slane %v12002_v30, %v8331_v23  ;;  %vm6031_vm0 = vcmp.lt.s32.totalorder %v8426_v21, %v12006_v53 }
 0x2bb   :  { %v6096_v39 = vrot.slane %v12013_v6, %v8327_v20  ;;  %v6104_v52 = vrot.slane %v12013_v6, %v8331_v23  ;;  %vm6027_vm1 = vcmp.lt.s32.totalorder %v8317_v14, %v12006_v53  ;;  %vm6033_vm2 = vcmp.lt.s32.totalorder %v8471_v43, %v12006_v53 }
 0x2bc   :  { %v6039_v11 = vrot.slane %v12002_v30, %v13087_v57  ;;  %v6047_v54 = vrot.slane %v12002_v30, %v8323_v18  ;;  %v6059_v5 = vrot.slane %v12002_v30, %v8329_v22  ;;  %vm6029_vm3 = vcmp.lt.s32.totalorder %v8381_v55, %v12006_v53 }
 0x2bd   :  { %v6080_v29 = vrot.slane %v12013_v6, %v13087_v57  ;;  %v6088_v9 = vrot.slane %v12013_v6, %v8323_v18  ;;  %v6100_v31 = vrot.slane %v12013_v6, %v8329_v22  ;;  %v6121_v42 = vsel %vm6031_vm0, %v6055_v49, %v6096_v39  ;;  %v12120_v39 = vpop.permute.xlu1 %6367 }
 0x2be   :  { %v6067_v45 = vrot.slane %v12002_v30, %v8333_v24  ;;  %v6108_v12 = vrot.slane %v12013_v6, %v8333_v24  ;;  %vm6032_vm4 = vcmp.lt.s32.totalorder %v8437_v33, %v12006_v53  ;;  %v6123_v13 = vsel %vm6033_vm2, %v6063_v50, %v6104_v52 }
 0x2bf   :  { %v6018_v1 = vadd.f32 %v6010_v8, %v5904_v38  ;;  %vm6034_vm5 = vcmp.lt.s32.totalorder %v8523_v44, %v12006_v53  ;;  %v6129_v51 = vadd.f32 %v6121_v42, %v6015_v41  ;;  %v6131_v61 = vadd.f32 %v6123_v13, %v6017_v35 }
 0x2c0   :  { %v6043_v32 = vrot.slane %v12002_v30, %v13090_v34  ;;  %v6051_v2 = vrot.slane %v12002_v30, %v8325_v19  ;;  %v6084_v26 = vrot.slane %v12013_v6, %v13090_v34  ;;  %vm6028_vm6 = vcmp.lt.s32.totalorder %v8339_v28, %v12006_v53 }
 0x2c1   :  { %vm6030_vm7 = vcmp.lt.s32.totalorder %v8392_v59, %v12006_v53  ;;  %v12073_v15 = vor.u32 %v6135_v27, %v6134_v4  ;;  %v6092_v63 = vrot.slane %v12013_v6, %v8325_v19  ;;  %v6117_v62 = vsel %vm6027_vm1, %v6039_v11, %v6080_v29  ;;  %v6362_v53 = vld [vmem:[#allocation5 + $0x187] ss:$8 sm:$0xf] }
 0x2c2   :  { %v6119_v17 = vsel %vm6029_vm3, %v6047_v54, %v6088_v9  ;;  %v6122_v58 = vsel %vm6032_vm4, %v6059_v5, %v6100_v31  ;;  %v6124_v56 = vsel %vm6034_vm5, %v6067_v45, %v6108_v12  ;;  %vm6141_vm8 = vcmp.lt.s32.totalorder %v8317_v14, %v12059_v7 }
 0x2c3   :  { %v12090_v41 = vsub.f32 0.0, %v12073_v15  ;;  %v6169_v35 = vrot.slane %v12073_v15, %v8327_v20  ;;  %v6177_v46 = vrot.slane %v12073_v15, %v8331_v23  ;;  %vm6143_vm9 = vcmp.lt.s32.totalorder %v8381_v55, %v12059_v7 }
 0x2c4   :  { %vm6145_vm10 = vcmp.lt.s32.totalorder %v8426_v21, %v12059_v7  ;;  %vm6147_vm11 = vcmp.lt.s32.totalorder %v8471_v43, %v12059_v7  ;;  %v6153_v30 = vrot.slane %v12073_v15, %v13087_v57  ;;  %v6161_v3 = vrot.slane %v12073_v15, %v8323_v18 }
 0x2c5   :  { %v6173_v48 = vrot.slane %v12073_v15, %v8329_v22  ;;  %v6210_v38 = vrot.slane %v12090_v41, %v8327_v20  ;;  %v6194_v6 = vrot.slane %v12090_v41, %v13087_v57  ;;  %v6202_v8 = vrot.slane %v12090_v41, %v8323_v18 }
 0x2c6   :  { %v6218_v49 = vrot.slane %v12090_v41, %v8331_v23  ;;  %v12118_v50 = vor.u32 %v6249_v10, %v6248_v36  ;;  %v6181_v52 = vrot.slane %v12073_v15, %v8333_v24  ;;  %v6214_v11 = vrot.slane %v12090_v41, %v8329_v22 }
 0x2c7   :  { %v6222_v54 = vrot.slane %v12090_v41, %v8333_v24  ;;  %v6235_v5 = vsel %vm6145_vm10, %v6169_v35, %v6210_v38  ;;  %v6125_v29 = vadd.f32 %v6117_v62, %v12015_v60  ;;  %vm6146_vm12 = vcmp.lt.s32.totalorder %v8437_v33, %v12059_v7 }
 0x2c8   :  { %vm6148_vm13 = vcmp.lt.s32.totalorder %v8523_v44, %v12059_v7  ;;  %v6237_v9 = vsel %vm6147_vm11, %v6177_v46, %v6218_v49  ;;  %v6127_v31 = vadd.f32 %v6119_v17, %v12021_v40  ;;  %v6130_v42 = vadd.f32 %v6122_v58, %v12023_v37 }
 0x2c9   :  { %v6243_v4 = vadd.f32 %v6235_v5, %v6129_v51  ;;  %v6245_v27 = vadd.f32 %v6237_v9, %v6131_v61  ;;  %v6132_v45 = vadd.f32 %v6124_v56, %v6018_v1  ;;  %v6231_v60 = vsel %vm6141_vm8, %v6153_v30, %v6194_v6  ;;  %v6476_v6 = vld [vmem:[#allocation5 + $0x1c0] ss:$8 sm:$0xf] }
 0x2ca   :  { %v6233_v12 = vsel %vm6143_vm9, %v6161_v3, %v6202_v8  ;;  %v12145_v13 = vsub.f32 0.0, %v12118_v50  ;;  %v12149_v62 = vadd.f32 %v12010_v0, %v12008_v25  ;;  %v6236_v40 = vsel %vm6146_vm12, %v6173_v48, %v6214_v11  ;;  %v12167_v0 = vpop.permute.xlu1 %6595  ;;  %v6477_v8 = vld [vmem:[#allocation5 + $0x1c0] ss:$8 sm:$0xf0] }
 0x2cb   :  { %v6238_v37 = vsel %vm6148_vm13, %v6181_v52, %v6222_v54  ;;  %v6283_v1 = vrot.slane %v12118_v50, %v8327_v20  ;;  %v12156_v51 = vsel %vm6028_vm6, %v6043_v32, %v6084_v26  ;;  %v12161_v61 = vsel %vm6030_vm7, %v6051_v2, %v6092_v63  ;;  %v6363_v2 = vld [vmem:[#allocation5 + $0x187] ss:$8 sm:$0xf0] }
 0x2cc   :  { %v6291_v17 = vrot.slane %v12118_v50, %v8331_v23  ;;  %v6324_v25 = vrot.slane %v12145_v13, %v8327_v20  ;;  %v12169_v58 = vadd.f32 %v6231_v60, %v6125_v29  ;;  %v12171_v36 = vadd.f32 %v6233_v12, %v6127_v31 }
 0x2cd   :  { %v6332_v32 = vrot.slane %v12145_v13, %v8331_v23  ;;  %vm6255_vm14 = vcmp.lt.s32.totalorder %v8317_v14, %v12061_v16  ;;  %v12177_v26 = vadd.f32 %v6236_v40, %v6130_v42  ;;  %v12179_v63 = vadd.f32 %v6238_v37, %v6132_v45 }
 0x2ce   :  { %vm6259_vm15 = vcmp.lt.s32.totalorder %v8426_v21, %v12061_v16  ;;  %vm6261_vm0 = vcmp.lt.s32.totalorder %v8471_v43, %v12061_v16  ;;  %v6267_v56 = vrot.slane %v12118_v50, %v13087_v57  ;;  %v6275_v35 = vrot.slane %v12118_v50, %v8323_v18  ;;  %v12212_v31 = vpop.permute.xlu1 %6709 }
 0x2cf   :  { %13399 = vst [vmem:[#allocation12_spill] sm:$0xff] %v12179_v63  ;;  %v6287_v10 = vrot.slane %v12118_v50, %v8329_v22  ;;  %v6349_v46 = vsel %vm6259_vm15, %v6283_v1, %v6324_v25  ;;  %v6295_v30 = vrot.slane %v12118_v50, %v8333_v24  ;;  %v6351_v3 = vsel %vm6261_vm0, %v6291_v17, %v6332_v32 }
 0x2d0   :  { %v6357_v48 = vadd.f32 %v6349_v46, %v6243_v4  ;;  %v12193_v38 = vor.u32 %v6363_v2, %v6362_v53  ;;  %vm6142_vm1 = vcmp.lt.s32.totalorder %v8339_v28, %v12059_v7  ;;  %v6308_v49 = vrot.slane %v12145_v13, %v13087_v57 }
 0x2d1   :  { %v6316_v52 = vrot.slane %v12145_v13, %v8323_v18  ;;  %vm6256_vm2 = vcmp.lt.s32.totalorder %v8339_v28, %v12061_v16  ;;  %v6359_v11 = vadd.f32 %v6351_v3, %v6245_v27  ;;  %v6328_v54 = vrot.slane %v12145_v13, %v8329_v22  ;;  %v12222_v27 = vpop.permute.xlu0 %6481 }
 0x2d2   :  { %v12206_v5 = vsub.f32 0.0, %v12193_v38  ;;  %v6397_v29 = vrot.slane %v12193_v38, %v8327_v20  ;;  %v6405_v9 = vrot.slane %v12193_v38, %v8331_v23  ;;  %v6336_v42 = vrot.slane %v12145_v13, %v8333_v24 }
 0x2d3   :  { %vm6373_vm3 = vcmp.lt.s32.totalorder %v8426_v21, %v12120_v39  ;;  %vm6375_vm4 = vcmp.lt.s32.totalorder %v8471_v43, %v12120_v39  ;;  %v12220_v4 = vor.u32 %v6477_v8, %v6476_v6  ;;  %vm6257_vm5 = vcmp.lt.s32.totalorder %v8381_v55, %v12061_v16 }
 0x2d4   :  { %vm6260_vm6 = vcmp.lt.s32.totalorder %v8437_v33, %v12061_v16  ;;  %v6438_v45 = vrot.slane %v12206_v5, %v8327_v20  ;;  %v6446_v60 = vrot.slane %v12206_v5, %v8331_v23  ;;  %vm6262_vm7 = vcmp.lt.s32.totalorder %v8523_v44, %v12061_v16 }
 0x2d5   :  { %v12235_v12 = vsub.f32 0.0, %v12220_v4  ;;  %v6511_v40 = vrot.slane %v12220_v4, %v8327_v20  ;;  %v6519_v37 = vrot.slane %v12220_v4, %v8331_v23  ;;  %vm6487_vm8 = vcmp.lt.s32.totalorder %v8426_v21, %v12222_v27  ;;  %v7275_v21 = vld [vmem:[#allocation5 + $0x1c7] ss:$8 sm:$0xf0] }
 0x2d6   :  { %v6463_v1 = vsel %vm6373_vm3, %v6397_v29, %v6438_v45  ;;  %v6465_v17 = vsel %vm6375_vm4, %v6405_v9, %v6446_v60  ;;  %vm6489_vm9 = vcmp.lt.s32.totalorder %v8471_v43, %v12222_v27  ;;  %v12248_v25 = vsel %vm6255_vm14, %v6267_v56, %v6308_v49  ;;  %v12264_v29 = vpop.permute.xlu1 %6937  ;;  %v6704_v9 = vld [vmem:[#allocation5 + $0x1c2] ss:$8 sm:$0xf] }
 0x2d7   :  { %v12250_v32 = vsel %vm6257_vm5, %v6275_v35, %v6316_v52  ;;  %v6552_v53 = vrot.slane %v12235_v12, %v8327_v20  ;;  %v6560_v2 = vrot.slane %v12235_v12, %v8331_v23  ;;  %v12256_v46 = vsel %vm6260_vm6, %v6287_v10, %v6328_v54  ;;  %v6590_v10 = vld [vmem:[#allocation5 + $0x1c1] ss:$8 sm:$0xf] }
 0x2d8   :  { %13400 = vst [vmem:[#allocation13_spill] sm:$0xff] %v12256_v46  ;;  %v12258_v3 = vsel %vm6262_vm7, %v6295_v30, %v6336_v42  ;;  %v12260_v6 = vadd.f32 %v6463_v1, %v6357_v48  ;;  %v12262_v8 = vadd.f32 %v6465_v17, %v6359_v11  ;;  %v6126_v49 = vadd.f32 %v12156_v51, %v12017_v47  ;;  %v6591_v54 = vld [vmem:[#allocation5 + $0x1c1] ss:$8 sm:$0xf0] }
 0x2d9   :  { %13401 = vst [vmem:[#allocation23_spill] sm:$0xff] %v12258_v3  ;;  %v12266_v56 = vsel %vm6487_vm8, %v6511_v40, %v6552_v53  ;;  %v12268_v35 = vsel %vm6489_vm9, %v6519_v37, %v6560_v2  ;;  %v6157_v52 = vrot.slane %v12073_v15, %v13090_v34  ;;  %v6198_v30 = vrot.slane %v12090_v41, %v13090_v34  ;;  %v6705_v42 = vld [vmem:[#allocation5 + $0x1c2] ss:$8 sm:$0xf0]  ;;  %v12300_v2 = vpop.permute.xlu0 %6823 }
 0x2da   :  { %13402 = vst [vmem:[#allocation20_spill] sm:$0xff] %v12260_v6  ;;  %13403 = vst [vmem:[#allocation54_spill] sm:$0xff] %v12262_v8  ;;  %v6271_v48 = vrot.slane %v12118_v50, %v13090_v34  ;;  %v6312_v11 = vrot.slane %v12145_v13, %v13090_v34  ;;  %vm6370_vm10 = vcmp.lt.s32.totalorder %v8339_v28, %v12120_v39  ;;  %v6818_v17 = vld [vmem:[#allocation5 + $0x1c3] ss:$8 sm:$0xf]  ;;  %v12306_v43 = vpop.permute.xlu1 %7051 }
 0x2db   :  { %13404 = vst [vmem:[#allocation25_spill] sm:$0xff] %v12266_v56  ;;  %13405 = vst [vmem:[#allocation22_spill] sm:$0xff] %v12268_v35  ;;  %v6385_v47 = vrot.slane %v12193_v38, %v13090_v34  ;;  %v6426_v51 = vrot.slane %v12206_v5, %v13090_v34  ;;  %vm6484_vm11 = vcmp.lt.s32.totalorder %v8339_v28, %v12222_v27  ;;  %v6819_v53 = vld [vmem:[#allocation5 + $0x1c3] ss:$8 sm:$0xf0] }
 0x2dc   :  { %v6499_v45 = vrot.slane %v12220_v4, %v13090_v34  ;;  %v6232_v60 = vsel %vm6142_vm1, %v6157_v52, %v6198_v30  ;;  %v6346_v40 = vsel %vm6256_vm2, %v6271_v48, %v6312_v11  ;;  %v6540_v37 = vrot.slane %v12235_v12, %v13090_v34  ;;  %v6932_v52 = vld [vmem:[#allocation5 + $0x1c4] ss:$8 sm:$0xf]  ;;  %v7046_v48 = vld [vmem:[#allocation5 + $0x1c5] ss:$8 sm:$0xf] }
 0x2dd   :  { %v12298_v1 = vor.u32 %v6591_v54, %v6590_v10  ;;  %v6240_v23 = vadd.f32 %v6232_v60, %v6126_v49  ;;  %v6460_v35 = vsel %vm6370_vm10, %v6385_v47, %v6426_v51  ;;  %vm6598_vm12 = vcmp.lt.s32.totalorder %v8339_v28, %v12167_v0  ;;  %v6933_v30 = vld [vmem:[#allocation5 + $0x1c4] ss:$8 sm:$0xf0]  ;;  %v7047_v51 = vld [vmem:[#allocation5 + $0x1c5] ss:$8 sm:$0xf0] }
 0x2de   :  { %v12304_v8 = vor.u32 %v6705_v42, %v6704_v9  ;;  %v6574_v10 = vsel %vm6484_vm11, %v6499_v45, %v6540_v37  ;;  %vm6712_vm13 = vcmp.lt.s32.totalorder %v8339_v28, %v12212_v31  ;;  %v12323_v47 = vor.u32 %v6819_v53, %v6818_v17 }
 0x2df   :  { %v12312_v54 = vsub.f32 0.0, %v12298_v1  ;;  %v6613_v49 = vrot.slane %v12298_v1, %v13090_v34  ;;  %v6354_v11 = vadd.f32 %v6346_v40, %v6240_v23  ;;  %vm6144_vm14 = vcmp.lt.s32.totalorder %v8392_v59, %v12059_v7  ;;  %v7160_v23 = vld [vmem:[#allocation5 + $0x1c6] ss:$8 sm:$0xf] }
 0x2e0   :  { %v12319_v9 = vsub.f32 0.0, %v12304_v8  ;;  %v6727_v42 = vrot.slane %v12304_v8, %v13090_v34  ;;  %vm6826_vm15 = vcmp.lt.s32.totalorder %v8339_v28, %v12300_v2  ;;  %v12331_v60 = vor.u32 %v6933_v30, %v6932_v52  ;;  %v7161_v40 = vld [vmem:[#allocation5 + $0x1c6] ss:$8 sm:$0xf0]  ;;  %v12344_v30 = vpop.permute.xlu0 %7165 }
 0x2e1   :  { %v6654_v45 = vrot.slane %v12312_v54, %v13090_v34  ;;  %vm6940_vm0 = vcmp.lt.s32.totalorder %v8339_v28, %v12264_v29  ;;  %vm6258_vm1 = vcmp.lt.s32.totalorder %v8392_v59, %v12061_v16  ;;  %v6468_v37 = vadd.f32 %v6460_v35, %v6354_v11  ;;  %v7274_v52 = vld [vmem:[#allocation5 + $0x1c7] ss:$8 sm:$0xf] }
 0x2e2   :  { %v6768_v17 = vrot.slane %v12319_v9, %v13090_v34  ;;  %v12340_v53 = vsub.f32 0.0, %v12323_v47  ;;  %v6841_v20 = vrot.slane %v12323_v47, %v13090_v34  ;;  %v12350_v6 = vsub.f32 0.0, %v12331_v60 }
 0x2e3   :  { %v6688_v56 = vsel %vm6598_vm12, %v6613_v49, %v6654_v45  ;;  %v6955_v35 = vrot.slane %v12331_v60, %v13090_v34  ;;  %v12354_v11 = vor.u32 %v7047_v51, %v7046_v48  ;;  %v6582_v24 = vadd.f32 %v6574_v10, %v6468_v37  ;;  %v12363_v49 = vpop.permute.xlu1 %7279 }
 0x2e4   :  { %v6802_v3 = vsel %vm6712_vm13, %v6727_v42, %v6768_v17  ;;  %v6882_v63 = vrot.slane %v12340_v53, %v13090_v34  ;;  %vm7054_vm2 = vcmp.lt.s32.totalorder %v8339_v28, %v12306_v43  ;;  %v6996_v45 = vrot.slane %v12350_v6, %v13090_v34 }
 0x2e5   :  { %v12368_v48 = vsub.f32 0.0, %v12354_v11  ;;  %v7069_v10 = vrot.slane %v12354_v11, %v13090_v34  ;;  %v12372_v51 = vor.u32 %v7161_v40, %v7160_v23  ;;  %v6696_v42 = vadd.f32 %v6688_v56, %v6582_v24 }
 0x2e6   :  { %v6916_v37 = vsel %vm6826_vm15, %v6841_v20, %v6882_v63  ;;  %vm7168_vm3 = vcmp.lt.s32.totalorder %v8339_v28, %v12344_v30  ;;  %v12379_v17 = vor.u32 %v7275_v21, %v7274_v52  ;;  %v7030_v44 = vsel %vm6940_vm0, %v6955_v35, %v6996_v45 }
 0x2e7   :  { %v7110_v22 = vrot.slane %v12368_v48, %v13090_v34  ;;  %v12387_v23 = vsub.f32 0.0, %v12372_v51  ;;  %v7183_v24 = vrot.slane %v12372_v51, %v13090_v34  ;;  %v6810_v56 = vadd.f32 %v6802_v3, %v6696_v42 }
 0x2e8   :  { %v12392_v20 = vsub.f32 0.0, %v12379_v17  ;;  %vm7282_vm4 = vcmp.lt.s32.totalorder %v8339_v28, %v12363_v49  ;;  %v7297_v21 = vrot.slane %v12379_v17, %v13090_v34  ;;  %v6128_v52 = vadd.f32 %v12161_v61, %v12149_v62 }
 0x2e9   :  { %v7144_v63 = vsel %vm7054_vm2, %v7069_v10, %v7110_v22  ;;  %v7224_v40 = vrot.slane %v12387_v23, %v13090_v34  ;;  %v6165_v3 = vrot.slane %v12073_v15, %v8325_v19  ;;  %v6924_v35 = vadd.f32 %v6916_v37, %v6810_v56 }
 0x2ea   :  { %v7338_v45 = vrot.slane %v12392_v20, %v13090_v34  ;;  %v6206_v42 = vrot.slane %v12090_v41, %v8325_v19  ;;  %v6279_v46 = vrot.slane %v12118_v50, %v8325_v19  ;;  %v6320_v62 = vrot.slane %v12145_v13, %v8325_v19 }
 0x2eb   :  { %v7258_v22 = vsel %vm7168_vm3, %v7183_v24, %v7224_v40  ;;  %vm6372_vm5 = vcmp.lt.s32.totalorder %v8392_v59, %v12120_v39  ;;  %v6393_v15 = vrot.slane %v12193_v38, %v8325_v19  ;;  %v7038_v34 = vadd.f32 %v7030_v44, %v6924_v35 }
 0x2ec   :  { %v7372_v61 = vsel %vm7282_vm4, %v7297_v21, %v7338_v45  ;;  %v6234_v41 = vsel %vm6144_vm14, %v6165_v3, %v6206_v42  ;;  %v6434_v50 = vrot.slane %v12206_v5, %v8325_v19  ;;  %v6348_v13 = vsel %vm6258_vm1, %v6279_v46, %v6320_v62 }
 0x2ed   :  { %v6242_v28 = vadd.f32 %v6234_v41, %v6128_v52  ;;  %vm6486_vm6 = vcmp.lt.s32.totalorder %v8392_v59, %v12222_v27  ;;  %v6507_v10 = vrot.slane %v12220_v4, %v8325_v19  ;;  %v7152_v44 = vadd.f32 %v7144_v63, %v7038_v34 }
 0x2ee   :  { %v6462_v37 = vsel %vm6372_vm5, %v6393_v15, %v6434_v50  ;;  %v6548_v7 = vrot.slane %v12235_v12, %v8325_v19  ;;  %vm6600_vm7 = vcmp.lt.s32.totalorder %v8392_v59, %v12167_v0  ;;  %vm6369_vm8 = vcmp.lt.s32.totalorder %v8317_v14, %v12120_v39 }
 0x2ef   :  { %vm6483_vm9 = vcmp.lt.s32.totalorder %v8317_v14, %v12222_v27  ;;  %v6356_v16 = vadd.f32 %v6348_v13, %v6242_v28  ;;  %v6621_v46 = vrot.slane %v12298_v1, %v8325_v19  ;;  %v6662_v24 = vrot.slane %v12312_v54, %v8325_v19 }
 0x2f0   :  { %vm6714_vm10 = vcmp.lt.s32.totalorder %v8392_v59, %v12212_v31  ;;  %v7266_v56 = vadd.f32 %v7258_v22, %v7152_v44  ;;  %v6576_v21 = vsel %vm6486_vm6, %v6507_v10, %v6548_v7  ;;  %v6735_v63 = vrot.slane %v12304_v8, %v8325_v19 }
 0x2f1   :  { %v6776_v40 = vrot.slane %v12319_v9, %v8325_v19  ;;  %v6470_v52 = vadd.f32 %v6462_v37, %v6356_v16  ;;  %v6690_v3 = vsel %vm6600_vm7, %v6621_v46, %v6662_v24  ;;  %vm6828_vm11 = vcmp.lt.s32.totalorder %v8392_v59, %v12300_v2 }
 0x2f2   :  { %v6849_v35 = vrot.slane %v12323_v47, %v8325_v19  ;;  %v7380_v45 = vadd.f32 %v7372_v61, %v7266_v56  ;;  %v6890_v22 = vrot.slane %v12340_v53, %v8325_v19  ;;  %vm6942_vm12 = vcmp.lt.s32.totalorder %v8392_v59, %v12264_v29 }
 0x2f3   :  { %v6804_v42 = vsel %vm6714_vm10, %v6735_v63, %v6776_v40  ;;  %v6584_v62 = vadd.f32 %v6576_v21, %v6470_v52  ;;  %v6963_v15 = vrot.slane %v12331_v60, %v8325_v19  ;;  %v7004_v34 = vrot.slane %v12350_v6, %v8325_v19 }
 0x2f4   :  { %vm7056_vm13 = vcmp.lt.s32.totalorder %v8392_v59, %v12306_v43  ;;  %v7831_v41 = vclamps-f32 %v7380_v45, 3.0  ;;  %v6918_v50 = vsel %vm6828_vm11, %v6849_v35, %v6890_v22  ;;  %v7077_v61 = vrot.slane %v12354_v11, %v8325_v19 }
 0x2f5   :  { %v7118_v28 = vrot.slane %v12368_v48, %v8325_v19  ;;  %v6698_v13 = vadd.f32 %v6690_v3, %v6584_v62  ;;  %v7032_v10 = vsel %vm6942_vm12, %v6963_v15, %v7004_v34  ;;  %vm7170_vm14 = vcmp.lt.s32.totalorder %v8392_v59, %v12344_v30 }
 0x2f6   :  { %v7191_v44 = vrot.slane %v12372_v51, %v8325_v19  ;;  %7596 = vmatprep.mubr.f32.mxu0 %v7831_v41  ;;  %v7232_v7 = vrot.slane %v12387_v23, %v8325_v19  ;;  %vm7284_vm15 = vcmp.lt.s32.totalorder %v8392_v59, %v12363_v49  ;;  %v7305_v16 = vrot.slane %v12379_v17, %v8325_v19 }
 0x2f7   :  { %v7146_v37 = vsel %vm7056_vm13, %v7077_v61, %v7118_v28  ;;  %v6812_v46 = vadd.f32 %v6804_v42, %v6698_v13  ;;  %v7346_v24 = vrot.slane %v12392_v20, %v8325_v19  ;;  %v6353_v56 = vadd.f32 %v12248_v25, %v12169_v58 }
 0x2f8   :  { %v6381_v21 = vrot.slane %v12193_v38, %v13087_v57  ;;  %v7260_v63 = vsel %vm7170_vm14, %v7191_v44, %v7232_v7  ;;  %v6422_v40 = vrot.slane %v12206_v5, %v13087_v57  ;;  %v6495_v59 = vrot.slane %v12220_v4, %v13087_v57 }
 0x2f9   :  { %v6536_v52 = vrot.slane %v12235_v12, %v13087_v57  ;;  %v6926_v3 = vadd.f32 %v6918_v50, %v6812_v46  ;;  %v7374_v35 = vsel %vm7284_vm15, %v7305_v16, %v7346_v24  ;;  %vm6597_vm0 = vcmp.lt.s32.totalorder %v8317_v14, %v12167_v0 }
 0x2fa   :  { %v6609_v19 = vrot.slane %v12298_v1, %v13087_v57  ;;  %vm6371_vm1 = vcmp.lt.s32.totalorder %v8381_v55, %v12120_v39  ;;  %v6459_v58 = vsel %vm6369_vm8, %v6381_v21, %v6422_v40  ;;  %v6650_v45 = vrot.slane %v12312_v54, %v13087_v57 }
 0x2fb   :  { %v6573_v25 = vsel %vm6483_vm9, %v6495_v59, %v6536_v52  ;;  %vm6711_vm2 = vcmp.lt.s32.totalorder %v8317_v14, %v12212_v31  ;;  %vm6485_vm3 = vcmp.lt.s32.totalorder %v8381_v55, %v12222_v27  ;;  %v7040_v42 = vadd.f32 %v7032_v10, %v6926_v3 }
 0x2fc   :  { %v6467_v22 = vadd.f32 %v6459_v58, %v6353_v56  ;;  %v6723_v62 = vrot.slane %v12304_v8, %v13087_v57  ;;  %v6764_v15 = vrot.slane %v12319_v9, %v13087_v57  ;;  %v6687_v34 = vsel %vm6597_vm0, %v6609_v19, %v6650_v45 }
 0x2fd   :  { %vm6825_vm4 = vcmp.lt.s32.totalorder %v8317_v14, %v12300_v2  ;;  %v6837_v41 = vrot.slane %v12323_v47, %v13087_v57  ;;  %v6878_v50 = vrot.slane %v12340_v53, %v13087_v57  ;;  %v7154_v61 = vadd.f32 %v7146_v37, %v7040_v42 }
 0x2fe   :  { %v6581_v28 = vadd.f32 %v6573_v25, %v6467_v22  ;;  %v6801_v13 = vsel %vm6711_vm2, %v6723_v62, %v6764_v15  ;;  %vm6939_vm5 = vcmp.lt.s32.totalorder %v8317_v14, %v12264_v29  ;;  %v6951_v44 = vrot.slane %v12331_v60, %v13087_v57 }
 0x2ff   :  { %v6915_v10 = vsel %vm6825_vm4, %v6837_v41, %v6878_v50  ;;  %v6992_v7 = vrot.slane %v12350_v6, %v13087_v57  ;;  %vm7053_vm6 = vcmp.lt.s32.totalorder %v8317_v14, %v12306_v43  ;;  %v7268_v16 = vadd.f32 %v7260_v63, %v7154_v61 }
 0x300   :  { %v6695_v46 = vadd.f32 %v6687_v34, %v6581_v28  ;;  %v7065_v37 = vrot.slane %v12354_v11, %v13087_v57  ;;  %v7106_v24 = vrot.slane %v12368_v48, %v13087_v57  ;;  %vm7167_vm7 = vcmp.lt.s32.totalorder %v8317_v14, %v12344_v30 }
 0x301   :  { %v7029_v56 = vsel %vm6939_vm5, %v6951_v44, %v6992_v7  ;;  %v7179_v21 = vrot.slane %v12372_v51, %v13087_v57  ;;  %v7220_v40 = vrot.slane %v12387_v23, %v13087_v57  ;;  %v7382_v59 = vadd.f32 %v7374_v35, %v7268_v16 }
 0x302   :  { %v6809_v52 = vadd.f32 %v6801_v13, %v6695_v46  ;;  %v7143_v63 = vsel %vm7053_vm6, %v7065_v37, %v7106_v24  ;;  %vm7281_vm8 = vcmp.lt.s32.totalorder %v8317_v14, %v12363_v49  ;;  %v7293_v19 = vrot.slane %v12379_v17, %v13087_v57 }
 0x303   :  { %v7257_v3 = vsel %vm7167_vm7, %v7179_v21, %v7220_v40  ;;  %v7334_v58 = vrot.slane %v12392_v20, %v13087_v57  ;;  %v6355_v25 = vadd.f32 %v12250_v32, %v12171_v36  ;;  %v7833_v45 = vclamps-f32 %v7382_v59, 3.0 }
 0x304   :  { %v6923_v42 = vadd.f32 %v6915_v10, %v6809_v52  ;;  %v6389_v35 = vrot.slane %v12193_v38, %v8323_v18  ;;  %v6430_v22 = vrot.slane %v12206_v5, %v8323_v18  ;;  %v6503_v14 = vrot.slane %v12220_v4, %v8323_v18 }
 0x305   :  { %v7371_v62 = vsel %vm7281_vm8, %v7293_v19, %v7334_v58  ;;  %v6544_v15 = vrot.slane %v12235_v12, %v8323_v18  ;;  %vm6599_vm9 = vcmp.lt.s32.totalorder %v8381_v55, %v12167_v0  ;;  %7666 = vmatprep.mubr.f32.mxu1 %v7833_v45  ;;  %v6617_v32 = vrot.slane %v12298_v1, %v8323_v18 }
 0x306   :  { %v7037_v57 = vadd.f32 %v7029_v56, %v6923_v42  ;;  %v6461_v36 = vsel %vm6371_vm1, %v6389_v35, %v6430_v22  ;;  %v6658_v34 = vrot.slane %v12312_v54, %v8323_v18  ;;  %vm6374_vm10 = vcmp.lt.s32.totalorder %v8437_v33, %v12120_v39 }
 0x307   :  { %vm6488_vm11 = vcmp.lt.s32.totalorder %v8437_v33, %v12222_v27  ;;  %v6469_v41 = vadd.f32 %v6461_v36, %v6355_v25  ;;  %v6575_v50 = vsel %vm6485_vm3, %v6503_v14, %v6544_v15  ;;  %vm6713_vm12 = vcmp.lt.s32.totalorder %v8381_v55, %v12212_v31  ;;  %v13406_v36 = vld [vmem:[#allocation13_spill] sm:$0xff] }
 0x308   :  { %v6731_v61 = vrot.slane %v12304_v8, %v8323_v18  ;;  %v7151_v28 = vadd.f32 %v7143_v63, %v7037_v57  ;;  %v6689_v13 = vsel %vm6599_vm9, %v6617_v32, %v6658_v34  ;;  %v6772_v10 = vrot.slane %v12319_v9, %v8323_v18  ;;  %v7498_v57 = vld [vmem:[#allocation7 + $0x2f0] sm:$0xff]  ;;  %v13407_v34 = vld [vmem:[#allocation15_spill] sm:$0xff] }
 0x309   :  { %vm6827_vm13 = vcmp.lt.s32.totalorder %v8381_v55, %v12300_v2  ;;  %v6583_v44 = vadd.f32 %v6575_v50, %v6469_v41  ;;  %v6845_v7 = vrot.slane %v12323_v47, %v8323_v18  ;;  %v6886_v16 = vrot.slane %v12340_v53, %v8323_v18 }
 0x30a   :  { %vm6941_vm14 = vcmp.lt.s32.totalorder %v8381_v55, %v12264_v29  ;;  %v7265_v46 = vadd.f32 %v7257_v3, %v7151_v28  ;;  %v6803_v37 = vsel %vm6713_vm12, %v6731_v61, %v6772_v10  ;;  %v6959_v24 = vrot.slane %v12331_v60, %v8323_v18  ;;  %v7482_v28 = vld [vmem:[#allocation7 + $0x270] sm:$0xff] }
 0x30b   :  { %v7000_v56 = vrot.slane %v12350_v6, %v8323_v18  ;;  %v6697_v21 = vadd.f32 %v6689_v13, %v6583_v44  ;;  %v6917_v40 = vsel %vm6827_vm13, %v6845_v7, %v6886_v16  ;;  %vm7055_vm15 = vcmp.lt.s32.totalorder %v8381_v55, %v12306_v43  ;;  %v7497_v44 = vld [vmem:[#allocation7 + $0x2e8] sm:$0xff]  ;;  %v13408_v7 = vld [vmem:[#allocation21_spill] sm:$0xff] }
 0x30c   :  { %v7073_v59 = vrot.slane %v12354_v11, %v8323_v18  ;;  %v7379_v52 = vadd.f32 %v7371_v62, %v7265_v46  ;;  %v7114_v3 = vrot.slane %v12368_v48, %v8323_v18  ;;  %vm7169_vm0 = vcmp.lt.s32.totalorder %v8381_v55, %v12344_v30  ;;  %v7483_v62 = vld [vmem:[#allocation7 + $0x278] sm:$0xff] }
 0x30d   :  { %v7031_v63 = vsel %vm6941_vm14, %v6959_v24, %v7000_v56  ;;  %v6811_v19 = vadd.f32 %v6803_v37, %v6697_v21  ;;  %v7187_v58 = vrot.slane %v12372_v51, %v8323_v18  ;;  %v7228_v25 = vrot.slane %v12387_v23, %v8323_v18  ;;  %v7481_v24 = vld [vmem:[#allocation7 + $0x268] sm:$0xff] }
 0x30e   :  { %vm7283_vm1 = vcmp.lt.s32.totalorder %v8381_v55, %v12363_v49  ;;  %v7830_v45 = vclamps-f32 %v7379_v52, 3.0  ;;  %v7145_v42 = vsel %vm7055_vm15, %v7073_v59, %v7114_v3  ;;  %v7301_v35 = vrot.slane %v12379_v17, %v8323_v18  ;;  %v7496_v52 = vld [vmem:[#allocation7 + $0x2e0] sm:$0xff] }
 0x30f   :  { %v7342_v22 = vrot.slane %v12392_v20, %v8323_v18  ;;  %v6925_v14 = vadd.f32 %v6917_v40, %v6811_v19  ;;  %v7259_v15 = vsel %vm7169_vm0, %v7187_v58, %v7228_v25  ;;  %v6358_v32 = vadd.f32 %v13406_v36, %v12177_v26  ;;  %v7480_v19 = vld [vmem:[#allocation7 + $0x260] sm:$0xff] }
 0x310   :  { %v6401_v41 = vrot.slane %v12193_v38, %v13407_v34  ;;  %7597 = vmatmul.mubr.f32.vlgmr.msra.gmra.mxu0 %v7830_v45  ;;  %v6442_v50 = vrot.slane %v12206_v5, %v13407_v34  ;;  %v6515_v61 = vrot.slane %v12220_v4, %v13407_v34  ;;  %v6556_v18 = vrot.slane %v12235_v12, %v13407_v34 }
 0x311   :  { %v7373_v55 = vsel %vm7283_vm1, %v7301_v35, %v7342_v22  ;;  %v7039_v13 = vadd.f32 %v7031_v63, %v6925_v14  ;;  %7909 = vmatpush3.msra.mxu0 %v7483_v62  ;;  %vm6602_vm2 = vcmp.lt.s32.totalorder %v8437_v33, %v12167_v0  ;;  %v6629_v26 = vrot.slane %v12298_v1, %v13407_v34  ;;  %v7495_v35 = vld [vmem:[#allocation7 + $0x2d8] sm:$0xff] }
 0x312   :  { %v6670_v10 = vrot.slane %v12312_v54, %v13407_v34  ;;  %vm6376_vm3 = vcmp.lt.s32.totalorder %v13408_v7, %v12120_v39  ;;  %vm6490_vm4 = vcmp.lt.s32.totalorder %v13408_v7, %v12222_v27  ;;  %7910 = vmatprep.subr.mxu0 %v7498_v57  ;;  %v6464_v16 = vsel %vm6374_vm10, %v6401_v41, %v6442_v50  ;;  %v7494_v41 = vld [vmem:[#allocation7 + $0x2d0] sm:$0xff] }
 0x313   :  { %v6578_v46 = vsel %vm6488_vm11, %v6515_v61, %v6556_v18  ;;  %vm6716_vm5 = vcmp.lt.s32.totalorder %v8437_v33, %v12212_v31  ;;  %v6743_v37 = vrot.slane %v12304_v8, %v13407_v34  ;;  %v7153_v56 = vadd.f32 %v7145_v42, %v7039_v13  ;;  %7911 = vmatpush3.msra.mxu0 %v7482_v28  ;;  %v7515_v28 = vld [vmem:[#allocation7 + $0x378] sm:$0xff] }
 0x314   :  { %v6472_v21 = vadd.f32 %v6464_v16, %v6358_v32  ;;  %v6692_v40 = vsel %vm6602_vm2, %v6629_v26, %v6670_v10  ;;  %v6784_v59 = vrot.slane %v12319_v9, %v13407_v34  ;;  %vm6830_vm6 = vcmp.lt.s32.totalorder %v8437_v33, %v12300_v2  ;;  %7912 = vmatprep.subr.mxu0 %v7497_v44 }
 0x315   :  { %v6857_v63 = vrot.slane %v12323_v47, %v13407_v34  ;;  %v6898_v3 = vrot.slane %v12340_v53, %v13407_v34  ;;  %vm6944_vm7 = vcmp.lt.s32.totalorder %v8437_v33, %v12264_v29  ;;  %v7267_v58 = vadd.f32 %v7259_v15, %v7153_v56  ;;  %7913 = vmatpush3.msra.mxu0 %v7481_v24  ;;  %v7479_v15 = vld [vmem:[#allocation7 + $0x258] sm:$0xff]  ;;  %v13410_v24 = vld [vmem:[#allocation23_spill] sm:$0xff] }
 0x316   :  { %v6586_v25 = vadd.f32 %v6578_v46, %v6472_v21  ;;  %v6806_v45 = vsel %vm6716_vm5, %v6743_v37, %v6784_v59  ;;  %v6971_v42 = vrot.slane %v12331_v60, %v13407_v34  ;;  %v7012_v62 = vrot.slane %v12350_v6, %v13407_v34  ;;  %7914 = vmatprep.subr.mxu0 %v7496_v52  ;;  %v7530_v46 = vld [vmem:[#allocation7 + $0x3f0] sm:$0xff]  ;;  %v13409_v37 = vld [vmem:[#allocation12_spill] sm:$0xff] }
 0x317   :  { %v6920_v22 = vsel %vm6830_vm6, %v6857_v63, %v6898_v3  ;;  %vm7058_vm8 = vcmp.lt.s32.totalorder %v8437_v33, %v12306_v43  ;;  %v7085_v14 = vrot.slane %v12354_v11, %v13407_v34  ;;  %v7381_v57 = vadd.f32 %v7373_v55, %v7267_v58  ;;  %7915 = vmatpush3.msra.mxu0 %v7480_v19  ;;  %v13411_v21 = vld [vmem:[#allocation17_spill] sm:$0xff]  ;;  %v7529_v58 = vld [vmem:[#allocation7 + $0x3e8] sm:$0xff] }
 0x318   :  { %v6700_v36 = vadd.f32 %v6692_v40, %v6586_v25  ;;  %v7126_v32 = vrot.slane %v12368_v48, %v13407_v34  ;;  %vm7172_vm9 = vcmp.lt.s32.totalorder %v8437_v33, %v12344_v30  ;;  %v7034_v50 = vsel %vm6944_vm7, %v6971_v42, %v7012_v62  ;;  %7916 = vmatprep.subr.mxu0 %v7495_v35  ;;  %v7528_v62 = vld [vmem:[#allocation7 + $0x3e0] sm:$0xff] }
 0x319   :  { %v7199_v61 = vrot.slane %v12372_v51, %v13407_v34  ;;  %v7240_v18 = vrot.slane %v12387_v23, %v13407_v34  ;;  %vm7286_vm10 = vcmp.lt.s32.totalorder %v8437_v33, %v12363_v49  ;;  %v7832_v55 = vclamps-f32 %v7381_v57, 3.0  ;;  %7917 = vmatpush3.msra.mxu0 %v7479_v15  ;;  %v7512_v57 = vld [vmem:[#allocation7 + $0x360] sm:$0xff] }
 0x31a   :  { %v6814_v13 = vadd.f32 %v6806_v45, %v6700_v36  ;;  %v7148_v26 = vsel %vm7058_vm8, %v7085_v14, %v7126_v32  ;;  %v7313_v10 = vrot.slane %v12379_v17, %v13407_v34  ;;  %v7354_v16 = vrot.slane %v12392_v20, %v13407_v34  ;;  %7918 = vmatprep.subr.mxu0 %v7494_v41  ;;  %v7514_v34 = vld [vmem:[#allocation7 + $0x370] sm:$0xff]  ;;  %v7513_v45 = vld [vmem:[#allocation7 + $0x368] sm:$0xff] }
 0x31b   :  { %v7262_v44 = vsel %vm7172_vm9, %v7199_v61, %v7240_v18  ;;  %v6360_v56 = vadd.f32 %v13410_v24, %v13409_v37  ;;  %v6409_v40 = vrot.slane %v12193_v38, %v13411_v21  ;;  %7667 = vmatmul.mubr.f32.vlgmr.msra.gmra.mxu1 %v7832_v55  ;;  %v6450_v52 = vrot.slane %v12206_v5, %v13411_v21 }
 0x31c   :  { %v6928_v59 = vadd.f32 %v6920_v22, %v6814_v13  ;;  %v6523_v63 = vrot.slane %v12220_v4, %v13411_v21  ;;  %v6564_v3 = vrot.slane %v12235_v12, %v13411_v21  ;;  %7944 = vmatpush3.msra.mxu1 %v7515_v28  ;;  %v7376_v19 = vsel %vm7286_vm10, %v7313_v10, %v7354_v16  ;;  %v13412_v4 = vld [vmem:[#allocation18_spill] sm:$0xff]  ;;  %v7478_v16 = vld [vmem:[#allocation7 + $0x250] sm:$0xff] }
 0x31d   :  { %vm6604_vm11 = vcmp.lt.s32.totalorder %v13408_v7, %v12167_v0  ;;  %v6637_v38 = vrot.slane %v12298_v1, %v13411_v21  ;;  %v6678_v5 = vrot.slane %v12312_v54, %v13411_v21  ;;  %vm6601_vm12 = vcmp.lt.s32.totalorder %v13412_v4, %v12167_v0  ;;  %7945 = vmatprep.subr.mxu1 %v7530_v46  ;;  %v7511_v28 = vld [vmem:[#allocation7 + $0x358] sm:$0xff] }
 0x31e   :  { %v7042_v12 = vadd.f32 %v7034_v50, %v6928_v59  ;;  %v6466_v33 = vsel %vm6376_vm3, %v6409_v40, %v6450_v52  ;;  %v6580_v25 = vsel %vm6490_vm4, %v6523_v63, %v6564_v3  ;;  %vm6718_vm13 = vcmp.lt.s32.totalorder %v13408_v7, %v12212_v31  ;;  %7946 = vmatpush3.msra.mxu1 %v7514_v34  ;;  %v7527_v50 = vld [vmem:[#allocation7 + $0x3d8] sm:$0xff]  ;;  %v7510_v40 = vld [vmem:[#allocation7 + $0x350] sm:$0xff]  ;;  %v7493_v59 = vld [vmem:[#allocation7 + $0x2c8] sm:$0xff] }
 0x31f   :  { %vm6715_vm14 = vcmp.lt.s32.totalorder %v13412_v4, %v12212_v31  ;;  %v6474_v42 = vadd.f32 %v6466_v33, %v6360_v56  ;;  %v6694_v35 = vsel %vm6604_vm11, %v6637_v38, %v6678_v5  ;;  %v6751_v22 = vrot.slane %v12304_v8, %v13411_v21  ;;  %7947 = vmatprep.subr.mxu1 %v7529_v58  ;;  %v7525_v34 = vld [vmem:[#allocation7 + $0x3c8] sm:$0xff] }
 0x320   :  { %v6792_v39 = vrot.slane %v12319_v9, %v13411_v21  ;;  %v7156_v14 = vadd.f32 %v7148_v26, %v7042_v12  ;;  %vm6832_vm15 = vcmp.lt.s32.totalorder %v13408_v7, %v12300_v2  ;;  %v6865_v27 = vrot.slane %v12323_v47, %v13411_v21  ;;  %7948 = vmatpush3.msra.mxu1 %v7513_v45  ;;  %v7477_v58 = vld [vmem:[#allocation7 + $0x248] sm:$0xff] }
 0x321   :  { %v6906_v15 = vrot.slane %v12340_v53, %v13411_v21  ;;  %v6588_v36 = vadd.f32 %v6580_v25, %v6474_v42  ;;  %vm6946_vm0 = vcmp.lt.s32.totalorder %v13408_v7, %v12264_v29  ;;  %v6979_v41 = vrot.slane %v12331_v60, %v13411_v21  ;;  %7949 = vmatprep.subr.mxu1 %v7528_v62  ;;  %v7509_v12 = vld [vmem:[#allocation7 + $0x348] sm:$0xff]  ;;  %v13414_v25 = vld [vmem:[#allocation25_spill] sm:$0xff] }
 0x322   :  { %v6808_v32 = vsel %vm6718_vm13, %v6751_v22, %v6792_v39  ;;  %v7270_v61 = vadd.f32 %v7262_v44, %v7156_v14  ;;  %v7020_v55 = vrot.slane %v12350_v6, %v13411_v21  ;;  %vm7060_vm1 = vcmp.lt.s32.totalorder %v13408_v7, %v12306_v43  ;;  %7950 = vmatpush3.msra.mxu1 %v7512_v57  ;;  %v7526_v44 = vld [vmem:[#allocation7 + $0x3d0] sm:$0xff]  ;;  %v13413_v33 = vld [vmem:[#allocation20_spill] sm:$0xff]  ;;  %v7524_v22 = vld [vmem:[#allocation7 + $0x3c0] sm:$0xff] }
 0x323   :  { %v6922_v18 = vsel %vm6832_vm15, %v6865_v27, %v6906_v15  ;;  %v6702_v13 = vadd.f32 %v6694_v35, %v6588_v36  ;;  %v7093_v26 = vrot.slane %v12354_v11, %v13411_v21  ;;  %v7134_v10 = vrot.slane %v12368_v48, %v13411_v21  ;;  %7951 = vmatprep.subr.mxu1 %v7527_v50  ;;  %v7492_v35 = vld [vmem:[#allocation7 + $0x2c0] sm:$0xff]  ;;  %v13415_v39 = vld [vmem:[#allocation14_spill] sm:$0xff] }
 0x324   :  { %vm7174_vm2 = vcmp.lt.s32.totalorder %v13408_v7, %v12344_v30  ;;  %v7384_v46 = vadd.f32 %v7376_v19, %v7270_v61  ;;  %v7036_v37 = vsel %vm6946_vm0, %v6979_v41, %v7020_v55  ;;  %v7207_v24 = vrot.slane %v12372_v51, %v13411_v21  ;;  %7952 = vmatpush3.msra.mxu1 %v7511_v28  ;;  %v7476_v27 = vld [vmem:[#allocation7 + $0x240] sm:$0xff]  ;;  %v7491_v41 = vld [vmem:[#allocation7 + $0x2b8] sm:$0xff] }
 0x325   :  { %v7248_v56 = vrot.slane %v12387_v23, %v13411_v21  ;;  %v6816_v52 = vadd.f32 %v6808_v32, %v6702_v13  ;;  %v7150_v63 = vsel %vm7060_vm1, %v7093_v26, %v7134_v10  ;;  %vm7288_vm3 = vcmp.lt.s32.totalorder %v13408_v7, %v12363_v49  ;;  %7953 = vmatprep.subr.mxu1 %v7526_v44  ;;  %v7508_v15 = vld [vmem:[#allocation7 + $0x340] sm:$0xff]  ;;  %v7523_v50 = vld [vmem:[#allocation7 + $0x3b8] sm:$0xff]  ;;  %v7490_v44 = vld [vmem:[#allocation7 + $0x2b0] sm:$0xff] }
 0x326   :  { %v7321_v3 = vrot.slane %v12379_v17, %v13411_v21  ;;  %v7835_v19 = vclamps-f32 %v7384_v46, 3.0  ;;  %v7362_v5 = vrot.slane %v12392_v20, %v13411_v21  ;;  %7919 = vmatpush3.msra.mxu0 %v7478_v16  ;;  %v6585_v45 = vadd.f32 %v13414_v25, %v13413_v33  ;;  %7954 = vmatpush3.msra.mxu1 %v7510_v40  ;;  %v13416_v7 = vld [vmem:[#allocation19_spill] sm:$0xff]  ;;  %v7507_v55 = vld [vmem:[#allocation7 + $0x338] sm:$0xff]  ;;  %v7522_v16 = vld [vmem:[#allocation7 + $0x3b0] sm:$0xff] }
 0x327   :  { %v7264_v38 = vsel %vm7174_vm2, %v7207_v24, %v7248_v56  ;;  %v6930_v42 = vadd.f32 %v6922_v18, %v6816_v52  ;;  %7920 = vmatprep.subr.mxu0 %v7493_v59  ;;  %v6625_v62 = vrot.slane %v12298_v1, %v13415_v39  ;;  %v6666_v14 = vrot.slane %v12312_v54, %v13415_v39  ;;  %v7475_v18 = vld [vmem:[#allocation7 + $0x238] sm:$0xff]  ;;  %v7506_v24 = vld [vmem:[#allocation7 + $0x330] sm:$0xff]  ;;  %v7488_v25 = vld [vmem:[#allocation7 + $0x2a0] sm:$0xff] }
 0x328   :  { %7736 = vmatprep.mubr.f32.mxu0 %v7835_v19  ;;  %v7378_v21 = vsel %vm7288_vm3, %v7321_v3, %v7362_v5  ;;  %7955 = vmatprep.subr.mxu1 %v7525_v34  ;;  %v6739_v57 = vrot.slane %v12304_v8, %v13415_v39  ;;  %v6780_v36 = vrot.slane %v12319_v9, %v13415_v39  ;;  %v7521_v3 = vld [vmem:[#allocation7 + $0x3a8] sm:$0xff] }
 0x329   :  { %v7044_v32 = vadd.f32 %v7036_v37, %v6930_v42  ;;  %7921 = vmatpush3.msra.mxu0 %v7477_v58  ;;  %7956 = vmatpush3.msra.mxu1 %v7509_v12  ;;  %v6691_v61 = vsel %vm6601_vm12, %v6625_v62, %v6666_v14  ;;  %vm6829_vm4 = vcmp.lt.s32.totalorder %v13412_v4, %v12300_v2  ;;  %v7474_v37 = vld [vmem:[#allocation7 + $0x230] sm:$0xff]  ;;  %v7473_v19 = vld [vmem:[#allocation7 + $0x228] sm:$0xff] }
 0x32a   :  { %vm6603_vm5 = vcmp.lt.s32.totalorder %v13416_v7, %v12167_v0  ;;  %7922 = vmatprep.subr.mxu0 %v7492_v35  ;;  %7957 = vmatprep.subr.mxu1 %v7524_v22  ;;  %v6699_v28 = vadd.f32 %v6691_v61, %v6585_v45  ;;  %v6805_v13 = vsel %vm6715_vm14, %v6739_v57, %v6780_v36  ;;  %v7505_v5 = vld [vmem:[#allocation7 + $0x328] sm:$0xff]  ;;  %v7520_v45 = vld [vmem:[#allocation7 + $0x3a0] sm:$0xff] }
 0x32b   :  { %v6853_v26 = vrot.slane %v12323_v47, %v13415_v39  ;;  %v7158_v10 = vadd.f32 %v7150_v63, %v7044_v32  ;;  %7923 = vmatpush3.msra.mxu0 %v7476_v27  ;;  %7958 = vmatpush3.msra.mxu1 %v7508_v15  ;;  %v6894_v46 = vrot.slane %v12340_v53, %v13415_v39  ;;  %v7489_v63 = vld [vmem:[#allocation7 + $0x2a8] sm:$0xff]  ;;  %v7472_v35 = vld [vmem:[#allocation7 + $0x220] sm:$0xff]  ;;  %v7487_v15 = vld [vmem:[#allocation7 + $0x298] sm:$0xff] }
 0x32c   :  { %vm6943_vm6 = vcmp.lt.s32.totalorder %v13412_v4, %v12264_v29  ;;  %vm6717_vm7 = vcmp.lt.s32.totalorder %v13416_v7, %v12212_v31  ;;  %7924 = vmatprep.subr.mxu0 %v7491_v41  ;;  %7959 = vmatprep.subr.mxu1 %v7523_v50  ;;  %v6813_v56 = vadd.f32 %v6805_v13, %v6699_v28  ;;  %v7504_v27 = vld [vmem:[#allocation7 + $0x320] sm:$0xff]  ;;  %v7519_v32 = vld [vmem:[#allocation7 + $0x398] sm:$0xff]  ;;  %v7486_v28 = vld [vmem:[#allocation7 + $0x290] sm:$0xff] }
 0x32d   :  { %v6967_v40 = vrot.slane %v12331_v60, %v13415_v39  ;;  %v7008_v59 = vrot.slane %v12350_v6, %v13415_v39  ;;  %v7272_v52 = vadd.f32 %v7264_v38, %v7158_v10  ;;  %7925 = vmatpush3.msra.mxu0 %v7475_v18  ;;  %7960 = vmatpush3.msra.mxu1 %v7507_v55  ;;  %v7471_v41 = vld [vmem:[#allocation7 + $0x218] sm:$0xff]  ;;  %v7484_v0 = vld [vmem:[#allocation7 + $0x280] sm:$0xff] }
 0x32e   :  { %v6919_v34 = vsel %vm6829_vm4, %v6853_v26, %v6894_v46  ;;  %vm7057_vm8 = vcmp.lt.s32.totalorder %v13412_v4, %v12306_v43  ;;  %7926 = vmatprep.subr.mxu0 %v7490_v44  ;;  %7961 = vmatprep.subr.mxu1 %v7522_v16  ;;  %v7081_v12 = vrot.slane %v12354_v11, %v13415_v39  ;;  %v7503_v55 = vld [vmem:[#allocation7 + $0x318] sm:$0xff]  ;;  %v13419_v44 = vld [vmem:[#allocation16_spill] sm:$0xff]  ;;  %v7500_v31 = vld [vmem:[#allocation7 + $0x300] sm:$0xff] }
 0x32f   :  { %v6927_v58 = vadd.f32 %v6919_v34, %v6813_v56  ;;  %v7033_v38 = vsel %vm6943_vm6, %v6967_v40, %v7008_v59  ;;  %v7386_v33 = vadd.f32 %v7378_v21, %v7272_v52  ;;  %7927 = vmatpush3.msra.mxu0 %v7474_v37  ;;  %7962 = vmatpush3.msra.mxu1 %v7506_v24  ;;  %v13417_v13 = vld [vmem:[#allocation54_spill] sm:$0xff]  ;;  %v7518_v37 = vld [vmem:[#allocation7 + $0x390] sm:$0xff]  ;;  %v7485_v52 = vld [vmem:[#allocation7 + $0x288] sm:$0xff] }
 0x330   :  { %v7122_v42 = vrot.slane %v12368_v48, %v13415_v39  ;;  %vm7171_vm9 = vcmp.lt.s32.totalorder %v13412_v4, %v12344_v30  ;;  %7928 = vmatprep.subr.mxu0 %v7489_v63  ;;  %7963 = vmatprep.subr.mxu1 %v7521_v3  ;;  %v7195_v62 = vrot.slane %v12372_v51, %v13415_v39  ;;  %v13418_v26 = vld [vmem:[#allocation22_spill] sm:$0xff]  ;;  %v7470_v24 = vld [vmem:[#allocation7 + $0x210] sm:$0xff]  ;;  %v7469_v63 = vld [vmem:[#allocation7 + $0x208] sm:$0xff] }
 0x331   :  { %v7041_v22 = vadd.f32 %v7033_v38, %v6927_v58  ;;  %v7236_v14 = vrot.slane %v12387_v23, %v13415_v39  ;;  %v7837_v21 = vclamps-f32 %v7386_v33, 3.0  ;;  %7929 = vmatpush3.msra.mxu0 %v7473_v19  ;;  %7964 = vmatpush3.msra.mxu1 %v7505_v5  ;;  %vm7285_vm10 = vcmp.lt.s32.totalorder %v13412_v4, %v12363_v49  ;;  %v7502_v59 = vld [vmem:[#allocation7 + $0x310] sm:$0xff]  ;;  %v7517_v4 = vld [vmem:[#allocation7 + $0x388] sm:$0xff]  ;;  %v7516_v58 = vld [vmem:[#allocation7 + $0x380] sm:$0xff] }
 0x332   :  { %v7147_v57 = vsel %vm7057_vm8, %v7081_v12, %v7122_v42  ;;  %v7309_v36 = vrot.slane %v12379_v17, %v13415_v39  ;;  %7930 = vmatprep.subr.mxu0 %v7488_v25  ;;  %7965 = vmatprep.subr.mxu1 %v7520_v45  ;;  %v7350_v18 = vrot.slane %v12392_v20, %v13415_v39  ;;  %v7501_v19 = vld [vmem:[#allocation7 + $0x308] sm:$0xff]  ;;  %v7468_v38 = vld [vmem:[#allocation7 + $0x200] sm:$0xff] }
 0x333   :  { %v7155_v50 = vadd.f32 %v7147_v57, %v7041_v22  ;;  %v7261_v61 = vsel %vm7171_vm9, %v7195_v62, %v7236_v14  ;;  %7806 = vmatprep.mubr.f32.mxu1 %v7837_v21  ;;  %7931 = vmatpush3.msra.mxu0 %v7472_v35  ;;  %v6587_v10 = vadd.f32 %v13418_v26, %v13417_v13 }
 0x334   :  { %v6633_v16 = vrot.slane %v12298_v1, %v13419_v44  ;;  %v6674_v46 = vrot.slane %v12312_v54, %v13419_v44  ;;  %7966 = vmatpush3.msra.mxu1 %v7504_v27  ;;  %7932 = vmatprep.subr.mxu0 %v7487_v15  ;;  %v7375_v39 = vsel %vm7285_vm10, %v7309_v36, %v7350_v18 }
 0x335   :  { %v7269_v56 = vadd.f32 %v7261_v61, %v7155_v50  ;;  %v6747_v40 = vrot.slane %v12304_v8, %v13419_v44  ;;  %7967 = vmatprep.subr.mxu1 %v7519_v32  ;;  %7933 = vmatpush3.msra.mxu0 %v7471_v41  ;;  %v6788_v54 = vrot.slane %v12319_v9, %v13419_v44 }
 0x336   :  { %v6693_v1 = vsel %vm6603_vm5, %v6633_v16, %v6674_v46  ;;  %vm6831_vm11 = vcmp.lt.s32.totalorder %v13416_v7, %v12300_v2  ;;  %7968 = vmatpush3.msra.mxu1 %v7503_v55  ;;  %7934 = vmatprep.subr.mxu0 %v7486_v28  ;;  %v6861_v34 = vrot.slane %v12323_v47, %v13419_v44 }
 0x337   :  { %v7383_v3 = vadd.f32 %v7375_v39, %v7269_v56  ;;  %v6701_v8 = vadd.f32 %v6693_v1, %v6587_v10  ;;  %7969 = vmatprep.subr.mxu1 %v7518_v37  ;;  %7935 = vmatpush3.msra.mxu0 %v7470_v24  ;;  %v6807_v9 = vsel %vm6717_vm7, %v6747_v40, %v6788_v54 }
 0x338   :  { %v6902_v5 = vrot.slane %v12340_v53, %v13419_v44  ;;  %vm6945_vm12 = vcmp.lt.s32.totalorder %v13416_v7, %v12264_v29  ;;  %7970 = vmatpush3.msra.mxu1 %v7502_v59  ;;  %7936 = vmatprep.subr.mxu0 %v7485_v52  ;;  %v6975_v47 = vrot.slane %v12331_v60, %v13419_v44 }
 0x339   :  { %v6815_v12 = vadd.f32 %v6807_v9, %v6701_v8  ;;  %v7016_v33 = vrot.slane %v12350_v6, %v13419_v44  ;;  %7971 = vmatprep.subr.mxu1 %v7517_v4  ;;  %7937 = vmatpush3.msra.mxu0 %v7469_v63  ;;  %vm7059_vm13 = vcmp.lt.s32.totalorder %v13416_v7, %v12306_v43  ;;  %v7834_v45 = vclamps-f32 %v7383_v3, 3.0 }
 0x33a   :  { %v6921_v53 = vsel %vm6831_vm11, %v6861_v34, %v6902_v5  ;;  %v7089_v25 = vrot.slane %v12354_v11, %v13419_v44  ;;  %7972 = vmatpush3.msra.mxu1 %v7501_v19  ;;  %7938 = vmatprep.subr.mxu0 %v7484_v0  ;;  %v7130_v42 = vrot.slane %v12368_v48, %v13419_v44 }
 0x33b   :  { %v6929_v60 = vadd.f32 %v6921_v53, %v6815_v12  ;;  %v7035_v6 = vsel %vm6945_vm12, %v6975_v47, %v7016_v33  ;;  %7973 = vmatprep.subr.mxu1 %v7516_v58  ;;  %7939 = vmatpush3.msra.mxu0 %v7468_v38  ;;  %vm7173_vm14 = vcmp.lt.s32.totalorder %v13416_v7, %v12344_v30 }
 0x33c   :  { %v7203_v2 = vrot.slane %v12372_v51, %v13419_v44  ;;  %v7244_v11 = vrot.slane %v12387_v23, %v13419_v44  ;;  %7974 = vmatpush3.msra.mxu1 %v7500_v31  ;;  %7737 = vmatmul.mubr.f32.vlgmr.msra.gmra.mxu0 %v7834_v45  ;;  %v7149_v29 = vsel %vm7059_vm13, %v7089_v25, %v7130_v42 }
 0x33d   :  { %v7043_v35 = vadd.f32 %v7035_v6, %v6929_v60  ;;  %vm7287_vm15 = vcmp.lt.s32.totalorder %v13416_v7, %v12363_v49  ;;  %v7317_v30 = vrot.slane %v12379_v17, %v13419_v44  ;;  %v7358_v51 = vrot.slane %v12392_v20, %v13419_v44 }
 0x33e   :  { %v7263_v48 = vsel %vm7173_vm14, %v7203_v2, %v7244_v11 }
 0x33f   :  { %v7157_v22 = vadd.f32 %v7149_v29, %v7043_v35  ;;  %v7377_v62 = vsel %vm7287_vm15, %v7317_v30, %v7358_v51 }
 0x341   :  { %v7271_v23 = vadd.f32 %v7263_v48, %v7157_v22 }
 0x343   :  { %v7385_v14 = vadd.f32 %v7377_v62, %v7271_v23 }
 0x345   :  { %v7836_v21 = vclamps-f32 %v7385_v14, 3.0 }
 0x347   :  { %7807 = vmatmul.mubr.f32.vlgmr.msra.gmra.mxu1 %v7836_v21 }
 0x3d0   :  { %v7870_v27 = vpop.f32.mrf.mxu0 }
 0x3d2   :  { %v7871_v43 = vpop.f32.mrf.mxu0 }
 0x3d3   :  { %v7872_v49 = vadd.f32 %v7871_v43, %v7870_v27 }
 0x3db   :  { %v7905_v15 = vpop.f32.mrf.mxu1 }
 0x3dd   :  { %v7906_v36 = vpop.f32.mrf.mxu1 }
 0x3de   :  { %v7907_v7 = vadd.f32 %v7906_v36, %v7905_v15 }
 0x3e0   :  { %v7669_v50 = vadd.f32 %v7907_v7, %v7872_v49 }
 0x3fc   :  { %v7940_v57 = vpop.f32.mrf.mxu0 }
 0x3fe   :  { %v7941_v32 = vpop.f32.mrf.mxu0 }
 0x3ff   :  { %v7942_v41 = vadd.f32 %v7941_v32, %v7940_v57 }
 0x401   :  { %v7739_v61 = vadd.f32 %v7942_v41, %v7669_v50 }
 0x407   :  { %v7975_v17 = vpop.f32.mrf.mxu1 }
 0x409   :  { %v7976_v18 = vpop.f32.mrf.mxu1 }
 0x40a   :  { %v7977_v20 = vadd.f32 %v7976_v18, %v7975_v17 }
 0x40c   :  { %v7809_v55 = vadd.f32 %v7977_v20, %v7739_v61 }
 0x40e   :  { %7813 = vst [vmem:[#allocation8] sm:$0xff] %v7809_v55 }
 0x40f   :  { %8189 = shalt.err (!%p8186_p5)
}
 0x410   :  { %7823 = dma.vmem_to_hbm [thread:$0]  %s7821_s2, 128, %s12883_s3, [#allocation4]  }
 0x411   :  { %8202 = dma.done.wait [#allocation4], 128  }
 0x412   :  { %8203 = vsyncadd [#allocation4], 4294967168 }
 0x413   :  { %7827 = vsyncpa [#allocation3], 1 }
 0x414   :  { %7828 = vsyncpa [#allocation6], 1 }
 0x415   :  { %7829 = vsyncpa [#allocation4], 1 }

</bundles_post_ra>
